<compile_context>
chip_gen: v7x
topology: tpu7x:2x2x1
jax: 0.10.0
libtpu: 0.0.40
codegen_flags: <defaults>
</compile_context>

<pallas_src>
import jax
import jax.numpy as jnp
from jax.experimental import pallas as pl
from jax.experimental.pallas import tpu as pltpu


LATENT_DIM = 100
LATENT_PAD = 128               # zero-padded contraction dim (lane/sublane aligned)
IMG_SHAPE = (1, 8, 8)          # (C, H, W) -- small doctest-style image
OUT_DIM = IMG_SHAPE[0] * IMG_SHAPE[1] * IMG_SHAPE[2]   # 64
OUT_PAD = 128                  # lane-dense padded output width
HIDDEN = (128, 256, 512, 1024)
BN_EPS = 0.8                   # BatchNorm1d(out_feat, 0.8) -> eps = 0.8
LRELU_SLOPE = 0.2


def _generator_kernel(z_ref,
                      w1_ref, b1_ref,
                      w2_ref, g2_ref, be2_ref,
                      w3_ref, g3_ref, be3_ref,
                      w4_ref, g4_ref, be4_ref,
                      w5_ref, b5_ref,
                      out_ref):
    """Whole MLP forward for one batch tile, all operands resident in VMEM."""
    batch = z_ref.shape[0]
    inv_b = 1.0 / batch

    def matmul(x, w_ref):
        # bf16 x bf16 MXU matmul, f32 accumulation.
        return jnp.dot(x.astype(jnp.bfloat16), w_ref[...],
                       preferred_element_type=jnp.float32)

    def leaky(x):
        return jnp.where(x > 0, x, LRELU_SLOPE * x)

    def bn_leaky(x, g_ref, be_ref):
        # Training-mode BatchNorm1d (biased variance), fused to scale/shift.
        s = jnp.sum(x, axis=0, keepdims=True)
        sq = jnp.sum(x * x, axis=0, keepdims=True)
        mean = s * inv_b
        var = sq * inv_b - mean * mean          # safe with eps = 0.8
        scale = g_ref[...] * jax.lax.rsqrt(var + BN_EPS)
        shift = be_ref[...] - mean * scale
        return leaky(x * scale + shift)

    h = leaky(matmul(z_ref[...], w1_ref) + b1_ref[...])          # (B, 128)
    h = bn_leaky(matmul(h, w2_ref), g2_ref, be2_ref)              # (B, 256)
    h = bn_leaky(matmul(h, w3_ref), g3_ref, be3_ref)              # (B, 512)
    h = bn_leaky(matmul(h, w4_ref), g4_ref, be4_ref)              # (B, 1024)
    out_ref[...] = jnp.tanh(matmul(h, w5_ref) + b5_ref[...])      # (B, OUT_PAD)


def init_params(key):
    """Deterministic synthetic parameters (bf16 weights, f32 bias/BN rows)."""
    dims = [LATENT_DIM, *HIDDEN, OUT_DIM]
    keys = jax.random.split(key, 13)
    params = {}
    # Linear weights, stored transposed vs PyTorch: (in, out).
    for i in range(5):
        fan_in, fan_out = dims[i], dims[i + 1]
        w = jax.random.normal(keys[i], (fan_in, fan_out), jnp.float32) * (fan_in ** -0.5)
        params[f"w{i+1}"] = w
    # Zero-pad for lane/contraction alignment (padding is exact, contributes 0).
    params["w1"] = jnp.pad(params["w1"], ((0, LATENT_PAD - LATENT_DIM), (0, 0)))
    params["w5"] = jnp.pad(params["w5"], ((0, 0), (0, OUT_PAD - OUT_DIM)))
    for i in range(1, 6):
        params[f"w{i}"] = params[f"w{i}"].astype(jnp.bfloat16)
    # Only layers 1 and 5 keep a bias (pre-BN biases are mathematically dead).
    params["b1"] = 0.1 * jax.random.normal(keys[5], (1, HIDDEN[0]), jnp.float32)
    b5 = 0.1 * jax.random.normal(keys[6], (1, OUT_DIM), jnp.float32)
    params["b5"] = jnp.pad(b5, ((0, 0), (0, OUT_PAD - OUT_DIM)))
    # BatchNorm affine params for layers 2, 3, 4 (non-trivial, to exercise the path).
    for j, (i, feat) in enumerate(zip((2, 3, 4), HIDDEN[1:])):
        params[f"g{i}"] = 1.0 + 0.1 * jax.random.normal(keys[7 + j], (1, feat), jnp.float32)
        params[f"be{i}"] = 0.1 * jax.random.normal(keys[10 + j], (1, feat), jnp.float32)
    return params


def generator_forward(z, params):
    """Pallas-backed forward pass. Returns (img, z) like the PyTorch module."""
    B = z.shape[0]
    assert B % 8 == 0, "batch must be a multiple of 8 (sublane alignment)"
    z_pad = jnp.pad(z, ((0, 0), (0, LATENT_PAD - LATENT_DIM)))
    flat_args = (
        z_pad,
        params["w1"], params["b1"],
        params["w2"], params["g2"], params["be2"],
        params["w3"], params["g3"], params["be3"],
        params["w4"], params["g4"], params["be4"],
        params["w5"], params["b5"],
    )
    vmem_spec = pl.BlockSpec(memory_space=pltpu.MemorySpace.VMEM)

    flops = 2 * B * (LATENT_PAD * 128 + 128 * 256 + 256 * 512 + 512 * 1024
                     + 1024 * OUT_PAD)
    bytes_accessed = sum(int(a.size) * a.dtype.itemsize for a in flat_args) \
        + B * OUT_PAD * 4
    cost = pl.CostEstimate(flops=flops,
                           transcendentals=B * OUT_PAD,
                           bytes_accessed=bytes_accessed)

    out_pad = pl.pallas_call(
        _generator_kernel,
        out_shape=jax.ShapeDtypeStruct((B, OUT_PAD), jnp.float32),
        in_specs=[vmem_spec] * len(flat_args),
        out_specs=vmem_spec,
        cost_estimate=cost,
    )(*flat_args)

    img = out_pad[:, :OUT_DIM].reshape(B, *IMG_SHAPE)   # NCHW, matches img.view(...)
    return img, z


def reference_forward(z, params):
    """Plain-JAX reference mirroring the kernel math (bf16 matmuls, f32 BN)."""
    B = z.shape[0]
    inv_b = 1.0 / B
    z_pad = jnp.pad(z, ((0, 0), (0, LATENT_PAD - LATENT_DIM)))

    def mm(x, w):
        return jnp.dot(x.astype(jnp.bfloat16), w, preferred_element_type=jnp.float32)

    def leaky(x):
        return jnp.where(x > 0, x, LRELU_SLOPE * x)

    def bn_leaky(x, g, be):
        mean = jnp.sum(x, axis=0, keepdims=True) * inv_b
        var = jnp.sum(x * x, axis=0, keepdims=True) * inv_b - mean * mean
        scale = g * jax.lax.rsqrt(var + BN_EPS)
        shift = be - mean * scale
        return leaky(x * scale + shift)

    h = leaky(mm(z_pad, params["w1"]) + params["b1"])
    h = bn_leaky(mm(h, params["w2"]), params["g2"], params["be2"])
    h = bn_leaky(mm(h, params["w3"]), params["g3"], params["be3"])
    h = bn_leaky(mm(h, params["w4"]), params["g4"], params["be4"])
    out = jnp.tanh(mm(h, params["w5"]) + params["b5"])
    return out[:, :OUT_DIM].reshape(B, *IMG_SHAPE), z


if __name__ == "__main__":
    key = jax.random.PRNGKey(0)
    k_param, k_z = jax.random.split(key)

    # Batch of 128: fills a 128-row MXU tile and amortizes the weight DMA.
    B = 128
    params = init_params(k_param)
    z = jax.random.normal(k_z, (B, LATENT_DIM), jnp.float32)

    img, z_out = generator_forward(z, params)
    img = jax.block_until_ready(img)

    # Sanity check vs. plain-JAX reference (bf16 matmuls -> relaxed tolerance).
    img_ref, _ = reference_forward(z, params)
    assert img.shape == (B,) + IMG_SHAPE
    max_err = float(jnp.max(jnp.abs(img - img_ref)))
    assert jnp.allclose(img, img_ref, atol=2e-2, rtol=0.0), max_err
    assert jnp.array_equal(z_out, z)

    print("KERNEL_OK")
</pallas_src>

<mosaic_0001>
module attributes {stable_mosaic.version = 11 : i64} {
  func.func @_generator_kernel(%arg0: memref<128x128xf32, #tpu.memory_space<vmem>>, %arg1: memref<128x128xbf16, #tpu.memory_space<vmem>>, %arg2: memref<1x128xf32, #tpu.memory_space<vmem>>, %arg3: memref<128x256xbf16, #tpu.memory_space<vmem>>, %arg4: memref<1x256xf32, #tpu.memory_space<vmem>>, %arg5: memref<1x256xf32, #tpu.memory_space<vmem>>, %arg6: memref<256x512xbf16, #tpu.memory_space<vmem>>, %arg7: memref<1x512xf32, #tpu.memory_space<vmem>>, %arg8: memref<1x512xf32, #tpu.memory_space<vmem>>, %arg9: memref<512x1024xbf16, #tpu.memory_space<vmem>>, %arg10: memref<1x1024xf32, #tpu.memory_space<vmem>>, %arg11: memref<1x1024xf32, #tpu.memory_space<vmem>>, %arg12: memref<1024x128xbf16, #tpu.memory_space<vmem>>, %arg13: memref<1x128xf32, #tpu.memory_space<vmem>>, %arg14: memref<128x128xf32, #tpu.memory_space<vmem>>) attributes {dimension_semantics = [], scalar_prefetch = 0 : i64, scratch_operands = 0 : i64, tpu.core_type = #tpu.core_type<tc>} {
    %c0 = arith.constant 0 : index
    %c0_0 = arith.constant 0 : index
    %0 = vector.load %arg0[%c0, %c0_0] : memref<128x128xf32, #tpu.memory_space<vmem>>, vector<128x128xf32>
    %1 = arith.truncf %0 : vector<128x128xf32> to vector<128x128xbf16>
    %c0_1 = arith.constant 0 : index
    %c0_2 = arith.constant 0 : index
    %2 = vector.load %arg1[%c0_1, %c0_2] : memref<128x128xbf16, #tpu.memory_space<vmem>>, vector<128x128xbf16>
    %cst = arith.constant dense<0.000000e+00> : vector<128x128xf32>
    %3 = tpu.matmul %1, %2, %cst {dimension_numbers = #tpu.dot_dimension_numbers<[1], [0], [0], [1], [0, 0, 1, 1], [], []>} : vector<128x128xbf16>, vector<128x128xbf16>, vector<128x128xf32> -> vector<128x128xf32>
    %c0_3 = arith.constant 0 : index
    %c0_4 = arith.constant 0 : index
    %4 = vector.load %arg2[%c0_3, %c0_4] : memref<1x128xf32, #tpu.memory_space<vmem>>, vector<1x128xf32>
    %5 = vector.broadcast %4 : vector<1x128xf32> to vector<128x128xf32>
    %6 = arith.addf %3, %5 : vector<128x128xf32>
    %cst_5 = arith.constant 0.000000e+00 : f32
    %7 = vector.broadcast %cst_5 : f32 to vector<128x128xf32>
    %8 = arith.cmpf ogt, %6, %7 : vector<128x128xf32>
    %cst_6 = arith.constant 2.000000e-01 : f32
    %9 = vector.broadcast %cst_6 : f32 to vector<128x128xf32>
    %10 = arith.mulf %9, %6 : vector<128x128xf32>
    %11 = arith.select %8, %6, %10 : vector<128x128xi1>, vector<128x128xf32>
    %12 = arith.truncf %11 : vector<128x128xf32> to vector<128x128xbf16>
    %c0_7 = arith.constant 0 : index
    %c0_8 = arith.constant 0 : index
    %13 = vector.load %arg3[%c0_7, %c0_8] : memref<128x256xbf16, #tpu.memory_space<vmem>>, vector<128x256xbf16>
    %cst_9 = arith.constant dense<0.000000e+00> : vector<128x256xf32>
    %14 = tpu.matmul %12, %13, %cst_9 {dimension_numbers = #tpu.dot_dimension_numbers<[1], [0], [0], [1], [0, 0, 1, 1], [], []>} : vector<128x128xbf16>, vector<128x256xbf16>, vector<128x256xf32> -> vector<128x256xf32>
    %cst_10 = arith.constant dense<0.000000e+00> : vector<256xf32>
    %15 = vector.multi_reduction <add>, %14, %cst_10 [0] : vector<128x256xf32> to vector<256xf32>
    %16 = vector.shape_cast %15 : vector<256xf32> to vector<1x256xf32>
    %17 = arith.mulf %14, %14 : vector<128x256xf32>
    %cst_11 = arith.constant dense<0.000000e+00> : vector<256xf32>
    %18 = vector.multi_reduction <add>, %17, %cst_11 [0] : vector<128x256xf32> to vector<256xf32>
    %19 = vector.shape_cast %18 : vector<256xf32> to vector<1x256xf32>
    %cst_12 = arith.constant 7.812500e-03 : f32
    %20 = vector.broadcast %cst_12 : f32 to vector<1x256xf32>
    %21 = arith.mulf %16, %20 : vector<1x256xf32>
    %cst_13 = arith.constant 7.812500e-03 : f32
    %22 = vector.broadcast %cst_13 : f32 to vector<1x256xf32>
    %23 = arith.mulf %19, %22 : vector<1x256xf32>
    %24 = arith.mulf %21, %21 : vector<1x256xf32>
    %25 = arith.subf %23, %24 : vector<1x256xf32>
    %c0_14 = arith.constant 0 : index
    %c0_15 = arith.constant 0 : index
    %26 = vector.load %arg4[%c0_14, %c0_15] : memref<1x256xf32, #tpu.memory_space<vmem>>, vector<1x256xf32>
    %cst_16 = arith.constant 8.000000e-01 : f32
    %27 = vector.broadcast %cst_16 : f32 to vector<1x256xf32>
    %28 = arith.addf %25, %27 : vector<1x256xf32>
    %29 = math.rsqrt %28 : vector<1x256xf32>
    %30 = arith.mulf %26, %29 : vector<1x256xf32>
    %c0_17 = arith.constant 0 : index
    %c0_18 = arith.constant 0 : index
    %31 = vector.load %arg5[%c0_17, %c0_18] : memref<1x256xf32, #tpu.memory_space<vmem>>, vector<1x256xf32>
    %32 = arith.mulf %21, %30 : vector<1x256xf32>
    %33 = arith.subf %31, %32 : vector<1x256xf32>
    %34 = vector.broadcast %30 : vector<1x256xf32> to vector<128x256xf32>
    %35 = arith.mulf %14, %34 : vector<128x256xf32>
    %36 = vector.broadcast %33 : vector<1x256xf32> to vector<128x256xf32>
    %37 = arith.addf %35, %36 : vector<128x256xf32>
    %cst_19 = arith.constant 0.000000e+00 : f32
    %38 = vector.broadcast %cst_19 : f32 to vector<128x256xf32>
    %39 = arith.cmpf ogt, %37, %38 : vector<128x256xf32>
    %cst_20 = arith.constant 2.000000e-01 : f32
    %40 = vector.broadcast %cst_20 : f32 to vector<128x256xf32>
    %41 = arith.mulf %40, %37 : vector<128x256xf32>
    %42 = arith.select %39, %37, %41 : vector<128x256xi1>, vector<128x256xf32>
    %43 = arith.truncf %42 : vector<128x256xf32> to vector<128x256xbf16>
    %c0_21 = arith.constant 0 : index
    %c0_22 = arith.constant 0 : index
    %44 = vector.load %arg6[%c0_21, %c0_22] : memref<256x512xbf16, #tpu.memory_space<vmem>>, vector<256x512xbf16>
    %cst_23 = arith.constant dense<0.000000e+00> : vector<128x512xf32>
    %45 = tpu.matmul %43, %44, %cst_23 {dimension_numbers = #tpu.dot_dimension_numbers<[1], [0], [0], [1], [0, 0, 1, 1], [], []>} : vector<128x256xbf16>, vector<256x512xbf16>, vector<128x512xf32> -> vector<128x512xf32>
    %cst_24 = arith.constant dense<0.000000e+00> : vector<512xf32>
    %46 = vector.multi_reduction <add>, %45, %cst_24 [0] : vector<128x512xf32> to vector<512xf32>
    %47 = vector.shape_cast %46 : vector<512xf32> to vector<1x512xf32>
    %48 = arith.mulf %45, %45 : vector<128x512xf32>
    %cst_25 = arith.constant dense<0.000000e+00> : vector<512xf32>
    %49 = vector.multi_reduction <add>, %48, %cst_25 [0] : vector<128x512xf32> to vector<512xf32>
    %50 = vector.shape_cast %49 : vector<512xf32> to vector<1x512xf32>
    %cst_26 = arith.constant 7.812500e-03 : f32
    %51 = vector.broadcast %cst_26 : f32 to vector<1x512xf32>
    %52 = arith.mulf %47, %51 : vector<1x512xf32>
    %cst_27 = arith.constant 7.812500e-03 : f32
    %53 = vector.broadcast %cst_27 : f32 to vector<1x512xf32>
    %54 = arith.mulf %50, %53 : vector<1x512xf32>
    %55 = arith.mulf %52, %52 : vector<1x512xf32>
    %56 = arith.subf %54, %55 : vector<1x512xf32>
    %c0_28 = arith.constant 0 : index
    %c0_29 = arith.constant 0 : index
    %57 = vector.load %arg7[%c0_28, %c0_29] : memref<1x512xf32, #tpu.memory_space<vmem>>, vector<1x512xf32>
    %cst_30 = arith.constant 8.000000e-01 : f32
    %58 = vector.broadcast %cst_30 : f32 to vector<1x512xf32>
    %59 = arith.addf %56, %58 : vector<1x512xf32>
    %60 = math.rsqrt %59 : vector<1x512xf32>
    %61 = arith.mulf %57, %60 : vector<1x512xf32>
    %c0_31 = arith.constant 0 : index
    %c0_32 = arith.constant 0 : index
    %62 = vector.load %arg8[%c0_31, %c0_32] : memref<1x512xf32, #tpu.memory_space<vmem>>, vector<1x512xf32>
    %63 = arith.mulf %52, %61 : vector<1x512xf32>
    %64 = arith.subf %62, %63 : vector<1x512xf32>
    %65 = vector.broadcast %61 : vector<1x512xf32> to vector<128x512xf32>
    %66 = arith.mulf %45, %65 : vector<128x512xf32>
    %67 = vector.broadcast %64 : vector<1x512xf32> to vector<128x512xf32>
    %68 = arith.addf %66, %67 : vector<128x512xf32>
    %cst_33 = arith.constant 0.000000e+00 : f32
    %69 = vector.broadcast %cst_33 : f32 to vector<128x512xf32>
    %70 = arith.cmpf ogt, %68, %69 : vector<128x512xf32>
    %cst_34 = arith.constant 2.000000e-01 : f32
    %71 = vector.broadcast %cst_34 : f32 to vector<128x512xf32>
    %72 = arith.mulf %71, %68 : vector<128x512xf32>
    %73 = arith.select %70, %68, %72 : vector<128x512xi1>, vector<128x512xf32>
    %74 = arith.truncf %73 : vector<128x512xf32> to vector<128x512xbf16>
    %c0_35 = arith.constant 0 : index
    %c0_36 = arith.constant 0 : index
    %75 = vector.load %arg9[%c0_35, %c0_36] : memref<512x1024xbf16, #tpu.memory_space<vmem>>, vector<512x1024xbf16>
    %cst_37 = arith.constant dense<0.000000e+00> : vector<128x1024xf32>
    %76 = tpu.matmul %74, %75, %cst_37 {dimension_numbers = #tpu.dot_dimension_numbers<[1], [0], [0], [1], [0, 0, 1, 1], [], []>} : vector<128x512xbf16>, vector<512x1024xbf16>, vector<128x1024xf32> -> vector<128x1024xf32>
    %cst_38 = arith.constant dense<0.000000e+00> : vector<1024xf32>
    %77 = vector.multi_reduction <add>, %76, %cst_38 [0] : vector<128x1024xf32> to vector<1024xf32>
    %78 = vector.shape_cast %77 : vector<1024xf32> to vector<1x1024xf32>
    %79 = arith.mulf %76, %76 : vector<128x1024xf32>
    %cst_39 = arith.constant dense<0.000000e+00> : vector<1024xf32>
    %80 = vector.multi_reduction <add>, %79, %cst_39 [0] : vector<128x1024xf32> to vector<1024xf32>
    %81 = vector.shape_cast %80 : vector<1024xf32> to vector<1x1024xf32>
    %cst_40 = arith.constant 7.812500e-03 : f32
    %82 = vector.broadcast %cst_40 : f32 to vector<1x1024xf32>
    %83 = arith.mulf %78, %82 : vector<1x1024xf32>
    %cst_41 = arith.constant 7.812500e-03 : f32
    %84 = vector.broadcast %cst_41 : f32 to vector<1x1024xf32>
    %85 = arith.mulf %81, %84 : vector<1x1024xf32>
    %86 = arith.mulf %83, %83 : vector<1x1024xf32>
    %87 = arith.subf %85, %86 : vector<1x1024xf32>
    %c0_42 = arith.constant 0 : index
    %c0_43 = arith.constant 0 : index
    %88 = vector.load %arg10[%c0_42, %c0_43] : memref<1x1024xf32, #tpu.memory_space<vmem>>, vector<1x1024xf32>
    %cst_44 = arith.constant 8.000000e-01 : f32
    %89 = vector.broadcast %cst_44 : f32 to vector<1x1024xf32>
    %90 = arith.addf %87, %89 : vector<1x1024xf32>
    %91 = math.rsqrt %90 : vector<1x1024xf32>
    %92 = arith.mulf %88, %91 : vector<1x1024xf32>
    %c0_45 = arith.constant 0 : index
    %c0_46 = arith.constant 0 : index
    %93 = vector.load %arg11[%c0_45, %c0_46] : memref<1x1024xf32, #tpu.memory_space<vmem>>, vector<1x1024xf32>
    %94 = arith.mulf %83, %92 : vector<1x1024xf32>
    %95 = arith.subf %93, %94 : vector<1x1024xf32>
    %96 = vector.broadcast %92 : vector<1x1024xf32> to vector<128x1024xf32>
    %97 = arith.mulf %76, %96 : vector<128x1024xf32>
    %98 = vector.broadcast %95 : vector<1x1024xf32> to vector<128x1024xf32>
    %99 = arith.addf %97, %98 : vector<128x1024xf32>
    %cst_47 = arith.constant 0.000000e+00 : f32
    %100 = vector.broadcast %cst_47 : f32 to vector<128x1024xf32>
    %101 = arith.cmpf ogt, %99, %100 : vector<128x1024xf32>
    %cst_48 = arith.constant 2.000000e-01 : f32
    %102 = vector.broadcast %cst_48 : f32 to vector<128x1024xf32>
    %103 = arith.mulf %102, %99 : vector<128x1024xf32>
    %104 = arith.select %101, %99, %103 : vector<128x1024xi1>, vector<128x1024xf32>
    %105 = arith.truncf %104 : vector<128x1024xf32> to vector<128x1024xbf16>
    %c0_49 = arith.constant 0 : index
    %c0_50 = arith.constant 0 : index
    %106 = vector.load %arg12[%c0_49, %c0_50] : memref<1024x128xbf16, #tpu.memory_space<vmem>>, vector<1024x128xbf16>
    %cst_51 = arith.constant dense<0.000000e+00> : vector<128x128xf32>
    %107 = tpu.matmul %105, %106, %cst_51 {dimension_numbers = #tpu.dot_dimension_numbers<[1], [0], [0], [1], [0, 0, 1, 1], [], []>} : vector<128x1024xbf16>, vector<1024x128xbf16>, vector<128x128xf32> -> vector<128x128xf32>
    %c0_52 = arith.constant 0 : index
    %c0_53 = arith.constant 0 : index
    %108 = vector.load %arg13[%c0_52, %c0_53] : memref<1x128xf32, #tpu.memory_space<vmem>>, vector<1x128xf32>
    %109 = vector.broadcast %108 : vector<1x128xf32> to vector<128x128xf32>
    %110 = arith.addf %107, %109 : vector<128x128xf32>
    %111 = math.tanh %110 : vector<128x128xf32>
    %c0_54 = arith.constant 0 : index
    %c0_55 = arith.constant 0 : index
    %112 = vector.load %arg14[%c0_54, %c0_55] : memref<128x128xf32, #tpu.memory_space<vmem>>, vector<128x128xf32>
    tpu.vector_store %arg14[%c0_54, %c0_55], %111 {strides = array<i32>} : memref<128x128xf32, #tpu.memory_space<vmem>>, vector<128x128xf32>,
    return
  }
}

</mosaic_0001>

<bundles_post_ra>
// kernel: tpu_custom_call.1
= control target key start
LH: loop header
LB: loop body
LE: loop exit
PB: predicated region body
PF: predicated region fallthrough
CT: control target
= control target key end

     0   :  { %19 = vsyncpa [#allocation3], 0  ;;  %s11742_s0 = inlined_call_operand.hbm [shape: f32[128,128], index: 0, kind: input, shape index: {}]   ;;  %s11743_s1 = inlined_call_operand.hbm [shape: bf16[128,128], index: 1, kind: input, shape index: {}]   ;;  %s11744_s2 = inlined_call_operand.hbm [shape: f32[1,128], index: 2, kind: input, shape index: {}]   ;;  %s11745_s3 = inlined_call_operand.hbm [shape: bf16[128,256], index: 3, kind: input, shape index: {}]   ;;  %s11746_s4 = inlined_call_operand.vmem [shape: f32[1,256], index: 4, kind: input, shape index: {}]   ;;  %s11747_s5 = inlined_call_operand.hbm [shape: f32[1,256], index: 5, kind: input, shape index: {}]   ;;  %s11748_s6 = inlined_call_operand.hbm [shape: bf16[256,512], index: 6, kind: input, shape index: {}]   ;;  %s11749_s7 = inlined_call_operand.vmem [shape: f32[1,512], index: 7, kind: input, shape index: {}]   ;;  %s11750_s8 = inlined_call_operand.vmem [shape: f32[1,512], index: 8, kind: input, shape index: {}]   ;;  %s11751_s9 = inlined_call_operand.hbm [shape: bf16[512,1024], index: 9, kind: input, shape index: {}]   ;;  %s11752_s10 = inlined_call_operand.vmem [shape: f32[1,1024], index: 10, kind: input, shape index: {}]   ;;  %s11753_s11 = inlined_call_operand.vmem [shape: f32[1,1024], index: 11, kind: input, shape index: {}]   ;;  %s11754_s12 = inlined_call_operand.hbm [shape: bf16[1024,128], index: 12, kind: input, shape index: {}]   ;;  %s11755_s13 = inlined_call_operand.vmem [shape: f32[1,128], index: 13, kind: input, shape index: {}]   ;;  %s11756_s14 = inlined_call_operand.hbm [shape: f32[128,128], index: 14, kind: output, shape index: {}]  }
   0x1   :  { %20 = vsyncpa [#allocation6], 0 }
   0x2   :  { %21 = vsyncpa [#allocation9], 0 }
   0x3   :  { %22 = vsyncpa [#allocation12], 0 }
   0x4   :  { %23 = vsyncpa [#allocation15], 0 }
   0x5   :  { %24 = vsyncpa [#allocation4], 0  ;;  %s8454_s29 = smov [#allocation5]   ;;  %s8244_s17 = scalar_lea.hbm %s11743_s1, 1024 }
   0x6   :  { %s42_s30 = sshll.u32 %s8454_s29, 4  ;;  %p8245_p0 = scmp.ne.s32.totalorder %s11743_s1, %s8244_s17  ;;  %s43_s30 = int_to_ptr.vmem [resolvable:$true] %s42_s30 }
   0x7   :  { %p8248_p1 = scmp.lt.u32.totalorder %s8244_s17, %s11743_s1 }
   0x9   :  { %p8250_p2 = pnand %p8248_p1, %p8245_p0 }
   0xb   :  { %8253 = shalt.err (!%p8250_p2)
}
   0xc   :  { %s8254_s22 = scalar_lea.vmem %s43_s30, 1024  ;;  %p8259_p4 = scmp.lt.s32.totalorder %s43_s30, %s43_s30 }
   0xd   :  { %p8255_p3 = scmp.ne.s32.totalorder %s43_s30, %s8254_s22  ;;  %p8260_p5 = scmp.lt.s32.totalorder %s8254_s22, %s8254_s22 }
   0xf   :  { %p8261_p6 = por %p8260_p5, %p8259_p4 }
  0x11   :  { %p8262_p7 = pnand %p8261_p6, %p8255_p3 }
  0x13   :  { %8265 = shalt.err (!%p8262_p7)
}
  0x14   :  { %s11757_s23 = smov 64   ;;  %s11758_s24 = smov 4  }
  0x15   :  { %48 = dma.hbm_to_vmem [thread:$0]  %s11743_s1, 1024, %s43_s30, [#allocation6], %s11757_s23, %s11757_s23, %s11758_s24  }
  0x16   :  { %s8457_s27 = smov [#allocation8]   ;;  %s8458_s29 = smov [#allocation11]  }
  0x17   :  { %s64_s28 = sshll.u32 %s8457_s27, 4  ;;  %s88_s15 = sshll.u32 %s8458_s29, 4  ;;  %s65_s28 = int_to_ptr.vmem [resolvable:$true] %s64_s28  ;;  %s89_s15 = int_to_ptr.vmem [resolvable:$true] %s88_s15 }
  0x18   :  { %s8266_s18 = scalar_lea.hbm %s11745_s3, 2048 }
  0x19   :  { %p8267_p8 = scmp.ne.s32.totalorder %s11745_s3, %s8266_s18  ;;  %p8270_p9 = scmp.lt.u32.totalorder %s8266_s18, %s11745_s3 }
  0x1b   :  { %p8272_p10 = pnand %p8270_p9, %p8267_p8 }
  0x1d   :  { %8275 = shalt.err (!%p8272_p10)
}
  0x1e   :  { %s8276_s1 = scalar_lea.vmem %s65_s28, 2048  ;;  %p8281_p12 = scmp.lt.s32.totalorder %s65_s28, %s65_s28 }
  0x1f   :  { %p8277_p11 = scmp.ne.s32.totalorder %s65_s28, %s8276_s1  ;;  %p8282_p13 = scmp.lt.s32.totalorder %s8276_s1, %s8276_s1 }
  0x21   :  { %p8283_p0 = por %p8282_p13, %p8281_p12 }
  0x23   :  { %p8284_p1 = pnand %p8283_p0, %p8277_p11 }
  0x25   :  { %8287 = shalt.err (!%p8284_p1)
}
  0x26   :  { %s8459_s30 = smov 128   ;;  %s8460_s25 = smov 8  }
  0x27   :  { %70 = dma.hbm_to_vmem [thread:$0]  %s11745_s3, 2048, %s65_s28, [#allocation9], %s8459_s30, %s8459_s30, %s8460_s25  }
  0x28   :  { %s8288_s17 = scalar_lea.hbm %s11748_s6, 8192 }
  0x29   :  { %p8289_p2 = scmp.ne.s32.totalorder %s11748_s6, %s8288_s17  ;;  %p8292_p3 = scmp.lt.u32.totalorder %s8288_s17, %s11748_s6 }
  0x2b   :  { %p8294_p4 = pnand %p8292_p3, %p8289_p2 }
  0x2d   :  { %8297 = shalt.err (!%p8294_p4)
}
  0x2e   :  { %s8298_s22 = scalar_lea.vmem %s89_s15, 8192  ;;  %p8303_p6 = scmp.lt.s32.totalorder %s89_s15, %s89_s15 }
  0x2f   :  { %p8299_p5 = scmp.ne.s32.totalorder %s89_s15, %s8298_s22  ;;  %p8304_p7 = scmp.lt.s32.totalorder %s8298_s22, %s8298_s22 }
  0x31   :  { %p8305_p8 = por %p8304_p7, %p8303_p6 }
  0x33   :  { %p8306_p9 = pnand %p8305_p8, %p8299_p5 }
  0x35   :  { %8309 = shalt.err (!%p8306_p9)
}
  0x36   :  { %s8461_s3 = smov 256   ;;  %s8462_s28 = smov 16  }
  0x37   :  { %94 = dma.hbm_to_vmem [thread:$0]  %s11748_s6, 8192, %s89_s15, [#allocation12], %s8461_s3, %s8461_s3, %s8462_s28  }
  0x38   :  { %s8463_s27 = smov [#allocation2]   ;;  %s8464_s16 = smov [#allocation7]  }
  0x39   :  { %s30_s29 = sshll.u32 %s8463_s27, 4  ;;  %s55_s17 = sshll.u32 %s8464_s16, 4  ;;  %s31_s29 = int_to_ptr.vmem [resolvable:$true] %s30_s29  ;;  %s56_s17 = int_to_ptr.vmem [resolvable:$true] %s55_s17 }
  0x3a   :  { %s8310_s20 = scalar_lea.hbm %s11742_s0, 2048 }
  0x3b   :  { %p8311_p10 = scmp.ne.s32.totalorder %s11742_s0, %s8310_s20  ;;  %p8314_p11 = scmp.lt.u32.totalorder %s8310_s20, %s11742_s0 }
  0x3d   :  { %p8316_p12 = pnand %p8314_p11, %p8311_p10 }
  0x3f   :  { %8319 = shalt.err (!%p8316_p12)
}
  0x40   :  { %s8320_s6 = scalar_lea.vmem %s31_s29, 2048  ;;  %p8325_p0 = scmp.lt.s32.totalorder %s31_s29, %s31_s29 }
  0x41   :  { %p8321_p13 = scmp.ne.s32.totalorder %s31_s29, %s8320_s6  ;;  %p8326_p1 = scmp.lt.s32.totalorder %s8320_s6, %s8320_s6 }
  0x43   :  { %p8327_p2 = por %p8326_p1, %p8325_p0 }
  0x45   :  { %p8328_p3 = pnand %p8327_p2, %p8321_p13 }
  0x47   :  { %8331 = shalt.err (!%p8328_p3)
}
  0x48   :  { %36 = dma.hbm_to_vmem [thread:$0]  %s11742_s0, 2048, %s31_s29, [#allocation3], %s8459_s30, %s8459_s30, %s8460_s25  }
  0x49   :  { %s8332_s24 = scalar_lea.hbm %s11744_s2, 16 }
  0x4a   :  { %p8333_p4 = scmp.ne.s32.totalorder %s11744_s2, %s8332_s24  ;;  %p8336_p5 = scmp.lt.u32.totalorder %s8332_s24, %s11744_s2 }
  0x4c   :  { %p8338_p6 = pnand %p8336_p5, %p8333_p4 }
  0x4e   :  { %8341 = shalt.err (!%p8338_p6)
}
  0x4f   :  { %s8342_s18 = scalar_lea.vmem %s56_s17, 16  ;;  %s8346_s19 = scalar_lea.vmem %s56_s17, 32 }
  0x50   :  { %p8343_p7 = scmp.ne.s32.totalorder %s56_s17, %s8342_s18  ;;  %p8347_p8 = scmp.lt.s32.totalorder %s56_s17, %s56_s17 }
  0x51   :  { %p8348_p9 = scmp.lt.s32.totalorder %s8346_s19, %s8342_s18 }
  0x53   :  { %p8349_p10 = por %p8348_p9, %p8347_p8 }
  0x55   :  { %p8350_p11 = pnand %p8349_p10, %p8343_p7 }
  0x57   :  { %8353 = shalt.err (!%p8350_p11)
}
  0x58   :  { %58 = dma.hbm_to_vmem [thread:$0]  %s11744_s2, 16, %s56_s17, [#allocation6]  }
  0x59   :  { %s8465_s20 = smov [#allocation10]   ;;  %s8466_s22 = smov [#allocation13]  }
  0x5a   :  { %s79_s21 = sshll.u32 %s8465_s20, 4  ;;  %s104_s6 = sshll.u32 %s8466_s22, 4  ;;  %s80_s21 = int_to_ptr.vmem [resolvable:$true] %s79_s21  ;;  %s105_s6 = int_to_ptr.vmem [resolvable:$true] %s104_s6 }
  0x5b   :  { %s8354_s28 = scalar_lea.hbm %s11747_s5, 32 }
  0x5c   :  { %p8355_p12 = scmp.ne.s32.totalorder %s11747_s5, %s8354_s28  ;;  %p8358_p13 = scmp.lt.u32.totalorder %s8354_s28, %s11747_s5 }
  0x5e   :  { %p8360_p0 = pnand %p8358_p13, %p8355_p12 }
  0x60   :  { %8363 = shalt.err (!%p8360_p0)
}
  0x61   :  { %s8364_s2 = scalar_lea.vmem %s80_s21, 32  ;;  %p8369_p2 = scmp.lt.s32.totalorder %s80_s21, %s80_s21 }
  0x62   :  { %p8365_p1 = scmp.ne.s32.totalorder %s80_s21, %s8364_s2  ;;  %p8370_p3 = scmp.lt.s32.totalorder %s8364_s2, %s8364_s2 }
  0x64   :  { %p8371_p4 = por %p8370_p3, %p8369_p2 }
  0x66   :  { %p8372_p5 = pnand %p8371_p4, %p8365_p1 }
  0x68   :  { %8375 = shalt.err (!%p8372_p5)
}
  0x69   :  { %82 = dma.hbm_to_vmem [thread:$0]  %s11747_s5, 32, %s80_s21, [#allocation9]  }
  0x6a   :  { %s8376_s19 = scalar_lea.hbm %s11751_s9, 32768 }
  0x6b   :  { %p8377_p6 = scmp.ne.s32.totalorder %s11751_s9, %s8376_s19  ;;  %p8380_p7 = scmp.lt.u32.totalorder %s8376_s19, %s11751_s9 }
  0x6d   :  { %p8382_p8 = pnand %p8380_p7, %p8377_p6 }
  0x6f   :  { %8385 = shalt.err (!%p8382_p8)
}
  0x70   :  { %s8386_s15 = scalar_lea.vmem %s105_s6, 32768  ;;  %p8391_p10 = scmp.lt.s32.totalorder %s105_s6, %s105_s6 }
  0x71   :  { %p8387_p9 = scmp.ne.s32.totalorder %s105_s6, %s8386_s15  ;;  %p8392_p11 = scmp.lt.s32.totalorder %s8386_s15, %s8386_s15 }
  0x73   :  { %p8393_p12 = por %p8392_p11, %p8391_p10 }
  0x75   :  { %p8394_p13 = pnand %p8393_p12, %p8387_p9 }
  0x77   :  { %8397 = shalt.err (!%p8394_p13)
}
  0x78   :  { %s8467_s5 = smov 512   ;;  %s8468_s21 = smov 32  }
  0x79   :  { %110 = dma.hbm_to_vmem [thread:$0]  %s11751_s9, 32768, %s105_s6, [#allocation12], %s8467_s5, %s8467_s5, %s8468_s21  }
  0x7a   :  { %s8469_s23 = smov [#allocation14]   ;;  %s8398_s2 = scalar_lea.hbm %s11754_s12, 8192 }
  0x7b   :  { %s120_s24 = sshll.u32 %s8469_s23, 4  ;;  %p8399_p0 = scmp.ne.s32.totalorder %s11754_s12, %s8398_s2  ;;  %s121_s24 = int_to_ptr.vmem [resolvable:$true] %s120_s24 }
  0x7c   :  { %p8402_p1 = scmp.lt.u32.totalorder %s8398_s2, %s11754_s12 }
  0x7e   :  { %p8404_p2 = pnand %p8402_p1, %p8399_p0 }
  0x80   :  { %8407 = shalt.err (!%p8404_p2)
}
  0x81   :  { %s8408_s19 = scalar_lea.vmem %s121_s24, 8192  ;;  %p8413_p4 = scmp.lt.s32.totalorder %s121_s24, %s121_s24 }
  0x82   :  { %p8409_p3 = scmp.ne.s32.totalorder %s121_s24, %s8408_s19  ;;  %p8414_p5 = scmp.lt.s32.totalorder %s8408_s19, %s8408_s19 }
  0x84   :  { %p8415_p6 = por %p8414_p5, %p8413_p4 }
  0x86   :  { %p8416_p7 = pnand %p8415_p6, %p8409_p3 }
  0x88   :  { %8419 = shalt.err (!%p8416_p7)
}
  0x89   :  { %s12052_s9 = smov 4   ;;  %s12053_s6 = smov 64  }
  0x8a   :  { %126 = dma.hbm_to_vmem [thread:$0]  %s11754_s12, 8192, %s121_s24, [#allocation15], %s12053_s6, %s12053_s6, %s12052_s9  }
  0x8b   :  { %8442 = dma.done.wait [#allocation3], 2048  }
  0x8c   :  { %8443 = vsyncadd [#allocation3], 4294965248 }
  0x8d   :  { %8444 = dma.done.wait [#allocation6], 1040  }
  0x8e   :  { %8445 = vsyncadd [#allocation6], 4294966256 }
  0x8f   :  { %8446 = dma.done.wait [#allocation9], 2080  }
  0x90   :  { %8447 = vsyncadd [#allocation9], 4294965216 }
  0x91   :  { %8448 = dma.done.wait [#allocation12], 40960  }
  0x92   :  { %8449 = vsyncadd [#allocation12], 4294926336 }
  0x93   :  { %8450 = dma.done.wait [#allocation15], 8192  }
  0x94   :  { %8451 = vsyncadd [#allocation15], 4294959104  ;;  %v7992_v0 = vld [vmem:[#allocation5] sm:$0xff]   ;;  %v7993_v1 = vld [vmem:[#allocation5 + $0x8] sm:$0xff]   ;;  %v8470_v48 = vmov 0  }
  0x95   :  { %7813 = vmatprep.subr.bf16.mxu0 %v7992_v0  ;;  %v7994_v2 = vld [vmem:[#allocation5 + $0x10] sm:$0xff]   ;;  %v7995_v3 = vld [vmem:[#allocation5 + $0x18] sm:$0xff]   ;;  %v154_v4 = vld [vmem:[#allocation2] sm:$0xff]  ;;  %530 = vmatprep.mubr.bf16.mxu1 %v8470_v48 }
  0x96   :  { %7814 = vmatpush3.bf16.msra.mxu0 %v7992_v0  ;;  %v155_v5 = vld [vmem:[#allocation2 + $0x8] sm:$0xff]  ;;  %v7996_v7 = vld [vmem:[#allocation5 + $0x20] sm:$0xff]   ;;  %v8005_v12 = vld [vmem:[#allocation8 + $0x10] ss:$8 sps:$4 sm:$0xff]  }
  0x97   :  { %7815 = vmatprep.subr.bf16.mxu0 %v7993_v1  ;;  %v170_v6 = vpack.c.bf16 %v155_v5, %v154_v4  ;;  %v8000_v8 = vld [vmem:[#allocation8 + $0x4] ss:$8 sps:$4 sm:$0xff]   ;;  %v8002_v9 = vld [vmem:[#allocation8] ss:$8 sps:$4 sm:$0xff]   ;;  %v8003_v10 = vld [vmem:[#allocation8 + $0x14] ss:$8 sps:$4 sm:$0xff]  }
  0x98   :  { %v7997_v11 = vld [vmem:[#allocation5 + $0x28] sm:$0xff]   ;;  %498 = vmatprep.subr.bf16.mxu1 %v8000_v8  ;;  %v7998_v14 = vld [vmem:[#allocation5 + $0x30] sm:$0xff]   ;;  %v7999_v17 = vld [vmem:[#allocation5 + $0x38] sm:$0xff]  }
  0x99   :  { %7829 = vmatprep.mubr.bf16.mxu0 %v170_v6  ;;  %499 = vmatpush1.bf16.msra.mxu1 %v8002_v9  ;;  %v8006_v13 = vld [vmem:[#allocation8 + $0x24] ss:$8 sps:$4 sm:$0xff]   ;;  %v8008_v15 = vld [vmem:[#allocation8 + $0x20] ss:$8 sps:$4 sm:$0xff]   ;;  %v8009_v16 = vld [vmem:[#allocation8 + $0x34] ss:$8 sps:$4 sm:$0xff]  }
  0x9a   :  { %7816 = vmatpush3.bf16.msra.mxu0 %v7993_v1  ;;  %500 = vmatprep.subr.bf16.mxu1 %v8003_v10  ;;  %v8011_v18 = vld [vmem:[#allocation8 + $0x30] ss:$8 sps:$4 sm:$0xff]   ;;  %v8012_v19 = vld [vmem:[#allocation8 + $0x44] ss:$8 sps:$4 sm:$0xff]   ;;  %v8014_v24 = vld [vmem:[#allocation8 + $0x40] ss:$8 sps:$4 sm:$0xff]  }
  0x9b   :  { %7817 = vmatprep.subr.bf16.mxu0 %v7994_v2  ;;  %v156_v20 = vld [vmem:[#allocation2 + $0x10] sm:$0xff]  ;;  %v157_v21 = vld [vmem:[#allocation2 + $0x18] sm:$0xff]  ;;  %v158_v22 = vld [vmem:[#allocation2 + $0x20] sm:$0xff] }
  0x9c   :  { %v159_v23 = vld [vmem:[#allocation2 + $0x28] sm:$0xff]  ;;  %v8015_v25 = vld [vmem:[#allocation8 + $0x54] ss:$8 sps:$4 sm:$0xff]   ;;  %v171_v26 = vpack.c.bf16 %v157_v21, %v156_v20  ;;  %v8017_v43 = vld [vmem:[#allocation8 + $0x50] ss:$8 sps:$4 sm:$0xff]  }
  0x9d   :  { %501 = vmatpush1.bf16.msra.mxu1 %v8005_v12  ;;  %v172_v27 = vpack.c.bf16 %v159_v23, %v158_v22  ;;  %v160_v28 = vld [vmem:[#allocation2 + $0x30] sm:$0xff]  ;;  %v161_v29 = vld [vmem:[#allocation2 + $0x38] sm:$0xff]  ;;  %v162_v30 = vld [vmem:[#allocation2 + $0x40] sm:$0xff] }
  0x9e   :  { %7818 = vmatpush3.bf16.msra.mxu0 %v7994_v2  ;;  %502 = vmatprep.subr.bf16.mxu1 %v8006_v13  ;;  %v163_v31 = vld [vmem:[#allocation2 + $0x48] sm:$0xff]  ;;  %v173_v32 = vpack.c.bf16 %v161_v29, %v160_v28  ;;  %v164_v34 = vld [vmem:[#allocation2 + $0x50] sm:$0xff]  ;;  %v165_v35 = vld [vmem:[#allocation2 + $0x58] sm:$0xff] }
  0x9f   :  { %7819 = vmatprep.subr.bf16.mxu0 %v7995_v3  ;;  %v174_v33 = vpack.c.bf16 %v163_v31, %v162_v30  ;;  %v166_v36 = vld [vmem:[#allocation2 + $0x60] sm:$0xff]  ;;  %v167_v37 = vld [vmem:[#allocation2 + $0x68] sm:$0xff]  ;;  %v175_v38 = vpack.c.bf16 %v165_v35, %v164_v34  ;;  %v168_v40 = vld [vmem:[#allocation2 + $0x70] sm:$0xff] }
  0xa0   :  { %v176_v39 = vpack.c.bf16 %v167_v37, %v166_v36  ;;  %v169_v41 = vld [vmem:[#allocation2 + $0x78] sm:$0xff]  ;;  %v8018_v44 = vld [vmem:[#allocation8 + $0x64] ss:$8 sps:$4 sm:$0xff]   ;;  %v8020_v45 = vld [vmem:[#allocation8 + $0x60] ss:$8 sps:$4 sm:$0xff]  }
  0xa1   :  { %503 = vmatpush1.bf16.msra.mxu1 %v8008_v15  ;;  %v177_v42 = vpack.c.bf16 %v169_v41, %v168_v40  ;;  %v8021_v46 = vld [vmem:[#allocation8 + $0x74] ss:$8 sps:$4 sm:$0xff]   ;;  %v8023_v47 = vld [vmem:[#allocation8 + $0x70] ss:$8 sps:$4 sm:$0xff]  }
  0xa2   :  { %7820 = vmatpush3.bf16.msra.mxu0 %v7995_v3  ;;  %504 = vmatprep.subr.bf16.mxu1 %v8009_v16  ;;  %v8657_v49 = vld [vmem:[#allocation7] ss:$0 sm:$0xff] }
  0xa3   :  { %7821 = vmatprep.subr.bf16.mxu0 %v7996_v7 }
  0xa5   :  { %505 = vmatpush1.bf16.msra.mxu1 %v8011_v18 }
  0xa6   :  { %7822 = vmatpush3.bf16.msra.mxu0 %v7996_v7  ;;  %506 = vmatprep.subr.bf16.mxu1 %v8012_v19 }
  0xa7   :  { %7823 = vmatprep.subr.bf16.mxu0 %v7997_v11 }
  0xa9   :  { %507 = vmatpush1.bf16.msra.mxu1 %v8014_v24 }
  0xaa   :  { %7824 = vmatpush3.bf16.msra.mxu0 %v7997_v11  ;;  %508 = vmatprep.subr.bf16.mxu1 %v8015_v25 }
  0xab   :  { %7825 = vmatprep.subr.bf16.mxu0 %v7998_v14 }
  0xad   :  { %509 = vmatpush1.bf16.msra.mxu1 %v8017_v43 }
  0xae   :  { %7826 = vmatpush3.bf16.msra.mxu0 %v7998_v14  ;;  %510 = vmatprep.subr.bf16.mxu1 %v8018_v44 }
  0xaf   :  { %7827 = vmatprep.subr.bf16.mxu0 %v7999_v17 }
  0xb1   :  { %511 = vmatpush1.bf16.msra.mxu1 %v8020_v45 }
  0xb2   :  { %7828 = vmatpush3.bf16.msra.mxu0 %v7999_v17  ;;  %512 = vmatprep.subr.bf16.mxu1 %v8021_v46 }
  0xb5   :  { %7830 = vmatmul.mubr.bf16.vlgmr.msra.gmra.mrb[0].mxu0 %v171_v26  ;;  %513 = vmatpush1.bf16.msra.mxu1 %v8023_v47 }
  0xb6   :  { %7833 = vmatprep.mubr.bf16.mxu0 %v172_v27 }
  0xbd   :  { %7834 = vmatmul.mubr.bf16.gmra.mrb[4].mxu0 %v173_v32 }
  0xbe   :  { %7837 = vmatprep.mubr.bf16.mxu0 %v174_v33 }
  0xc5   :  { %7838 = vmatmul.mubr.bf16.gmra.mrb[8].mxu0 %v175_v38 }
  0xc6   :  { %7841 = vmatprep.mubr.bf16.mxu0 %v176_v39 }
  0xcd   :  { %7842 = vmatmul.mubr.bf16.gmra.mrb[12].mxu0 %v177_v42 }
 0x188   :  { %v7831_v50 = vpop.f32.mrb[0].mxu0 }
 0x189   :  { %v292_v51 = vadd.f32 %v7831_v50, %v8657_v49  ;;  %v283_v52 = vpop.f32.mrb[1].mxu0 }
 0x18a   :  { %v284_v53 = vadd.f32 %v8657_v49, %v283_v52  ;;  %v7832_v54 = vpop.f32.mrb[2].mxu0 }
 0x18b   :  { %v364_v55 = vmul.f32 0.2, %v292_v51  ;;  %v295_v56 = vadd.f32 %v7832_v54, %v8657_v49  ;;  %v286_v57 = vpop.f32.mrb[3].mxu0  ;;  %vm348_vm0 = vcmp.gt.f32.partialorder %v292_v51, 0.0 }
 0x18c   :  { %v362_v58 = vmul.f32 0.2, %v284_v53  ;;  %v287_v59 = vadd.f32 %v8657_v49, %v286_v57  ;;  %vm346_vm1 = vcmp.gt.f32.partialorder %v284_v53, 0.0 }
 0x18d   :  { %vm349_vm2 = vcmp.gt.f32.partialorder %v295_v56, 0.0  ;;  %v365_v60 = vmul.f32 0.2, %v295_v56  ;;  %v380_v62 = vsel %vm348_vm0, %v292_v51, %v364_v55 }
 0x18e   :  { %vm347_vm3 = vcmp.gt.f32.partialorder %v287_v59, 0.0  ;;  %v363_v61 = vmul.f32 0.2, %v287_v59  ;;  %v378_v1 = vsel %vm346_vm1, %v284_v53, %v362_v58 }
 0x18f   :  { %v381_v63 = vsel %vm349_vm2, %v295_v56, %v365_v60  ;;  %v8029_v60 = vld [vmem:[#allocation11 + $0x4] ss:$16 sps:$4 sm:$0xff]  }
 0x190   :  { %v7835_v0 = vpop.f32.mrb[4].mxu0  ;;  %v379_v2 = vsel %vm347_vm3, %v287_v59, %v363_v61  ;;  %v395_v3 = vpack.c.bf16 %v381_v63, %v380_v62  ;;  %v8024_v61 = vld [vmem:[#allocation11 + $0x8] ss:$16 sps:$4 sm:$0xff]   ;;  %v8027_v62 = vld [vmem:[#allocation11] ss:$16 sps:$4 sm:$0xff]   ;;  %1363 = vmatprep.subr.bf16.mxu0 %v8029_v60 }
 0x191   :  { %v308_v4 = vadd.f32 %v7835_v0, %v8657_v49  ;;  %v394_v5 = vpack.c.bf16 %v379_v2, %v378_v1  ;;  %v299_v6 = vpop.f32.mrb[5].mxu0  ;;  %1364 = vmatpush1.bf16.msra.mxu0 %v8027_v62  ;;  %v8032_v63 = vld [vmem:[#allocation11 + $0x2c] ss:$16 sps:$4 sm:$0xff]   ;;  %v8035_v0 = vld [vmem:[#allocation11 + $0x24] ss:$16 sps:$4 sm:$0xff]  }
 0x192   :  { %v300_v7 = vadd.f32 %v8657_v49, %v299_v6  ;;  %v7836_v8 = vpop.f32.mrb[6].mxu0  ;;  %v8030_v1 = vld [vmem:[#allocation11 + $0x28] ss:$16 sps:$4 sm:$0xff]   ;;  %v8033_v2 = vld [vmem:[#allocation11 + $0x20] ss:$16 sps:$4 sm:$0xff]   ;;  %1365 = vmatprep.subr.bf16.mxu0 %v8035_v0 }
 0x193   :  { %vm352_vm4 = vcmp.gt.f32.partialorder %v308_v4, 0.0  ;;  %v368_v9 = vmul.f32 0.2, %v308_v4  ;;  %531 = vmatmul.mubr.bf16.vlgmr.msra.gmra.mrb[0].mxu1 %v394_v5  ;;  %v311_v10 = vadd.f32 %v7836_v8, %v8657_v49  ;;  %v302_v11 = vpop.f32.mrb[7].mxu0  ;;  %v8039_v5 = vld [vmem:[#allocation11 + $0x40] ss:$16 sps:$4 sm:$0xff]  }
 0x194   :  { %vm350_vm5 = vcmp.gt.f32.partialorder %v300_v7, 0.0  ;;  %v366_v12 = vmul.f32 0.2, %v300_v7  ;;  %v303_v13 = vadd.f32 %v8657_v49, %v302_v11  ;;  %540 = vmatprep.mubr.bf16.mxu1 %v8470_v48  ;;  %v8044_v6 = vld [vmem:[#allocation11 + $0x6c] ss:$16 sps:$4 sm:$0xff]  }
 0x195   :  { %vm353_vm6 = vcmp.gt.f32.partialorder %v311_v10, 0.0  ;;  %v369_v14 = vmul.f32 0.2, %v311_v10  ;;  %v384_v15 = vsel %vm352_vm4, %v308_v4, %v368_v9  ;;  %1366 = vmatpush1.bf16.msra.mxu0 %v8033_v2  ;;  %v8041_v4 = vld [vmem:[#allocation11 + $0x44] ss:$16 sps:$4 sm:$0xff]  }
 0x196   :  { %vm351_vm7 = vcmp.gt.f32.partialorder %v303_v13, 0.0  ;;  %v367_v16 = vmul.f32 0.2, %v303_v13  ;;  %v382_v17 = vsel %vm350_vm5, %v300_v7, %v366_v12  ;;  %1367 = vmatprep.subr.bf16.mxu0 %v8041_v4  ;;  %v8047_v7 = vld [vmem:[#allocation11 + $0x64] ss:$16 sps:$4 sm:$0xff]  }
 0x197   :  { %v385_v18 = vsel %vm353_vm6, %v311_v10, %v369_v14  ;;  %v8042_v8 = vld [vmem:[#allocation11 + $0x68] ss:$16 sps:$4 sm:$0xff]   ;;  %v8045_v9 = vld [vmem:[#allocation11 + $0x60] ss:$16 sps:$4 sm:$0xff]   ;;  %v8050_v10 = vld [vmem:[#allocation11 + $0x8c] ss:$16 sps:$4 sm:$0xff]  }
 0x198   :  { %v7839_v19 = vpop.f32.mrb[8].mxu0  ;;  %v383_v20 = vsel %vm351_vm7, %v303_v13, %v367_v16  ;;  %v397_v21 = vpack.c.bf16 %v385_v18, %v384_v15  ;;  %v8053_v11 = vld [vmem:[#allocation11 + $0x84] ss:$16 sps:$4 sm:$0xff]   ;;  %v8048_v12 = vld [vmem:[#allocation11 + $0x88] ss:$16 sps:$4 sm:$0xff]  }
 0x199   :  { %v324_v22 = vadd.f32 %v7839_v19, %v8657_v49  ;;  %v396_v23 = vpack.c.bf16 %v383_v20, %v382_v17  ;;  %v315_v24 = vpop.f32.mrb[9].mxu0  ;;  %1368 = vmatpush1.bf16.msra.mxu0 %v8039_v5  ;;  %v8051_v13 = vld [vmem:[#allocation11 + $0x80] ss:$16 sps:$4 sm:$0xff]   ;;  %v8056_v14 = vld [vmem:[#allocation11 + $0xac] ss:$16 sps:$4 sm:$0xff]  }
 0x19a   :  { %v316_v25 = vadd.f32 %v8657_v49, %v315_v24  ;;  %v7840_v26 = vpop.f32.mrb[10].mxu0  ;;  %1369 = vmatprep.subr.bf16.mxu0 %v8047_v7  ;;  %v8059_v15 = vld [vmem:[#allocation11 + $0xa4] ss:$16 sps:$4 sm:$0xff]   ;;  %v8054_v16 = vld [vmem:[#allocation11 + $0xa8] ss:$16 sps:$4 sm:$0xff]  }
 0x19b   :  { %541 = vmatmul.mubr.bf16.gmra.mrb[4].mxu1 %v395_v3  ;;  %vm356_vm8 = vcmp.gt.f32.partialorder %v324_v22, 0.0  ;;  %v372_v27 = vmul.f32 0.2, %v324_v22  ;;  %v327_v28 = vadd.f32 %v7840_v26, %v8657_v49  ;;  %v318_v29 = vpop.f32.mrb[11].mxu0  ;;  %v8038_v3 = vld [vmem:[#allocation11 + $0x4c] ss:$16 sps:$4 sm:$0xff]  }
 0x19c   :  { %550 = vmatprep.mubr.bf16.mxu1 %v8470_v48  ;;  %vm354_vm9 = vcmp.gt.f32.partialorder %v316_v25, 0.0  ;;  %v370_v30 = vmul.f32 0.2, %v316_v25  ;;  %v319_v31 = vadd.f32 %v8657_v49, %v318_v29  ;;  %v8057_v17 = vld [vmem:[#allocation11 + $0xa0] ss:$16 sps:$4 sm:$0xff]  }
 0x19d   :  { %vm357_vm10 = vcmp.gt.f32.partialorder %v327_v28, 0.0  ;;  %v373_v32 = vmul.f32 0.2, %v327_v28  ;;  %v388_v33 = vsel %vm356_vm8, %v324_v22, %v372_v27  ;;  %1370 = vmatpush1.bf16.msra.mxu0 %v8045_v9  ;;  %v8062_v18 = vld [vmem:[#allocation11 + $0xcc] ss:$16 sps:$4 sm:$0xff]  }
 0x19e   :  { %vm355_vm11 = vcmp.gt.f32.partialorder %v319_v31, 0.0  ;;  %v371_v34 = vmul.f32 0.2, %v319_v31  ;;  %v386_v35 = vsel %vm354_vm9, %v316_v25, %v370_v30  ;;  %1371 = vmatprep.subr.bf16.mxu0 %v8053_v11  ;;  %v8065_v19 = vld [vmem:[#allocation11 + $0xc4] ss:$16 sps:$4 sm:$0xff]  }
 0x19f   :  { %v389_v36 = vsel %vm357_vm10, %v327_v28, %v373_v32  ;;  %v8060_v20 = vld [vmem:[#allocation11 + $0xc8] ss:$16 sps:$4 sm:$0xff]   ;;  %v8068_v22 = vld [vmem:[#allocation11 + $0xec] ss:$16 sps:$4 sm:$0xff]   ;;  %v8069_v25 = vld [vmem:[#allocation11 + $0xe0] ss:$16 sps:$4 sm:$0xff]  }
 0x1a0   :  { %v7843_v37 = vpop.f32.mrb[12].mxu0  ;;  %v387_v38 = vsel %vm355_vm11, %v319_v31, %v371_v34  ;;  %v399_v39 = vpack.c.bf16 %v389_v36, %v388_v33  ;;  %v8066_v24 = vld [vmem:[#allocation11 + $0xe8] ss:$16 sps:$4 sm:$0xff]   ;;  %v8074_v26 = vld [vmem:[#allocation11 + $0x10c] ss:$16 sps:$4 sm:$0xff]  }
 0x1a1   :  { %v340_v40 = vadd.f32 %v7843_v37, %v8657_v49  ;;  %v398_v41 = vpack.c.bf16 %v387_v38, %v386_v35  ;;  %v331_v42 = vpop.f32.mrb[13].mxu0  ;;  %1372 = vmatpush1.bf16.msra.mxu0 %v8051_v13  ;;  %v8077_v27 = vld [vmem:[#allocation11 + $0x104] ss:$16 sps:$4 sm:$0xff]   ;;  %v8072_v28 = vld [vmem:[#allocation11 + $0x108] ss:$16 sps:$4 sm:$0xff]  }
 0x1a2   :  { %v332_v43 = vadd.f32 %v8657_v49, %v331_v42  ;;  %v7844_v44 = vpop.f32.mrb[14].mxu0  ;;  %1373 = vmatprep.subr.bf16.mxu0 %v8059_v15  ;;  %v8075_v29 = vld [vmem:[#allocation11 + $0x100] ss:$16 sps:$4 sm:$0xff]   ;;  %v8080_v30 = vld [vmem:[#allocation11 + $0x12c] ss:$16 sps:$4 sm:$0xff]  }
 0x1a3   :  { %551 = vmatmul.mubr.bf16.gmra.mrb[8].mxu1 %v396_v23  ;;  %vm360_vm12 = vcmp.gt.f32.partialorder %v340_v40, 0.0  ;;  %v376_v45 = vmul.f32 0.2, %v340_v40  ;;  %v343_v46 = vadd.f32 %v7844_v44, %v8657_v49  ;;  %v334_v47 = vpop.f32.mrb[15].mxu0  ;;  %v8071_v23 = vld [vmem:[#allocation11 + $0xe4] ss:$16 sps:$4 sm:$0xff]  }
 0x1a4   :  { %560 = vmatprep.mubr.bf16.mxu1 %v8470_v48  ;;  %vm358_vm13 = vcmp.gt.f32.partialorder %v332_v43, 0.0  ;;  %v374_v50 = vmul.f32 0.2, %v332_v43  ;;  %v335_v51 = vadd.f32 %v8657_v49, %v334_v47  ;;  %v8026_v49 = vld [vmem:[#allocation11 + $0xc] ss:$16 sps:$4 sm:$0xff]  }
 0x1a5   :  { %vm361_vm14 = vcmp.gt.f32.partialorder %v343_v46, 0.0  ;;  %v377_v52 = vmul.f32 0.2, %v343_v46  ;;  %v392_v53 = vsel %vm360_vm12, %v340_v40, %v376_v45  ;;  %1476 = vmatprep.subr.bf16.mxu1 %v8026_v49  ;;  %1374 = vmatpush1.bf16.msra.mxu0 %v8057_v17  ;;  %v8083_v31 = vld [vmem:[#allocation11 + $0x124] ss:$16 sps:$4 sm:$0xff]  }
 0x1a6   :  { %vm359_vm15 = vcmp.gt.f32.partialorder %v335_v51, 0.0  ;;  %v375_v54 = vmul.f32 0.2, %v335_v51  ;;  %v390_v55 = vsel %vm358_vm13, %v332_v43, %v374_v50  ;;  %1477 = vmatpush1.bf16.msra.mxu1 %v8024_v61  ;;  %1375 = vmatprep.subr.bf16.mxu0 %v8065_v19  ;;  %v8078_v32 = vld [vmem:[#allocation11 + $0x128] ss:$16 sps:$4 sm:$0xff]  }
 0x1a7   :  { %v393_v56 = vsel %vm361_vm14, %v343_v46, %v377_v52  ;;  %1478 = vmatprep.subr.bf16.mxu1 %v8032_v63  ;;  %v8081_v33 = vld [vmem:[#allocation11 + $0x120] ss:$16 sps:$4 sm:$0xff]   ;;  %v8086_v34 = vld [vmem:[#allocation11 + $0x14c] ss:$16 sps:$4 sm:$0xff]   ;;  %v8089_v35 = vld [vmem:[#allocation11 + $0x144] ss:$16 sps:$4 sm:$0xff]  }
 0x1a8   :  { %v391_v57 = vsel %vm359_vm15, %v335_v51, %v375_v54  ;;  %v401_v58 = vpack.c.bf16 %v393_v56, %v392_v53  ;;  %v8084_v36 = vld [vmem:[#allocation11 + $0x148] ss:$16 sps:$4 sm:$0xff]   ;;  %v8087_v37 = vld [vmem:[#allocation11 + $0x140] ss:$16 sps:$4 sm:$0xff]   ;;  %v8092_v38 = vld [vmem:[#allocation11 + $0x16c] ss:$16 sps:$4 sm:$0xff]  }
 0x1a9   :  { %v400_v59 = vpack.c.bf16 %v391_v57, %v390_v55  ;;  %v8090_v40 = vld [vmem:[#allocation11 + $0x168] ss:$16 sps:$4 sm:$0xff]   ;;  %v8098_v42 = vld [vmem:[#allocation11 + $0x18c] ss:$16 sps:$4 sm:$0xff]   ;;  %v8101_v43 = vld [vmem:[#allocation11 + $0x184] ss:$16 sps:$4 sm:$0xff]  }
 0x1aa   :  { %1479 = vmatpush1.bf16.msra.mxu1 %v8030_v1  ;;  %v8096_v44 = vld [vmem:[#allocation11 + $0x188] ss:$16 sps:$4 sm:$0xff]   ;;  %v8099_v45 = vld [vmem:[#allocation11 + $0x180] ss:$16 sps:$4 sm:$0xff]   ;;  %v8104_v46 = vld [vmem:[#allocation11 + $0x1ac] ss:$16 sps:$4 sm:$0xff]  }
 0x1ab   :  { %561 = vmatmul.mubr.bf16.gmra.mrb[12].mxu1 %v397_v21  ;;  %1480 = vmatprep.subr.bf16.mxu1 %v8038_v3  ;;  %v8063_v21 = vld [vmem:[#allocation11 + $0xc0] ss:$16 sps:$4 sm:$0xff]   ;;  %v8107_v47 = vld [vmem:[#allocation11 + $0x1a4] ss:$16 sps:$4 sm:$0xff]   ;;  %v8102_v50 = vld [vmem:[#allocation11 + $0x1a8] ss:$16 sps:$4 sm:$0xff]  }
 0x1ac   :  { %570 = vmatprep.mubr.bf16.mxu1 %v8470_v48  ;;  %1376 = vmatpush1.bf16.msra.mxu0 %v8063_v21  ;;  %v8105_v51 = vld [vmem:[#allocation11 + $0x1a0] ss:$16 sps:$4 sm:$0xff]   ;;  %v8110_v52 = vld [vmem:[#allocation11 + $0x1cc] ss:$16 sps:$4 sm:$0xff]   ;;  %v8113_v53 = vld [vmem:[#allocation11 + $0x1c4] ss:$16 sps:$4 sm:$0xff]  }
 0x1ad   :  { %1377 = vmatprep.subr.bf16.mxu0 %v8071_v23  ;;  %v8108_v54 = vld [vmem:[#allocation11 + $0x1c8] ss:$16 sps:$4 sm:$0xff]   ;;  %v8111_v55 = vld [vmem:[#allocation11 + $0x1c0] ss:$16 sps:$4 sm:$0xff]   ;;  %v8116_v56 = vld [vmem:[#allocation11 + $0x1ec] ss:$16 sps:$4 sm:$0xff]  }
 0x1ae   :  { %v8114_v57 = vld [vmem:[#allocation11 + $0x1e8] ss:$16 sps:$4 sm:$0xff]  }
 0x1b0   :  { %1378 = vmatpush1.bf16.msra.mxu0 %v8069_v25 }
 0x1b1   :  { %1379 = vmatprep.subr.bf16.mxu0 %v8077_v27 }
 0x1b3   :  { %571 = vmatmul.mubr.bf16.gmra.mrb[16].mxu1 %v398_v41  ;;  %v8093_v41 = vld [vmem:[#allocation11 + $0x160] ss:$16 sps:$4 sm:$0xff]  }
 0x1b4   :  { %580 = vmatprep.mubr.bf16.mxu1 %v8470_v48  ;;  %1380 = vmatpush1.bf16.msra.mxu0 %v8075_v29 }
 0x1b5   :  { %1381 = vmatprep.subr.bf16.mxu0 %v8083_v31 }
 0x1b8   :  { %1382 = vmatpush1.bf16.msra.mxu0 %v8081_v33 }
 0x1b9   :  { %1383 = vmatprep.subr.bf16.mxu0 %v8089_v35 }
 0x1bb   :  { %581 = vmatmul.mubr.bf16.gmra.mrb[20].mxu1 %v399_v39  ;;  %v8095_v39 = vld [vmem:[#allocation11 + $0x164] ss:$16 sps:$4 sm:$0xff]  }
 0x1bc   :  { %590 = vmatprep.mubr.bf16.mxu1 %v8470_v48  ;;  %1384 = vmatpush1.bf16.msra.mxu0 %v8087_v37 }
 0x1bd   :  { %1385 = vmatprep.subr.bf16.mxu0 %v8095_v39 }
 0x1c0   :  { %1386 = vmatpush1.bf16.msra.mxu0 %v8093_v41 }
 0x1c1   :  { %1387 = vmatprep.subr.bf16.mxu0 %v8101_v43 }
 0x1c3   :  { %591 = vmatmul.mubr.bf16.gmra.mrb[24].mxu1 %v400_v59  ;;  %v8119_v59 = vld [vmem:[#allocation11 + $0x1e4] ss:$16 sps:$4 sm:$0xff]  }
 0x1c4   :  { %600 = vmatprep.mubr.bf16.mxu1 %v8470_v48  ;;  %v8036_v48 = vld [vmem:[#allocation11 + $0x48] ss:$16 sps:$4 sm:$0xff]   ;;  %1388 = vmatpush1.bf16.msra.mxu0 %v8099_v45 }
 0x1c5   :  { %1481 = vmatpush1.bf16.msra.mxu1 %v8036_v48  ;;  %1389 = vmatprep.subr.bf16.mxu0 %v8107_v47 }
 0x1c6   :  { %1482 = vmatprep.subr.bf16.mxu1 %v8044_v6 }
 0x1c8   :  { %1390 = vmatpush1.bf16.msra.mxu0 %v8105_v51 }
 0x1c9   :  { %1483 = vmatpush1.bf16.msra.mxu1 %v8042_v8  ;;  %1391 = vmatprep.subr.bf16.mxu0 %v8113_v53 }
 0x1ca   :  { %1484 = vmatprep.subr.bf16.mxu1 %v8050_v10 }
 0x1cb   :  { %601 = vmatmul.mubr.bf16.gmra.mrb[28].mxu1 %v401_v58  ;;  %v8117_v58 = vld [vmem:[#allocation11 + $0x1e0] ss:$16 sps:$4 sm:$0xff]  }
 0x1cc   :  { %1392 = vmatpush1.bf16.msra.mxu0 %v8111_v55 }
 0x1cd   :  { %1485 = vmatpush1.bf16.msra.mxu1 %v8048_v12  ;;  %1393 = vmatprep.subr.bf16.mxu0 %v8119_v59 }
 0x1ce   :  { %1486 = vmatprep.subr.bf16.mxu1 %v8056_v14 }
 0x1d0   :  { %1394 = vmatpush1.bf16.msra.mxu0 %v8117_v58 }
 0x1d1   :  { %1487 = vmatpush1.bf16.msra.mxu1 %v8054_v16 }
 0x1d2   :  { %1488 = vmatprep.subr.bf16.mxu1 %v8062_v18 }
 0x1d5   :  { %1489 = vmatpush1.bf16.msra.mxu1 %v8060_v20 }
 0x1d6   :  { %1490 = vmatprep.subr.bf16.mxu1 %v8068_v22 }
 0x1d9   :  { %1491 = vmatpush1.bf16.msra.mxu1 %v8066_v24 }
 0x1da   :  { %1492 = vmatprep.subr.bf16.mxu1 %v8074_v26 }
 0x1dd   :  { %1493 = vmatpush1.bf16.msra.mxu1 %v8072_v28 }
 0x1de   :  { %1494 = vmatprep.subr.bf16.mxu1 %v8080_v30 }
 0x1e1   :  { %1495 = vmatpush1.bf16.msra.mxu1 %v8078_v32 }
 0x1e2   :  { %1496 = vmatprep.subr.bf16.mxu1 %v8086_v34 }
 0x1e5   :  { %1497 = vmatpush1.bf16.msra.mxu1 %v8084_v36 }
 0x1e6   :  { %1498 = vmatprep.subr.bf16.mxu1 %v8092_v38 }
 0x1e9   :  { %1499 = vmatpush1.bf16.msra.mxu1 %v8090_v40 }
 0x1ea   :  { %1500 = vmatprep.subr.bf16.mxu1 %v8098_v42 }
 0x1ed   :  { %1501 = vmatpush1.bf16.msra.mxu1 %v8096_v44 }
 0x1ee   :  { %1502 = vmatprep.subr.bf16.mxu1 %v8104_v46 }
 0x1f1   :  { %1503 = vmatpush1.bf16.msra.mxu1 %v8102_v50 }
 0x1f2   :  { %1504 = vmatprep.subr.bf16.mxu1 %v8110_v52 }
 0x1f5   :  { %1505 = vmatpush1.bf16.msra.mxu1 %v8108_v54 }
 0x1f6   :  { %1506 = vmatprep.subr.bf16.mxu1 %v8116_v56 }
 0x1f9   :  { %1507 = vmatpush1.bf16.msra.mxu1 %v8114_v57 }
 0x266   :  { %v8682_v49 = vpop.f32.mrb[0].mxu1 }
 0x267   :  { %v8684_v60 = vpop.f32.mrb[1].mxu1  ;;  %v653_v62 = vmul.f32 %v8682_v49, %v8682_v49 }
 0x268   :  { %v8686_v61 = vpop.f32.mrb[2].mxu1  ;;  %v654_v2 = vmul.f32 %v8684_v60, %v8684_v60 }
 0x269   :  { %v611_v63 = vadd.f32 %v8686_v61, %v8682_v49  ;;  %v655_v0 = vmul.f32 %v8686_v61, %v8686_v61  ;;  %v8694_v1 = vpop.f32.mrb[3].mxu1 }
 0x26a   :  { %v632_v3 = vadd.f32 %v8694_v1, %v8684_v60  ;;  %v656_v4 = vmul.f32 %v8694_v1, %v8694_v1 }
 0x26b   :  { %v685_v48 = vadd.f32 %v655_v0, %v653_v62 }
 0x26c   :  { %v706_v5 = vadd.f32 %v656_v4, %v654_v2 }
 0x26e   :  { %v8702_v6 = vpop.f32.mrb[4].mxu1 }
 0x26f   :  { %v612_v7 = vadd.f32 %v611_v63, %v8702_v6  ;;  %v657_v8 = vmul.f32 %v8702_v6, %v8702_v6  ;;  %v8707_v9 = vpop.f32.mrb[5].mxu1 }
 0x270   :  { %v633_v10 = vadd.f32 %v632_v3, %v8707_v9  ;;  %v658_v11 = vmul.f32 %v8707_v9, %v8707_v9  ;;  %v8712_v12 = vpop.f32.mrb[6].mxu1 }
 0x271   :  { %v686_v13 = vadd.f32 %v685_v48, %v657_v8  ;;  %v613_v14 = vadd.f32 %v612_v7, %v8712_v12  ;;  %v659_v15 = vmul.f32 %v8712_v12, %v8712_v12  ;;  %v8717_v16 = vpop.f32.mrb[7].mxu1 }
 0x272   :  { %v707_v17 = vadd.f32 %v706_v5, %v658_v11  ;;  %v634_v18 = vadd.f32 %v633_v10, %v8717_v16  ;;  %v660_v19 = vmul.f32 %v8717_v16, %v8717_v16 }
 0x273   :  { %v687_v20 = vadd.f32 %v686_v13, %v659_v15 }
 0x274   :  { %v708_v21 = vadd.f32 %v707_v17, %v660_v19 }
 0x276   :  { %v8722_v22 = vpop.f32.mrb[8].mxu1 }
 0x277   :  { %v614_v23 = vadd.f32 %v613_v14, %v8722_v22  ;;  %v661_v24 = vmul.f32 %v8722_v22, %v8722_v22  ;;  %v8727_v25 = vpop.f32.mrb[9].mxu1 }
 0x278   :  { %v635_v26 = vadd.f32 %v634_v18, %v8727_v25  ;;  %v662_v27 = vmul.f32 %v8727_v25, %v8727_v25  ;;  %v8732_v28 = vpop.f32.mrb[10].mxu1 }
 0x279   :  { %v688_v29 = vadd.f32 %v687_v20, %v661_v24  ;;  %v615_v30 = vadd.f32 %v614_v23, %v8732_v28  ;;  %v663_v31 = vmul.f32 %v8732_v28, %v8732_v28  ;;  %v8737_v32 = vpop.f32.mrb[11].mxu1 }
 0x27a   :  { %v709_v33 = vadd.f32 %v708_v21, %v662_v27  ;;  %v636_v34 = vadd.f32 %v635_v26, %v8737_v32  ;;  %v664_v35 = vmul.f32 %v8737_v32, %v8737_v32 }
 0x27b   :  { %v689_v36 = vadd.f32 %v688_v29, %v663_v31 }
 0x27c   :  { %v710_v37 = vadd.f32 %v709_v33, %v664_v35 }
 0x27e   :  { %v8742_v38 = vpop.f32.mrb[12].mxu1 }
 0x27f   :  { %v616_v39 = vadd.f32 %v615_v30, %v8742_v38  ;;  %v665_v40 = vmul.f32 %v8742_v38, %v8742_v38  ;;  %v8747_v41 = vpop.f32.mrb[13].mxu1 }
 0x280   :  { %v637_v42 = vadd.f32 %v636_v34, %v8747_v41  ;;  %v666_v43 = vmul.f32 %v8747_v41, %v8747_v41  ;;  %v8752_v44 = vpop.f32.mrb[14].mxu1 }
 0x281   :  { %v690_v45 = vadd.f32 %v689_v36, %v665_v40  ;;  %v617_v46 = vadd.f32 %v616_v39, %v8752_v44  ;;  %v667_v47 = vmul.f32 %v8752_v44, %v8752_v44  ;;  %v8757_v50 = vpop.f32.mrb[15].mxu1 }
 0x282   :  { %v711_v51 = vadd.f32 %v710_v37, %v666_v43  ;;  %v638_v52 = vadd.f32 %v637_v42, %v8757_v50  ;;  %v668_v53 = vmul.f32 %v8757_v50, %v8757_v50 }
 0x283   :  { %v691_v54 = vadd.f32 %v690_v45, %v667_v47 }
 0x284   :  { %v712_v55 = vadd.f32 %v711_v51, %v668_v53 }
 0x286   :  { %v8762_v56 = vpop.f32.mrb[16].mxu1 }
 0x287   :  { %v618_v57 = vadd.f32 %v617_v46, %v8762_v56  ;;  %v669_v58 = vmul.f32 %v8762_v56, %v8762_v56  ;;  %v8767_v59 = vpop.f32.mrb[17].mxu1 }
 0x288   :  { %v639_v62 = vadd.f32 %v638_v52, %v8767_v59  ;;  %v670_v63 = vmul.f32 %v8767_v59, %v8767_v59  ;;  %v8772_v0 = vpop.f32.mrb[18].mxu1 }
 0x289   :  { %v692_v2 = vadd.f32 %v691_v54, %v669_v58  ;;  %v619_v3 = vadd.f32 %v618_v57, %v8772_v0  ;;  %v671_v4 = vmul.f32 %v8772_v0, %v8772_v0  ;;  %v8777_v48 = vpop.f32.mrb[19].mxu1 }
 0x28a   :  { %v713_v5 = vadd.f32 %v712_v55, %v670_v63  ;;  %v640_v7 = vadd.f32 %v639_v62, %v8777_v48  ;;  %v672_v8 = vmul.f32 %v8777_v48, %v8777_v48 }
 0x28b   :  { %v693_v10 = vadd.f32 %v692_v2, %v671_v4 }
 0x28c   :  { %v714_v11 = vadd.f32 %v713_v5, %v672_v8 }
 0x28e   :  { %v8782_v13 = vpop.f32.mrb[20].mxu1 }
 0x28f   :  { %v620_v14 = vadd.f32 %v619_v3, %v8782_v13  ;;  %v673_v15 = vmul.f32 %v8782_v13, %v8782_v13  ;;  %v8787_v17 = vpop.f32.mrb[21].mxu1 }
 0x290   :  { %v641_v18 = vadd.f32 %v640_v7, %v8787_v17  ;;  %v674_v19 = vmul.f32 %v8787_v17, %v8787_v17  ;;  %v8792_v20 = vpop.f32.mrb[22].mxu1 }
 0x291   :  { %v694_v21 = vadd.f32 %v693_v10, %v673_v15  ;;  %v621_v23 = vadd.f32 %v620_v14, %v8792_v20  ;;  %v675_v24 = vmul.f32 %v8792_v20, %v8792_v20  ;;  %v8797_v26 = vpop.f32.mrb[23].mxu1 }
 0x292   :  { %v715_v27 = vadd.f32 %v714_v11, %v674_v19  ;;  %v642_v29 = vadd.f32 %v641_v18, %v8797_v26  ;;  %v676_v30 = vmul.f32 %v8797_v26, %v8797_v26 }
 0x293   :  { %v695_v31 = vadd.f32 %v694_v21, %v675_v24 }
 0x294   :  { %v716_v33 = vadd.f32 %v715_v27, %v676_v30 }
 0x296   :  { %v8802_v34 = vpop.f32.mrb[24].mxu1 }
 0x297   :  { %v622_v35 = vadd.f32 %v621_v23, %v8802_v34  ;;  %v677_v36 = vmul.f32 %v8802_v34, %v8802_v34  ;;  %v8807_v37 = vpop.f32.mrb[25].mxu1 }
 0x298   :  { %v643_v39 = vadd.f32 %v642_v29, %v8807_v37  ;;  %v678_v40 = vmul.f32 %v8807_v37, %v8807_v37  ;;  %v8812_v42 = vpop.f32.mrb[26].mxu1 }
 0x299   :  { %v696_v43 = vadd.f32 %v695_v31, %v677_v36  ;;  %v623_v45 = vadd.f32 %v622_v35, %v8812_v42  ;;  %v679_v46 = vmul.f32 %v8812_v42, %v8812_v42  ;;  %v8817_v47 = vpop.f32.mrb[27].mxu1 }
 0x29a   :  { %v717_v51 = vadd.f32 %v716_v33, %v678_v40  ;;  %v644_v52 = vadd.f32 %v643_v39, %v8817_v47  ;;  %v680_v53 = vmul.f32 %v8817_v47, %v8817_v47 }
 0x29b   :  { %v697_v54 = vadd.f32 %v696_v43, %v679_v46 }
 0x29c   :  { %v718_v55 = vadd.f32 %v717_v51, %v680_v53 }
 0x29e   :  { %v8822_v57 = vpop.f32.mrb[28].mxu1 }
 0x29f   :  { %v624_v58 = vadd.f32 %v623_v45, %v8822_v57  ;;  %v681_v62 = vmul.f32 %v8822_v57, %v8822_v57  ;;  %v8827_v63 = vpop.f32.mrb[29].mxu1 }
 0x2a0   :  { %v645_v2 = vadd.f32 %v644_v52, %v8827_v63  ;;  %v682_v3 = vmul.f32 %v8827_v63, %v8827_v63  ;;  %v8832_v4 = vpop.f32.mrb[30].mxu1 }
 0x2a1   :  { %v698_v5 = vadd.f32 %v697_v54, %v681_v62  ;;  %v625_v7 = vadd.f32 %v624_v58, %v8832_v4  ;;  %v683_v8 = vmul.f32 %v8832_v4, %v8832_v4  ;;  %v608_v10 = vpop.f32.mrb[31].mxu1 }
 0x2a2   :  { %v719_v11 = vadd.f32 %v718_v55, %v682_v3  ;;  %v646_v14 = vadd.f32 %v645_v2, %v608_v10  ;;  %v684_v15 = vmul.f32 %v608_v10, %v608_v10 }
 0x2a3   :  { %v626_v18 = vrot.slane %v625_v7, 4  ;;  %v699_v19 = vadd.f32 %v698_v5, %v683_v8 }
 0x2a4   :  { %v647_v21 = vrot.slane %v646_v14, 4  ;;  %v720_v23 = vadd.f32 %v719_v11, %v684_v15 }
 0x2a5   :  { %v627_v24 = vadd.f32 %v626_v18, %v625_v7  ;;  %v700_v27 = vrot.slane %v699_v19, 4 }
 0x2a6   :  { %v648_v29 = vadd.f32 %v647_v21, %v646_v14  ;;  %v721_v30 = vrot.slane %v720_v23, 4 }
 0x2a7   :  { %v628_v31 = vrot.slane %v627_v24, 2  ;;  %v701_v33 = vadd.f32 %v700_v27, %v699_v19 }
 0x2a8   :  { %v649_v35 = vrot.slane %v648_v29, 2  ;;  %v722_v36 = vadd.f32 %v721_v30, %v720_v23 }
 0x2a9   :  { %v629_v39 = vadd.f32 %v628_v31, %v627_v24  ;;  %v702_v40 = vrot.slane %v701_v33, 2  ;;  %v8471_v24 = vmov 1966171168  }
 0x2aa   :  { %v650_v43 = vadd.f32 %v649_v35, %v648_v29  ;;  %v723_v45 = vrot.slane %v722_v36, 2  ;;  %v744_v27 = vunpack.c.l.s4 %v8471_v24  ;;  %v746_v29 = vlaneseq }
 0x2ab   :  { %v630_v46 = vrot.slane %v629_v39, 1  ;;  %v703_v51 = vadd.f32 %v702_v40, %v701_v33 }
 0x2ac   :  { %v651_v52 = vrot.slane %v650_v43, 1  ;;  %v724_v53 = vadd.f32 %v723_v45, %v722_v36  ;;  %v745_v30 = vunpack.c.0.s8 %v744_v27  ;;  %v8837_v31 = vshrl.u32 %v746_v29, 7 }
 0x2ad   :  { %v631_v54 = vadd.f32 %v630_v46, %v629_v39  ;;  %v704_v55 = vrot.slane %v703_v51, 1 }
 0x2ae   :  { %v652_v58 = vadd.f32 %v651_v52, %v650_v43  ;;  %v725_v62 = vrot.slane %v724_v53, 1  ;;  %12054 = vst [vmem:[#allocation23_spill] sm:$0xff] %v8837_v31  ;;  %v8840_v35 = vsub.s32 %v745_v30, %v8837_v31  ;;  %v735_v43 = vld [vmem:[%s11746_s4] sm:$0x3]  ;;  %v8848_v46 = vsub.s32 0, %v8837_v31 }
 0x2af   :  { %v705_v2 = vadd.f32 %v704_v55, %v703_v51  ;;  %v727_v3 = vmul.f32 0.0078125, %v631_v54  ;;  %v8851_v51 = vsub.s32 1, %v8837_v31 }
 0x2b0   :  { %v726_v5 = vadd.f32 %v725_v62, %v724_v53  ;;  %v728_v7 = vmul.f32 0.0078125, %v652_v58  ;;  %12055 = vst [vmem:[#allocation24_spill] sm:$0xff] %v8840_v35  ;;  %12056 = vst [vmem:[#allocation25_spill] sm:$0xff] %v8848_v46 }
 0x2b1   :  { %v729_v8 = vmul.f32 0.0078125, %v705_v2  ;;  %v731_v11 = vmul.f32 %v727_v3, %v727_v3  ;;  %12057 = vst [vmem:[#allocation26_spill] sm:$0xff] %v8851_v51 }
 0x2b2   :  { %v730_v14 = vmul.f32 0.0078125, %v726_v5  ;;  %v732_v15 = vmul.f32 %v728_v7, %v728_v7 }
 0x2b3   :  { %v733_v18 = vsub.f32 %v729_v8, %v731_v11 }
 0x2b4   :  { %v734_v19 = vsub.f32 %v730_v14, %v732_v15 }
 0x2b5   :  { %v736_v21 = vadd.f32 0.8, %v733_v18 }
 0x2b6   :  { %v737_v23 = vadd.f32 0.8, %v734_v19 }
 0x2b7   :  { %8184 = vrsqrt.f32 %v736_v21 }
 0x2b8   :  { %8186 = vrsqrt.f32 %v737_v23 }
 0x2c1   :  { %v8185_v33 = vpop.eup %8184 }
 0x2c2   :  { %v8187_v36 = vpop.eup %8186 }
 0x2c3   :  { %v742_v39 = vcombine.low %v8185_v33, %v8187_v36 }
 0x2c5   :  { %v749_v40 = vrot.slane %v742_v39, %v8840_v35 }
 0x2c7   :  { %v756_v45 = vrot.slane %v749_v40, %v8840_v35 }
 0x2c9   :  { %v758_v52 = vmul.f32 %v756_v45, %v735_v43 }
 0x2cb   :  { %v764_v53 = vrot.slane %v758_v52, %v8848_v46  ;;  %v768_v54 = vrot.slane %v758_v52, %v8851_v51 }
 0x2cd   :  { %v771_v55 = vmul.f32 %v764_v53, %v727_v3  ;;  %v772_v58 = vmul.f32 %v768_v54, %v728_v7  ;;  %v823_v62 = vmul.f32 %v768_v54, %v608_v10  ;;  %v793_v2 = vmul.f32 %v768_v54, %v8684_v60 }
 0x2ce   :  { %v795_v5 = vmul.f32 %v768_v54, %v8694_v1  ;;  %v792_v8 = vmul.f32 %v764_v53, %v8682_v49  ;;  %v794_v11 = vmul.f32 %v764_v53, %v8686_v61  ;;  %v797_v14 = vmul.f32 %v768_v54, %v8707_v9 }
 0x2cf   :  { %v775_v15 = vcombine.low %v771_v55, %v772_v58  ;;  %v799_v18 = vmul.f32 %v768_v54, %v8717_v16  ;;  %v796_v19 = vmul.f32 %v764_v53, %v8702_v6  ;;  %v798_v21 = vmul.f32 %v764_v53, %v8712_v12  ;;  %v759_v12 = vld [vmem:[#allocation10] sm:$0x3] }
 0x2d0   :  { %v801_v3 = vmul.f32 %v768_v54, %v8727_v25  ;;  %v803_v10 = vmul.f32 %v768_v54, %v8737_v32  ;;  %v8866_v60 = vmul.f32 %v764_v53, %v8722_v22  ;;  %v8869_v49 = vmul.f32 %v764_v53, %v8732_v28 }
 0x2d1   :  { %v782_v61 = vrot.slane %v775_v15, %v8840_v35  ;;  %v8873_v1 = vmul.f32 %v768_v54, %v8747_v41  ;;  %v8876_v9 = vmul.f32 %v768_v54, %v8757_v50  ;;  %v8879_v6 = vmul.f32 %v764_v53, %v8742_v38 }
 0x2d2   :  { %v8882_v16 = vmul.f32 %v764_v53, %v8752_v44  ;;  %v8885_v22 = vmul.f32 %v768_v54, %v8767_v59  ;;  %v8888_v25 = vmul.f32 %v768_v54, %v8777_v48  ;;  %v8891_v28 = vmul.f32 %v764_v53, %v8762_v56 }
 0x2d3   :  { %v789_v32 = vrot.slane %v782_v61, %v8840_v35  ;;  %v8895_v41 = vmul.f32 %v764_v53, %v8772_v0  ;;  %v8898_v38 = vmul.f32 %v768_v54, %v8787_v17  ;;  %v8901_v44 = vmul.f32 %v768_v54, %v8797_v26 }
 0x2d4   :  { %v8904_v50 = vmul.f32 %v764_v53, %v8782_v13  ;;  %v8907_v59 = vmul.f32 %v764_v53, %v8792_v20  ;;  %v8910_v56 = vmul.f32 %v768_v54, %v8807_v37  ;;  %v8913_v48 = vmul.f32 %v768_v54, %v8817_v47 }
 0x2d5   :  { %v791_v0 = vsub.f32 %v759_v12, %v789_v32  ;;  %v8916_v7 = vmul.f32 %v764_v53, %v8802_v34  ;;  %v8919_v17 = vmul.f32 %v764_v53, %v8812_v42  ;;  %v8922_v26 = vmul.f32 %v768_v54, %v8827_v63 }
 0x2d6   :  { %v8925_v13 = vmul.f32 %v764_v53, %v8822_v57  ;;  %v8928_v20 = vmul.f32 %v764_v53, %v8832_v4 }
 0x2d7   :  { %v8931_v37 = vrot.slane %v791_v0, %v8848_v46  ;;  %v8934_v47 = vrot.slane %v791_v0, %v8851_v51 }
 0x2d9   :  { %v8937_v34 = vadd.f32 %v8934_v47, %v823_v62  ;;  %v836_v42 = vadd.f32 %v8934_v47, %v793_v2  ;;  %v838_v63 = vadd.f32 %v8934_v47, %v795_v5  ;;  %v835_v23 = vadd.f32 %v8931_v37, %v792_v8 }
 0x2da   :  { %v837_v57 = vadd.f32 %v8931_v37, %v794_v11  ;;  %v840_v4 = vadd.f32 %v8934_v47, %v797_v14  ;;  %v842_v24 = vadd.f32 %v8934_v47, %v799_v18  ;;  %v839_v27 = vadd.f32 %v8931_v37, %v796_v19 }
 0x2db   :  { %vm868_vm0 = vcmp.gt.f32.partialorder %v836_v42, 0.0  ;;  %vm870_vm1 = vcmp.gt.f32.partialorder %v838_v63, 0.0  ;;  %v900_v29 = vmul.f32 0.2, %v836_v42  ;;  %v902_v30 = vmul.f32 0.2, %v838_v63 }
 0x2dc   :  { %vm867_vm2 = vcmp.gt.f32.partialorder %v835_v23, 0.0  ;;  %vm869_vm3 = vcmp.gt.f32.partialorder %v837_v57, 0.0  ;;  %v899_v33 = vmul.f32 0.2, %v835_v23  ;;  %v901_v36 = vmul.f32 0.2, %v837_v57 }
 0x2dd   :  { %v932_v39 = vsel %vm868_vm0, %v836_v42, %v900_v29  ;;  %v934_v40 = vsel %vm870_vm1, %v838_v63, %v902_v30  ;;  %vm872_vm4 = vcmp.gt.f32.partialorder %v840_v4, 0.0  ;;  %vm874_vm5 = vcmp.gt.f32.partialorder %v842_v24, 0.0 }
 0x2de   :  { %v964_v43 = vpack.c.bf16 %v934_v40, %v932_v39  ;;  %v931_v45 = vsel %vm867_vm2, %v835_v23, %v899_v33  ;;  %v933_v52 = vsel %vm869_vm3, %v837_v57, %v901_v36  ;;  %v904_v53 = vmul.f32 0.2, %v840_v4 }
 0x2df   :  { %v963_v54 = vpack.c.bf16 %v933_v52, %v931_v45  ;;  %v906_v55 = vmul.f32 0.2, %v842_v24  ;;  %v841_v58 = vadd.f32 %v8931_v37, %v798_v21  ;;  %vm871_vm6 = vcmp.gt.f32.partialorder %v839_v27, 0.0 }
 0x2e0   :  { %1395 = vmatprep.mubr.bf16.mxu0 %v964_v43  ;;  %1508 = vmatprep.mubr.bf16.mxu1 %v964_v43  ;;  %v936_v62 = vsel %vm872_vm4, %v840_v4, %v904_v53  ;;  %v903_v2 = vmul.f32 0.2, %v839_v27  ;;  %v844_v5 = vadd.f32 %v8934_v47, %v801_v3  ;;  %v846_v8 = vadd.f32 %v8934_v47, %v803_v10 }
 0x2e1   :  { %1396 = vmatmul.mubr.bf16.vlgmr.msra.gmra.mrb[16].mxu0 %v963_v54  ;;  %1509 = vmatmul.mubr.bf16.vlgmr.msra.gmra.mrb[32].mxu1 %v963_v54  ;;  %v938_v11 = vsel %vm874_vm5, %v842_v24, %v906_v55  ;;  %vm873_vm7 = vcmp.gt.f32.partialorder %v841_v58, 0.0  ;;  %v905_v14 = vmul.f32 0.2, %v841_v58  ;;  %v843_v15 = vadd.f32 %v8931_v37, %v8866_v60 }
 0x2e2   :  { %v966_v18 = vpack.c.bf16 %v938_v11, %v936_v62  ;;  %v935_v19 = vsel %vm871_vm6, %v839_v27, %v903_v2  ;;  %vm876_vm8 = vcmp.gt.f32.partialorder %v844_v5, 0.0  ;;  %vm878_vm9 = vcmp.gt.f32.partialorder %v846_v8, 0.0 }
 0x2e3   :  { %v937_v21 = vsel %vm873_vm7, %v841_v58, %v905_v14  ;;  %v908_v61 = vmul.f32 0.2, %v844_v5  ;;  %v910_v12 = vmul.f32 0.2, %v846_v8  ;;  %v845_v3 = vadd.f32 %v8931_v37, %v8869_v49 }
 0x2e4   :  { %1405 = vmatprep.mubr.bf16.mxu0 %v966_v18  ;;  %1518 = vmatprep.mubr.bf16.mxu1 %v966_v18  ;;  %v965_v10 = vpack.c.bf16 %v937_v21, %v935_v19  ;;  %vm875_vm10 = vcmp.gt.f32.partialorder %v843_v15, 0.0  ;;  %v907_v32 = vmul.f32 0.2, %v843_v15  ;;  %v848_v0 = vadd.f32 %v8934_v47, %v8873_v1 }
 0x2e5   :  { %v940_v42 = vsel %vm876_vm8, %v844_v5, %v908_v61  ;;  %v942_v60 = vsel %vm878_vm9, %v846_v8, %v910_v12  ;;  %vm877_vm11 = vcmp.gt.f32.partialorder %v845_v3, 0.0  ;;  %v909_v63 = vmul.f32 0.2, %v845_v3 }
 0x2e6   :  { %v968_v23 = vpack.c.bf16 %v942_v60, %v940_v42  ;;  %v939_v57 = vsel %vm875_vm10, %v843_v15, %v907_v32  ;;  %v850_v4 = vadd.f32 %v8934_v47, %v8876_v9  ;;  %vm880_vm12 = vcmp.gt.f32.partialorder %v848_v0, 0.0 }
 0x2e7   :  { %v941_v24 = vsel %vm877_vm11, %v845_v3, %v909_v63  ;;  %v912_v49 = vmul.f32 0.2, %v848_v0  ;;  %v847_v27 = vadd.f32 %v8931_v37, %v8879_v6  ;;  %v849_v29 = vadd.f32 %v8931_v37, %v8882_v16 }
 0x2e8   :  { %v967_v30 = vpack.c.bf16 %v941_v24, %v939_v57  ;;  %vm882_vm13 = vcmp.gt.f32.partialorder %v850_v4, 0.0  ;;  %v914_v1 = vmul.f32 0.2, %v850_v4  ;;  %v852_v33 = vadd.f32 %v8934_v47, %v8885_v22 }
 0x2e9   :  { %1406 = vmatmul.mubr.bf16.gmra.mrb[20].mxu0 %v965_v10  ;;  %1519 = vmatmul.mubr.bf16.gmra.mrb[36].mxu1 %v965_v10  ;;  %v944_v36 = vsel %vm880_vm12, %v848_v0, %v912_v49  ;;  %vm879_vm14 = vcmp.gt.f32.partialorder %v847_v27, 0.0  ;;  %vm881_vm15 = vcmp.gt.f32.partialorder %v849_v29, 0.0  ;;  %v911_v9 = vmul.f32 0.2, %v847_v27 }
 0x2ea   :  { %1415 = vmatprep.mubr.bf16.mxu0 %v968_v23  ;;  %1528 = vmatprep.mubr.bf16.mxu1 %v968_v23  ;;  %v946_v39 = vsel %vm882_vm13, %v850_v4, %v914_v1  ;;  %v913_v40 = vmul.f32 0.2, %v849_v29  ;;  %v854_v6 = vadd.f32 %v8934_v47, %v8888_v25  ;;  %vm884_vm0 = vcmp.gt.f32.partialorder %v852_v33, 0.0 }
 0x2eb   :  { %v970_v16 = vpack.c.bf16 %v946_v39, %v944_v36  ;;  %v943_v43 = vsel %vm879_vm14, %v847_v27, %v911_v9  ;;  %v916_v45 = vmul.f32 0.2, %v852_v33  ;;  %v851_v22 = vadd.f32 %v8931_v37, %v8891_v28 }
 0x2ec   :  { %v945_v52 = vsel %vm881_vm15, %v849_v29, %v913_v40  ;;  %vm886_vm1 = vcmp.gt.f32.partialorder %v854_v6, 0.0  ;;  %v918_v53 = vmul.f32 0.2, %v854_v6  ;;  %v853_v54 = vadd.f32 %v8931_v37, %v8895_v41 }
 0x2ed   :  { %v969_v55 = vpack.c.bf16 %v945_v52, %v943_v43  ;;  %v948_v58 = vsel %vm884_vm0, %v852_v33, %v916_v45  ;;  %vm883_vm2 = vcmp.gt.f32.partialorder %v851_v22, 0.0  ;;  %v915_v62 = vmul.f32 0.2, %v851_v22  ;;  %v2310_v43 = vld [vmem:[#allocation13 + $0x28] sm:$0xff] }
 0x2ee   :  { %v950_v2 = vsel %vm886_vm1, %v854_v6, %v918_v53  ;;  %vm885_vm3 = vcmp.gt.f32.partialorder %v853_v54, 0.0  ;;  %v917_v25 = vmul.f32 0.2, %v853_v54  ;;  %v856_v5 = vadd.f32 %v8934_v47, %v8898_v38  ;;  %v2313_v53 = vld [vmem:[#allocation13 + $0x40] sm:$0xff] }
 0x2ef   :  { %v972_v8 = vpack.c.bf16 %v950_v2, %v948_v58  ;;  %v947_v11 = vsel %vm883_vm2, %v851_v22, %v915_v62  ;;  %v858_v28 = vadd.f32 %v8934_v47, %v8901_v44  ;;  %v855_v14 = vadd.f32 %v8931_v37, %v8904_v50  ;;  %v2318_v62 = vld [vmem:[#allocation13 + $0x68] sm:$0xff] }
 0x2f0   :  { %v949_v15 = vsel %vm885_vm3, %v853_v54, %v917_v25  ;;  %vm888_vm4 = vcmp.gt.f32.partialorder %v856_v5, 0.0  ;;  %v920_v41 = vmul.f32 0.2, %v856_v5  ;;  %v857_v18 = vadd.f32 %v8931_v37, %v8907_v59  ;;  %v2317_v54 = vld [vmem:[#allocation13 + $0x60] sm:$0xff] }
 0x2f1   :  { %1416 = vmatmul.mubr.bf16.gmra.mrb[24].mxu0 %v967_v30  ;;  %1529 = vmatmul.mubr.bf16.gmra.mrb[40].mxu1 %v967_v30  ;;  %v971_v19 = vpack.c.bf16 %v949_v15, %v947_v11  ;;  %vm890_vm5 = vcmp.gt.f32.partialorder %v858_v28, 0.0  ;;  %v922_v21 = vmul.f32 0.2, %v858_v28  ;;  %vm887_vm6 = vcmp.gt.f32.partialorder %v855_v14, 0.0  ;;  %v2325_v11 = vld [vmem:[#allocation13 + $0xa0] sm:$0xff]  ;;  %v2326_v15 = vld [vmem:[#allocation13 + $0xa8] sm:$0xff] }
 0x2f2   :  { %1425 = vmatprep.mubr.bf16.mxu0 %v970_v16  ;;  %1538 = vmatprep.mubr.bf16.mxu1 %v970_v16  ;;  %v952_v38 = vsel %vm888_vm4, %v856_v5, %v920_v41  ;;  %vm889_vm7 = vcmp.gt.f32.partialorder %v857_v18, 0.0  ;;  %v919_v44 = vmul.f32 0.2, %v855_v14  ;;  %v921_v61 = vmul.f32 0.2, %v857_v18 }
 0x2f3   :  { %v954_v12 = vsel %vm890_vm5, %v858_v28, %v922_v21  ;;  %v860_v50 = vadd.f32 %v8934_v47, %v8910_v56  ;;  %v862_v3 = vadd.f32 %v8934_v47, %v8913_v48  ;;  %v859_v59 = vadd.f32 %v8931_v37, %v8916_v7  ;;  %v2322_v28 = vld [vmem:[#allocation13 + $0x88] sm:$0xff]  ;;  %v2329_v21 = vld [vmem:[#allocation13 + $0xc0] sm:$0xff] }
 0x2f4   :  { %v974_v10 = vpack.c.bf16 %v954_v12, %v952_v38  ;;  %v951_v32 = vsel %vm887_vm6, %v855_v14, %v919_v44  ;;  %v953_v0 = vsel %vm889_vm7, %v857_v18, %v921_v61  ;;  %v861_v42 = vadd.f32 %v8931_v37, %v8919_v17  ;;  %v2333_v38 = vld [vmem:[#allocation13 + $0xe0] sm:$0xff]  ;;  %v2330_v44 = vld [vmem:[#allocation13 + $0xc8] sm:$0xff] }
 0x2f5   :  { %v973_v60 = vpack.c.bf16 %v953_v0, %v951_v32  ;;  %vm892_vm8 = vcmp.gt.f32.partialorder %v860_v50, 0.0  ;;  %vm894_vm9 = vcmp.gt.f32.partialorder %v862_v3, 0.0  ;;  %v924_v63 = vmul.f32 0.2, %v860_v50  ;;  %v2334_v12 = vld [vmem:[#allocation13 + $0xe8] sm:$0xff]  ;;  %v2341_v32 = vld [vmem:[#allocation13 + $0x120] sm:$0xff] }
 0x2f6   :  { %v926_v23 = vmul.f32 0.2, %v862_v3  ;;  %vm891_vm10 = vcmp.gt.f32.partialorder %v859_v59, 0.0  ;;  %vm893_vm11 = vcmp.gt.f32.partialorder %v861_v42, 0.0  ;;  %v923_v56 = vmul.f32 0.2, %v859_v59 }
 0x2f7   :  { %v956_v57 = vsel %vm892_vm8, %v860_v50, %v924_v63  ;;  %v925_v4 = vmul.f32 0.2, %v861_v42  ;;  %v864_v48 = vadd.f32 %v8934_v47, %v8922_v26  ;;  %vm898_vm12 = vcmp.gt.f32.partialorder %v8937_v34, 0.0  ;;  %v2338_v0 = vld [vmem:[#allocation13 + $0x108] sm:$0xff] }
 0x2f8   :  { %v958_v7 = vsel %vm894_vm9, %v862_v3, %v926_v23  ;;  %v955_v24 = vsel %vm891_vm10, %v859_v59, %v923_v56  ;;  %v930_v49 = vmul.f32 0.2, %v8937_v34  ;;  %v863_v17 = vadd.f32 %v8931_v37, %v8925_v13 }
 0x2f9   :  { %1426 = vmatmul.mubr.bf16.gmra.mrb[28].mxu0 %v969_v55  ;;  %1539 = vmatmul.mubr.bf16.gmra.mrb[44].mxu1 %v969_v55  ;;  %v976_v27 = vpack.c.bf16 %v958_v7, %v956_v57  ;;  %v957_v29 = vsel %vm893_vm11, %v861_v42, %v925_v4  ;;  %vm896_vm13 = vcmp.gt.f32.partialorder %v864_v48, 0.0  ;;  %v928_v30 = vmul.f32 0.2, %v864_v48  ;;  %v2314_v55 = vld [vmem:[#allocation13 + $0x48] sm:$0xff]  ;;  %v2345_v57 = vld [vmem:[#allocation13 + $0x140] sm:$0xff] }
 0x2fa   :  { %1435 = vmatprep.mubr.bf16.mxu0 %v972_v8  ;;  %1548 = vmatprep.mubr.bf16.mxu1 %v972_v8  ;;  %v975_v1 = vpack.c.bf16 %v957_v29, %v955_v24  ;;  %v962_v26 = vsel %vm898_vm12, %v8937_v34, %v930_v49  ;;  %v865_v47 = vadd.f32 %v8931_v37, %v8928_v20  ;;  %vm895_vm14 = vcmp.gt.f32.partialorder %v863_v17, 0.0  ;;  %v2305_v20 = vld [vmem:[#allocation13] sm:$0xff]  ;;  %v2306_v34 = vld [vmem:[#allocation13 + $0x8] sm:$0xff] }
 0x2fb   :  { %v960_v33 = vsel %vm896_vm13, %v864_v48, %v928_v30  ;;  %v927_v36 = vmul.f32 0.2, %v863_v17  ;;  %v2309_v37 = vld [vmem:[#allocation13 + $0x20] sm:$0xff]  ;;  %v7222_v22 = vcombine.low %v2306_v34, %v2310_v43  ;;  %v7223_v52 = vcombine.high %v2306_v34, %v2310_v43  ;;  %v2346_v48 = vld [vmem:[#allocation13 + $0x148] sm:$0xff] }
 0x2fc   :  { %v978_v9 = vpack.c.bf16 %v962_v26, %v960_v33  ;;  %vm897_vm15 = vcmp.gt.f32.partialorder %v865_v47, 0.0  ;;  %v929_v13 = vmul.f32 0.2, %v865_v47  ;;  %v7221_v16 = vcombine.high %v2305_v20, %v2309_v37  ;;  %v2321_v8 = vld [vmem:[#allocation13 + $0x80] sm:$0xff]  ;;  %v2350_v24 = vld [vmem:[#allocation13 + $0x168] sm:$0xff] }
 0x2fd   :  { %v959_v39 = vsel %vm895_vm14, %v863_v17, %v927_v36  ;;  %v7220_v45 = vcombine.low %v2305_v20, %v2309_v37  ;;  %4067 = vmatprep.subr.bf16.mxu1 %v7223_v52  ;;  %v7229_v58 = vcombine.high %v2313_v53, %v2317_v54  ;;  %v7228_v2 = vcombine.low %v2313_v53, %v2317_v54  ;;  %v2349_v4 = vld [vmem:[#allocation13 + $0x160] sm:$0xff]  ;;  %v2366_v20 = vld [vmem:[#allocation13 + $0x1e8] sm:$0xff] }
 0x2fe   :  { %v961_v40 = vsel %vm897_vm15, %v865_v47, %v929_v13  ;;  %3841 = vmatprep.subr.bf16.mxu0 %v7221_v16  ;;  %4068 = vmatpush1.bf16.msra.mxu1 %v7222_v22  ;;  %v7230_v25 = vcombine.low %v2314_v55, %v2318_v62  ;;  %v7231_v5 = vcombine.high %v2314_v55, %v2318_v62  ;;  %v2353_v29 = vld [vmem:[#allocation13 + $0x180] sm:$0xff]  ;;  %v2358_v47 = vld [vmem:[#allocation13 + $0x1a8] sm:$0xff] }
 0x2ff   :  { %v977_v6 = vpack.c.bf16 %v961_v40, %v959_v39  ;;  %3842 = vmatpush1.bf16.msra.mxu0 %v7220_v45  ;;  %v7237_v14 = vcombine.high %v2321_v8, %v2325_v11  ;;  %v7236_v41 = vcombine.low %v2321_v8, %v2325_v11  ;;  %v7238_v18 = vcombine.low %v2322_v28, %v2326_v15  ;;  %v2357_v30 = vld [vmem:[#allocation13 + $0x1a0] sm:$0xff]  ;;  %v2362_v40 = vld [vmem:[#allocation13 + $0x1c8] sm:$0xff] }
 0x300   :  { %3843 = vmatprep.subr.bf16.mxu0 %v7229_v58  ;;  %4069 = vmatprep.subr.bf16.mxu1 %v7231_v5  ;;  %v7245_v61 = vcombine.high %v2329_v21, %v2333_v38  ;;  %v7244_v50 = vcombine.low %v2329_v21, %v2333_v38  ;;  %v7246_v3 = vcombine.low %v2330_v44, %v2334_v12  ;;  %v2361_v13 = vld [vmem:[#allocation13 + $0x1c0] sm:$0xff]  ;;  %v2370_v22 = vld [vmem:[#allocation13 + $0x208] sm:$0xff] }
 0x301   :  { %1436 = vmatmul.mubr.bf16.gmra.mrb[32].mxu0 %v971_v19  ;;  %1549 = vmatmul.mubr.bf16.gmra.mrb[48].mxu1 %v971_v19  ;;  %v7239_v19 = vcombine.high %v2322_v28, %v2326_v15  ;;  %v7247_v59 = vcombine.high %v2330_v44, %v2334_v12  ;;  %v7261_v7 = vcombine.high %v2345_v57, %v2349_v4  ;;  %v2365_v39 = vld [vmem:[#allocation13 + $0x1e0] sm:$0xff]  ;;  %v2374_v53 = vld [vmem:[#allocation13 + $0x228] sm:$0xff] }
 0x302   :  { %1445 = vmatprep.mubr.bf16.mxu0 %v974_v10  ;;  %1558 = vmatprep.mubr.bf16.mxu1 %v974_v10  ;;  %v2337_v10 = vld [vmem:[#allocation13 + $0x100] sm:$0xff]  ;;  %v7260_v49 = vcombine.low %v2345_v57, %v2349_v4  ;;  %v7262_v17 = vcombine.low %v2346_v48, %v2350_v24  ;;  %v7269_v26 = vcombine.high %v2353_v29, %v2357_v30  ;;  %v9001_v15 = vld [vmem:[#allocation13 + $0x2a8] sm:$0xff] }
 0x303   :  { %3844 = vmatpush1.bf16.msra.mxu0 %v7228_v2  ;;  %4070 = vmatpush1.bf16.msra.mxu1 %v7230_v25  ;;  %v7253_v42 = vcombine.high %v2337_v10, %v2341_v32  ;;  %v7252_v63 = vcombine.low %v2337_v10, %v2341_v32  ;;  %v7268_v33 = vcombine.low %v2353_v29, %v2357_v30  ;;  %v2369_v43 = vld [vmem:[#allocation13 + $0x200] sm:$0xff]  ;;  %v2378_v2 = vld [vmem:[#allocation13 + $0x248] sm:$0xff] }
 0x304   :  { %3845 = vmatprep.subr.bf16.mxu0 %v7237_v14  ;;  %4071 = vmatprep.subr.bf16.mxu1 %v7239_v19  ;;  %v7276_v37 = vcombine.low %v2361_v13, %v2365_v39  ;;  %v7278_v34 = vcombine.low %v2362_v40, %v2366_v20  ;;  %v7279_v16 = vcombine.high %v2362_v40, %v2366_v20  ;;  %v2373_v45 = vld [vmem:[#allocation13 + $0x220] sm:$0xff]  ;;  %v2382_v25 = vld [vmem:[#allocation13 + $0x268] sm:$0xff] }
 0x305   :  { %v7285_v52 = vcombine.high %v2369_v43, %v2373_v45  ;;  %v2377_v54 = vld [vmem:[#allocation13 + $0x240] sm:$0xff]  ;;  %v7284_v58 = vcombine.low %v2369_v43, %v2373_v45  ;;  %v7287_v62 = vcombine.high %v2370_v22, %v2374_v53  ;;  %v7286_v8 = vcombine.low %v2370_v22, %v2374_v53  ;;  %v8999_v14 = vld [vmem:[#allocation13 + $0x288] sm:$0xff] }
 0x306   :  { %v2381_v55 = vld [vmem:[#allocation13 + $0x260] sm:$0xff]  ;;  %v7294_v38 = vcombine.low %v2378_v2, %v2382_v25  ;;  %v9067_v40 = vld [vmem:[#allocation13 + $0x328] sm:$0xff] }
 0x307   :  { %3846 = vmatpush1.bf16.msra.mxu0 %v7236_v41  ;;  %4072 = vmatpush1.bf16.msra.mxu1 %v7238_v18  ;;  %v8995_v5 = vld [vmem:[#allocation13 + $0x280] sm:$0xff]  ;;  %v7293_v11 = vcombine.high %v2377_v54, %v2381_v55  ;;  %v7295_v41 = vcombine.high %v2378_v2, %v2382_v25  ;;  %v7292_v21 = vcombine.low %v2377_v54, %v2381_v55 }
 0x308   :  { %3847 = vmatprep.subr.bf16.mxu0 %v7245_v61  ;;  %4073 = vmatprep.subr.bf16.mxu1 %v7247_v59  ;;  %v8997_v28 = vld [vmem:[#allocation13 + $0x2a0] sm:$0xff]  ;;  %v7303_v59 = vcombine.high %v8999_v14, %v9001_v15 }
 0x309   :  { %1446 = vmatmul.mubr.bf16.gmra.mrb[36].mxu0 %v973_v60  ;;  %1559 = vmatmul.mubr.bf16.gmra.mrb[52].mxu1 %v973_v60  ;;  %v2342_v60 = vld [vmem:[#allocation13 + $0x128] sm:$0xff]  ;;  %v9071_v20 = vld [vmem:[#allocation13 + $0x360] sm:$0xff] }
 0x30a   :  { %1455 = vmatprep.mubr.bf16.mxu0 %v976_v27  ;;  %1568 = vmatprep.mubr.bf16.mxu1 %v976_v27  ;;  %v7254_v23 = vcombine.low %v2338_v0, %v2342_v60  ;;  %v7255_v56 = vcombine.high %v2338_v0, %v2342_v60  ;;  %v7263_v27 = vcombine.high %v2346_v48, %v2350_v24 }
 0x30b   :  { %3848 = vmatpush1.bf16.msra.mxu0 %v7244_v50  ;;  %4074 = vmatpush1.bf16.msra.mxu1 %v7246_v3  ;;  %v7300_v50 = vcombine.low %v8995_v5, %v8997_v28  ;;  %v7301_v3 = vcombine.high %v8995_v5, %v8997_v28 }
 0x30c   :  { %3849 = vmatprep.subr.bf16.mxu0 %v7253_v42  ;;  %4075 = vmatprep.subr.bf16.mxu1 %v7255_v56 }
 0x30f   :  { %3850 = vmatpush1.bf16.msra.mxu0 %v7252_v63  ;;  %4076 = vmatpush1.bf16.msra.mxu1 %v7254_v23  ;;  %v9029_v63 = vld [vmem:[#allocation13 + $0x2c0] sm:$0xff] }
 0x310   :  { %3851 = vmatprep.subr.bf16.mxu0 %v7261_v7  ;;  %4077 = vmatprep.subr.bf16.mxu1 %v7263_v27  ;;  %v9031_v23 = vld [vmem:[#allocation13 + $0x2e0] sm:$0xff] }
 0x311   :  { %1456 = vmatmul.mubr.bf16.gmra.mrb[40].mxu0 %v975_v1  ;;  %1569 = vmatmul.mubr.bf16.gmra.mrb[56].mxu1 %v975_v1  ;;  %v2354_v1 = vld [vmem:[#allocation13 + $0x188] sm:$0xff] }
 0x312   :  { %1465 = vmatprep.mubr.bf16.mxu0 %v978_v9  ;;  %1578 = vmatprep.mubr.bf16.mxu1 %v978_v9  ;;  %v7270_v36 = vcombine.low %v2354_v1, %v2358_v47  ;;  %v7271_v9 = vcombine.high %v2354_v1, %v2358_v47  ;;  %v9059_v47 = vld [vmem:[#allocation13 + $0x320] sm:$0xff] }
 0x313   :  { %3852 = vmatpush1.bf16.msra.mxu0 %v7260_v49  ;;  %4078 = vmatpush1.bf16.msra.mxu1 %v7262_v17  ;;  %v9045_v49 = vld [vmem:[#allocation13 + $0x2c8] sm:$0xff] }
 0x314   :  { %3853 = vmatprep.subr.bf16.mxu0 %v7269_v26  ;;  %4079 = vmatprep.subr.bf16.mxu1 %v7271_v9  ;;  %v9047_v17 = vld [vmem:[#allocation13 + $0x2e8] sm:$0xff]  ;;  %v9057_v26 = vld [vmem:[#allocation13 + $0x300] sm:$0xff] }
 0x315   :  { %v7310_v43 = vcombine.low %v9045_v49, %v9047_v17  ;;  %v7311_v45 = vcombine.high %v9045_v49, %v9047_v17  ;;  %v7316_v22 = vcombine.low %v9057_v26, %v9059_v47 }
 0x317   :  { %3854 = vmatpush1.bf16.msra.mxu0 %v7268_v33  ;;  %4080 = vmatpush1.bf16.msra.mxu1 %v7270_v36  ;;  %v9061_v33 = vld [vmem:[#allocation13 + $0x308] sm:$0xff] }
 0x318   :  { %4081 = vmatprep.subr.bf16.mxu1 %v7279_v16  ;;  %v7309_v16 = vcombine.high %v9029_v63, %v9031_v23  ;;  %v7318_v55 = vcombine.low %v9061_v33, %v9067_v40 }
 0x319   :  { %1466 = vmatmul.mubr.bf16.gmra.mrb[44].mxu0 %v977_v6  ;;  %1579 = vmatmul.mubr.bf16.gmra.mrb[60].mxu1 %v977_v6  ;;  %v7277_v6 = vcombine.high %v2361_v13, %v2365_v39  ;;  %v7302_v13 = vcombine.low %v8999_v14, %v9001_v15  ;;  %v7308_v39 = vcombine.low %v9029_v63, %v9031_v23 }
 0x31b   :  { %3855 = vmatprep.subr.bf16.mxu0 %v7277_v6  ;;  %4082 = vmatpush1.bf16.msra.mxu1 %v7278_v34  ;;  %v9069_v6 = vld [vmem:[#allocation13 + $0x340] sm:$0xff] }
 0x31c   :  { %3856 = vmatpush1.bf16.msra.mxu0 %v7276_v37  ;;  %4083 = vmatprep.subr.bf16.mxu1 %v7287_v62  ;;  %v7325_v2 = vcombine.high %v9069_v6, %v9071_v20 }
 0x31d   :  { %3857 = vmatprep.subr.bf16.mxu0 %v7285_v52  ;;  %v7317_v52 = vcombine.high %v9057_v26, %v9059_v47 }
 0x31f   :  { %4084 = vmatpush1.bf16.msra.mxu1 %v7286_v8 }
 0x320   :  { %3858 = vmatpush1.bf16.msra.mxu0 %v7284_v58  ;;  %4085 = vmatprep.subr.bf16.mxu1 %v7295_v41  ;;  %v7319_v58 = vcombine.high %v9061_v33, %v9067_v40 }
 0x321   :  { %3859 = vmatprep.subr.bf16.mxu0 %v7293_v11 }
 0x323   :  { %4086 = vmatpush1.bf16.msra.mxu1 %v7294_v38 }
 0x324   :  { %3860 = vmatpush1.bf16.msra.mxu0 %v7292_v21  ;;  %4087 = vmatprep.subr.bf16.mxu1 %v7303_v59  ;;  %v9115_v59 = vld [vmem:[#allocation13 + $0x348] sm:$0xff] }
 0x325   :  { %3861 = vmatprep.subr.bf16.mxu0 %v7301_v3 }
 0x327   :  { %4088 = vmatpush1.bf16.msra.mxu1 %v7302_v13 }
 0x328   :  { %3862 = vmatpush1.bf16.msra.mxu0 %v7300_v50  ;;  %4089 = vmatprep.subr.bf16.mxu1 %v7311_v45  ;;  %v9147_v45 = vld [vmem:[#allocation13 + $0x428] sm:$0xff] }
 0x329   :  { %3863 = vmatprep.subr.bf16.mxu0 %v7309_v16  ;;  %v9145_v16 = vld [vmem:[#allocation13 + $0x408] sm:$0xff]  ;;  %12069 = vst [vmem:[#allocation38_spill] sm:$0xff] %v9147_v45 }
 0x32a   :  { %12068 = vst [vmem:[#allocation37_spill] sm:$0xff] %v9145_v16 }
 0x32b   :  { %4090 = vmatpush1.bf16.msra.mxu1 %v7310_v43 }
 0x32c   :  { %3864 = vmatpush1.bf16.msra.mxu0 %v7308_v39  ;;  %4091 = vmatprep.subr.bf16.mxu1 %v7319_v58 }
 0x32d   :  { %3865 = vmatprep.subr.bf16.mxu0 %v7317_v52 }
 0x32f   :  { %4092 = vmatpush1.bf16.msra.mxu1 %v7318_v55  ;;  %v2429_v55 = vld [vmem:[#allocation13 + $0x3e0] sm:$0xff] }
 0x330   :  { %3866 = vmatpush1.bf16.msra.mxu0 %v7316_v22 }
 0x331   :  { %3867 = vmatprep.subr.bf16.mxu0 %v7325_v2 }
 0x3b4   :  { %v9003_v18 = vpop.f32.mrb[16].mxu0  ;;  %v9005_v19 = vpop.f32.mrb[32].mxu1 }
 0x3b5   :  { %12058 = vst [vmem:[#allocation27_spill] sm:$0xff] %v9005_v19  ;;  %v1673_v44 = vmul.f32 %v9003_v18, %v9003_v18  ;;  %v9009_v61 = vpop.f32.mrb[17].mxu0  ;;  %v9011_v12 = vpop.f32.mrb[33].mxu1  ;;  %v1675_v10 = vmul.f32 %v9005_v19, %v9005_v19 }
 0x3b6   :  { %12059 = vst [vmem:[#allocation28_spill] sm:$0xff] %v9011_v12  ;;  %v1674_v32 = vmul.f32 %v9009_v61, %v9009_v61  ;;  %v1676_v0 = vmul.f32 %v9011_v12, %v9011_v12  ;;  %v9025_v42 = vpop.f32.mrb[18].mxu0  ;;  %v9027_v60 = vpop.f32.mrb[34].mxu1 }
 0x3b7   :  { %12060 = vst [vmem:[#allocation29_spill] sm:$0xff] %v9027_v60  ;;  %v1589_v56 = vadd.f32 %v9025_v42, %v9003_v18  ;;  %v1677_v57 = vmul.f32 %v9025_v42, %v9025_v42  ;;  %v1631_v4 = vadd.f32 %v9027_v60, %v9005_v19  ;;  %v1679_v48 = vmul.f32 %v9027_v60, %v9027_v60  ;;  %v9041_v7 = vpop.f32.mrb[19].mxu0  ;;  %v9043_v24 = vpop.f32.mrb[35].mxu1 }
 0x3b8   :  { %12061 = vst [vmem:[#allocation30_spill] sm:$0xff] %v9043_v24  ;;  %v1610_v27 = vadd.f32 %v9041_v7, %v9009_v61  ;;  %v1678_v29 = vmul.f32 %v9041_v7, %v9041_v7  ;;  %v1652_v30 = vadd.f32 %v9043_v24, %v9011_v12  ;;  %v1680_v1 = vmul.f32 %v9043_v24, %v9043_v24 }
 0x3b9   :  { %v1737_v36 = vadd.f32 %v1677_v57, %v1673_v44  ;;  %v1779_v9 = vadd.f32 %v1679_v48, %v1675_v10  ;;  %v9126_v57 = vld [vmem:[#allocation13 + $0x380] sm:$0xff] }
 0x3ba   :  { %v1758_v37 = vadd.f32 %v1678_v29, %v1674_v32  ;;  %v1800_v34 = vadd.f32 %v1680_v1, %v1676_v0  ;;  %v9133_v29 = vld [vmem:[#allocation13 + $0x388] sm:$0xff]  ;;  %v9137_v1 = vld [vmem:[#allocation13 + $0x400] sm:$0xff] }
 0x3bb   :  { %12066 = vst [vmem:[#allocation35_spill] sm:$0xff] %v9137_v1 }
 0x3bc   :  { %v9083_v53 = vpop.f32.mrb[20].mxu0  ;;  %v9085_v54 = vpop.f32.mrb[36].mxu1 }
 0x3bd   :  { %12062 = vst [vmem:[#allocation31_spill] sm:$0xff] %v9085_v54  ;;  %v1590_v25 = vadd.f32 %v1589_v56, %v9083_v53  ;;  %v1681_v5 = vmul.f32 %v9083_v53, %v9083_v53  ;;  %v1632_v8 = vadd.f32 %v1631_v4, %v9085_v54  ;;  %v1683_v11 = vmul.f32 %v9085_v54, %v9085_v54  ;;  %v9101_v28 = vpop.f32.mrb[21].mxu0  ;;  %v9103_v14 = vpop.f32.mrb[37].mxu1  ;;  %v9124_v56 = vld [vmem:[#allocation13 + $0x368] sm:$0xff]  ;;  %v9128_v4 = vld [vmem:[#allocation13 + $0x3a0] sm:$0xff] }
 0x3be   :  { %12063 = vst [vmem:[#allocation32_spill] sm:$0xff] %v9103_v14  ;;  %v1611_v15 = vadd.f32 %v1610_v27, %v9101_v28  ;;  %v1682_v41 = vmul.f32 %v9101_v28, %v9101_v28  ;;  %v1653_v21 = vadd.f32 %v1652_v30, %v9103_v14  ;;  %v1684_v38 = vmul.f32 %v9103_v14, %v9103_v14  ;;  %v9111_v44 = vpop.f32.mrb[22].mxu0  ;;  %v9113_v3 = vpop.f32.mrb[38].mxu1  ;;  %v9135_v30 = vld [vmem:[#allocation13 + $0x3a8] sm:$0xff] }
 0x3bf   :  { %12064 = vst [vmem:[#allocation33_spill] sm:$0xff] %v9113_v3  ;;  %v1738_v10 = vadd.f32 %v1737_v36, %v1681_v5  ;;  %v1780_v32 = vadd.f32 %v1779_v9, %v1683_v11  ;;  %v1591_v50 = vadd.f32 %v1590_v25, %v9111_v44  ;;  %v1685_v0 = vmul.f32 %v9111_v44, %v9111_v44  ;;  %v9120_v63 = vpop.f32.mrb[23].mxu0  ;;  %v9122_v23 = vpop.f32.mrb[39].mxu1 }
 0x3c0   :  { %12065 = vst [vmem:[#allocation34_spill] sm:$0xff] %v9122_v23  ;;  %v1759_v48 = vadd.f32 %v1758_v37, %v1682_v41  ;;  %v1801_v49 = vadd.f32 %v1800_v34, %v1684_v38  ;;  %v1633_v17 = vadd.f32 %v1632_v8, %v9113_v3  ;;  %v1687_v27 = vmul.f32 %v9113_v3, %v9113_v3  ;;  %v9143_v34 = vld [vmem:[#allocation13 + $0x420] sm:$0xff] }
 0x3c1   :  { %v1739_v36 = vadd.f32 %v1738_v10, %v1685_v0  ;;  %v1612_v9 = vadd.f32 %v1611_v15, %v9120_v63  ;;  %v1686_v13 = vmul.f32 %v9120_v63, %v9120_v63  ;;  %v1654_v37 = vadd.f32 %v1653_v21, %v9122_v23  ;;  %12067 = vst [vmem:[#allocation36_spill] sm:$0xff] %v9143_v34  ;;  %v2425_v15 = vld [vmem:[#allocation13 + $0x3c0] sm:$0xff] }
 0x3c2   :  { %v1781_v25 = vadd.f32 %v1780_v32, %v1687_v27  ;;  %v1688_v5 = vmul.f32 %v9122_v23, %v9122_v23  ;;  %v7326_v8 = vcombine.low %v9115_v59, %v9124_v56  ;;  %v7327_v39 = vcombine.high %v9115_v59, %v9124_v56 }
 0x3c3   :  { %v1760_v11 = vadd.f32 %v1759_v48, %v1686_v13  ;;  %v7333_v41 = vcombine.high %v9126_v57, %v9128_v4  ;;  %v7335_v43 = vcombine.high %v9133_v29, %v9135_v30 }
 0x3c4   :  { %v1802_v21 = vadd.f32 %v1801_v49, %v1688_v5  ;;  %v9159_v38 = vpop.f32.mrb[24].mxu0  ;;  %v9161_v10 = vpop.f32.mrb[40].mxu1  ;;  %4093 = vmatprep.subr.bf16.mxu1 %v7327_v39  ;;  %v7334_v39 = vcombine.low %v9133_v29, %v9135_v30 }
 0x3c5   :  { %12070 = vst [vmem:[#allocation39_spill] sm:$0xff] %v9161_v10  ;;  %v1592_v59 = vadd.f32 %v1591_v50, %v9159_v38  ;;  %v1689_v32 = vmul.f32 %v9159_v38, %v9159_v38  ;;  %v1634_v0 = vadd.f32 %v1633_v17, %v9161_v10  ;;  %v1691_v56 = vmul.f32 %v9161_v10, %v9161_v10  ;;  %v9175_v48 = vpop.f32.mrb[25].mxu0  ;;  %v9177_v49 = vpop.f32.mrb[41].mxu1 }
 0x3c6   :  { %12071 = vst [vmem:[#allocation40_spill] sm:$0xff] %v9177_v49  ;;  %v1613_v27 = vadd.f32 %v1612_v9, %v9175_v48  ;;  %v1690_v50 = vmul.f32 %v9175_v48, %v9175_v48  ;;  %v1655_v13 = vadd.f32 %v1654_v37, %v9177_v49  ;;  %v1692_v17 = vmul.f32 %v9177_v49, %v9177_v49  ;;  %v9188_v5 = vpop.f32.mrb[26].mxu0  ;;  %v9190_v58 = vpop.f32.mrb[42].mxu1 }
 0x3c7   :  { %12072 = vst [vmem:[#allocation41_spill] sm:$0xff] %v9190_v58  ;;  %v1740_v26 = vadd.f32 %v1739_v36, %v1689_v32  ;;  %v1782_v47 = vadd.f32 %v1781_v25, %v1691_v56  ;;  %v1593_v22 = vadd.f32 %v1592_v59, %v9188_v5  ;;  %v1693_v9 = vmul.f32 %v9188_v5, %v9188_v5  ;;  %v9198_v52 = vpop.f32.mrb[27].mxu0  ;;  %v9200_v37 = vpop.f32.mrb[43].mxu1  ;;  %v2426_v36 = vld [vmem:[#allocation13 + $0x3c8] sm:$0xff] }
 0x3c8   :  { %12073 = vst [vmem:[#allocation42_spill] sm:$0xff] %v9200_v37  ;;  %v1761_v62 = vadd.f32 %v1760_v11, %v1690_v50  ;;  %v1803_v10 = vadd.f32 %v1802_v21, %v1692_v17  ;;  %v1635_v33 = vadd.f32 %v1634_v0, %v9190_v58  ;;  %v1695_v40 = vmul.f32 %v9190_v58, %v9190_v58  ;;  %v2430_v25 = vld [vmem:[#allocation13 + $0x3e8] sm:$0xff] }
 0x3c9   :  { %v1741_v59 = vadd.f32 %v1740_v26, %v1693_v9  ;;  %v1614_v32 = vadd.f32 %v1613_v27, %v9198_v52  ;;  %v1694_v56 = vmul.f32 %v9198_v52, %v9198_v52  ;;  %v1656_v2 = vadd.f32 %v1655_v13, %v9200_v37  ;;  %4094 = vmatpush1.bf16.msra.mxu1 %v7326_v8 }
 0x3ca   :  { %v12074_v11 = vcombine.low %v9069_v6, %v9071_v20  ;;  %v1783_v21 = vadd.f32 %v1782_v47, %v1695_v40  ;;  %v1696_v0 = vmul.f32 %v9200_v37, %v9200_v37  ;;  %4095 = vmatprep.subr.bf16.mxu1 %v7335_v43  ;;  %v7340_v27 = vcombine.low %v2425_v15, %v2429_v55 }
 0x3cb   :  { %v1762_v50 = vadd.f32 %v1761_v62, %v1694_v56  ;;  %v7341_v17 = vcombine.high %v2425_v15, %v2429_v55  ;;  %v7342_v26 = vcombine.low %v2426_v36, %v2430_v25  ;;  %v7343_v6 = vcombine.high %v2426_v36, %v2430_v25 }
 0x3cc   :  { %3868 = vmatpush1.bf16.msra.mxu0 %v12074_v11  ;;  %v1804_v9 = vadd.f32 %v1803_v10, %v1696_v0  ;;  %v9219_v13 = vpop.f32.mrb[28].mxu0  ;;  %v9221_v58 = vpop.f32.mrb[44].mxu1  ;;  %v7349_v20 = vcombine.high %v9137_v1, %v9143_v34  ;;  %v7351_v8 = vcombine.high %v9145_v16, %v9147_v45  ;;  %v12077_v43 = vcombine.low %v9126_v57, %v9128_v4 }
 0x3cd   :  { %3869 = vmatprep.subr.bf16.mxu0 %v7333_v41  ;;  %12075 = vst [vmem:[#allocation43_spill] sm:$0xff] %v9221_v58  ;;  %v1594_v41 = vadd.f32 %v1593_v22, %v9219_v13  ;;  %v1697_v62 = vmul.f32 %v9219_v13, %v9219_v13  ;;  %v1636_v29 = vadd.f32 %v1635_v33, %v9221_v58  ;;  %v9233_v15 = vpop.f32.mrb[29].mxu0  ;;  %v9235_v10 = vpop.f32.mrb[45].mxu1 }
 0x3ce   :  { %v1699_v30 = vmul.f32 %v9221_v58, %v9221_v58  ;;  %12076 = vst [vmem:[#allocation44_spill] sm:$0xff] %v9235_v10  ;;  %v1615_v47 = vadd.f32 %v1614_v32, %v9233_v15  ;;  %v1698_v22 = vmul.f32 %v9233_v15, %v9233_v15  ;;  %v1657_v40 = vadd.f32 %v1656_v2, %v9235_v10  ;;  %v9246_v55 = vpop.f32.mrb[30].mxu0  ;;  %v9248_v36 = vpop.f32.mrb[46].mxu1 }
 0x3cf   :  { %v1700_v33 = vmul.f32 %v9235_v10, %v9235_v10  ;;  %12078 = vst [vmem:[#allocation45_spill] sm:$0xff] %v9248_v36  ;;  %4096 = vmatpush1.bf16.msra.mxu1 %v7334_v39  ;;  %v1742_v25 = vadd.f32 %v1741_v59, %v1697_v62  ;;  %v1595_v57 = vadd.f32 %v1594_v41, %v9246_v55  ;;  %v9253_v32 = vpop.f32.mrb[31].mxu0  ;;  %v9255_v11 = vpop.f32.mrb[47].mxu1 }
 0x3d0   :  { %3870 = vmatpush1.bf16.msra.mxu0 %v12077_v43  ;;  %v1784_v56 = vadd.f32 %v1783_v21, %v1699_v30  ;;  %v1701_v4 = vmul.f32 %v9246_v55, %v9246_v55  ;;  %12079 = vst [vmem:[#allocation46_spill] sm:$0xff] %v9255_v11  ;;  %v1763_v2 = vadd.f32 %v1762_v50, %v1698_v22 }
 0x3d1   :  { %3871 = vmatprep.subr.bf16.mxu0 %v7341_v17  ;;  %v1805_v0 = vadd.f32 %v1804_v9, %v1700_v33  ;;  %v1637_v43 = vadd.f32 %v1636_v29, %v9248_v36  ;;  %v1703_v58 = vmul.f32 %v9248_v36, %v9248_v36  ;;  %4097 = vmatprep.subr.bf16.mxu1 %v7343_v6 }
 0x3d2   :  { %v1743_v59 = vadd.f32 %v1742_v25, %v1701_v4  ;;  %v1616_v21 = vadd.f32 %v1615_v47, %v9253_v32  ;;  %v1702_v39 = vmul.f32 %v9253_v32, %v9253_v32  ;;  %v1658_v41 = vadd.f32 %v1657_v40, %v9255_v11 }
 0x3d3   :  { %v1785_v62 = vadd.f32 %v1784_v56, %v1703_v58  ;;  %v1704_v50 = vmul.f32 %v9255_v11, %v9255_v11  ;;  %4098 = vmatpush1.bf16.msra.mxu1 %v7342_v26 }
 0x3d4   :  { %3872 = vmatpush1.bf16.msra.mxu0 %v7340_v27  ;;  %v1764_v17 = vadd.f32 %v1763_v2, %v1702_v39  ;;  %4180 = vmatprep.subr.bf16.mxu1 %v7351_v8  ;;  %v9266_v29 = vpop.f32.mrb[32].mxu0  ;;  %v9268_v6 = vpop.f32.mrb[48].mxu1 }
 0x3d5   :  { %3954 = vmatprep.subr.bf16.mxu0 %v7349_v20  ;;  %v1806_v9 = vadd.f32 %v1805_v0, %v1704_v50  ;;  %12080 = vst [vmem:[#allocation47_spill] sm:$0xff] %v9268_v6  ;;  %v1596_v30 = vadd.f32 %v1595_v57, %v9266_v29  ;;  %v1705_v47 = vmul.f32 %v9266_v29, %v9266_v29  ;;  %v9276_v22 = vpop.f32.mrb[33].mxu0  ;;  %v9278_v26 = vpop.f32.mrb[49].mxu1 }
 0x3d6   :  { %v1638_v27 = vadd.f32 %v1637_v43, %v9268_v6  ;;  %v1707_v58 = vmul.f32 %v9268_v6, %v9268_v6  ;;  %12081 = vst [vmem:[#allocation48_spill] sm:$0xff] %v9278_v26  ;;  %v1617_v20 = vadd.f32 %v1616_v21, %v9276_v22  ;;  %v1706_v8 = vmul.f32 %v9276_v22, %v9276_v22  ;;  %v9286_v25 = vpop.f32.mrb[34].mxu0  ;;  %v9288_v56 = vpop.f32.mrb[50].mxu1 }
 0x3d7   :  { %v1659_v40 = vadd.f32 %v1658_v41, %v9278_v26  ;;  %v1708_v33 = vmul.f32 %v9278_v26, %v9278_v26  ;;  %12082 = vst [vmem:[#allocation49_spill] sm:$0xff] %v9288_v56  ;;  %v1744_v57 = vadd.f32 %v1743_v59, %v1705_v47  ;;  %v1597_v2 = vadd.f32 %v1596_v30, %v9286_v25  ;;  %v9293_v43 = vpop.f32.mrb[35].mxu0  ;;  %v9295_v21 = vpop.f32.mrb[51].mxu1 }
 0x3d8   :  { %v1786_v4 = vadd.f32 %v1785_v62, %v1707_v58  ;;  %v1709_v0 = vmul.f32 %v9286_v25, %v9286_v25  ;;  %12083 = vst [vmem:[#allocation50_spill] sm:$0xff] %v9295_v21  ;;  %v1765_v39 = vadd.f32 %v1764_v17, %v1706_v8  ;;  %v1639_v50 = vadd.f32 %v1638_v27, %v9288_v56 }
 0x3d9   :  { %v1807_v41 = vadd.f32 %v1806_v9, %v1708_v33  ;;  %v1711_v6 = vmul.f32 %v9288_v56, %v9288_v56  ;;  %v1618_v59 = vadd.f32 %v1617_v20, %v9293_v43  ;;  %v1710_v62 = vmul.f32 %v9293_v43, %v9293_v43 }
 0x3da   :  { %v1745_v26 = vadd.f32 %v1744_v57, %v1709_v0  ;;  %v1660_v30 = vadd.f32 %v1659_v40, %v9295_v21  ;;  %v1712_v58 = vmul.f32 %v9295_v21, %v9295_v21 }
 0x3db   :  { %v1787_v47 = vadd.f32 %v1786_v4, %v1711_v6  ;;  %v1766_v36 = vadd.f32 %v1765_v39, %v1710_v62 }
 0x3dc   :  { %v1808_v17 = vadd.f32 %v1807_v41, %v1712_v58  ;;  %v9306_v9 = vpop.f32.mrb[36].mxu0  ;;  %v9308_v27 = vpop.f32.mrb[52].mxu1 }
 0x3dd   :  { %12084 = vst [vmem:[#allocation51_spill] sm:$0xff] %v9308_v27  ;;  %v1598_v8 = vadd.f32 %v1597_v2, %v9306_v9  ;;  %v1713_v20 = vmul.f32 %v9306_v9, %v9306_v9  ;;  %v1640_v33 = vadd.f32 %v1639_v50, %v9308_v27  ;;  %v1715_v40 = vmul.f32 %v9308_v27, %v9308_v27  ;;  %v9316_v6 = vpop.f32.mrb[37].mxu0  ;;  %v9318_v57 = vpop.f32.mrb[53].mxu1 }
 0x3de   :  { %12085 = vst [vmem:[#allocation52_spill] sm:$0xff] %v9318_v57  ;;  %v1619_v4 = vadd.f32 %v1618_v59, %v9316_v6  ;;  %v1714_v0 = vmul.f32 %v9316_v6, %v9316_v6  ;;  %v1661_v39 = vadd.f32 %v1660_v30, %v9318_v57  ;;  %v1716_v2 = vmul.f32 %v9318_v57, %v9318_v57  ;;  %v9326_v41 = vpop.f32.mrb[38].mxu0  ;;  %v9328_v50 = vpop.f32.mrb[54].mxu1 }
 0x3df   :  { %12086 = vst [vmem:[#allocation53_spill] sm:$0xff] %v9328_v50  ;;  %v1746_v62 = vadd.f32 %v1745_v26, %v1713_v20  ;;  %v1788_v58 = vadd.f32 %v1787_v47, %v1715_v40  ;;  %v1599_v27 = vadd.f32 %v1598_v8, %v9326_v41  ;;  %v1717_v56 = vmul.f32 %v9326_v41, %v9326_v41  ;;  %v9333_v59 = vpop.f32.mrb[39].mxu0  ;;  %v9335_v21 = vpop.f32.mrb[55].mxu1 }
 0x3e0   :  { %12087 = vst [vmem:[#allocation54_spill] sm:$0xff] %v9335_v21  ;;  %v1767_v11 = vadd.f32 %v1766_v36, %v1714_v0  ;;  %v1809_v30 = vadd.f32 %v1808_v17, %v1716_v2  ;;  %v1641_v10 = vadd.f32 %v1640_v33, %v9328_v50  ;;  %v1719_v57 = vmul.f32 %v9328_v50, %v9328_v50 }
 0x3e1   :  { %v1747_v37 = vadd.f32 %v1746_v62, %v1717_v56  ;;  %v1620_v26 = vadd.f32 %v1619_v4, %v9333_v59  ;;  %v1718_v47 = vmul.f32 %v9333_v59, %v9333_v59  ;;  %v1662_v8 = vadd.f32 %v1661_v39, %v9335_v21 }
 0x3e2   :  { %v1789_v20 = vadd.f32 %v1788_v58, %v1719_v57  ;;  %v1720_v40 = vmul.f32 %v9335_v21, %v9335_v21 }
 0x3e3   :  { %v1768_v49 = vadd.f32 %v1767_v11, %v1718_v47 }
 0x3e4   :  { %v1810_v36 = vadd.f32 %v1809_v30, %v1720_v40  ;;  %v9346_v17 = vpop.f32.mrb[40].mxu0  ;;  %v9348_v33 = vpop.f32.mrb[56].mxu1 }
 0x3e5   :  { %12088 = vst [vmem:[#allocation55_spill] sm:$0xff] %v9348_v33  ;;  %v1600_v0 = vadd.f32 %v1599_v27, %v9346_v17  ;;  %v1721_v56 = vmul.f32 %v9346_v17, %v9346_v17  ;;  %v1642_v4 = vadd.f32 %v1641_v10, %v9348_v33  ;;  %v1723_v39 = vmul.f32 %v9348_v33, %v9348_v33  ;;  %v9356_v57 = vpop.f32.mrb[41].mxu0  ;;  %v9358_v2 = vpop.f32.mrb[57].mxu1 }
 0x3e6   :  { %12089 = vst [vmem:[#allocation56_spill] sm:$0xff] %v9358_v2  ;;  %v1621_v11 = vadd.f32 %v1620_v26, %v9356_v57  ;;  %v1722_v62 = vmul.f32 %v9356_v57, %v9356_v57  ;;  %v1663_v58 = vadd.f32 %v1662_v8, %v9358_v2  ;;  %v1724_v27 = vmul.f32 %v9358_v2, %v9358_v2  ;;  %v9366_v30 = vpop.f32.mrb[42].mxu0  ;;  %v9368_v10 = vpop.f32.mrb[58].mxu1 }
 0x3e7   :  { %12090 = vst [vmem:[#allocation57_spill] sm:$0xff] %v9366_v30  ;;  %12091 = vst [vmem:[#allocation58_spill] sm:$0xff] %v9368_v10  ;;  %v1748_v47 = vadd.f32 %v1747_v37, %v1721_v56  ;;  %v1790_v40 = vadd.f32 %v1789_v20, %v1723_v39  ;;  %v1601_v33 = vadd.f32 %v1600_v0, %v9366_v30  ;;  %v9373_v26 = vpop.f32.mrb[43].mxu0  ;;  %v9375_v21 = vpop.f32.mrb[59].mxu1 }
 0x3e8   :  { %v1725_v50 = vmul.f32 %v9366_v30, %v9366_v30  ;;  %12092 = vst [vmem:[#allocation59_spill] sm:$0xff] %v9375_v21  ;;  %v1769_v45 = vadd.f32 %v1768_v49, %v1722_v62  ;;  %v1811_v8 = vadd.f32 %v1810_v36, %v1724_v27  ;;  %v1643_v16 = vadd.f32 %v1642_v4, %v9368_v10 }
 0x3e9   :  { %v1727_v2 = vmul.f32 %v9368_v10, %v9368_v10  ;;  %v1622_v37 = vadd.f32 %v1621_v11, %v9373_v26  ;;  %v1726_v20 = vmul.f32 %v9373_v26, %v9373_v26  ;;  %v1664_v0 = vadd.f32 %v1663_v58, %v9375_v21 }
 0x3ea   :  { %v1749_v34 = vadd.f32 %v1748_v47, %v1725_v50  ;;  %v1728_v39 = vmul.f32 %v9375_v21, %v9375_v21 }
 0x3eb   :  { %v1791_v56 = vadd.f32 %v1790_v40, %v1727_v2  ;;  %v1770_v1 = vadd.f32 %v1769_v45, %v1726_v20 }
 0x3ec   :  { %v1812_v49 = vadd.f32 %v1811_v8, %v1728_v39  ;;  %v9386_v36 = vpop.f32.mrb[44].mxu0  ;;  %v9388_v4 = vpop.f32.mrb[60].mxu1 }
 0x3ed   :  { %12093 = vst [vmem:[#allocation60_spill] sm:$0xff] %v9386_v36  ;;  %12094 = vst [vmem:[#allocation61_spill] sm:$0xff] %v9388_v4  ;;  %v1602_v62 = vadd.f32 %v1601_v33, %v9386_v36  ;;  %v1729_v50 = vmul.f32 %v9386_v36, %v9386_v36  ;;  %v1644_v11 = vadd.f32 %v1643_v16, %v9388_v4  ;;  %v9396_v2 = vpop.f32.mrb[45].mxu0  ;;  %v9398_v27 = vpop.f32.mrb[61].mxu1 }
 0x3ee   :  { %v1731_v58 = vmul.f32 %v9388_v4, %v9388_v4  ;;  %12095 = vst [vmem:[#allocation62_spill] sm:$0xff] %v9396_v2  ;;  %12096 = vst [vmem:[#allocation63_spill] sm:$0xff] %v9398_v27  ;;  %v1623_v45 = vadd.f32 %v1622_v37, %v9396_v2  ;;  %v1730_v47 = vmul.f32 %v9396_v2, %v9396_v2  ;;  %v9406_v8 = vpop.f32.mrb[46].mxu0  ;;  %v9408_v16 = vpop.f32.mrb[62].mxu1 }
 0x3ef   :  { %v1665_v40 = vadd.f32 %v1664_v0, %v9398_v27  ;;  %v1732_v33 = vmul.f32 %v9398_v27, %v9398_v27  ;;  %12097 = vst [vmem:[#allocation64_spill] sm:$0xff] %v9406_v8  ;;  %12098 = vst [vmem:[#allocation65_spill] sm:$0xff] %v9408_v16  ;;  %v1750_v20 = vadd.f32 %v1749_v34, %v1729_v50  ;;  %v9413_v37 = vpop.f32.mrb[47].mxu0  ;;  %v9415_v21 = vpop.f32.mrb[63].mxu1 }
 0x3f0   :  { %v1792_v39 = vadd.f32 %v1791_v56, %v1731_v58  ;;  %v1603_v4 = vadd.f32 %v1602_v62, %v9406_v8  ;;  %v1733_v10 = vmul.f32 %v9406_v8, %v9406_v8  ;;  %12099 = vst [vmem:[#allocation66_spill] sm:$0xff] %v9413_v37  ;;  %12100 = vst [vmem:[#allocation67_spill] sm:$0xff] %v9415_v21 }
 0x3f1   :  { %v1771_v3 = vadd.f32 %v1770_v1, %v1730_v47  ;;  %v1813_v0 = vadd.f32 %v1812_v49, %v1732_v33  ;;  %v1645_v54 = vadd.f32 %v1644_v11, %v9408_v16  ;;  %v1735_v27 = vmul.f32 %v9408_v16, %v9408_v16 }
 0x3f2   :  { %v1604_v23 = vrot.slane %v1603_v4, 4  ;;  %v1751_v14 = vadd.f32 %v1750_v20, %v1733_v10  ;;  %v1624_v34 = vadd.f32 %v1623_v45, %v9413_v37  ;;  %v1734_v56 = vmul.f32 %v9413_v37, %v9413_v37 }
 0x3f3   :  { %v1646_v62 = vrot.slane %v1645_v54, 4  ;;  %v1793_v50 = vadd.f32 %v1792_v39, %v1735_v27  ;;  %v1666_v58 = vadd.f32 %v1665_v40, %v9415_v21  ;;  %v1736_v1 = vmul.f32 %v9415_v21, %v9415_v21 }
 0x3f4   :  { %v1605_v49 = vadd.f32 %v1604_v23, %v1603_v4  ;;  %v1752_v47 = vrot.slane %v1751_v14, 4  ;;  %v1625_v11 = vrot.slane %v1624_v34, 4  ;;  %v1772_v33 = vadd.f32 %v1771_v3, %v1734_v56 }
 0x3f5   :  { %v1647_v60 = vadd.f32 %v1646_v62, %v1645_v54  ;;  %v1794_v16 = vrot.slane %v1793_v50, 4  ;;  %v1667_v19 = vrot.slane %v1666_v58, 4  ;;  %v1814_v10 = vadd.f32 %v1813_v0, %v1736_v1 }
 0x3f6   :  { %v1606_v20 = vrot.slane %v1605_v49, 2  ;;  %v1753_v45 = vadd.f32 %v1752_v47, %v1751_v14  ;;  %v1626_v24 = vadd.f32 %v1625_v11, %v1624_v34  ;;  %v1773_v12 = vrot.slane %v1772_v33, 4 }
 0x3f7   :  { %v1648_v8 = vrot.slane %v1647_v60, 2  ;;  %v1795_v36 = vadd.f32 %v1794_v16, %v1793_v50  ;;  %v1668_v27 = vadd.f32 %v1667_v19, %v1666_v58  ;;  %v1815_v39 = vrot.slane %v1814_v10, 4 }
 0x3f8   :  { %v1607_v40 = vadd.f32 %v1606_v20, %v1605_v49  ;;  %v1754_v37 = vrot.slane %v1753_v45, 2  ;;  %v1627_v2 = vrot.slane %v1626_v24, 2  ;;  %v1774_v21 = vadd.f32 %v1773_v12, %v1772_v33 }
 0x3f9   :  { %v1649_v23 = vadd.f32 %v1648_v8, %v1647_v60  ;;  %v1796_v4 = vrot.slane %v1795_v36, 2  ;;  %v1669_v30 = vrot.slane %v1668_v27, 2  ;;  %v1816_v3 = vadd.f32 %v1815_v39, %v1814_v10 }
 0x3fa   :  { %v1608_v54 = vrot.slane %v1607_v40, 1  ;;  %v1755_v56 = vadd.f32 %v1754_v37, %v1753_v45  ;;  %v1628_v62 = vadd.f32 %v1627_v2, %v1626_v24  ;;  %v1775_v0 = vrot.slane %v1774_v21, 2 }
 0x3fb   :  { %v1650_v1 = vrot.slane %v1649_v23, 1  ;;  %v1797_v14 = vadd.f32 %v1796_v4, %v1795_v36  ;;  %v1670_v34 = vadd.f32 %v1669_v30, %v1668_v27  ;;  %v1817_v47 = vrot.slane %v1816_v3, 2 }
 0x3fc   :  { %v1609_v11 = vadd.f32 %v1608_v54, %v1607_v40  ;;  %v1756_v16 = vrot.slane %v1755_v56, 1  ;;  %v1629_v19 = vrot.slane %v1628_v62, 1  ;;  %v1776_v50 = vadd.f32 %v1775_v0, %v1774_v21 }
 0x3fd   :  { %v1651_v58 = vadd.f32 %v1650_v1, %v1649_v23  ;;  %v1798_v49 = vrot.slane %v1797_v14, 1  ;;  %v1671_v20 = vrot.slane %v1670_v34, 1  ;;  %v1818_v12 = vadd.f32 %v1817_v47, %v1816_v3 }
 0x3fe   :  { %v1757_v60 = vadd.f32 %v1756_v16, %v1755_v56  ;;  %v9426_v8 = vmul.f32 0.0078125, %v1609_v11  ;;  %v1630_v33 = vadd.f32 %v1629_v19, %v1628_v62  ;;  %v1777_v10 = vrot.slane %v1776_v50, 1 }
 0x3ff   :  { %v1799_v37 = vadd.f32 %v1798_v49, %v1797_v14  ;;  %v9428_v24 = vmul.f32 0.0078125, %v1651_v58  ;;  %v1672_v2 = vadd.f32 %v1671_v20, %v1670_v34  ;;  %v1819_v36 = vrot.slane %v1818_v12, 1  ;;  %v9444_v58 = vld [vmem:[#allocation13 + $0x460] sm:$0xff]  ;;  %v9446_v49 = vld [vmem:[#allocation13 + $0x448] sm:$0xff] }
 0x400   :  { %v1825_v30 = vmul.f32 0.0078125, %v1757_v60  ;;  %v1829_v45 = vmul.f32 %v9426_v8, %v9426_v8  ;;  %v1778_v27 = vadd.f32 %v1777_v10, %v1776_v50  ;;  %v9432_v21 = vmul.f32 0.0078125, %v1630_v33  ;;  %v9442_v50 = vld [vmem:[#allocation13 + $0x440] sm:$0xff]  ;;  %12101 = vst [vmem:[#allocation68_spill] sm:$0xff] %v9444_v58  ;;  %12102 = vst [vmem:[#allocation69_spill] sm:$0xff] %v9446_v49  ;;  %v9448_v20 = vld [vmem:[#allocation13 + $0x468] sm:$0xff] }
 0x401   :  { %v1827_v39 = vmul.f32 0.0078125, %v1799_v37  ;;  %v1831_v40 = vmul.f32 %v9428_v24, %v9428_v24  ;;  %v1820_v23 = vadd.f32 %v1819_v36, %v1818_v12  ;;  %v9436_v4 = vmul.f32 0.0078125, %v1672_v2  ;;  %12103 = vst [vmem:[#allocation70_spill] sm:$0xff] %v9448_v20  ;;  %v9450_v12 = vld [vmem:[#allocation13 + $0x480] sm:$0xff]  ;;  %v9454_v33 = vld [vmem:[#allocation13 + $0x488] sm:$0xff] }
 0x402   :  { %v1833_v3 = vsub.f32 %v1825_v30, %v1829_v45  ;;  %v1826_v54 = vmul.f32 0.0078125, %v1778_v27  ;;  %v1830_v56 = vmul.f32 %v9432_v21, %v9432_v21  ;;  %12104 = vst [vmem:[#allocation71_spill] sm:$0xff] %v9450_v12  ;;  %v9452_v60 = vld [vmem:[#allocation13 + $0x4a0] sm:$0xff]  ;;  %12106 = vst [vmem:[#allocation73_spill] sm:$0xff] %v9454_v33  ;;  %v9456_v10 = vld [vmem:[#allocation13 + $0x4a8] sm:$0xff] }
 0x403   :  { %v1835_v62 = vsub.f32 %v1827_v39, %v1831_v40  ;;  %v1828_v0 = vmul.f32 0.0078125, %v1820_v23  ;;  %v1832_v1 = vmul.f32 %v9436_v4, %v9436_v4  ;;  %12105 = vst [vmem:[#allocation72_spill] sm:$0xff] %v9452_v60  ;;  %12107 = vst [vmem:[#allocation74_spill] sm:$0xff] %v9456_v10  ;;  %v9458_v37 = vld [vmem:[#allocation13 + $0x4c0] sm:$0xff]  ;;  %v9462_v36 = vld [vmem:[#allocation13 + $0x4c8] sm:$0xff] }
 0x404   :  { %v1838_v14 = vadd.f32 0.8, %v1833_v3  ;;  %v1834_v34 = vsub.f32 %v1826_v54, %v1830_v56  ;;  %12108 = vst [vmem:[#allocation75_spill] sm:$0xff] %v9458_v37  ;;  %v9460_v2 = vld [vmem:[#allocation13 + $0x4e0] sm:$0xff]  ;;  %12110 = vst [vmem:[#allocation77_spill] sm:$0xff] %v9462_v36  ;;  %v9464_v30 = vld [vmem:[#allocation13 + $0x4e8] sm:$0xff] }
 0x405   :  { %v1840_v47 = vadd.f32 0.8, %v1835_v62  ;;  %v1836_v11 = vsub.f32 %v1828_v0, %v1832_v1  ;;  %12109 = vst [vmem:[#allocation76_spill] sm:$0xff] %v9460_v2  ;;  %12111 = vst [vmem:[#allocation78_spill] sm:$0xff] %v9464_v30  ;;  %v9466_v45 = vld [vmem:[#allocation13 + $0x500] sm:$0xff]  ;;  %v9470_v39 = vld [vmem:[#allocation13 + $0x508] sm:$0xff] }
 0x406   :  { %8188 = vrsqrt.f32 %v1838_v14  ;;  %v1839_v16 = vadd.f32 0.8, %v1834_v34  ;;  %12112 = vst [vmem:[#allocation79_spill] sm:$0xff] %v9466_v45  ;;  %v9468_v27 = vld [vmem:[#allocation13 + $0x520] sm:$0xff]  ;;  %12114 = vst [vmem:[#allocation81_spill] sm:$0xff] %v9470_v39  ;;  %v9472_v40 = vld [vmem:[#allocation13 + $0x528] sm:$0xff] }
 0x407   :  { %8190 = vrsqrt.f32 %v1840_v47  ;;  %v1841_v19 = vadd.f32 0.8, %v1836_v11  ;;  %12113 = vst [vmem:[#allocation80_spill] sm:$0xff] %v9468_v27  ;;  %12115 = vst [vmem:[#allocation82_spill] sm:$0xff] %v9472_v40  ;;  %v9474_v23 = vld [vmem:[#allocation13 + $0x540] sm:$0xff]  ;;  %v9479_v54 = vsub.s32 2, %v8837_v31 }
 0x408   :  { %8192 = vrsqrt.f32 %v1839_v16  ;;  %12116 = vst [vmem:[#allocation83_spill] sm:$0xff] %v9474_v23  ;;  %v9476_v3 = vld [vmem:[#allocation13 + $0x560] sm:$0xff]  ;;  %v9482_v56 = vsub.s32 3, %v8837_v31  ;;  %v9488_v1 = vld [vmem:[#allocation13 + $0x548] sm:$0xff] }
 0x409   :  { %8194 = vrsqrt.f32 %v1841_v19  ;;  %12117 = vst [vmem:[#allocation84_spill] sm:$0xff] %v9476_v3  ;;  %12118 = vst [vmem:[#allocation85_spill] sm:$0xff] %v9479_v54  ;;  %v9490_v14 = vld [vmem:[#allocation13 + $0x568] sm:$0xff]  ;;  %v9492_v34 = vld [vmem:[#allocation13 + $0x580] sm:$0xff] }
 0x40a   :  { %12119 = vst [vmem:[#allocation86_spill] sm:$0xff] %v9482_v56  ;;  %12120 = vst [vmem:[#allocation87_spill] sm:$0xff] %v9488_v1  ;;  %v9502_v62 = vld [vmem:[#allocation13 + $0x5a0] sm:$0xff]  ;;  %v9504_v0 = vld [vmem:[#allocation13 + $0x588] sm:$0xff] }
 0x40b   :  { %12121 = vst [vmem:[#allocation88_spill] sm:$0xff] %v9490_v14  ;;  %12122 = vst [vmem:[#allocation89_spill] sm:$0xff] %v9492_v34  ;;  %v9506_v31 = vld [vmem:[#allocation13 + $0x5a8] sm:$0xff]  ;;  %v9516_v20 = vld [vmem:[#allocation13 + $0x5c0] sm:$0xff] }
 0x40c   :  { %12123 = vst [vmem:[#allocation90_spill] sm:$0xff] %v9502_v62  ;;  %12124 = vst [vmem:[#allocation91_spill] sm:$0xff] %v9506_v31  ;;  %v9518_v19 = vld [vmem:[#allocation13 + $0x5e0] sm:$0xff]  ;;  %v9520_v60 = vld [vmem:[#allocation13 + $0x5c8] sm:$0xff] }
 0x40d   :  { %12125 = vst [vmem:[#allocation92_spill] sm:$0xff] %v9516_v20  ;;  %12126 = vst [vmem:[#allocation93_spill] sm:$0xff] %v9518_v19  ;;  %v9530_v16 = vld [vmem:[#allocation13 + $0x5e8] sm:$0xff]  ;;  %v9532_v2 = vld [vmem:[#allocation13 + $0x600] sm:$0xff] }
 0x40e   :  { %12127 = vst [vmem:[#allocation94_spill] sm:$0xff] %v9520_v60  ;;  %12128 = vst [vmem:[#allocation95_spill] sm:$0xff] %v9530_v16  ;;  %v9534_v37 = vld [vmem:[#allocation13 + $0x620] sm:$0xff]  ;;  %v9544_v11 = vld [vmem:[#allocation13 + $0x608] sm:$0xff] }
 0x40f   :  { %12129 = vst [vmem:[#allocation96_spill] sm:$0xff] %v9532_v2  ;;  %12130 = vst [vmem:[#allocation97_spill] sm:$0xff] %v9534_v37  ;;  %v9546_v27 = vld [vmem:[#allocation13 + $0x628] sm:$0xff]  ;;  %v9548_v45 = vld [vmem:[#allocation13 + $0x640] sm:$0xff] }
 0x410   :  { %v8189_v12 = vpop.eup %8188  ;;  %12131 = vst [vmem:[#allocation98_spill] sm:$0xff] %v9544_v11  ;;  %12132 = vst [vmem:[#allocation99_spill] sm:$0xff] %v9546_v27  ;;  %v9558_v47 = vld [vmem:[#allocation13 + $0x660] sm:$0xff]  ;;  %v9560_v3 = vld [vmem:[#allocation13 + $0x648] sm:$0xff] }
 0x411   :  { %v8191_v10 = vpop.eup %8190  ;;  %12133 = vst [vmem:[#allocation100_spill] sm:$0xff] %v9548_v45  ;;  %12134 = vst [vmem:[#allocation101_spill] sm:$0xff] %v9558_v47  ;;  %v9562_v23 = vld [vmem:[#allocation13 + $0x668] sm:$0xff]  ;;  %v9570_v14 = vld [vmem:[#allocation13 + $0x680] sm:$0xff] }
 0x412   :  { %v8193_v30 = vpop.eup %8192  ;;  %12135 = vst [vmem:[#allocation102_spill] sm:$0xff] %v9562_v23  ;;  %v9572_v58 = vld [vmem:[#allocation13 + $0x6a0] sm:$0xff]  ;;  %v9574_v62 = vld [vmem:[#allocation13 + $0x688] sm:$0xff]  ;;  %v1837_v19 = vld [vmem:[%s11749_s7] sm:$0xf] }
 0x413   :  { %v8195_v40 = vpop.eup %8194  ;;  %v1850_v39 = vcombine.low %v8189_v12, %v8193_v30  ;;  %12136 = vst [vmem:[#allocation103_spill] sm:$0xff] %v9572_v58  ;;  %12137 = vst [vmem:[#allocation104_spill] sm:$0xff] %v9574_v62  ;;  %v9582_v36 = vld [vmem:[#allocation13 + $0x6a8] sm:$0xff]  ;;  %v9584_v33 = vld [vmem:[#allocation13 + $0x6c0] sm:$0xff] }
 0x414   :  { %v1851_v34 = vcombine.low %v8191_v10, %v8195_v40  ;;  %12138 = vst [vmem:[#allocation105_spill] sm:$0xff] %v9582_v36  ;;  %12139 = vst [vmem:[#allocation106_spill] sm:$0xff] %v9584_v33  ;;  %v9586_v49 = vld [vmem:[#allocation13 + $0x6e0] sm:$0xff]  ;;  %v9595_v1 = vld [vmem:[#allocation13 + $0x6c8] sm:$0xff] }
 0x415   :  { %12140 = vst [vmem:[#allocation107_spill] sm:$0xff] %v9586_v49  ;;  %v1858_v31 = vrot.slane %v1850_v39, %v8840_v35  ;;  %12141 = vst [vmem:[#allocation108_spill] sm:$0xff] %v9595_v1  ;;  %v9597_v30 = vld [vmem:[#allocation13 + $0x6e8] sm:$0xff]  ;;  %v9599_v16 = vld [vmem:[#allocation13 + $0x700] sm:$0xff] }
 0x416   :  { %12142 = vst [vmem:[#allocation109_spill] sm:$0xff] %v9597_v30  ;;  %12143 = vst [vmem:[#allocation110_spill] sm:$0xff] %v9599_v16  ;;  %v1865_v60 = vrot.slane %v1851_v34, %v8840_v35  ;;  %v9608_v37 = vld [vmem:[#allocation13 + $0x720] sm:$0xff]  ;;  %v9610_v12 = vld [vmem:[#allocation13 + $0x708] sm:$0xff] }
 0x417   :  { %12144 = vst [vmem:[#allocation111_spill] sm:$0xff] %v9608_v37  ;;  %12145 = vst [vmem:[#allocation112_spill] sm:$0xff] %v9610_v12  ;;  %v9612_v2 = vld [vmem:[#allocation13 + $0x728] sm:$0xff]  ;;  %v9625_v47 = vld [vmem:[#allocation13 + $0x740] sm:$0xff] }
 0x418   :  { %12146 = vst [vmem:[#allocation113_spill] sm:$0xff] %v9612_v2  ;;  %12147 = vst [vmem:[#allocation114_spill] sm:$0xff] %v9625_v47  ;;  %v9627_v45 = vld [vmem:[#allocation13 + $0x760] sm:$0xff]  ;;  %v9629_v27 = vld [vmem:[#allocation13 + $0x748] sm:$0xff]  ;;  %v1866_v11 = vcombine.low %v1858_v31, %v1865_v60 }
 0x419   :  { %12148 = vst [vmem:[#allocation115_spill] sm:$0xff] %v9627_v45  ;;  %12149 = vst [vmem:[#allocation116_spill] sm:$0xff] %v9629_v27  ;;  %v9637_v10 = vld [vmem:[#allocation13 + $0x768] sm:$0xff]  ;;  %v9639_v23 = vld [vmem:[#allocation13 + $0x780] sm:$0xff] }
 0x41a   :  { %12150 = vst [vmem:[#allocation117_spill] sm:$0xff] %v9637_v10  ;;  %12151 = vst [vmem:[#allocation118_spill] sm:$0xff] %v9639_v23  ;;  %v9641_v40 = vld [vmem:[#allocation13 + $0x7a0] sm:$0xff]  ;;  %v9651_v34 = vld [vmem:[#allocation13 + $0x788] sm:$0xff]  ;;  %v1873_v62 = vrot.slane %v1866_v11, %v8840_v35 }
 0x41b   :  { %12152 = vst [vmem:[#allocation119_spill] sm:$0xff] %v9641_v40  ;;  %12153 = vst [vmem:[#allocation120_spill] sm:$0xff] %v9651_v34  ;;  %v9653_v39 = vld [vmem:[#allocation13 + $0x7a8] sm:$0xff]  ;;  %v9655_v36 = vld [vmem:[#allocation13 + $0x7c0] sm:$0xff] }
 0x41c   :  { %12154 = vst [vmem:[#allocation121_spill] sm:$0xff] %v9653_v39  ;;  %12155 = vst [vmem:[#allocation122_spill] sm:$0xff] %v9655_v36  ;;  %v9664_v30 = vld [vmem:[#allocation13 + $0x7e0] sm:$0xff]  ;;  %v9666_v20 = vld [vmem:[#allocation13 + $0x7c8] sm:$0xff]  ;;  %v1875_v60 = vmul.f32 %v1873_v62, %v1837_v19 }
 0x41d   :  { %12156 = vst [vmem:[#allocation123_spill] sm:$0xff] %v9664_v30  ;;  %12157 = vst [vmem:[#allocation124_spill] sm:$0xff] %v9666_v20  ;;  %v9668_v1 = vld [vmem:[#allocation13 + $0x7e8] sm:$0xff]  ;;  %v9678_v37 = vld [vmem:[#allocation13 + $0x10] sm:$0xff] }
 0x41e   :  { %12158 = vst [vmem:[#allocation125_spill] sm:$0xff] %v9668_v1  ;;  %12159 = vst [vmem:[#allocation126_spill] sm:$0xff] %v9678_v37  ;;  %v9686_v16 = vld [vmem:[#allocation13 + $0x30] sm:$0xff]  ;;  %v9688_v11 = vld [vmem:[#allocation13 + $0x18] sm:$0xff]  ;;  %v1881_v49 = vrot.slane %v1875_v60, %v8848_v46  ;;  %v1885_v12 = vrot.slane %v1875_v60, %v8851_v51  ;;  %v9703_v40 = vrot.slane %v1875_v60, %v9479_v54 }
 0x41f   :  { %12160 = vst [vmem:[#allocation127_spill] sm:$0xff] %v9686_v16  ;;  %12161 = vst [vmem:[#allocation128_spill] sm:$0xff] %v9688_v11  ;;  %v9690_v58 = vld [vmem:[#allocation13 + $0x38] sm:$0xff]  ;;  %v9706_v23 = vrot.slane %v1875_v60, %v9482_v56  ;;  %v12172_v11 = vld [vmem:[#allocation28_spill] sm:$0xff] }
 0x420   :  { %12162 = vst [vmem:[#allocation129_spill] sm:$0xff] %v9690_v58  ;;  %12163 = vst [vmem:[#allocation130_spill] sm:$0xff] %v9703_v40  ;;  %v1898_v30 = vmul.f32 %v1881_v49, %v9426_v8  ;;  %v1899_v36 = vmul.f32 %v1885_v12, %v9432_v21  ;;  %v1900_v60 = vmul.f32 %v9703_v40, %v9428_v24  ;;  %v12173_v20 = vld [vmem:[#allocation30_spill] sm:$0xff] }
 0x421   :  { %v1901_v39 = vmul.f32 %v9706_v23, %v9436_v4  ;;  %v1933_v31 = vmul.f32 %v1885_v12, %v9009_v61  ;;  %v1937_v62 = vmul.f32 %v1885_v12, %v9041_v7  ;;  %v1932_v1 = vmul.f32 %v1881_v49, %v9003_v18 }
 0x422   :  { %v1906_v2 = vcombine.low %v1898_v30, %v1899_v36  ;;  %v1936_v8 = vmul.f32 %v1881_v49, %v9025_v42  ;;  %v1941_v21 = vmul.f32 %v1885_v12, %v9101_v28  ;;  %v1945_v24 = vmul.f32 %v1885_v12, %v9120_v63  ;;  %v9791_v30 = vld [vmem:[#allocation13 + $0x50] sm:$0xff] }
 0x423   :  { %v1907_v16 = vcombine.low %v1900_v60, %v1901_v39  ;;  %v1940_v37 = vmul.f32 %v1881_v49, %v9083_v53  ;;  %v9732_v4 = vmul.f32 %v1881_v49, %v9111_v44  ;;  %v9735_v61 = vmul.f32 %v1885_v12, %v9175_v48  ;;  %12164 = vst [vmem:[#allocation131_spill] sm:$0xff] %v9791_v30  ;;  %v12166_v39 = vld [vmem:[#allocation57_spill] sm:$0xff] }
 0x424   :  { %v1914_v18 = vrot.slane %v1906_v2, %v8840_v35  ;;  %v9740_v36 = vmul.f32 %v1885_v12, %v9198_v52  ;;  %v9743_v42 = vmul.f32 %v1881_v49, %v9159_v38  ;;  %v9746_v28 = vmul.f32 %v1881_v49, %v9188_v5  ;;  %v1876_v5 = vld [vmem:[%s11750_s8] sm:$0xf] }
 0x425   :  { %v1921_v7 = vrot.slane %v1907_v16, %v8840_v35  ;;  %v9749_v53 = vmul.f32 %v1885_v12, %v9233_v15  ;;  %v9752_v44 = vmul.f32 %v1885_v12, %v9253_v32  ;;  %v9755_v63 = vmul.f32 %v1881_v49, %v9219_v13 }
 0x426   :  { %v9758_v2 = vmul.f32 %v1881_v49, %v9246_v55  ;;  %v9761_v52 = vmul.f32 %v1885_v12, %v9276_v22  ;;  %v9764_v38 = vmul.f32 %v1885_v12, %v9293_v43  ;;  %v9770_v15 = vmul.f32 %v1881_v49, %v9266_v29 }
 0x427   :  { %v1922_v48 = vcombine.low %v1914_v18, %v1921_v7  ;;  %v9773_v13 = vmul.f32 %v1881_v49, %v9286_v25  ;;  %v9776_v32 = vmul.f32 %v1885_v12, %v9316_v6  ;;  %v9779_v55 = vmul.f32 %v1885_v12, %v9333_v59  ;;  %v9793_v25 = vld [vmem:[#allocation13 + $0x70] sm:$0xff]  ;;  %v12168_v7 = vld [vmem:[#allocation66_spill] sm:$0xff] }
 0x428   :  { %v9783_v43 = vmul.f32 %v1881_v49, %v9306_v9  ;;  %v9786_v16 = vmul.f32 %v1881_v49, %v9326_v41  ;;  %v9789_v29 = vmul.f32 %v1885_v12, %v9356_v57  ;;  %12165 = vst [vmem:[#allocation132_spill] sm:$0xff] %v9793_v25  ;;  %v9796_v6 = vmul.f32 %v1885_v12, %v9373_v26  ;;  %v12167_v9 = vld [vmem:[#allocation62_spill] sm:$0xff]  ;;  %v12171_v26 = vld [vmem:[#allocation67_spill] sm:$0xff] }
 0x429   :  { %v1929_v22 = vrot.slane %v1922_v48, %v8840_v35  ;;  %v9799_v59 = vmul.f32 %v1881_v49, %v9346_v17  ;;  %v9802_v60 = vmul.f32 %v1881_v49, %v12166_v39  ;;  %v9805_v18 = vmul.f32 %v1885_v12, %v12167_v9  ;;  %v12169_v48 = vld [vmem:[#allocation60_spill] sm:$0xff] }
 0x42a   :  { %v9808_v57 = vmul.f32 %v1885_v12, %v12168_v7  ;;  %v9811_v19 = vmul.f32 %v1881_v49, %v12169_v48  ;;  %v12170_v35 = vld [vmem:[#allocation64_spill] sm:$0xff]  ;;  %v1995_v17 = vmul.f32 %v9706_v23, %v12171_v26  ;;  %v9820_v39 = vmul.f32 %v9706_v23, %v12172_v11 }
 0x42b   :  { %v1931_v41 = vsub.f32 %v1876_v5, %v1929_v22  ;;  %v9814_v58 = vmul.f32 %v1881_v49, %v12170_v35  ;;  %v9824_v9 = vmul.f32 %v9706_v23, %v12173_v20  ;;  %v12174_v22 = vld [vmem:[#allocation27_spill] sm:$0xff]  ;;  %v12175_v20 = vld [vmem:[#allocation29_spill] sm:$0xff]  ;;  %v12176_v26 = vld [vmem:[#allocation32_spill] sm:$0xff] }
 0x42c   :  { %v9839_v11 = vmul.f32 %v9703_v40, %v12174_v22  ;;  %v9846_v48 = vmul.f32 %v9703_v40, %v12175_v20  ;;  %v9850_v12 = vmul.f32 %v9706_v23, %v12176_v26 }
 0x42d   :  { %v9829_v5 = vrot.slane %v1931_v41, %v8848_v46  ;;  %v9832_v35 = vrot.slane %v1931_v41, %v8851_v51  ;;  %v9835_v49 = vrot.slane %v1931_v41, %v9482_v56  ;;  %v9842_v7 = vrot.slane %v1931_v41, %v9479_v54  ;;  %v12177_v51 = vld [vmem:[#allocation34_spill] sm:$0xff] }
 0x42e   :  { %v9854_v46 = vmul.f32 %v9706_v23, %v12177_v51  ;;  %v12179_v51 = vld [vmem:[#allocation31_spill] sm:$0xff] }
 0x42f   :  { %v9857_v56 = vadd.f32 %v9835_v49, %v1995_v17  ;;  %v2018_v22 = vadd.f32 %v9832_v35, %v1933_v31  ;;  %v2022_v41 = vadd.f32 %v9832_v35, %v1937_v62  ;;  %v2017_v54 = vadd.f32 %v9829_v5, %v1932_v1 }
 0x430   :  { %v2021_v20 = vadd.f32 %v9829_v5, %v1936_v8  ;;  %v2026_v30 = vadd.f32 %v9832_v35, %v1941_v21  ;;  %v2030_v26 = vadd.f32 %v9832_v35, %v1945_v24  ;;  %v2025_v25 = vadd.f32 %v9829_v5, %v1940_v37 }
 0x431   :  { %12178 = vst [vmem:[#allocation57_spill] sm:$0xff] %v9857_v56  ;;  %vm2082_vm0 = vcmp.gt.f32.partialorder %v2018_v22, 0.0  ;;  %vm2086_vm1 = vcmp.gt.f32.partialorder %v2022_v41, 0.0  ;;  %v9868_v17 = vmul.f32 %v9703_v40, %v12179_v51  ;;  %v12180_v56 = vld [vmem:[#allocation33_spill] sm:$0xff]  ;;  %v2146_v62 = vmul.f32 0.2, %v2018_v22 }
 0x432   :  { %v9872_v31 = vmul.f32 %v9703_v40, %v12180_v56  ;;  %v2150_v1 = vmul.f32 0.2, %v2022_v41  ;;  %vm2081_vm2 = vcmp.gt.f32.partialorder %v2017_v54, 0.0  ;;  %vm2085_vm3 = vcmp.gt.f32.partialorder %v2021_v20, 0.0 }
 0x433   :  { %v2145_v8 = vmul.f32 0.2, %v2017_v54  ;;  %v2149_v21 = vmul.f32 0.2, %v2021_v20  ;;  %vm2090_vm4 = vcmp.gt.f32.partialorder %v2026_v30, 0.0  ;;  %vm2094_vm5 = vcmp.gt.f32.partialorder %v2030_v26, 0.0 }
 0x434   :  { %v2210_v24 = vsel %vm2082_vm0, %v2018_v22, %v2146_v62  ;;  %v2214_v37 = vsel %vm2086_vm1, %v2022_v41, %v2150_v1  ;;  %v2154_v34 = vmul.f32 0.2, %v2026_v30  ;;  %v2158_v10 = vmul.f32 0.2, %v2030_v26 }
 0x435   :  { %v9874_v27 = vpack.c.bf16 %v2214_v37, %v2210_v24  ;;  %v2209_v51 = vsel %vm2081_vm2, %v2017_v54, %v2145_v8  ;;  %v2213_v45 = vsel %vm2085_vm3, %v2021_v20, %v2149_v21  ;;  %v2029_v56 = vadd.f32 %v9829_v5, %v9732_v4  ;;  %v12182_v4 = vld [vmem:[#allocation36_spill] sm:$0xff]  ;;  %v12189_v24 = vld [vmem:[#allocation69_spill] sm:$0xff]  ;;  %v12190_v37 = vld [vmem:[#allocation70_spill] sm:$0xff] }
 0x436   :  { %v9878_v47 = vpack.c.bf16 %v2213_v45, %v2209_v51  ;;  %v2218_v33 = vsel %vm2090_vm4, %v2026_v30, %v2154_v34  ;;  %v2222_v40 = vsel %vm2094_vm5, %v2030_v26, %v2158_v10  ;;  %vm2089_vm6 = vcmp.gt.f32.partialorder %v2025_v25, 0.0  ;;  %v12181_v34 = vld [vmem:[#allocation35_spill] sm:$0xff]  ;;  %v12185_v30 = vld [vmem:[#allocation38_spill] sm:$0xff] }
 0x437   :  { %3873 = vmatprep.mubr.bf16.mxu0 %v9874_v27  ;;  %4099 = vmatprep.mubr.bf16.mxu1 %v9874_v27  ;;  %v9882_v22 = vpack.c.bf16 %v2222_v40, %v2218_v33  ;;  %vm2093_vm7 = vcmp.gt.f32.partialorder %v2029_v56, 0.0  ;;  %v2153_v41 = vmul.f32 0.2, %v2025_v25  ;;  %v2157_v62 = vmul.f32 0.2, %v2029_v56  ;;  %v12184_v40 = vld [vmem:[#allocation37_spill] sm:$0xff] }
 0x438   :  { %3874 = vmatmul.mubr.bf16.vlgmr.msra.gmra.mrb[48].mxu0 %v9878_v47  ;;  %4100 = vmatmul.mubr.bf16.vlgmr.msra.gmra.mrb[64].mxu1 %v9878_v47  ;;  %v2034_v45 = vadd.f32 %v9832_v35, %v9735_v61  ;;  %v2038_v54 = vadd.f32 %v9832_v35, %v9740_v36  ;;  %v2033_v10 = vadd.f32 %v9829_v5, %v9743_v42  ;;  %v12187_v42 = vld [vmem:[#allocation68_spill] sm:$0xff] }
 0x439   :  { %v12183_v33 = vcombine.low %v12181_v34, %v12182_v4  ;;  %v12186_v20 = vcombine.low %v12184_v40, %v12185_v30  ;;  %v2217_v26 = vsel %vm2089_vm6, %v2025_v25, %v2153_v41  ;;  %v2221_v1 = vsel %vm2093_vm7, %v2029_v56, %v2157_v62  ;;  %3883 = vmatprep.mubr.bf16.mxu0 %v9882_v22 }
 0x43a   :  { %v2037_v8 = vadd.f32 %v9829_v5, %v9746_v28  ;;  %4109 = vmatprep.mubr.bf16.mxu1 %v9882_v22  ;;  %v9902_v61 = vpack.c.bf16 %v2221_v1, %v2217_v26  ;;  %vm2098_vm8 = vcmp.gt.f32.partialorder %v2034_v45, 0.0  ;;  %vm2102_vm9 = vcmp.gt.f32.partialorder %v2038_v54, 0.0  ;;  %v12195_v26 = vld [vmem:[#allocation72_spill] sm:$0xff] }
 0x43b   :  { %3955 = vmatpush1.bf16.msra.mxu0 %v12183_v33  ;;  %4181 = vmatpush1.bf16.msra.mxu1 %v12186_v20  ;;  %v2162_v36 = vmul.f32 0.2, %v2034_v45  ;;  %v12188_v21 = vcombine.high %v9442_v50, %v12187_v42  ;;  %v12191_v25 = vcombine.high %v12189_v24, %v12190_v37  ;;  %v2166_v51 = vmul.f32 0.2, %v2038_v54  ;;  %v12194_v20 = vld [vmem:[#allocation71_spill] sm:$0xff] }
 0x43c   :  { %vm2097_vm10 = vcmp.gt.f32.partialorder %v2033_v10, 0.0  ;;  %vm2101_vm11 = vcmp.gt.f32.partialorder %v2037_v8, 0.0  ;;  %v2161_v28 = vmul.f32 0.2, %v2033_v10  ;;  %v2165_v41 = vmul.f32 0.2, %v2037_v8 }
 0x43d   :  { %3956 = vmatprep.subr.bf16.mxu0 %v12188_v21  ;;  %4182 = vmatprep.subr.bf16.mxu1 %v12191_v25  ;;  %v2226_v56 = vsel %vm2098_vm8, %v2034_v45, %v2162_v36  ;;  %v2042_v62 = vadd.f32 %v9832_v35, %v9749_v53  ;;  %v2046_v34 = vadd.f32 %v9832_v35, %v9752_v44  ;;  %v12197_v53 = vld [vmem:[#allocation73_spill] sm:$0xff]  ;;  %v12198_v36 = vld [vmem:[#allocation74_spill] sm:$0xff] }
 0x43e   :  { %v12192_v4 = vcombine.low %v9442_v50, %v12187_v42  ;;  %v12193_v33 = vcombine.low %v12189_v24, %v12190_v37  ;;  %v2230_v40 = vsel %vm2102_vm9, %v2038_v54, %v2166_v51  ;;  %v2225_v30 = vsel %vm2097_vm10, %v2033_v10, %v2161_v28 }
 0x43f   :  { %v2041_v45 = vadd.f32 %v9829_v5, %v9755_v63  ;;  %v12196_v1 = vcombine.high %v12194_v20, %v12195_v26  ;;  %v12199_v44 = vcombine.high %v12197_v53, %v12198_v36  ;;  %v9928_v21 = vpack.c.bf16 %v2230_v40, %v2226_v56  ;;  %v12205_v40 = vld [vmem:[#allocation77_spill] sm:$0xff] }
 0x440   :  { %3957 = vmatpush1.bf16.msra.mxu0 %v12192_v4  ;;  %4183 = vmatpush1.bf16.msra.mxu1 %v12193_v33  ;;  %v2229_v50 = vsel %vm2101_vm11, %v2037_v8, %v2165_v41  ;;  %vm2106_vm12 = vcmp.gt.f32.partialorder %v2042_v62, 0.0  ;;  %vm2110_vm13 = vcmp.gt.f32.partialorder %v2046_v34, 0.0  ;;  %v2170_v54 = vmul.f32 0.2, %v2042_v62  ;;  %v12203_v4 = vld [vmem:[#allocation76_spill] sm:$0xff] }
 0x441   :  { %3958 = vmatprep.subr.bf16.mxu0 %v12196_v1  ;;  %4184 = vmatprep.subr.bf16.mxu1 %v12199_v44  ;;  %v9930_v42 = vpack.c.bf16 %v2229_v50, %v2225_v30  ;;  %v2174_v10 = vmul.f32 0.2, %v2046_v34  ;;  %v2045_v63 = vadd.f32 %v9829_v5, %v9758_v2  ;;  %vm2105_vm14 = vcmp.gt.f32.partialorder %v2041_v45, 0.0  ;;  %v12206_v30 = vld [vmem:[#allocation78_spill] sm:$0xff] }
 0x442   :  { %3884 = vmatmul.mubr.bf16.gmra.mrb[52].mxu0 %v9902_v61  ;;  %4110 = vmatmul.mubr.bf16.gmra.mrb[68].mxu1 %v9902_v61  ;;  %v2169_v24 = vmul.f32 0.2, %v2041_v45  ;;  %v2050_v37 = vadd.f32 %v9832_v35, %v9761_v52  ;;  %v2054_v8 = vadd.f32 %v9832_v35, %v9764_v38  ;;  %v12200_v25 = vcombine.low %v12194_v20, %v12195_v26  ;;  %v12202_v38 = vld [vmem:[#allocation75_spill] sm:$0xff] }
 0x443   :  { %v12201_v51 = vcombine.low %v12197_v53, %v12198_v36  ;;  %v2234_v2 = vsel %vm2106_vm12, %v2042_v62, %v2170_v54  ;;  %v2238_v28 = vsel %vm2110_vm13, %v2046_v34, %v2174_v10  ;;  %vm2109_vm15 = vcmp.gt.f32.partialorder %v2045_v63, 0.0  ;;  %3893 = vmatprep.mubr.bf16.mxu0 %v9928_v21  ;;  %4119 = vmatprep.mubr.bf16.mxu1 %v9928_v21 }
 0x444   :  { %3959 = vmatpush1.bf16.msra.mxu0 %v12200_v25  ;;  %v2173_v56 = vmul.f32 0.2, %v2045_v63  ;;  %v9948_v52 = vpack.c.bf16 %v2238_v28, %v2234_v2  ;;  %v2233_v41 = vsel %vm2105_vm14, %v2041_v45, %v2169_v24  ;;  %vm2114_vm0 = vcmp.gt.f32.partialorder %v2050_v37, 0.0  ;;  %v12210_v24 = vld [vmem:[#allocation79_spill] sm:$0xff] }
 0x445   :  { %4185 = vmatpush1.bf16.msra.mxu1 %v12201_v51  ;;  %vm2118_vm1 = vcmp.gt.f32.partialorder %v2054_v8, 0.0  ;;  %v12204_v33 = vcombine.high %v12202_v38, %v12203_v4  ;;  %v12207_v20 = vcombine.high %v12205_v40, %v12206_v30  ;;  %v2178_v34 = vmul.f32 0.2, %v2050_v37  ;;  %v12214_v51 = vld [vmem:[#allocation82_spill] sm:$0xff] }
 0x446   :  { %v2237_v62 = vsel %vm2109_vm15, %v2045_v63, %v2173_v56  ;;  %v2182_v26 = vmul.f32 0.2, %v2054_v8  ;;  %v2049_v1 = vadd.f32 %v9829_v5, %v9770_v15  ;;  %v2053_v45 = vadd.f32 %v9829_v5, %v9773_v13  ;;  %v12211_v13 = vld [vmem:[#allocation80_spill] sm:$0xff] }
 0x447   :  { %3960 = vmatprep.subr.bf16.mxu0 %v12204_v33  ;;  %4186 = vmatprep.subr.bf16.mxu1 %v12207_v20  ;;  %v9958_v53 = vpack.c.bf16 %v2237_v62, %v2233_v41  ;;  %v2058_v36 = vadd.f32 %v9832_v35, %v9776_v32  ;;  %v2062_v44 = vadd.f32 %v9832_v35, %v9779_v55  ;;  %v12213_v32 = vld [vmem:[#allocation81_spill] sm:$0xff] }
 0x448   :  { %v12208_v50 = vcombine.low %v12202_v38, %v12203_v4  ;;  %v12209_v54 = vcombine.low %v12205_v40, %v12206_v30  ;;  %v2242_v15 = vsel %vm2114_vm0, %v2050_v37, %v2178_v34  ;;  %v2246_v10 = vsel %vm2118_vm1, %v2054_v8, %v2182_v26  ;;  %v12218_v34 = vld [vmem:[#allocation83_spill] sm:$0xff]  ;;  %v12219_v26 = vld [vmem:[#allocation84_spill] sm:$0xff] }
 0x449   :  { %vm2113_vm2 = vcmp.gt.f32.partialorder %v2049_v1, 0.0  ;;  %v2177_v63 = vmul.f32 0.2, %v2049_v1  ;;  %v12212_v25 = vcombine.high %v12210_v24, %v12211_v13  ;;  %v12215_v2 = vcombine.high %v12213_v32, %v12214_v51 }
 0x44a   :  { %3961 = vmatpush1.bf16.msra.mxu0 %v12208_v50  ;;  %4187 = vmatpush1.bf16.msra.mxu1 %v12209_v54  ;;  %v9978_v55 = vpack.c.bf16 %v2246_v10, %v2242_v15  ;;  %vm2117_vm3 = vcmp.gt.f32.partialorder %v2053_v45, 0.0  ;;  %v2181_v28 = vmul.f32 0.2, %v2053_v45  ;;  %vm2122_vm4 = vcmp.gt.f32.partialorder %v2058_v36, 0.0  ;;  %v12222_v50 = vld [vmem:[#allocation88_spill] sm:$0xff] }
 0x44b   :  { %3962 = vmatprep.subr.bf16.mxu0 %v12212_v25  ;;  %4188 = vmatprep.subr.bf16.mxu1 %v12215_v2  ;;  %v2241_v56 = vsel %vm2113_vm2, %v2049_v1, %v2177_v63  ;;  %vm2126_vm5 = vcmp.gt.f32.partialorder %v2062_v44, 0.0  ;;  %v2186_v41 = vmul.f32 0.2, %v2058_v36  ;;  %v2190_v37 = vmul.f32 0.2, %v2062_v44 }
 0x44c   :  { %3894 = vmatmul.mubr.bf16.gmra.mrb[56].mxu0 %v9930_v42  ;;  %4120 = vmatmul.mubr.bf16.gmra.mrb[72].mxu1 %v9930_v42  ;;  %v2245_v8 = vsel %vm2117_vm3, %v2053_v45, %v2181_v28  ;;  %v2057_v38 = vadd.f32 %v9829_v5, %v9783_v43  ;;  %v2061_v4 = vadd.f32 %v9829_v5, %v9786_v16  ;;  %v12221_v45 = vld [vmem:[#allocation87_spill] sm:$0xff] }
 0x44d   :  { %v12216_v33 = vcombine.low %v12210_v24, %v12211_v13  ;;  %v12217_v40 = vcombine.low %v12213_v32, %v12214_v51  ;;  %v9992_v30 = vpack.c.bf16 %v2245_v8, %v2241_v56  ;;  %v2250_v20 = vsel %vm2122_vm4, %v2058_v36, %v2186_v41  ;;  %3903 = vmatprep.mubr.bf16.mxu0 %v9948_v52  ;;  %v12226_v51 = vld [vmem:[#allocation89_spill] sm:$0xff] }
 0x44e   :  { %v2254_v62 = vsel %vm2126_vm5, %v2062_v44, %v2190_v37  ;;  %4129 = vmatprep.mubr.bf16.mxu1 %v9948_v52  ;;  %vm2121_vm6 = vcmp.gt.f32.partialorder %v2057_v38, 0.0  ;;  %vm2125_vm7 = vcmp.gt.f32.partialorder %v2061_v4, 0.0  ;;  %v2185_v16 = vmul.f32 0.2, %v2057_v38 }
 0x44f   :  { %3963 = vmatpush1.bf16.msra.mxu0 %v12216_v33  ;;  %4189 = vmatpush1.bf16.msra.mxu1 %v12217_v40  ;;  %v9996_v43 = vpack.c.bf16 %v2254_v62, %v2250_v20  ;;  %v12220_v1 = vcombine.high %v12218_v34, %v12219_v26  ;;  %v12223_v54 = vcombine.high %v12221_v45, %v12222_v50  ;;  %v2189_v15 = vmul.f32 0.2, %v2061_v4 }
 0x450   :  { %v2066_v36 = vadd.f32 %v9832_v35, %v9789_v29  ;;  %v2070_v44 = vadd.f32 %v9832_v35, %v9796_v6  ;;  %v2065_v10 = vadd.f32 %v9829_v5, %v9799_v59  ;;  %v2249_v63 = vsel %vm2121_vm6, %v2057_v38, %v2185_v16 }
 0x451   :  { %3964 = vmatprep.subr.bf16.mxu0 %v12220_v1  ;;  %4190 = vmatprep.subr.bf16.mxu1 %v12223_v54  ;;  %v2069_v24 = vadd.f32 %v9829_v5, %v9802_v60  ;;  %v2074_v13 = vadd.f32 %v9832_v35, %v9805_v18  ;;  %v2078_v25 = vadd.f32 %v9832_v35, %v9808_v57  ;;  %v12227_v60 = vld [vmem:[#allocation90_spill] sm:$0xff]  ;;  %v12229_v18 = vld [vmem:[#allocation91_spill] sm:$0xff] }
 0x452   :  { %v12224_v32 = vcombine.low %v12218_v34, %v12219_v26  ;;  %v12225_v29 = vcombine.low %v12221_v45, %v12222_v50  ;;  %v2253_v6 = vsel %vm2125_vm7, %v2061_v4, %v2189_v15  ;;  %vm2130_vm8 = vcmp.gt.f32.partialorder %v2066_v36, 0.0  ;;  %v12233_v45 = vld [vmem:[#allocation92_spill] sm:$0xff]  ;;  %v12234_v50 = vld [vmem:[#allocation93_spill] sm:$0xff]  ;;  %v12236_v15 = vld [vmem:[#allocation94_spill] sm:$0xff] }
 0x453   :  { %vm2134_vm9 = vcmp.gt.f32.partialorder %v2070_v44, 0.0  ;;  %v2194_v59 = vmul.f32 0.2, %v2066_v36  ;;  %v12228_v2 = vcombine.high %v12226_v51, %v12227_v60  ;;  %v12230_v28 = vcombine.high %v9504_v0, %v12229_v18 }
 0x454   :  { %3965 = vmatpush1.bf16.msra.mxu0 %v12224_v32  ;;  %4191 = vmatpush1.bf16.msra.mxu1 %v12225_v29  ;;  %v10028_v57 = vpack.c.bf16 %v2253_v6, %v2249_v63  ;;  %v2198_v35 = vmul.f32 0.2, %v2070_v44  ;;  %vm2129_vm10 = vcmp.gt.f32.partialorder %v2065_v10, 0.0  ;;  %vm2133_vm11 = vcmp.gt.f32.partialorder %v2069_v24, 0.0 }
 0x455   :  { %3966 = vmatprep.subr.bf16.mxu0 %v12228_v2  ;;  %4192 = vmatprep.subr.bf16.mxu1 %v12230_v28  ;;  %v2258_v56 = vsel %vm2130_vm8, %v2066_v36, %v2194_v59  ;;  %v2193_v41 = vmul.f32 0.2, %v2065_v10  ;;  %v2197_v37 = vmul.f32 0.2, %v2069_v24  ;;  %vm2138_vm12 = vcmp.gt.f32.partialorder %v2074_v13, 0.0  ;;  %v12237_v36 = vld [vmem:[#allocation95_spill] sm:$0xff] }
 0x456   :  { %3904 = vmatmul.mubr.bf16.gmra.mrb[60].mxu0 %v9958_v53  ;;  %4130 = vmatmul.mubr.bf16.gmra.mrb[76].mxu1 %v9958_v53  ;;  %v2262_v8 = vsel %vm2134_vm9, %v2070_v44, %v2198_v35  ;;  %vm2142_vm13 = vcmp.gt.f32.partialorder %v2078_v25, 0.0  ;;  %v2202_v38 = vmul.f32 0.2, %v2074_v13  ;;  %v2206_v4 = vmul.f32 0.2, %v2078_v25  ;;  %v12245_v59 = vld [vmem:[#allocation99_spill] sm:$0xff] }
 0x457   :  { %v12231_v33 = vcombine.low %v12226_v51, %v12227_v60  ;;  %v12232_v40 = vcombine.low %v9504_v0, %v12229_v18  ;;  %v10038_v20 = vpack.c.bf16 %v2262_v8, %v2258_v56  ;;  %v2257_v62 = vsel %vm2129_vm10, %v2065_v10, %v2193_v41  ;;  %3913 = vmatprep.mubr.bf16.mxu0 %v9978_v55 }
 0x458   :  { %v2261_v16 = vsel %vm2133_vm11, %v2069_v24, %v2197_v37  ;;  %4139 = vmatprep.mubr.bf16.mxu1 %v9978_v55  ;;  %v2266_v26 = vsel %vm2138_vm12, %v2074_v13, %v2202_v38  ;;  %v2270_v1 = vsel %vm2142_vm13, %v2078_v25, %v2206_v4  ;;  %v12235_v54 = vcombine.high %v12233_v45, %v12234_v50 }
 0x459   :  { %3967 = vmatpush1.bf16.msra.mxu0 %v12231_v33  ;;  %4193 = vmatpush1.bf16.msra.mxu1 %v12232_v40  ;;  %v10042_v34 = vpack.c.bf16 %v2261_v16, %v2257_v62  ;;  %v12238_v0 = vcombine.high %v12236_v15, %v12237_v36  ;;  %v10050_v44 = vpack.c.bf16 %v2270_v1, %v2266_v26  ;;  %v12249_v1 = vld [vmem:[#allocation100_spill] sm:$0xff] }
 0x45a   :  { %3968 = vmatprep.subr.bf16.mxu0 %v12235_v54  ;;  %v2073_v10 = vadd.f32 %v9829_v5, %v9811_v19  ;;  %v2077_v63 = vadd.f32 %v9829_v5, %v9814_v58  ;;  %v2020_v24 = vadd.f32 %v9835_v49, %v9820_v39  ;;  %v2024_v13 = vadd.f32 %v9835_v49, %v9824_v9  ;;  %v12241_v5 = vld [vmem:[#allocation96_spill] sm:$0xff]  ;;  %v12242_v9 = vld [vmem:[#allocation97_spill] sm:$0xff] }
 0x45b   :  { %4194 = vmatprep.subr.bf16.mxu1 %v12238_v0  ;;  %v2019_v25 = vadd.f32 %v9842_v7, %v9839_v11  ;;  %v2023_v32 = vadd.f32 %v9842_v7, %v9846_v48  ;;  %v12239_v29 = vcombine.low %v12233_v45, %v12234_v50  ;;  %v12240_v19 = vcombine.low %v12236_v15, %v12237_v36  ;;  %v12244_v11 = vld [vmem:[#allocation98_spill] sm:$0xff]  ;;  %v12250_v45 = vld [vmem:[#allocation101_spill] sm:$0xff] }
 0x45c   :  { %vm2137_vm14 = vcmp.gt.f32.partialorder %v2073_v10, 0.0  ;;  %vm2141_vm15 = vcmp.gt.f32.partialorder %v2077_v63, 0.0  ;;  %v2201_v58 = vmul.f32 0.2, %v2073_v10  ;;  %v2205_v39 = vmul.f32 0.2, %v2077_v63 }
 0x45d   :  { %3969 = vmatpush1.bf16.msra.mxu0 %v12239_v29  ;;  %4195 = vmatpush1.bf16.msra.mxu1 %v12240_v19  ;;  %v12243_v6 = vcombine.high %v12241_v5, %v12242_v9  ;;  %v12246_v51 = vcombine.high %v12244_v11, %v12245_v59  ;;  %vm2084_vm0 = vcmp.gt.f32.partialorder %v2020_v24, 0.0  ;;  %vm2088_vm1 = vcmp.gt.f32.partialorder %v2024_v13, 0.0  ;;  %v12259_v19 = vld [vmem:[#allocation104_spill] sm:$0xff] }
 0x45e   :  { %v2148_v48 = vmul.f32 0.2, %v2020_v24  ;;  %v2152_v60 = vmul.f32 0.2, %v2024_v13  ;;  %v2265_v2 = vsel %vm2137_vm14, %v2073_v10, %v2201_v58  ;;  %v2269_v18 = vsel %vm2141_vm15, %v2077_v63, %v2205_v39  ;;  %3914 = vmatmul.mubr.bf16.gmra.mrb[64].mxu0 %v9992_v30  ;;  %4140 = vmatmul.mubr.bf16.gmra.mrb[80].mxu1 %v9992_v30  ;;  %v12260_v58 = vld [vmem:[#allocation105_spill] sm:$0xff] }
 0x45f   :  { %3970 = vmatprep.subr.bf16.mxu0 %v12243_v6  ;;  %4196 = vmatprep.subr.bf16.mxu1 %v12246_v51  ;;  %vm2083_vm2 = vcmp.gt.f32.partialorder %v2019_v25, 0.0  ;;  %vm2087_vm3 = vcmp.gt.f32.partialorder %v2023_v32, 0.0  ;;  %v10078_v28 = vpack.c.bf16 %v2269_v18, %v2265_v2  ;;  %v2147_v41 = vmul.f32 0.2, %v2019_v25 }
 0x460   :  { %v2212_v35 = vsel %vm2084_vm0, %v2020_v24, %v2148_v48  ;;  %v2216_v56 = vsel %vm2088_vm1, %v2024_v13, %v2152_v60  ;;  %v12247_v37 = vcombine.low %v12241_v5, %v12242_v9  ;;  %v12248_v8 = vcombine.low %v12244_v11, %v12245_v59  ;;  %3923 = vmatprep.mubr.bf16.mxu0 %v9996_v43  ;;  %v12256_v13 = vld [vmem:[#allocation40_spill] sm:$0xff]  ;;  %v12262_v9 = vld [vmem:[#allocation42_spill] sm:$0xff] }
 0x461   :  { %v10086_v38 = vpack.c.bf16 %v2216_v56, %v2212_v35  ;;  %v2151_v4 = vmul.f32 0.2, %v2023_v32  ;;  %v2028_v33 = vadd.f32 %v9835_v49, %v9850_v12  ;;  %v2032_v40 = vadd.f32 %v9835_v49, %v9854_v46  ;;  %4149 = vmatprep.mubr.bf16.mxu1 %v9996_v43  ;;  %v12252_v12 = vld [vmem:[#allocation102_spill] sm:$0xff]  ;;  %v12265_v56 = vld [vmem:[#allocation41_spill] sm:$0xff] }
 0x462   :  { %3971 = vmatpush1.bf16.msra.mxu0 %v12247_v37  ;;  %4197 = vmatpush1.bf16.msra.mxu1 %v12248_v8  ;;  %v2211_v62 = vsel %vm2083_vm2, %v2019_v25, %v2147_v41  ;;  %v2027_v16 = vadd.f32 %v9842_v7, %v9868_v17  ;;  %v2031_v26 = vadd.f32 %v9842_v7, %v9872_v31  ;;  %v12264_v11 = vld [vmem:[#allocation130_spill] sm:$0xff] }
 0x463   :  { %v12251_v50 = vcombine.high %v12249_v1, %v12250_v45  ;;  %v12253_v54 = vcombine.high %v9560_v3, %v12252_v12  ;;  %v2215_v46 = vsel %vm2087_vm3, %v2023_v32, %v2151_v4  ;;  %vm2092_vm4 = vcmp.gt.f32.partialorder %v2028_v33, 0.0  ;;  %v12257_v32 = vld [vmem:[#allocation103_spill] sm:$0xff] }
 0x464   :  { %vm2096_vm5 = vcmp.gt.f32.partialorder %v2032_v40, 0.0  ;;  %v2156_v15 = vmul.f32 0.2, %v2028_v33  ;;  %v10106_v36 = vpack.c.bf16 %v2215_v46, %v2211_v62  ;;  %v2160_v0 = vmul.f32 0.2, %v2032_v40  ;;  %v12274_v46 = vld [vmem:[#allocation109_spill] sm:$0xff] }
 0x465   :  { %3972 = vmatprep.subr.bf16.mxu0 %v12251_v50  ;;  %4198 = vmatprep.subr.bf16.mxu1 %v12253_v54  ;;  %vm2091_vm6 = vcmp.gt.f32.partialorder %v2027_v16, 0.0  ;;  %vm2095_vm7 = vcmp.gt.f32.partialorder %v2031_v26, 0.0  ;;  %v12254_v17 = vcombine.low %v12249_v1, %v12250_v45  ;;  %v12255_v31 = vcombine.low %v9560_v3, %v12252_v12  ;;  %v12263_v3 = vld [vmem:[#allocation39_spill] sm:$0xff]  ;;  %v12270_v45 = vld [vmem:[#allocation106_spill] sm:$0xff]  ;;  %v12273_v54 = vld [vmem:[#allocation108_spill] sm:$0xff] }
 0x466   :  { %v2220_v10 = vsel %vm2092_vm4, %v2028_v33, %v2156_v15  ;;  %v2155_v63 = vmul.f32 0.2, %v2027_v16  ;;  %v2159_v24 = vmul.f32 0.2, %v2031_v26  ;;  %v1951_v25 = vmul.f32 %v9706_v23, %v12256_v13  ;;  %3924 = vmatmul.mubr.bf16.gmra.mrb[68].mxu0 %v10028_v57  ;;  %4150 = vmatmul.mubr.bf16.gmra.mrb[84].mxu1 %v10028_v57  ;;  %v12271_v50 = vld [vmem:[#allocation107_spill] sm:$0xff] }
 0x467   :  { %3973 = vmatpush1.bf16.msra.mxu0 %v12254_v17  ;;  %4199 = vmatpush1.bf16.msra.mxu1 %v12255_v31  ;;  %v12258_v29 = vcombine.high %v9570_v14, %v12257_v32  ;;  %v12261_v39 = vcombine.high %v12259_v19, %v12260_v58  ;;  %v2224_v5 = vsel %vm2096_vm5, %v2032_v40, %v2160_v0  ;;  %v12268_v40 = vld [vmem:[#allocation44_spill] sm:$0xff] }
 0x468   :  { %v1955_v6 = vmul.f32 %v9706_v23, %v12262_v9  ;;  %v1950_v59 = vmul.f32 %v12264_v11, %v12263_v3  ;;  %v10126_v51 = vpack.c.bf16 %v2224_v5, %v2220_v10  ;;  %v2219_v48 = vsel %vm2091_vm6, %v2027_v16, %v2155_v63  ;;  %3933 = vmatprep.mubr.bf16.mxu0 %v10038_v20  ;;  %v12281_v9 = vld [vmem:[#allocation112_spill] sm:$0xff] }
 0x469   :  { %3974 = vmatprep.subr.bf16.mxu0 %v12258_v29  ;;  %4200 = vmatprep.subr.bf16.mxu1 %v12261_v39  ;;  %v2223_v60 = vsel %vm2095_vm7, %v2031_v26, %v2159_v24  ;;  %v2036_v2 = vadd.f32 %v9835_v49, %v1951_v25  ;;  %v1954_v41 = vmul.f32 %v12264_v11, %v12265_v56  ;;  %v12269_v26 = vld [vmem:[#allocation46_spill] sm:$0xff]  ;;  %v12279_v39 = vld [vmem:[#allocation111_spill] sm:$0xff] }
 0x46a   :  { %v10131_v18 = vpack.c.bf16 %v2223_v60, %v2219_v48  ;;  %v2040_v35 = vadd.f32 %v9835_v49, %v1955_v6  ;;  %v12266_v37 = vcombine.low %v9570_v14, %v12257_v32  ;;  %v12267_v8 = vcombine.low %v12259_v19, %v12260_v58  ;;  %4159 = vmatprep.mubr.bf16.mxu1 %v10038_v20  ;;  %v12278_v58 = vld [vmem:[#allocation110_spill] sm:$0xff]  ;;  %v12282_v6 = vld [vmem:[#allocation113_spill] sm:$0xff]  ;;  %v12284_v60 = vld [vmem:[#allocation43_spill] sm:$0xff] }
 0x46b   :  { %vm2100_vm8 = vcmp.gt.f32.partialorder %v2036_v2, 0.0  ;;  %v2164_v4 = vmul.f32 0.2, %v2036_v2  ;;  %v2035_v33 = vadd.f32 %v9842_v7, %v1950_v59  ;;  %v1959_v62 = vmul.f32 %v9706_v23, %v12268_v40 }
 0x46c   :  { %3975 = vmatpush1.bf16.msra.mxu0 %v12266_v37  ;;  %4201 = vmatpush1.bf16.msra.mxu1 %v12267_v8  ;;  %vm2104_vm9 = vcmp.gt.f32.partialorder %v2040_v35, 0.0  ;;  %v2168_v16 = vmul.f32 0.2, %v2040_v35  ;;  %v2039_v14 = vadd.f32 %v9842_v7, %v1954_v41  ;;  %v1963_v1 = vmul.f32 %v9706_v23, %v12269_v26  ;;  %v12285_v41 = vld [vmem:[#allocation45_spill] sm:$0xff]  ;;  %v12286_v8 = vld [vmem:[#allocation48_spill] sm:$0xff] }
 0x46d   :  { %v12272_v12 = vcombine.high %v12270_v45, %v12271_v50  ;;  %v12275_v15 = vcombine.high %v12273_v54, %v12274_v46  ;;  %v2228_v0 = vsel %vm2100_vm8, %v2036_v2, %v2164_v4  ;;  %vm2099_vm10 = vcmp.gt.f32.partialorder %v2035_v33, 0.0 }
 0x46e   :  { %v2163_v17 = vmul.f32 0.2, %v2035_v33  ;;  %v2044_v31 = vadd.f32 %v9835_v49, %v1959_v62  ;;  %v2232_v10 = vsel %vm2104_vm9, %v2040_v35, %v2168_v16  ;;  %vm2103_vm11 = vcmp.gt.f32.partialorder %v2039_v14, 0.0  ;;  %3934 = vmatmul.mubr.bf16.gmra.mrb[72].mxu0 %v10042_v34  ;;  %4160 = vmatmul.mubr.bf16.gmra.mrb[88].mxu1 %v10042_v34  ;;  %v12287_v62 = vld [vmem:[#allocation50_spill] sm:$0xff] }
 0x46f   :  { %3976 = vmatprep.subr.bf16.mxu0 %v12272_v12  ;;  %4202 = vmatprep.subr.bf16.mxu1 %v12275_v15  ;;  %v2167_v63 = vmul.f32 0.2, %v2039_v14  ;;  %v2048_v24 = vadd.f32 %v9835_v49, %v1963_v1  ;;  %v12276_v13 = vcombine.low %v12270_v45, %v12271_v50  ;;  %v12277_v25 = vcombine.low %v12273_v54, %v12274_v46  ;;  %v12290_v46 = vld [vmem:[#allocation47_spill] sm:$0xff] }
 0x470   :  { %v10164_v32 = vpack.c.bf16 %v2232_v10, %v2228_v0  ;;  %v2227_v29 = vsel %vm2099_vm10, %v2035_v33, %v2163_v17  ;;  %vm2108_vm12 = vcmp.gt.f32.partialorder %v2044_v31, 0.0  ;;  %v2172_v19 = vmul.f32 0.2, %v2044_v31  ;;  %3943 = vmatprep.mubr.bf16.mxu0 %v10050_v44  ;;  %4169 = vmatprep.mubr.bf16.mxu1 %v10050_v44  ;;  %v12291_v0 = vld [vmem:[#allocation114_spill] sm:$0xff]  ;;  %v12292_v17 = vld [vmem:[#allocation115_spill] sm:$0xff]  ;;  %v12294_v10 = vld [vmem:[#allocation116_spill] sm:$0xff] }
 0x471   :  { %3977 = vmatpush1.bf16.msra.mxu0 %v12276_v13  ;;  %4203 = vmatpush1.bf16.msra.mxu1 %v12277_v25  ;;  %v12280_v5 = vcombine.high %v12278_v58, %v12279_v39  ;;  %v12283_v3 = vcombine.high %v12281_v9, %v12282_v6  ;;  %v2231_v59 = vsel %vm2103_vm11, %v2039_v14, %v2167_v63  ;;  %vm2112_vm13 = vcmp.gt.f32.partialorder %v2048_v24, 0.0  ;;  %v12295_v63 = vld [vmem:[#allocation117_spill] sm:$0xff] }
 0x472   :  { %v2176_v48 = vmul.f32 0.2, %v2048_v24  ;;  %v1958_v2 = vmul.f32 %v12264_v11, %v12284_v60  ;;  %v10174_v35 = vpack.c.bf16 %v2231_v59, %v2227_v29  ;;  %v2236_v56 = vsel %vm2108_vm12, %v2044_v31, %v2172_v19  ;;  %v12301_v60 = vld [vmem:[#allocation119_spill] sm:$0xff] }
 0x473   :  { %3978 = vmatprep.subr.bf16.mxu0 %v12280_v5  ;;  %4204 = vmatprep.subr.bf16.mxu1 %v12283_v3  ;;  %v1962_v37 = vmul.f32 %v12264_v11, %v12285_v41  ;;  %v1967_v4 = vmul.f32 %v9706_v23, %v12286_v8  ;;  %v1971_v16 = vmul.f32 %v9706_v23, %v12287_v62  ;;  %v12304_v41 = vld [vmem:[#allocation121_spill] sm:$0xff] }
 0x474   :  { %v2240_v33 = vsel %vm2112_vm13, %v2048_v24, %v2176_v48  ;;  %v2043_v40 = vadd.f32 %v9842_v7, %v1958_v2  ;;  %v12288_v14 = vcombine.low %v12278_v58, %v12279_v39  ;;  %v12289_v26 = vcombine.low %v12281_v9, %v12282_v6  ;;  %v12297_v58 = vld [vmem:[#allocation49_spill] sm:$0xff]  ;;  %v12300_v48 = vld [vmem:[#allocation118_spill] sm:$0xff] }
 0x475   :  { %v10191_v1 = vpack.c.bf16 %v2240_v33, %v2236_v56  ;;  %v2047_v45 = vadd.f32 %v9842_v7, %v1962_v37  ;;  %v2052_v50 = vadd.f32 %v9835_v49, %v1967_v4  ;;  %v2056_v54 = vadd.f32 %v9835_v49, %v1971_v16  ;;  %v12303_v56 = vld [vmem:[#allocation120_spill] sm:$0xff] }
 0x476   :  { %3979 = vmatpush1.bf16.msra.mxu0 %v12288_v14  ;;  %4205 = vmatpush1.bf16.msra.mxu1 %v12289_v26  ;;  %vm2107_vm14 = vcmp.gt.f32.partialorder %v2043_v40, 0.0  ;;  %v2171_v12 = vmul.f32 0.2, %v2043_v40  ;;  %v1966_v15 = vmul.f32 %v12264_v11, %v12290_v46  ;;  %v12293_v31 = vcombine.high %v12291_v0, %v12292_v17  ;;  %v12306_v16 = vld [vmem:[#allocation52_spill] sm:$0xff] }
 0x477   :  { %v12296_v24 = vcombine.high %v12294_v10, %v12295_v63  ;;  %vm2111_vm15 = vcmp.gt.f32.partialorder %v2047_v45, 0.0  ;;  %v2175_v13 = vmul.f32 0.2, %v2047_v45  ;;  %vm2116_vm0 = vcmp.gt.f32.partialorder %v2052_v50, 0.0  ;;  %3944 = vmatmul.mubr.bf16.gmra.mrb[76].mxu0 %v10078_v28  ;;  %4170 = vmatmul.mubr.bf16.gmra.mrb[92].mxu1 %v10078_v28 }
 0x478   :  { %3980 = vmatprep.subr.bf16.mxu0 %v12293_v31  ;;  %v2180_v25 = vmul.f32 0.2, %v2052_v50  ;;  %v2235_v29 = vsel %vm2107_vm14, %v2043_v40, %v2171_v12  ;;  %vm2120_vm1 = vcmp.gt.f32.partialorder %v2056_v54, 0.0  ;;  %v2184_v19 = vmul.f32 0.2, %v2056_v54  ;;  %v12308_v12 = vld [vmem:[#allocation51_spill] sm:$0xff]  ;;  %3986 = vmatprep.mubr.bf16.mxu0 %v10086_v38 }
 0x479   :  { %4206 = vmatprep.subr.bf16.mxu1 %v12296_v24  ;;  %v1970_v39 = vmul.f32 %v12264_v11, %v12297_v58  ;;  %v12298_v5 = vcombine.low %v12291_v0, %v12292_v17  ;;  %v12299_v9 = vcombine.low %v12294_v10, %v12295_v63  ;;  %v2239_v6 = vsel %vm2111_vm15, %v2047_v45, %v2175_v13  ;;  %v12307_v45 = vld [vmem:[#allocation54_spill] sm:$0xff]  ;;  %v12311_v31 = vld [vmem:[#allocation53_spill] sm:$0xff]  ;;  %v12315_v58 = vld [vmem:[#allocation124_spill] sm:$0xff] }
 0x47a   :  { %v2244_v3 = vsel %vm2116_vm0, %v2052_v50, %v2180_v25  ;;  %v2051_v59 = vadd.f32 %v9842_v7, %v1966_v15  ;;  %v12302_v2 = vcombine.high %v12300_v48, %v12301_v60  ;;  %v12305_v37 = vcombine.high %v12303_v56, %v12304_v41  ;;  %4212 = vmatprep.mubr.bf16.mxu1 %v10086_v38  ;;  %v12312_v25 = vld [vmem:[#allocation122_spill] sm:$0xff] }
 0x47b   :  { %3981 = vmatpush1.bf16.msra.mxu0 %v12298_v5  ;;  %4207 = vmatpush1.bf16.msra.mxu1 %v12299_v9  ;;  %v10221_v8 = vpack.c.bf16 %v2239_v6, %v2235_v29  ;;  %v2248_v4 = vsel %vm2120_vm1, %v2056_v54, %v2184_v19  ;;  %v2055_v33 = vadd.f32 %v9842_v7, %v1970_v39  ;;  %v12313_v29 = vld [vmem:[#allocation123_spill] sm:$0xff]  ;;  %v12316_v39 = vld [vmem:[#allocation125_spill] sm:$0xff]  ;;  %v2316_v9 = vld [vmem:[#allocation13 + $0x58] sm:$0xff] }
 0x47c   :  { %3982 = vmatprep.subr.bf16.mxu0 %v12302_v2  ;;  %4208 = vmatprep.subr.bf16.mxu1 %v12305_v37  ;;  %v10224_v40 = vpack.c.bf16 %v2248_v4, %v2244_v3  ;;  %vm2115_vm2 = vcmp.gt.f32.partialorder %v2051_v59, 0.0  ;;  %v2179_v62 = vmul.f32 0.2, %v2051_v59  ;;  %v1975_v14 = vmul.f32 %v9706_v23, %v12306_v16  ;;  %v2320_v6 = vld [vmem:[#allocation13 + $0x78] sm:$0xff] }
 0x47d   :  { %vm2119_vm3 = vcmp.gt.f32.partialorder %v2055_v33, 0.0  ;;  %v2183_v26 = vmul.f32 0.2, %v2055_v33  ;;  %v1979_v50 = vmul.f32 %v9706_v23, %v12307_v45  ;;  %v1974_v54 = vmul.f32 %v12264_v11, %v12308_v12  ;;  %v12321_v16 = vld [vmem:[#allocation126_spill] sm:$0xff]  ;;  %v12324_v45 = vld [vmem:[#allocation128_spill] sm:$0xff] }
 0x47e   :  { %v12309_v46 = vcombine.low %v12300_v48, %v12301_v60  ;;  %v12310_v15 = vcombine.low %v12303_v56, %v12304_v41  ;;  %v2243_v0 = vsel %vm2115_vm2, %v2051_v59, %v2179_v62  ;;  %v2060_v17 = vadd.f32 %v9835_v49, %v1975_v14  ;;  %v12322_v14 = vld [vmem:[#allocation127_spill] sm:$0xff] }
 0x47f   :  { %v1978_v10 = vmul.f32 %v12264_v11, %v12311_v31  ;;  %v2247_v63 = vsel %vm2119_vm3, %v2055_v33, %v2183_v26  ;;  %v2064_v24 = vadd.f32 %v9835_v49, %v1979_v50  ;;  %v2059_v13 = vadd.f32 %v9842_v7, %v1974_v54  ;;  %v12320_v33 = vld [vmem:[#allocation56_spill] sm:$0xff]  ;;  %v12325_v50 = vld [vmem:[#allocation129_spill] sm:$0xff] }
 0x480   :  { %3983 = vmatpush1.bf16.msra.mxu0 %v12309_v46  ;;  %4209 = vmatpush1.bf16.msra.mxu1 %v12310_v15  ;;  %v12314_v19 = vcombine.high %v12312_v25, %v12313_v29  ;;  %v12317_v5 = vcombine.high %v12315_v58, %v12316_v39  ;;  %v10253_v3 = vpack.c.bf16 %v2247_v63, %v2243_v0  ;;  %vm2124_vm4 = vcmp.gt.f32.partialorder %v2060_v17, 0.0  ;;  %v10270_v54 = vld [vmem:[#allocation13 + $0x90] sm:$0xff]  ;;  %v12327_v0 = vld [vmem:[#allocation59_spill] sm:$0xff]  ;;  %v2324_v63 = vld [vmem:[#allocation13 + $0x98] sm:$0xff] }
 0x481   :  { %v2188_v59 = vmul.f32 0.2, %v2060_v17  ;;  %v2063_v48 = vadd.f32 %v9842_v7, %v1978_v10  ;;  %vm2128_vm5 = vcmp.gt.f32.partialorder %v2064_v24, 0.0  ;;  %v2192_v60 = vmul.f32 0.2, %v2064_v24  ;;  %v2327_v10 = vld [vmem:[#allocation13 + $0xb0] sm:$0xff] }
 0x482   :  { %3984 = vmatprep.subr.bf16.mxu0 %v12314_v19  ;;  %4210 = vmatprep.subr.bf16.mxu1 %v12317_v5  ;;  %vm2123_vm6 = vcmp.gt.f32.partialorder %v2059_v13, 0.0  ;;  %v2187_v2 = vmul.f32 0.2, %v2059_v13  ;;  %v12318_v56 = vcombine.low %v12312_v25, %v12313_v29  ;;  %v12319_v41 = vcombine.low %v12315_v58, %v12316_v39  ;;  %v2328_v25 = vld [vmem:[#allocation13 + $0xb8] sm:$0xff] }
 0x483   :  { %v2252_v37 = vsel %vm2124_vm4, %v2060_v17, %v2188_v59  ;;  %vm2127_vm7 = vcmp.gt.f32.partialorder %v2063_v48, 0.0  ;;  %v2191_v4 = vmul.f32 0.2, %v2063_v48  ;;  %v1983_v62 = vmul.f32 %v9706_v23, %v12320_v33  ;;  %v12330_v59 = vld [vmem:[#allocation132_spill] sm:$0xff] }
 0x484   :  { %3985 = vmatpush1.bf16.msra.mxu0 %v12318_v56  ;;  %4211 = vmatpush1.bf16.msra.mxu1 %v12319_v41  ;;  %v12323_v26 = vcombine.high %v12321_v16, %v12322_v14  ;;  %v12326_v12 = vcombine.high %v12324_v45, %v12325_v50  ;;  %v2256_v46 = vsel %vm2128_vm5, %v2064_v24, %v2192_v60 }
 0x485   :  { %v2251_v15 = vsel %vm2123_vm6, %v2059_v13, %v2187_v2  ;;  %v1987_v17 = vmul.f32 %v9706_v23, %v12327_v0  ;;  %v7235_v31 = vcombine.high %v2316_v9, %v2320_v6  ;;  %v10274_v29 = vpack.c.bf16 %v2256_v46, %v2252_v37 }
 0x486   :  { %4293 = vmatprep.subr.bf16.mxu0 %v12323_v26  ;;  %4519 = vmatprep.subr.bf16.mxu1 %v12326_v12  ;;  %v2255_v19 = vsel %vm2127_vm7, %v2063_v48, %v2191_v4  ;;  %v2068_v58 = vadd.f32 %v9835_v49, %v1983_v62  ;;  %v12328_v13 = vcombine.low %v12321_v16, %v12322_v14  ;;  %v12331_v48 = vld [vmem:[#allocation131_spill] sm:$0xff]  ;;  %v2331_v62 = vld [vmem:[#allocation13 + $0xd0] sm:$0xff]  ;;  %v12334_v12 = vld [vmem:[#allocation58_spill] sm:$0xff] }
 0x487   :  { %3987 = vmatmul.mubr.bf16.vlgmr.msra.gmra.mrb[48].mxu0 %v10106_v36  ;;  %4213 = vmatmul.mubr.bf16.vlgmr.msra.gmra.mrb[64].mxu1 %v10106_v36  ;;  %v10279_v39 = vpack.c.bf16 %v2255_v19, %v2251_v15  ;;  %v2072_v24 = vadd.f32 %v9835_v49, %v1987_v17  ;;  %v12329_v5 = vcombine.low %v12324_v45, %v12325_v50  ;;  %v2335_v14 = vld [vmem:[#allocation13 + $0xf0] sm:$0xff]  ;;  %v12333_v45 = vld [vmem:[#allocation55_spill] sm:$0xff] }
 0x488   :  { %4294 = vmatpush1.bf16.msra.mxu0 %v12328_v13  ;;  %v7232_v60 = vcombine.low %v12331_v48, %v12330_v59  ;;  %v7234_v2 = vcombine.low %v2316_v9, %v2320_v6  ;;  %vm2132_vm8 = vcmp.gt.f32.partialorder %v2068_v58, 0.0  ;;  %v2196_v56 = vmul.f32 0.2, %v2068_v58  ;;  %3996 = vmatprep.mubr.bf16.mxu0 %v10126_v51  ;;  %v2332_v9 = vld [vmem:[#allocation13 + $0xd8] sm:$0xff]  ;;  %v12335_v15 = vld [vmem:[#allocation63_spill] sm:$0xff]  ;;  %v12336_v17 = vld [vmem:[#allocation57_spill] sm:$0xff] }
 0x489   :  { %4520 = vmatpush1.bf16.msra.mxu1 %v12329_v5  ;;  %4222 = vmatprep.mubr.bf16.mxu1 %v10126_v51  ;;  %v7241_v41 = vcombine.high %v10270_v54, %v2327_v10  ;;  %v7243_v37 = vcombine.high %v2324_v63, %v2328_v25  ;;  %vm2136_vm9 = vcmp.gt.f32.partialorder %v2072_v24, 0.0  ;;  %v2200_v4 = vmul.f32 0.2, %v2072_v24  ;;  %v2336_v6 = vld [vmem:[#allocation13 + $0xf8] sm:$0xff]  ;;  %v2343_v5 = vld [vmem:[#allocation13 + $0x130] sm:$0xff] }
 0x48a   :  { %v12332_v33 = vcombine.high %v12331_v48, %v12330_v59  ;;  %4521 = vmatprep.subr.bf16.mxu1 %v7235_v31  ;;  %v2260_v16 = vsel %vm2132_vm8, %v2068_v58, %v2196_v56  ;;  %v1982_v50 = vmul.f32 %v12264_v11, %v12333_v45  ;;  %v1986_v46 = vmul.f32 %v12264_v11, %v12334_v12  ;;  %v2348_v12 = vld [vmem:[#allocation13 + $0x158] sm:$0xff] }
 0x48b   :  { %v2264_v26 = vsel %vm2136_vm9, %v2072_v24, %v2200_v4  ;;  %v1991_v0 = vmul.f32 %v9706_v23, %v12335_v15  ;;  %v2208_v19 = vmul.f32 0.2, %v12336_v17  ;;  %v7240_v31 = vcombine.low %v10270_v54, %v2327_v10  ;;  %v2339_v24 = vld [vmem:[#allocation13 + $0x110] sm:$0xff]  ;;  %v2340_v54 = vld [vmem:[#allocation13 + $0x118] sm:$0xff] }
 0x48c   :  { %4295 = vmatprep.subr.bf16.mxu0 %v12332_v33  ;;  %v7242_v58 = vcombine.low %v2324_v63, %v2328_v25  ;;  %v10304_v13 = vpack.c.bf16 %v2264_v26, %v2260_v16  ;;  %vm2144_vm10 = vcmp.gt.f32.partialorder %v12336_v17, 0.0  ;;  %v2067_v59 = vadd.f32 %v9842_v7, %v1982_v50  ;;  %v2344_v10 = vld [vmem:[#allocation13 + $0x138] sm:$0xff]  ;;  %v12337_v26 = vld [vmem:[#allocation61_spill] sm:$0xff] }
 0x48d   :  { %4296 = vmatpush1.bf16.msra.mxu0 %v7232_v60  ;;  %4522 = vmatpush1.bf16.msra.mxu1 %v7234_v2  ;;  %v2071_v48 = vadd.f32 %v9842_v7, %v1986_v46  ;;  %v2076_v23 = vadd.f32 %v9835_v49, %v1991_v0  ;;  %v7248_v56 = vcombine.low %v2331_v62, %v2335_v14  ;;  %v2351_v50 = vld [vmem:[#allocation13 + $0x170] sm:$0xff]  ;;  %v2352_v46 = vld [vmem:[#allocation13 + $0x178] sm:$0xff] }
 0x48e   :  { %4297 = vmatprep.subr.bf16.mxu0 %v7241_v41  ;;  %4523 = vmatprep.subr.bf16.mxu1 %v7243_v37  ;;  %v7249_v60 = vcombine.high %v2331_v62, %v2335_v14  ;;  %v7250_v2 = vcombine.low %v2332_v9, %v2336_v6  ;;  %v7251_v4 = vcombine.high %v2332_v9, %v2336_v6  ;;  %vm2131_vm11 = vcmp.gt.f32.partialorder %v2067_v59, 0.0  ;;  %v2347_v14 = vld [vmem:[#allocation13 + $0x150] sm:$0xff] }
 0x48f   :  { %3997 = vmatmul.mubr.bf16.gmra.mrb[52].mxu0 %v10131_v18  ;;  %4223 = vmatmul.mubr.bf16.gmra.mrb[68].mxu1 %v10131_v18  ;;  %vm2135_vm12 = vcmp.gt.f32.partialorder %v2071_v48, 0.0  ;;  %v2195_v63 = vmul.f32 0.2, %v2067_v59  ;;  %v2199_v25 = vmul.f32 0.2, %v2071_v48  ;;  %v7257_v41 = vcombine.high %v2339_v24, %v2343_v5  ;;  %v12338_v0 = vld [vmem:[#allocation65_spill] sm:$0xff] }
 0x490   :  { %vm2140_vm13 = vcmp.gt.f32.partialorder %v2076_v23, 0.0  ;;  %v2204_v37 = vmul.f32 0.2, %v2076_v23  ;;  %v2272_v49 = vsel %vm2144_vm10, %v12336_v17, %v2208_v19  ;;  %4006 = vmatprep.mubr.bf16.mxu0 %v10164_v32  ;;  %4232 = vmatprep.mubr.bf16.mxu1 %v10164_v32  ;;  %v7259_v33 = vcombine.high %v2340_v54, %v2344_v10 }
 0x491   :  { %4298 = vmatpush1.bf16.msra.mxu0 %v7240_v31  ;;  %4524 = vmatpush1.bf16.msra.mxu1 %v7242_v58  ;;  %v2259_v62 = vsel %vm2131_vm11, %v2067_v59, %v2195_v63  ;;  %v2263_v16 = vsel %vm2135_vm12, %v2071_v48, %v2199_v25  ;;  %v1990_v45 = vmul.f32 %v12264_v11, %v12337_v26  ;;  %v2355_v59 = vld [vmem:[#allocation13 + $0x190] sm:$0xff]  ;;  %v2356_v63 = vld [vmem:[#allocation13 + $0x198] sm:$0xff] }
 0x492   :  { %4299 = vmatprep.subr.bf16.mxu0 %v7249_v60  ;;  %4525 = vmatprep.subr.bf16.mxu1 %v7251_v4  ;;  %v10317_v9 = vpack.c.bf16 %v2263_v16, %v2259_v62  ;;  %v2268_v6 = vsel %vm2140_vm13, %v2076_v23, %v2204_v37  ;;  %v1994_v17 = vmul.f32 %v12264_v11, %v12338_v0  ;;  %v2359_v4 = vld [vmem:[#allocation13 + $0x1b0] sm:$0xff]  ;;  %v2360_v25 = vld [vmem:[#allocation13 + $0x1b8] sm:$0xff] }
 0x493   :  { %v10321_v15 = vpack.c.bf16 %v2272_v49, %v2268_v6  ;;  %v7256_v19 = vcombine.low %v2339_v24, %v2343_v5  ;;  %v7258_v31 = vcombine.low %v2340_v54, %v2344_v10  ;;  %v2075_v58 = vadd.f32 %v9842_v7, %v1990_v45  ;;  %v2363_v10 = vld [vmem:[#allocation13 + $0x1d0] sm:$0xff]  ;;  %v2368_v62 = vld [vmem:[#allocation13 + $0x1f8] sm:$0xff] }
 0x494   :  { %v2079_v48 = vadd.f32 %v9842_v7, %v1994_v17  ;;  %v7265_v23 = vcombine.high %v2347_v14, %v2351_v50  ;;  %v7267_v60 = vcombine.high %v2348_v12, %v2352_v46  ;;  %v7264_v24 = vcombine.low %v2347_v14, %v2351_v50  ;;  %v2367_v49 = vld [vmem:[#allocation13 + $0x1f0] sm:$0xff] }
 0x495   :  { %4300 = vmatpush1.bf16.msra.mxu0 %v7248_v56  ;;  %4526 = vmatpush1.bf16.msra.mxu1 %v7250_v2  ;;  %vm2139_vm14 = vcmp.gt.f32.partialorder %v2075_v58, 0.0  ;;  %v2203_v37 = vmul.f32 0.2, %v2075_v58  ;;  %v7266_v5 = vcombine.low %v2348_v12, %v2352_v46  ;;  %v7273_v7 = vcombine.high %v2355_v59, %v2359_v4  ;;  %v2371_v6 = vld [vmem:[#allocation13 + $0x210] sm:$0xff]  ;;  %v2372_v12 = vld [vmem:[#allocation13 + $0x218] sm:$0xff] }
 0x496   :  { %4301 = vmatprep.subr.bf16.mxu0 %v7257_v41  ;;  %4527 = vmatprep.subr.bf16.mxu1 %v7259_v33  ;;  %vm2143_vm15 = vcmp.gt.f32.partialorder %v2079_v48, 0.0  ;;  %v2207_v11 = vmul.f32 0.2, %v2079_v48  ;;  %v7275_v2 = vcombine.high %v2356_v63, %v2360_v25  ;;  %v2364_v33 = vld [vmem:[#allocation13 + $0x1d8] sm:$0xff]  ;;  %v7272_v16 = vcombine.low %v2355_v59, %v2359_v4  ;;  %v2375_v50 = vld [vmem:[#allocation13 + $0x230] sm:$0xff] }
 0x497   :  { %4007 = vmatmul.mubr.bf16.gmra.mrb[56].mxu0 %v10174_v35  ;;  %4233 = vmatmul.mubr.bf16.gmra.mrb[72].mxu1 %v10174_v35  ;;  %v2267_v56 = vsel %vm2139_vm14, %v2075_v58, %v2203_v37  ;;  %v7274_v14 = vcombine.low %v2356_v63, %v2360_v25  ;;  %v7281_v26 = vcombine.high %v2363_v10, %v2367_v49  ;;  %v2376_v46 = vld [vmem:[#allocation13 + $0x238] sm:$0xff]  ;;  %v2379_v58 = vld [vmem:[#allocation13 + $0x250] sm:$0xff] }
 0x498   :  { %4016 = vmatprep.mubr.bf16.mxu0 %v10191_v1  ;;  %4242 = vmatprep.mubr.bf16.mxu1 %v10191_v1  ;;  %v2271_v54 = vsel %vm2143_vm15, %v2079_v48, %v2207_v11  ;;  %v7283_v45 = vcombine.high %v2364_v33, %v2368_v62  ;;  %v7280_v0 = vcombine.low %v2363_v10, %v2367_v49  ;;  %v2383_v59 = vld [vmem:[#allocation13 + $0x270] sm:$0xff]  ;;  %v2380_v48 = vld [vmem:[#allocation13 + $0x258] sm:$0xff] }
 0x499   :  { %4302 = vmatpush1.bf16.msra.mxu0 %v7256_v19  ;;  %4528 = vmatpush1.bf16.msra.mxu1 %v7258_v31  ;;  %v10331_v41 = vpack.c.bf16 %v2271_v54, %v2267_v56  ;;  %v7282_v17 = vcombine.low %v2364_v33, %v2368_v62  ;;  %v7289_v19 = vcombine.high %v2371_v6, %v2375_v50  ;;  %v2387_v63 = vld [vmem:[#allocation13 + $0x290] sm:$0xff]  ;;  %v2396_v33 = vld [vmem:[#allocation13 + $0x2d8] sm:$0xff] }
 0x49a   :  { %4303 = vmatprep.subr.bf16.mxu0 %v7265_v23  ;;  %4529 = vmatprep.subr.bf16.mxu1 %v7267_v60  ;;  %v7291_v31 = vcombine.high %v2372_v12, %v2376_v46  ;;  %v2384_v23 = vld [vmem:[#allocation13 + $0x278] sm:$0xff]  ;;  %v7288_v60 = vcombine.low %v2371_v6, %v2375_v50  ;;  %v7290_v4 = vcombine.low %v2372_v12, %v2376_v46  ;;  %v2391_v11 = vld [vmem:[#allocation13 + $0x2b0] sm:$0xff] }
 0x49b   :  { %v7297_v25 = vcombine.high %v2379_v58, %v2383_v59  ;;  %v7299_v37 = vcombine.high %v2380_v48, %v2384_v23  ;;  %v7296_v56 = vcombine.low %v2379_v58, %v2383_v59  ;;  %v2395_v10 = vld [vmem:[#allocation13 + $0x2d0] sm:$0xff]  ;;  %v2400_v62 = vld [vmem:[#allocation13 + $0x2f8] sm:$0xff] }
 0x49c   :  { %v2399_v49 = vld [vmem:[#allocation13 + $0x2f0] sm:$0xff]  ;;  %v2404_v12 = vld [vmem:[#allocation13 + $0x318] sm:$0xff] }
 0x49d   :  { %4304 = vmatpush1.bf16.msra.mxu0 %v7264_v24  ;;  %4530 = vmatpush1.bf16.msra.mxu1 %v7266_v5  ;;  %v2388_v24 = vld [vmem:[#allocation13 + $0x298] sm:$0xff]  ;;  %v2403_v6 = vld [vmem:[#allocation13 + $0x310] sm:$0xff] }
 0x49e   :  { %4305 = vmatprep.subr.bf16.mxu0 %v7273_v7  ;;  %4531 = vmatprep.subr.bf16.mxu1 %v7275_v2  ;;  %v2392_v5 = vld [vmem:[#allocation13 + $0x2b8] sm:$0xff]  ;;  %v7298_v7 = vcombine.low %v2380_v48, %v2384_v23  ;;  %v7305_v2 = vcombine.high %v2387_v63, %v2391_v11  ;;  %v2407_v50 = vld [vmem:[#allocation13 + $0x330] sm:$0xff] }
 0x49f   :  { %4017 = vmatmul.mubr.bf16.gmra.mrb[60].mxu0 %v10221_v8  ;;  %4243 = vmatmul.mubr.bf16.gmra.mrb[76].mxu1 %v10221_v8  ;;  %v7307_v54 = vcombine.high %v2388_v24, %v2392_v5  ;;  %v2408_v46 = vld [vmem:[#allocation13 + $0x338] sm:$0xff]  ;;  %v2411_v58 = vld [vmem:[#allocation13 + $0x350] sm:$0xff] }
 0x4a0   :  { %4026 = vmatprep.mubr.bf16.mxu0 %v10224_v40  ;;  %4252 = vmatprep.mubr.bf16.mxu1 %v10224_v40  ;;  %v2415_v59 = vld [vmem:[#allocation13 + $0x370] sm:$0xff]  ;;  %v2412_v48 = vld [vmem:[#allocation13 + $0x358] sm:$0xff] }
 0x4a1   :  { %4306 = vmatpush1.bf16.msra.mxu0 %v7272_v16  ;;  %4532 = vmatpush1.bf16.msra.mxu1 %v7274_v14  ;;  %v7304_v16 = vcombine.low %v2387_v63, %v2391_v11  ;;  %v7306_v14 = vcombine.low %v2388_v24, %v2392_v5  ;;  %v2416_v23 = vld [vmem:[#allocation13 + $0x378] sm:$0xff]  ;;  %v2419_v63 = vld [vmem:[#allocation13 + $0x390] sm:$0xff] }
 0x4a2   :  { %4307 = vmatprep.subr.bf16.mxu0 %v7281_v26  ;;  %4533 = vmatprep.subr.bf16.mxu1 %v7283_v45  ;;  %v7313_v26 = vcombine.high %v2395_v10, %v2399_v49  ;;  %v7315_v45 = vcombine.high %v2396_v33, %v2400_v62  ;;  %v2423_v11 = vld [vmem:[#allocation13 + $0x3b0] sm:$0xff]  ;;  %v2420_v24 = vld [vmem:[#allocation13 + $0x398] sm:$0xff] }
 0x4a3   :  { %v2424_v5 = vld [vmem:[#allocation13 + $0x3b8] sm:$0xff] }
 0x4a5   :  { %4308 = vmatpush1.bf16.msra.mxu0 %v7280_v0  ;;  %4534 = vmatpush1.bf16.msra.mxu1 %v7282_v17  ;;  %v7312_v0 = vcombine.low %v2395_v10, %v2399_v49  ;;  %v7314_v17 = vcombine.low %v2396_v33, %v2400_v62  ;;  %v2427_v10 = vld [vmem:[#allocation13 + $0x3d0] sm:$0xff]  ;;  %v2428_v33 = vld [vmem:[#allocation13 + $0x3d8] sm:$0xff] }
 0x4a6   :  { %4309 = vmatprep.subr.bf16.mxu0 %v7289_v19  ;;  %4535 = vmatprep.subr.bf16.mxu1 %v7291_v31  ;;  %v7321_v19 = vcombine.high %v2403_v6, %v2407_v50  ;;  %v7323_v31 = vcombine.high %v2404_v12, %v2408_v46  ;;  %v2431_v49 = vld [vmem:[#allocation13 + $0x3f0] sm:$0xff]  ;;  %v2432_v62 = vld [vmem:[#allocation13 + $0x3f8] sm:$0xff] }
 0x4a7   :  { %4027 = vmatmul.mubr.bf16.gmra.mrb[64].mxu0 %v10253_v3  ;;  %4253 = vmatmul.mubr.bf16.gmra.mrb[80].mxu1 %v10253_v3 }
 0x4a8   :  { %4036 = vmatprep.mubr.bf16.mxu0 %v10274_v29  ;;  %4262 = vmatprep.mubr.bf16.mxu1 %v10274_v29 }
 0x4a9   :  { %4310 = vmatpush1.bf16.msra.mxu0 %v7288_v60  ;;  %4536 = vmatpush1.bf16.msra.mxu1 %v7290_v4  ;;  %v7320_v60 = vcombine.low %v2403_v6, %v2407_v50  ;;  %v7322_v4 = vcombine.low %v2404_v12, %v2408_v46  ;;  %v2435_v6 = vld [vmem:[#allocation13 + $0x410] sm:$0xff]  ;;  %v2436_v12 = vld [vmem:[#allocation13 + $0x418] sm:$0xff] }
 0x4aa   :  { %4311 = vmatprep.subr.bf16.mxu0 %v7297_v25  ;;  %4537 = vmatprep.subr.bf16.mxu1 %v7299_v37  ;;  %v7329_v25 = vcombine.high %v2411_v58, %v2415_v59  ;;  %v7331_v37 = vcombine.high %v2412_v48, %v2416_v23  ;;  %v2439_v50 = vld [vmem:[#allocation13 + $0x430] sm:$0xff]  ;;  %v2440_v46 = vld [vmem:[#allocation13 + $0x438] sm:$0xff] }
 0x4ad   :  { %4312 = vmatpush1.bf16.msra.mxu0 %v7296_v56  ;;  %4538 = vmatpush1.bf16.msra.mxu1 %v7298_v7  ;;  %v7328_v56 = vcombine.low %v2411_v58, %v2415_v59  ;;  %v7330_v7 = vcombine.low %v2412_v48, %v2416_v23  ;;  %v2443_v58 = vld [vmem:[#allocation13 + $0x450] sm:$0xff]  ;;  %v2444_v48 = vld [vmem:[#allocation13 + $0x458] sm:$0xff] }
 0x4ae   :  { %4313 = vmatprep.subr.bf16.mxu0 %v7305_v2  ;;  %4539 = vmatprep.subr.bf16.mxu1 %v7307_v54  ;;  %v7337_v2 = vcombine.high %v2419_v63, %v2423_v11  ;;  %v7339_v54 = vcombine.high %v2420_v24, %v2424_v5  ;;  %v2447_v59 = vld [vmem:[#allocation13 + $0x470] sm:$0xff]  ;;  %v2448_v23 = vld [vmem:[#allocation13 + $0x478] sm:$0xff] }
 0x4af   :  { %4037 = vmatmul.mubr.bf16.gmra.mrb[68].mxu0 %v10279_v39  ;;  %4263 = vmatmul.mubr.bf16.gmra.mrb[84].mxu1 %v10279_v39 }
 0x4b0   :  { %4046 = vmatprep.mubr.bf16.mxu0 %v10304_v13  ;;  %4272 = vmatprep.mubr.bf16.mxu1 %v10304_v13 }
 0x4b1   :  { %4314 = vmatpush1.bf16.msra.mxu0 %v7304_v16  ;;  %4540 = vmatpush1.bf16.msra.mxu1 %v7306_v14  ;;  %v7336_v16 = vcombine.low %v2419_v63, %v2423_v11  ;;  %v7338_v14 = vcombine.low %v2420_v24, %v2424_v5  ;;  %v2451_v63 = vld [vmem:[#allocation13 + $0x490] sm:$0xff]  ;;  %v2452_v24 = vld [vmem:[#allocation13 + $0x498] sm:$0xff]  ;;  %v7360_v5 = vcombine.low %v2443_v58, %v2447_v59 }
 0x4b2   :  { %4315 = vmatprep.subr.bf16.mxu0 %v7313_v26  ;;  %4541 = vmatprep.subr.bf16.mxu1 %v7315_v45  ;;  %v7345_v26 = vcombine.high %v2427_v10, %v2431_v49  ;;  %v7347_v45 = vcombine.high %v2428_v33, %v2432_v62  ;;  %v2455_v11 = vld [vmem:[#allocation13 + $0x4b0] sm:$0xff] }
 0x4b5   :  { %4316 = vmatpush1.bf16.msra.mxu0 %v7312_v0  ;;  %4542 = vmatpush1.bf16.msra.mxu1 %v7314_v17  ;;  %v7344_v0 = vcombine.low %v2427_v10, %v2431_v49  ;;  %v7346_v17 = vcombine.low %v2428_v33, %v2432_v62  ;;  %v2463_v10 = vld [vmem:[#allocation13 + $0x4f0] sm:$0xff]  ;;  %v2460_v49 = vld [vmem:[#allocation13 + $0x4d8] sm:$0xff]  ;;  %v7368_v62 = vcombine.low %v2451_v63, %v2455_v11 }
 0x4b6   :  { %4317 = vmatprep.subr.bf16.mxu0 %v7321_v19  ;;  %4543 = vmatprep.subr.bf16.mxu1 %v7323_v31  ;;  %v7353_v19 = vcombine.high %v2435_v6, %v2439_v50  ;;  %v7355_v31 = vcombine.high %v2436_v12, %v2440_v46  ;;  %v2464_v33 = vld [vmem:[#allocation13 + $0x4f8] sm:$0xff] }
 0x4b7   :  { %4047 = vmatmul.mubr.bf16.gmra.mrb[72].mxu0 %v10317_v9  ;;  %4273 = vmatmul.mubr.bf16.gmra.mrb[88].mxu1 %v10317_v9 }
 0x4b8   :  { %4056 = vmatprep.mubr.bf16.mxu0 %v10321_v15  ;;  %4282 = vmatprep.mubr.bf16.mxu1 %v10321_v15 }
 0x4b9   :  { %4318 = vmatpush1.bf16.msra.mxu0 %v7320_v60  ;;  %4544 = vmatpush1.bf16.msra.mxu1 %v7322_v4  ;;  %v7352_v60 = vcombine.low %v2435_v6, %v2439_v50  ;;  %v7354_v4 = vcombine.low %v2436_v12, %v2440_v46  ;;  %v7379_v6 = vcombine.high %v2460_v49, %v2464_v33 }
 0x4ba   :  { %4319 = vmatprep.subr.bf16.mxu0 %v7329_v25  ;;  %4545 = vmatprep.subr.bf16.mxu1 %v7331_v37  ;;  %v7361_v25 = vcombine.high %v2443_v58, %v2447_v59  ;;  %v7363_v37 = vcombine.high %v2444_v48, %v2448_v23  ;;  %v7378_v12 = vcombine.low %v2460_v49, %v2464_v33  ;;  %v2480_v58 = vld [vmem:[#allocation13 + $0x578] sm:$0xff]  ;;  %v2503_v33 = vld [vmem:[#allocation13 + $0x630] sm:$0xff] }
 0x4bd   :  { %4320 = vmatpush1.bf16.msra.mxu0 %v7328_v56  ;;  %4546 = vmatpush1.bf16.msra.mxu1 %v7330_v7  ;;  %v7362_v56 = vcombine.low %v2444_v48, %v2448_v23  ;;  %v7369_v7 = vcombine.high %v2451_v63, %v2455_v11  ;;  %v2483_v48 = vld [vmem:[#allocation13 + $0x590] sm:$0xff]  ;;  %v2484_v63 = vld [vmem:[#allocation13 + $0x598] sm:$0xff] }
 0x4be   :  { %4321 = vmatprep.subr.bf16.mxu0 %v7337_v2  ;;  %4547 = vmatprep.subr.bf16.mxu1 %v7339_v54  ;;  %v2459_v54 = vld [vmem:[#allocation13 + $0x4d0] sm:$0xff] }
 0x4bf   :  { %4057 = vmatmul.mubr.bf16.gmra.mrb[76].mxu0 %v10331_v41  ;;  %4283 = vmatmul.mubr.bf16.gmra.mrb[92].mxu1 %v10331_v41  ;;  %v7376_v50 = vcombine.low %v2459_v54, %v2463_v10 }
 0x4c0   :  { %4325 = vmatprep.mubr.bf16.mxu0 %v9874_v27  ;;  %4551 = vmatprep.mubr.bf16.mxu1 %v9874_v27  ;;  %v2456_v27 = vld [vmem:[#allocation13 + $0x4b8] sm:$0xff] }
 0x4c1   :  { %4322 = vmatpush1.bf16.msra.mxu0 %v7336_v16  ;;  %4548 = vmatpush1.bf16.msra.mxu1 %v7338_v14  ;;  %v7371_v2 = vcombine.high %v2452_v24, %v2456_v27  ;;  %v2467_v16 = vld [vmem:[#allocation13 + $0x510] sm:$0xff]  ;;  %v7377_v14 = vcombine.high %v2459_v54, %v2463_v10 }
 0x4c2   :  { %4323 = vmatprep.subr.bf16.mxu0 %v7345_v26  ;;  %4549 = vmatprep.subr.bf16.mxu1 %v7347_v45  ;;  %v2471_v26 = vld [vmem:[#allocation13 + $0x530] sm:$0xff]  ;;  %v2468_v45 = vld [vmem:[#allocation13 + $0x518] sm:$0xff] }
 0x4c3   :  { %v7385_v46 = vcombine.high %v2467_v16, %v2471_v26  ;;  %v7384_v59 = vcombine.low %v2467_v16, %v2471_v26  ;;  %v2499_v54 = vld [vmem:[#allocation13 + $0x610] sm:$0xff] }
 0x4c4   :  { %v2507_v26 = vld [vmem:[#allocation13 + $0x650] sm:$0xff] }
 0x4c5   :  { %4324 = vmatpush1.bf16.msra.mxu0 %v7344_v0  ;;  %4550 = vmatpush1.bf16.msra.mxu1 %v7346_v17  ;;  %v2475_v17 = vld [vmem:[#allocation13 + $0x550] sm:$0xff] }
 0x4c6   :  { %4406 = vmatprep.subr.bf16.mxu0 %v7353_v19  ;;  %4632 = vmatprep.subr.bf16.mxu1 %v7355_v31  ;;  %v2479_v19 = vld [vmem:[#allocation13 + $0x570] sm:$0xff]  ;;  %v2476_v31 = vld [vmem:[#allocation13 + $0x558] sm:$0xff] }
 0x4c7   :  { %v7393_v23 = vcombine.high %v2475_v17, %v2479_v19 }
 0x4c8   :  { %4326 = vmatmul.mubr.bf16.vlgmr.msra.gmra.mrb[80].mxu0 %v9878_v47  ;;  %4552 = vmatmul.mubr.bf16.vlgmr.msra.gmra.mrb[96].mxu1 %v9878_v47  ;;  %v7370_v47 = vcombine.low %v2452_v24, %v2456_v27  ;;  %v2491_v27 = vld [vmem:[#allocation13 + $0x5d0] sm:$0xff] }
 0x4c9   :  { %4407 = vmatpush1.bf16.msra.mxu0 %v7352_v60  ;;  %4633 = vmatpush1.bf16.msra.mxu1 %v7354_v4  ;;  %v7395_v60 = vcombine.high %v2476_v31, %v2480_v58  ;;  %v2487_v4 = vld [vmem:[#allocation13 + $0x5b0] sm:$0xff] }
 0x4ca   :  { %4335 = vmatprep.mubr.bf16.mxu0 %v9882_v22  ;;  %4561 = vmatprep.mubr.bf16.mxu1 %v9882_v22  ;;  %v2472_v22 = vld [vmem:[#allocation13 + $0x538] sm:$0xff]  ;;  %v7401_v11 = vcombine.high %v2483_v48, %v2487_v4 }
 0x4cb   :  { %4408 = vmatprep.subr.bf16.mxu0 %v7361_v25  ;;  %4634 = vmatprep.subr.bf16.mxu1 %v7363_v37  ;;  %v7387_v0 = vcombine.high %v2468_v45, %v2472_v22  ;;  %v7392_v25 = vcombine.low %v2475_v17, %v2479_v19  ;;  %v7394_v37 = vcombine.low %v2476_v31, %v2480_v58  ;;  %v2519_v19 = vld [vmem:[#allocation13 + $0x6b0] sm:$0xff]  ;;  %v2516_v31 = vld [vmem:[#allocation13 + $0x698] sm:$0xff] }
 0x4cd   :  { %4409 = vmatpush1.bf16.msra.mxu0 %v7360_v5  ;;  %4635 = vmatpush1.bf16.msra.mxu1 %v7362_v56  ;;  %v2495_v5 = vld [vmem:[#allocation13 + $0x5f0] sm:$0xff]  ;;  %v2492_v56 = vld [vmem:[#allocation13 + $0x5d8] sm:$0xff] }
 0x4ce   :  { %4410 = vmatprep.subr.bf16.mxu0 %v7369_v7  ;;  %4636 = vmatprep.subr.bf16.mxu1 %v7371_v2  ;;  %v2496_v7 = vld [vmem:[#allocation13 + $0x5f8] sm:$0xff]  ;;  %v7400_v2 = vcombine.low %v2483_v48, %v2487_v4  ;;  %v7409_v10 = vcombine.high %v2491_v27, %v2495_v5 }
 0x4cf   :  { %v7411_v49 = vcombine.high %v2492_v56, %v2496_v7  ;;  %v7410_v16 = vcombine.low %v2492_v56, %v2496_v7  ;;  %v2524_v4 = vld [vmem:[#allocation13 + $0x6d8] sm:$0xff] }
 0x4d0   :  { %4336 = vmatmul.mubr.bf16.gmra.mrb[84].mxu0 %v9902_v61  ;;  %4562 = vmatmul.mubr.bf16.gmra.mrb[100].mxu1 %v9902_v61  ;;  %v7386_v61 = vcombine.low %v2468_v45, %v2472_v22  ;;  %v2511_v45 = vld [vmem:[#allocation13 + $0x670] sm:$0xff]  ;;  %v2508_v22 = vld [vmem:[#allocation13 + $0x658] sm:$0xff] }
 0x4d1   :  { %4411 = vmatpush1.bf16.msra.mxu0 %v7368_v62  ;;  %4637 = vmatpush1.bf16.msra.mxu1 %v7370_v47  ;;  %v2500_v62 = vld [vmem:[#allocation13 + $0x618] sm:$0xff]  ;;  %v7408_v47 = vcombine.low %v2491_v27, %v2495_v5  ;;  %v7424_v58 = vcombine.low %v2507_v26, %v2511_v45 }
 0x4d2   :  { %4345 = vmatprep.mubr.bf16.mxu0 %v9928_v21  ;;  %4571 = vmatprep.mubr.bf16.mxu1 %v9928_v21  ;;  %v2488_v21 = vld [vmem:[#allocation13 + $0x5b8] sm:$0xff] }
 0x4d3   :  { %4412 = vmatprep.subr.bf16.mxu0 %v7377_v14  ;;  %4638 = vmatprep.subr.bf16.mxu1 %v7379_v6  ;;  %v7403_v24 = vcombine.high %v2484_v63, %v2488_v21  ;;  %v7417_v14 = vcombine.high %v2499_v54, %v2503_v33  ;;  %v2532_v27 = vld [vmem:[#allocation13 + $0x718] sm:$0xff] }
 0x4d5   :  { %4413 = vmatpush1.bf16.msra.mxu0 %v7376_v50  ;;  %4639 = vmatpush1.bf16.msra.mxu1 %v7378_v12  ;;  %v2512_v50 = vld [vmem:[#allocation13 + $0x678] sm:$0xff]  ;;  %v7416_v12 = vcombine.low %v2499_v54, %v2503_v33  ;;  %v2543_v54 = vld [vmem:[#allocation13 + $0x770] sm:$0xff] }
 0x4d6   :  { %4414 = vmatprep.subr.bf16.mxu0 %v7385_v46  ;;  %4640 = vmatprep.subr.bf16.mxu1 %v7387_v0  ;;  %v2515_v46 = vld [vmem:[#allocation13 + $0x690] sm:$0xff]  ;;  %v7425_v0 = vcombine.high %v2507_v26, %v2511_v45  ;;  %v7427_v17 = vcombine.high %v2508_v22, %v2512_v50 }
 0x4d8   :  { %4346 = vmatmul.mubr.bf16.gmra.mrb[88].mxu0 %v9930_v42  ;;  %4572 = vmatmul.mubr.bf16.gmra.mrb[104].mxu1 %v9930_v42  ;;  %v7402_v42 = vcombine.low %v2484_v63, %v2488_v21  ;;  %v2528_v63 = vld [vmem:[#allocation13 + $0x6f8] sm:$0xff]  ;;  %v7432_v21 = vcombine.low %v2515_v46, %v2519_v19 }
 0x4d9   :  { %4415 = vmatpush1.bf16.msra.mxu0 %v7384_v59  ;;  %4641 = vmatpush1.bf16.msra.mxu1 %v7386_v61  ;;  %v7426_v59 = vcombine.low %v2508_v22, %v2512_v50  ;;  %v7433_v61 = vcombine.high %v2515_v46, %v2519_v19  ;;  %v7442_v56 = vcombine.low %v2524_v4, %v2528_v63  ;;  %v2555_v50 = vld [vmem:[#allocation13 + $0x7d0] sm:$0xff]  ;;  %v2560_v46 = vld [vmem:[#allocation13 + $0x7f8] sm:$0xff] }
 0x4da   :  { %4355 = vmatprep.mubr.bf16.mxu0 %v9948_v52  ;;  %4581 = vmatprep.mubr.bf16.mxu1 %v9948_v52  ;;  %v2504_v52 = vld [vmem:[#allocation13 + $0x638] sm:$0xff] }
 0x4db   :  { %4416 = vmatprep.subr.bf16.mxu0 %v7393_v23  ;;  %4642 = vmatprep.subr.bf16.mxu1 %v7395_v60  ;;  %v7419_v6 = vcombine.high %v2500_v62, %v2504_v52  ;;  %v2523_v23 = vld [vmem:[#allocation13 + $0x6d0] sm:$0xff] }
 0x4dc   :  { %v2527_v60 = vld [vmem:[#allocation13 + $0x6f0] sm:$0xff] }
 0x4dd   :  { %4417 = vmatpush1.bf16.msra.mxu0 %v7392_v25  ;;  %4643 = vmatpush1.bf16.msra.mxu1 %v7394_v37  ;;  %v2531_v25 = vld [vmem:[#allocation13 + $0x710] sm:$0xff]  ;;  %v7441_v37 = vcombine.high %v2523_v23, %v2527_v60  ;;  %v7440_v5 = vcombine.low %v2523_v23, %v2527_v60 }
 0x4de   :  { %4418 = vmatprep.subr.bf16.mxu0 %v7401_v11  ;;  %4644 = vmatprep.subr.bf16.mxu1 %v7403_v24  ;;  %v7443_v11 = vcombine.high %v2524_v4, %v2528_v63  ;;  %v2535_v24 = vld [vmem:[#allocation13 + $0x730] sm:$0xff] }
 0x4df   :  { %v7449_v7 = vcombine.high %v2531_v25, %v2535_v24  ;;  %v7448_v33 = vcombine.low %v2531_v25, %v2535_v24 }
 0x4e0   :  { %4356 = vmatmul.mubr.bf16.gmra.mrb[92].mxu0 %v9958_v53  ;;  %4582 = vmatmul.mubr.bf16.gmra.mrb[108].mxu1 %v9958_v53  ;;  %v7418_v53 = vcombine.low %v2500_v62, %v2504_v52  ;;  %v2547_v62 = vld [vmem:[#allocation13 + $0x790] sm:$0xff] }
 0x4e1   :  { %4419 = vmatpush1.bf16.msra.mxu0 %v7400_v2  ;;  %4645 = vmatpush1.bf16.msra.mxu1 %v7402_v42  ;;  %v2539_v42 = vld [vmem:[#allocation13 + $0x750] sm:$0xff] }
 0x4e2   :  { %4365 = vmatprep.mubr.bf16.mxu0 %v9978_v55  ;;  %4591 = vmatprep.mubr.bf16.mxu1 %v9978_v55  ;;  %v2520_v55 = vld [vmem:[#allocation13 + $0x6b8] sm:$0xff]  ;;  %v7457_v52 = vcombine.high %v2539_v42, %v2543_v54 }
 0x4e3   :  { %4420 = vmatprep.subr.bf16.mxu0 %v7409_v10  ;;  %4646 = vmatprep.subr.bf16.mxu1 %v7411_v49  ;;  %v7435_v48 = vcombine.high %v2516_v31, %v2520_v55  ;;  %v2540_v10 = vld [vmem:[#allocation13 + $0x758] sm:$0xff] }
 0x4e4   :  { %v2544_v49 = vld [vmem:[#allocation13 + $0x778] sm:$0xff] }
 0x4e5   :  { %4421 = vmatpush1.bf16.msra.mxu0 %v7408_v47  ;;  %4647 = vmatpush1.bf16.msra.mxu1 %v7410_v16  ;;  %v7459_v47 = vcombine.high %v2540_v10, %v2544_v49  ;;  %v2551_v16 = vld [vmem:[#allocation13 + $0x7b0] sm:$0xff]  ;;  %v7458_v26 = vcombine.low %v2540_v10, %v2544_v49 }
 0x4e6   :  { %4422 = vmatprep.subr.bf16.mxu0 %v7417_v14  ;;  %4648 = vmatprep.subr.bf16.mxu1 %v7419_v6  ;;  %v2548_v14 = vld [vmem:[#allocation13 + $0x798] sm:$0xff]  ;;  %v7456_v6 = vcombine.low %v2539_v42, %v2543_v54  ;;  %v7465_v45 = vcombine.high %v2547_v62, %v2551_v16 }
 0x4e8   :  { %4366 = vmatmul.mubr.bf16.gmra.mrb[96].mxu0 %v9992_v30  ;;  %4592 = vmatmul.mubr.bf16.gmra.mrb[112].mxu1 %v9992_v30  ;;  %v7434_v30 = vcombine.low %v2516_v31, %v2520_v55 }
 0x4e9   :  { %4423 = vmatpush1.bf16.msra.mxu0 %v7416_v12  ;;  %4649 = vmatpush1.bf16.msra.mxu1 %v7418_v53  ;;  %v2559_v12 = vld [vmem:[#allocation13 + $0x7f0] sm:$0xff]  ;;  %v2556_v53 = vld [vmem:[#allocation13 + $0x7d8] sm:$0xff] }
 0x4ea   :  { %4375 = vmatprep.mubr.bf16.mxu0 %v9996_v43  ;;  %4601 = vmatprep.mubr.bf16.mxu1 %v9996_v43  ;;  %v2536_v43 = vld [vmem:[#allocation13 + $0x738] sm:$0xff]  ;;  %v7475_v19 = vcombine.high %v2556_v53, %v2560_v46  ;;  %v7474_v31 = vcombine.low %v2556_v53, %v2560_v46 }
 0x4eb   :  { %4424 = vmatprep.subr.bf16.mxu0 %v7425_v0  ;;  %4650 = vmatprep.subr.bf16.mxu1 %v7427_v17  ;;  %v7451_v2 = vcombine.high %v2532_v27, %v2536_v43  ;;  %v7464_v0 = vcombine.low %v2547_v62, %v2551_v16  ;;  %v7473_v17 = vcombine.high %v2555_v50, %v2559_v12 }
 0x4ed   :  { %4425 = vmatpush1.bf16.msra.mxu0 %v7424_v58  ;;  %4651 = vmatpush1.bf16.msra.mxu1 %v7426_v59 }
 0x4ee   :  { %4426 = vmatprep.subr.bf16.mxu0 %v7433_v61  ;;  %4652 = vmatprep.subr.bf16.mxu1 %v7435_v48 }
 0x4f0   :  { %4376 = vmatmul.mubr.bf16.gmra.mrb[100].mxu0 %v10028_v57  ;;  %4602 = vmatmul.mubr.bf16.gmra.mrb[116].mxu1 %v10028_v57  ;;  %v7450_v57 = vcombine.low %v2532_v27, %v2536_v43 }
 0x4f1   :  { %4427 = vmatpush1.bf16.msra.mxu0 %v7432_v21  ;;  %4653 = vmatpush1.bf16.msra.mxu1 %v7434_v30 }
 0x4f2   :  { %4385 = vmatprep.mubr.bf16.mxu0 %v10038_v20  ;;  %4611 = vmatprep.mubr.bf16.mxu1 %v10038_v20  ;;  %v2552_v20 = vld [vmem:[#allocation13 + $0x7b8] sm:$0xff] }
 0x4f3   :  { %4428 = vmatprep.subr.bf16.mxu0 %v7441_v37  ;;  %4654 = vmatprep.subr.bf16.mxu1 %v7443_v11  ;;  %v7467_v22 = vcombine.high %v2548_v14, %v2552_v20 }
 0x4f5   :  { %4429 = vmatpush1.bf16.msra.mxu0 %v7440_v5  ;;  %4655 = vmatpush1.bf16.msra.mxu1 %v7442_v56 }
 0x4f6   :  { %4430 = vmatprep.subr.bf16.mxu0 %v7449_v7  ;;  %4656 = vmatprep.subr.bf16.mxu1 %v7451_v2 }
 0x4f8   :  { %4386 = vmatmul.mubr.bf16.gmra.mrb[104].mxu0 %v10042_v34  ;;  %4612 = vmatmul.mubr.bf16.gmra.mrb[120].mxu1 %v10042_v34  ;;  %v7466_v34 = vcombine.low %v2548_v14, %v2552_v20 }
 0x4f9   :  { %4431 = vmatpush1.bf16.msra.mxu0 %v7448_v33  ;;  %4657 = vmatpush1.bf16.msra.mxu1 %v7450_v57 }
 0x4fa   :  { %4395 = vmatprep.mubr.bf16.mxu0 %v10050_v44  ;;  %4621 = vmatprep.mubr.bf16.mxu1 %v10050_v44  ;;  %v7472_v44 = vcombine.low %v2555_v50, %v2559_v12 }
 0x4fb   :  { %4432 = vmatprep.subr.bf16.mxu0 %v7457_v52  ;;  %4658 = vmatprep.subr.bf16.mxu1 %v7459_v47 }
 0x4fd   :  { %4433 = vmatpush1.bf16.msra.mxu0 %v7456_v6  ;;  %4659 = vmatpush1.bf16.msra.mxu1 %v7458_v26 }
 0x4fe   :  { %4434 = vmatprep.subr.bf16.mxu0 %v7465_v45  ;;  %4660 = vmatprep.subr.bf16.mxu1 %v7467_v22 }
 0x500   :  { %4396 = vmatmul.mubr.bf16.gmra.mrb[108].mxu0 %v10078_v28  ;;  %4622 = vmatmul.mubr.bf16.gmra.mrb[124].mxu1 %v10078_v28 }
 0x501   :  { %4435 = vmatpush1.bf16.msra.mxu0 %v7464_v0  ;;  %4661 = vmatpush1.bf16.msra.mxu1 %v7466_v34 }
 0x502   :  { %4438 = vmatprep.mubr.bf16.mxu0 %v10086_v38  ;;  %4664 = vmatprep.mubr.bf16.mxu1 %v10086_v38 }
 0x503   :  { %4436 = vmatprep.subr.bf16.mxu0 %v7473_v17  ;;  %4662 = vmatprep.subr.bf16.mxu1 %v7475_v19 }
 0x505   :  { %4437 = vmatpush1.bf16.msra.mxu0 %v7472_v44  ;;  %4663 = vmatpush1.bf16.msra.mxu1 %v7474_v31 }
 0x508   :  { %4439 = vmatmul.mubr.bf16.vlgmr.msra.gmra.mrb[80].mxu0 %v10106_v36  ;;  %4665 = vmatmul.mubr.bf16.vlgmr.msra.gmra.mrb[96].mxu1 %v10106_v36 }
 0x509   :  { %4448 = vmatprep.mubr.bf16.mxu0 %v10126_v51  ;;  %4674 = vmatprep.mubr.bf16.mxu1 %v10126_v51 }
 0x510   :  { %4449 = vmatmul.mubr.bf16.gmra.mrb[84].mxu0 %v10131_v18  ;;  %4675 = vmatmul.mubr.bf16.gmra.mrb[100].mxu1 %v10131_v18 }
 0x511   :  { %4458 = vmatprep.mubr.bf16.mxu0 %v10164_v32  ;;  %4684 = vmatprep.mubr.bf16.mxu1 %v10164_v32 }
 0x518   :  { %4459 = vmatmul.mubr.bf16.gmra.mrb[88].mxu0 %v10174_v35  ;;  %4685 = vmatmul.mubr.bf16.gmra.mrb[104].mxu1 %v10174_v35 }
 0x519   :  { %4468 = vmatprep.mubr.bf16.mxu0 %v10191_v1  ;;  %4694 = vmatprep.mubr.bf16.mxu1 %v10191_v1 }
 0x520   :  { %4469 = vmatmul.mubr.bf16.gmra.mrb[92].mxu0 %v10221_v8  ;;  %4695 = vmatmul.mubr.bf16.gmra.mrb[108].mxu1 %v10221_v8 }
 0x521   :  { %4478 = vmatprep.mubr.bf16.mxu0 %v10224_v40  ;;  %4704 = vmatprep.mubr.bf16.mxu1 %v10224_v40 }
 0x528   :  { %4479 = vmatmul.mubr.bf16.gmra.mrb[96].mxu0 %v10253_v3  ;;  %4705 = vmatmul.mubr.bf16.gmra.mrb[112].mxu1 %v10253_v3 }
 0x529   :  { %4488 = vmatprep.mubr.bf16.mxu0 %v10274_v29  ;;  %4714 = vmatprep.mubr.bf16.mxu1 %v10274_v29 }
 0x530   :  { %4489 = vmatmul.mubr.bf16.gmra.mrb[100].mxu0 %v10279_v39  ;;  %4715 = vmatmul.mubr.bf16.gmra.mrb[116].mxu1 %v10279_v39 }
 0x531   :  { %4498 = vmatprep.mubr.bf16.mxu0 %v10304_v13  ;;  %4724 = vmatprep.mubr.bf16.mxu1 %v10304_v13 }
 0x538   :  { %4499 = vmatmul.mubr.bf16.gmra.mrb[104].mxu0 %v10317_v9  ;;  %4725 = vmatmul.mubr.bf16.gmra.mrb[120].mxu1 %v10317_v9 }
 0x539   :  { %4508 = vmatprep.mubr.bf16.mxu0 %v10321_v15  ;;  %4734 = vmatprep.mubr.bf16.mxu1 %v10321_v15 }
 0x540   :  { %4509 = vmatmul.mubr.bf16.gmra.mrb[108].mxu0 %v10331_v41  ;;  %4735 = vmatmul.mubr.bf16.gmra.mrb[124].mxu1 %v10331_v41 }
 0x55a   :  { %v10415_v28 = vpop.f32.mrb[48].mxu0  ;;  %v10417_v38 = vpop.f32.mrb[64].mxu1 }
 0x55b   :  { %v10419_v36 = vpop.f32.mrb[49].mxu0  ;;  %v10421_v51 = vpop.f32.mrb[65].mxu1  ;;  %v4913_v18 = vmul.f32 %v10415_v28, %v10415_v28  ;;  %v4915_v32 = vmul.f32 %v10417_v38, %v10417_v38 }
 0x55c   :  { %v4914_v35 = vmul.f32 %v10419_v36, %v10419_v36  ;;  %v4916_v1 = vmul.f32 %v10421_v51, %v10421_v51  ;;  %v10431_v8 = vpop.f32.mrb[50].mxu0  ;;  %v10433_v40 = vpop.f32.mrb[66].mxu1 }
 0x55d   :  { %v4745_v3 = vadd.f32 %v10431_v8, %v10415_v28  ;;  %v4921_v29 = vmul.f32 %v10431_v8, %v10431_v8  ;;  %v4787_v39 = vadd.f32 %v10433_v40, %v10417_v38  ;;  %v4923_v13 = vmul.f32 %v10433_v40, %v10433_v40  ;;  %v10443_v9 = vpop.f32.mrb[51].mxu0  ;;  %v10445_v15 = vpop.f32.mrb[67].mxu1 }
 0x55e   :  { %v4766_v41 = vadd.f32 %v10443_v9, %v10419_v36  ;;  %v4922_v55 = vmul.f32 %v10443_v9, %v10443_v9  ;;  %v4808_v58 = vadd.f32 %v10445_v15, %v10421_v51  ;;  %v4924_v59 = vmul.f32 %v10445_v15, %v10445_v15 }
 0x55f   :  { %v5041_v61 = vadd.f32 %v4921_v29, %v4913_v18  ;;  %v5083_v48 = vadd.f32 %v4923_v13, %v4915_v32 }
 0x560   :  { %v5062_v23 = vadd.f32 %v4922_v55, %v4914_v35  ;;  %v5104_v60 = vadd.f32 %v4924_v59, %v4916_v1 }
 0x562   :  { %v10455_v4 = vpop.f32.mrb[52].mxu0  ;;  %v10457_v63 = vpop.f32.mrb[68].mxu1 }
 0x563   :  { %v4746_v21 = vadd.f32 %v4745_v3, %v10455_v4  ;;  %v4929_v30 = vmul.f32 %v10455_v4, %v10455_v4  ;;  %v4788_v25 = vadd.f32 %v4787_v39, %v10457_v63  ;;  %v4931_v37 = vmul.f32 %v10457_v63, %v10457_v63  ;;  %v10465_v11 = vpop.f32.mrb[53].mxu0  ;;  %v10467_v24 = vpop.f32.mrb[69].mxu1 }
 0x564   :  { %v4767_v27 = vadd.f32 %v4766_v41, %v10465_v11  ;;  %v4930_v43 = vmul.f32 %v10465_v11, %v10465_v11  ;;  %v4809_v5 = vadd.f32 %v4808_v58, %v10467_v24  ;;  %v4932_v56 = vmul.f32 %v10467_v24, %v10467_v24  ;;  %v10475_v7 = vpop.f32.mrb[54].mxu0  ;;  %v10477_v2 = vpop.f32.mrb[70].mxu1 }
 0x565   :  { %v5042_v42 = vadd.f32 %v5041_v61, %v4929_v30  ;;  %v5084_v54 = vadd.f32 %v5083_v48, %v4931_v37  ;;  %v4747_v10 = vadd.f32 %v4746_v21, %v10475_v7  ;;  %v4937_v49 = vmul.f32 %v10475_v7, %v10475_v7  ;;  %v10482_v33 = vpop.f32.mrb[55].mxu0  ;;  %v10484_v57 = vpop.f32.mrb[71].mxu1 }
 0x566   :  { %v5063_v62 = vadd.f32 %v5062_v23, %v4930_v43  ;;  %v5105_v52 = vadd.f32 %v5104_v60, %v4932_v56  ;;  %v4789_v47 = vadd.f32 %v4788_v25, %v10477_v2  ;;  %v4939_v16 = vmul.f32 %v10477_v2, %v10477_v2 }
 0x567   :  { %v5043_v14 = vadd.f32 %v5042_v42, %v4937_v49  ;;  %v4768_v20 = vadd.f32 %v4767_v27, %v10482_v33  ;;  %v4938_v6 = vmul.f32 %v10482_v33, %v10482_v33  ;;  %v4810_v26 = vadd.f32 %v4809_v5, %v10484_v57 }
 0x568   :  { %v5085_v45 = vadd.f32 %v5084_v54, %v4939_v16  ;;  %v4940_v22 = vmul.f32 %v10484_v57, %v10484_v57 }
 0x569   :  { %v5064_v50 = vadd.f32 %v5063_v62, %v4938_v6 }
 0x56a   :  { %v5106_v12 = vadd.f32 %v5105_v52, %v4940_v22  ;;  %v10495_v53 = vpop.f32.mrb[56].mxu0  ;;  %v10497_v46 = vpop.f32.mrb[72].mxu1 }
 0x56b   :  { %v4748_v0 = vadd.f32 %v4747_v10, %v10495_v53  ;;  %v4945_v34 = vmul.f32 %v10495_v53, %v10495_v53  ;;  %v4790_v17 = vadd.f32 %v4789_v47, %v10497_v46  ;;  %v4947_v19 = vmul.f32 %v10497_v46, %v10497_v46  ;;  %v10505_v44 = vpop.f32.mrb[57].mxu0  ;;  %v10507_v31 = vpop.f32.mrb[73].mxu1 }
 0x56c   :  { %v4769_v18 = vadd.f32 %v4768_v20, %v10505_v44  ;;  %v4946_v32 = vmul.f32 %v10505_v44, %v10505_v44  ;;  %v4811_v35 = vadd.f32 %v4810_v26, %v10507_v31  ;;  %v4948_v1 = vmul.f32 %v10507_v31, %v10507_v31  ;;  %v10515_v3 = vpop.f32.mrb[58].mxu0  ;;  %v10517_v29 = vpop.f32.mrb[74].mxu1 }
 0x56d   :  { %12339 = vst [vmem:[#allocation62_spill] sm:$0xff] %v10517_v29  ;;  %v5044_v39 = vadd.f32 %v5043_v14, %v4945_v34  ;;  %v5086_v13 = vadd.f32 %v5085_v45, %v4947_v19  ;;  %v4749_v41 = vadd.f32 %v4748_v0, %v10515_v3  ;;  %v4953_v55 = vmul.f32 %v10515_v3, %v10515_v3  ;;  %v10522_v58 = vpop.f32.mrb[59].mxu0  ;;  %v10524_v59 = vpop.f32.mrb[75].mxu1 }
 0x56e   :  { %v5065_v61 = vadd.f32 %v5064_v50, %v4946_v32  ;;  %v5107_v48 = vadd.f32 %v5106_v12, %v4948_v1  ;;  %v4791_v23 = vadd.f32 %v4790_v17, %v10517_v29  ;;  %v4955_v60 = vmul.f32 %v10517_v29, %v10517_v29 }
 0x56f   :  { %v5045_v21 = vadd.f32 %v5044_v39, %v4953_v55  ;;  %v4770_v30 = vadd.f32 %v4769_v18, %v10522_v58  ;;  %v4954_v25 = vmul.f32 %v10522_v58, %v10522_v58  ;;  %v4812_v37 = vadd.f32 %v4811_v35, %v10524_v59 }
 0x570   :  { %v5087_v27 = vadd.f32 %v5086_v13, %v4955_v60  ;;  %v4956_v43 = vmul.f32 %v10524_v59, %v10524_v59 }
 0x571   :  { %v5066_v5 = vadd.f32 %v5065_v61, %v4954_v25 }
 0x572   :  { %v5108_v56 = vadd.f32 %v5107_v48, %v4956_v43  ;;  %v10535_v42 = vpop.f32.mrb[60].mxu0  ;;  %v10537_v54 = vpop.f32.mrb[76].mxu1 }
 0x573   :  { %12340 = vst [vmem:[#allocation66_spill] sm:$0xff] %v10535_v42  ;;  %12341 = vst [vmem:[#allocation60_spill] sm:$0xff] %v10537_v54  ;;  %v4750_v10 = vadd.f32 %v4749_v41, %v10535_v42  ;;  %v4961_v49 = vmul.f32 %v10535_v42, %v10535_v42  ;;  %v4792_v62 = vadd.f32 %v4791_v23, %v10537_v54  ;;  %v10545_v47 = vpop.f32.mrb[61].mxu0  ;;  %v10547_v16 = vpop.f32.mrb[77].mxu1 }
 0x574   :  { %v4963_v52 = vmul.f32 %v10537_v54, %v10537_v54  ;;  %12342 = vst [vmem:[#allocation64_spill] sm:$0xff] %v10545_v47  ;;  %12343 = vst [vmem:[#allocation67_spill] sm:$0xff] %v10547_v16  ;;  %v4771_v14 = vadd.f32 %v4770_v30, %v10545_v47  ;;  %v4962_v20 = vmul.f32 %v10545_v47, %v10545_v47  ;;  %v10555_v45 = vpop.f32.mrb[62].mxu0  ;;  %v10557_v22 = vpop.f32.mrb[78].mxu1 }
 0x575   :  { %v4813_v6 = vadd.f32 %v4812_v37, %v10547_v16  ;;  %v4964_v26 = vmul.f32 %v10547_v16, %v10547_v16  ;;  %12344 = vst [vmem:[#allocation28_spill] sm:$0xff] %v10555_v45  ;;  %12345 = vst [vmem:[#allocation30_spill] sm:$0xff] %v10557_v22  ;;  %v5046_v50 = vadd.f32 %v5045_v21, %v4961_v49  ;;  %v10562_v17 = vpop.f32.mrb[63].mxu0  ;;  %v10564_v19 = vpop.f32.mrb[79].mxu1 }
 0x576   :  { %v5088_v12 = vadd.f32 %v5087_v27, %v4963_v52  ;;  %v4751_v0 = vadd.f32 %v4750_v10, %v10555_v45  ;;  %v4969_v34 = vmul.f32 %v10555_v45, %v10555_v45  ;;  %12346 = vst [vmem:[#allocation27_spill] sm:$0xff] %v10562_v17  ;;  %12347 = vst [vmem:[#allocation29_spill] sm:$0xff] %v10564_v19  ;;  %v8132_v45 = vld [vmem:[#allocation14 + $0x58] sm:$0xff]  }
 0x577   :  { %v5067_v18 = vadd.f32 %v5066_v5, %v4962_v20  ;;  %v5109_v32 = vadd.f32 %v5108_v56, %v4964_v26  ;;  %v4793_v35 = vadd.f32 %v4792_v62, %v10557_v22  ;;  %v4971_v1 = vmul.f32 %v10557_v22, %v10557_v22 }
 0x578   :  { %v5047_v39 = vadd.f32 %v5046_v50, %v4969_v34  ;;  %v4772_v13 = vadd.f32 %v4771_v14, %v10562_v17  ;;  %v4970_v41 = vmul.f32 %v10562_v17, %v10562_v17  ;;  %v4814_v55 = vadd.f32 %v4813_v6, %v10564_v19 }
 0x579   :  { %v5089_v61 = vadd.f32 %v5088_v12, %v4971_v1  ;;  %v4972_v48 = vmul.f32 %v10564_v19, %v10564_v19 }
 0x57a   :  { %v5068_v23 = vadd.f32 %v5067_v18, %v4970_v41  ;;  %v10575_v21 = vpop.f32.mrb[64].mxu0  ;;  %v10577_v30 = vpop.f32.mrb[80].mxu1 }
 0x57b   :  { %v5110_v60 = vadd.f32 %v5109_v32, %v4972_v48  ;;  %12348 = vst [vmem:[#allocation32_spill] sm:$0xff] %v10575_v21  ;;  %12349 = vst [vmem:[#allocation34_spill] sm:$0xff] %v10577_v30  ;;  %v4752_v25 = vadd.f32 %v4751_v0, %v10575_v21  ;;  %v4977_v37 = vmul.f32 %v10575_v21, %v10575_v21  ;;  %v10585_v5 = vpop.f32.mrb[65].mxu0  ;;  %v10587_v56 = vpop.f32.mrb[81].mxu1 }
 0x57c   :  { %v4794_v27 = vadd.f32 %v4793_v35, %v10577_v30  ;;  %v4979_v43 = vmul.f32 %v10577_v30, %v10577_v30  ;;  %12350 = vst [vmem:[#allocation31_spill] sm:$0xff] %v10585_v5  ;;  %12351 = vst [vmem:[#allocation33_spill] sm:$0xff] %v10587_v56  ;;  %v4773_v10 = vadd.f32 %v4772_v13, %v10585_v5  ;;  %v10595_v14 = vpop.f32.mrb[66].mxu0  ;;  %v10597_v20 = vpop.f32.mrb[82].mxu1 }
 0x57d   :  { %v4978_v49 = vmul.f32 %v10585_v5, %v10585_v5  ;;  %v4815_v62 = vadd.f32 %v4814_v55, %v10587_v56  ;;  %v4980_v52 = vmul.f32 %v10587_v56, %v10587_v56  ;;  %12352 = vst [vmem:[#allocation35_spill] sm:$0xff] %v10595_v14  ;;  %12353 = vst [vmem:[#allocation36_spill] sm:$0xff] %v10597_v20  ;;  %v10602_v0 = vpop.f32.mrb[67].mxu0  ;;  %v10604_v34 = vpop.f32.mrb[83].mxu1 }
 0x57e   :  { %v5048_v6 = vadd.f32 %v5047_v39, %v4977_v37  ;;  %v5090_v26 = vadd.f32 %v5089_v61, %v4979_v43  ;;  %v4753_v50 = vadd.f32 %v4752_v25, %v10595_v14  ;;  %v4985_v12 = vmul.f32 %v10595_v14, %v10595_v14  ;;  %12354 = vst [vmem:[#allocation37_spill] sm:$0xff] %v10602_v0 }
 0x57f   :  { %12355 = vst [vmem:[#allocation38_spill] sm:$0xff] %v10604_v34  ;;  %v5069_v18 = vadd.f32 %v5068_v23, %v4978_v49  ;;  %v5111_v32 = vadd.f32 %v5110_v60, %v4980_v52  ;;  %v4795_v35 = vadd.f32 %v4794_v27, %v10597_v20  ;;  %v4987_v1 = vmul.f32 %v10597_v20, %v10597_v20 }
 0x580   :  { %v5049_v13 = vadd.f32 %v5048_v6, %v4985_v12  ;;  %v4774_v39 = vadd.f32 %v4773_v10, %v10602_v0  ;;  %v4986_v41 = vmul.f32 %v10602_v0, %v10602_v0  ;;  %v4816_v55 = vadd.f32 %v4815_v62, %v10604_v34 }
 0x581   :  { %v5091_v61 = vadd.f32 %v5090_v26, %v4987_v1  ;;  %v4988_v48 = vmul.f32 %v10604_v34, %v10604_v34 }
 0x582   :  { %v5070_v25 = vadd.f32 %v5069_v18, %v4986_v41  ;;  %v10615_v60 = vpop.f32.mrb[68].mxu0  ;;  %v10617_v37 = vpop.f32.mrb[84].mxu1 }
 0x583   :  { %v5112_v23 = vadd.f32 %v5111_v32, %v4988_v48  ;;  %12356 = vst [vmem:[#allocation68_spill] sm:$0xff] %v10615_v60  ;;  %12357 = vst [vmem:[#allocation69_spill] sm:$0xff] %v10617_v37  ;;  %v4754_v27 = vadd.f32 %v4753_v50, %v10615_v60  ;;  %v4993_v43 = vmul.f32 %v10615_v60, %v10615_v60  ;;  %v10625_v62 = vpop.f32.mrb[69].mxu0  ;;  %v10627_v52 = vpop.f32.mrb[85].mxu1 }
 0x584   :  { %v4796_v10 = vadd.f32 %v4795_v35, %v10617_v37  ;;  %v4995_v49 = vmul.f32 %v10617_v37, %v10617_v37  ;;  %12358 = vst [vmem:[#allocation70_spill] sm:$0xff] %v10625_v62  ;;  %12359 = vst [vmem:[#allocation71_spill] sm:$0xff] %v10627_v52  ;;  %v4775_v6 = vadd.f32 %v4774_v39, %v10625_v62  ;;  %v10635_v18 = vpop.f32.mrb[70].mxu0  ;;  %v10637_v32 = vpop.f32.mrb[86].mxu1 }
 0x585   :  { %v4994_v26 = vmul.f32 %v10625_v62, %v10625_v62  ;;  %v4817_v12 = vadd.f32 %v4816_v55, %v10627_v52  ;;  %v4996_v50 = vmul.f32 %v10627_v52, %v10627_v52  ;;  %12360 = vst [vmem:[#allocation72_spill] sm:$0xff] %v10635_v18  ;;  %12361 = vst [vmem:[#allocation73_spill] sm:$0xff] %v10637_v32  ;;  %v10642_v39 = vpop.f32.mrb[71].mxu0  ;;  %v10644_v37 = vpop.f32.mrb[87].mxu1 }
 0x586   :  { %v5050_v35 = vadd.f32 %v5049_v13, %v4993_v43  ;;  %v5092_v1 = vadd.f32 %v5091_v61, %v4995_v49  ;;  %v4755_v41 = vadd.f32 %v4754_v27, %v10635_v18  ;;  %v5001_v48 = vmul.f32 %v10635_v18, %v10635_v18  ;;  %12362 = vst [vmem:[#allocation74_spill] sm:$0xff] %v10642_v39 }
 0x587   :  { %12363 = vst [vmem:[#allocation75_spill] sm:$0xff] %v10644_v37  ;;  %v5071_v60 = vadd.f32 %v5070_v25, %v4994_v26  ;;  %v5113_v55 = vadd.f32 %v5112_v23, %v4996_v50  ;;  %v4797_v62 = vadd.f32 %v4796_v10, %v10637_v32  ;;  %v5003_v52 = vmul.f32 %v10637_v32, %v10637_v32 }
 0x588   :  { %v5051_v20 = vadd.f32 %v5050_v35, %v5001_v48  ;;  %v4776_v13 = vadd.f32 %v4775_v6, %v10642_v39  ;;  %v5002_v61 = vmul.f32 %v10642_v39, %v10642_v39  ;;  %v4818_v27 = vadd.f32 %v4817_v12, %v10644_v37 }
 0x589   :  { %v5093_v43 = vadd.f32 %v5092_v1, %v5003_v52  ;;  %v5004_v49 = vmul.f32 %v10644_v37, %v10644_v37 }
 0x58a   :  { %v5072_v18 = vadd.f32 %v5071_v60, %v5002_v61  ;;  %v10655_v23 = vpop.f32.mrb[72].mxu0  ;;  %v10657_v10 = vpop.f32.mrb[88].mxu1 }
 0x58b   :  { %v5114_v25 = vadd.f32 %v5113_v55, %v5004_v49  ;;  %12364 = vst [vmem:[#allocation76_spill] sm:$0xff] %v10655_v23  ;;  %12365 = vst [vmem:[#allocation77_spill] sm:$0xff] %v10657_v10  ;;  %v4756_v26 = vadd.f32 %v4755_v41, %v10655_v23  ;;  %v5009_v6 = vmul.f32 %v10655_v23, %v10655_v23  ;;  %v10665_v52 = vpop.f32.mrb[73].mxu0  ;;  %v10667_v35 = vpop.f32.mrb[89].mxu1 }
 0x58c   :  { %v4798_v50 = vadd.f32 %v4797_v62, %v10657_v10  ;;  %v5011_v12 = vmul.f32 %v10657_v10, %v10657_v10  ;;  %12366 = vst [vmem:[#allocation78_spill] sm:$0xff] %v10665_v52  ;;  %12367 = vst [vmem:[#allocation79_spill] sm:$0xff] %v10667_v35  ;;  %v4777_v60 = vadd.f32 %v4776_v13, %v10665_v52  ;;  %v10675_v55 = vpop.f32.mrb[74].mxu0  ;;  %v10677_v62 = vpop.f32.mrb[90].mxu1 }
 0x58d   :  { %v5010_v1 = vmul.f32 %v10665_v52, %v10665_v52  ;;  %v4819_v48 = vadd.f32 %v4818_v27, %v10667_v35  ;;  %v5012_v41 = vmul.f32 %v10667_v35, %v10667_v35  ;;  %12368 = vst [vmem:[#allocation80_spill] sm:$0xff] %v10675_v55  ;;  %12369 = vst [vmem:[#allocation81_spill] sm:$0xff] %v10677_v62  ;;  %v10682_v13 = vpop.f32.mrb[75].mxu0  ;;  %v10684_v32 = vpop.f32.mrb[91].mxu1 }
 0x58e   :  { %v5052_v61 = vadd.f32 %v5051_v20, %v5009_v6  ;;  %v5094_v49 = vadd.f32 %v5093_v43, %v5011_v12  ;;  %v4757_v10 = vadd.f32 %v4756_v26, %v10675_v55  ;;  %v5017_v23 = vmul.f32 %v10675_v55, %v10675_v55  ;;  %12370 = vst [vmem:[#allocation82_spill] sm:$0xff] %v10682_v13 }
 0x58f   :  { %12371 = vst [vmem:[#allocation83_spill] sm:$0xff] %v10684_v32  ;;  %v5073_v52 = vadd.f32 %v5072_v18, %v5010_v1  ;;  %v5115_v27 = vadd.f32 %v5114_v25, %v5012_v41  ;;  %v4799_v37 = vadd.f32 %v4798_v50, %v10677_v62  ;;  %v5019_v35 = vmul.f32 %v10677_v62, %v10677_v62 }
 0x590   :  { %v5053_v39 = vadd.f32 %v5052_v61, %v5017_v23  ;;  %v4778_v20 = vadd.f32 %v4777_v60, %v10682_v13  ;;  %v5018_v43 = vmul.f32 %v10682_v13, %v10682_v13  ;;  %v4820_v26 = vadd.f32 %v4819_v48, %v10684_v32 }
 0x591   :  { %v5095_v6 = vadd.f32 %v5094_v49, %v5019_v35  ;;  %v5020_v12 = vmul.f32 %v10684_v32, %v10684_v32 }
 0x592   :  { %v5074_v55 = vadd.f32 %v5073_v52, %v5018_v43  ;;  %v10695_v25 = vpop.f32.mrb[76].mxu0  ;;  %v10697_v50 = vpop.f32.mrb[92].mxu1 }
 0x593   :  { %v5116_v18 = vadd.f32 %v5115_v27, %v5020_v12  ;;  %12372 = vst [vmem:[#allocation84_spill] sm:$0xff] %v10695_v25  ;;  %12373 = vst [vmem:[#allocation87_spill] sm:$0xff] %v10697_v50  ;;  %v4758_v1 = vadd.f32 %v4757_v10, %v10695_v25  ;;  %v5025_v23 = vmul.f32 %v10695_v25, %v10695_v25  ;;  %v10705_v35 = vpop.f32.mrb[77].mxu0  ;;  %v10707_v41 = vpop.f32.mrb[93].mxu1 }
 0x594   :  { %v4800_v60 = vadd.f32 %v4799_v37, %v10697_v50  ;;  %v5027_v48 = vmul.f32 %v10697_v50, %v10697_v50  ;;  %12374 = vst [vmem:[#allocation88_spill] sm:$0xff] %v10705_v35  ;;  %12375 = vst [vmem:[#allocation89_spill] sm:$0xff] %v10707_v41  ;;  %v4779_v52 = vadd.f32 %v4778_v20, %v10705_v35  ;;  %v10715_v27 = vpop.f32.mrb[78].mxu0  ;;  %v10717_v37 = vpop.f32.mrb[94].mxu1 }
 0x595   :  { %v5026_v61 = vmul.f32 %v10705_v35, %v10705_v35  ;;  %v4821_v49 = vadd.f32 %v4820_v26, %v10707_v41  ;;  %v5028_v10 = vmul.f32 %v10707_v41, %v10707_v41  ;;  %12376 = vst [vmem:[#allocation90_spill] sm:$0xff] %v10715_v27  ;;  %12377 = vst [vmem:[#allocation91_spill] sm:$0xff] %v10717_v37  ;;  %v10722_v20 = vpop.f32.mrb[79].mxu0  ;;  %v10724_v62 = vpop.f32.mrb[95].mxu1 }
 0x596   :  { %v5054_v43 = vadd.f32 %v5053_v39, %v5025_v23  ;;  %v5096_v12 = vadd.f32 %v5095_v6, %v5027_v48  ;;  %v4759_v50 = vadd.f32 %v4758_v1, %v10715_v27  ;;  %v5033_v25 = vmul.f32 %v10715_v27, %v10715_v27  ;;  %12378 = vst [vmem:[#allocation92_spill] sm:$0xff] %v10722_v20 }
 0x597   :  { %12379 = vst [vmem:[#allocation93_spill] sm:$0xff] %v10724_v62  ;;  %v5075_v35 = vadd.f32 %v5074_v55, %v5026_v61  ;;  %v5117_v26 = vadd.f32 %v5116_v18, %v5028_v10  ;;  %v4801_v32 = vadd.f32 %v4800_v60, %v10717_v37  ;;  %v5035_v41 = vmul.f32 %v10717_v37, %v10717_v37 }
 0x598   :  { %v4760_v13 = vrot.slane %v4759_v50, 4  ;;  %v5055_v30 = vadd.f32 %v5054_v43, %v5033_v25  ;;  %v4780_v39 = vadd.f32 %v4779_v52, %v10722_v20  ;;  %v5034_v6 = vmul.f32 %v10722_v20, %v10722_v20 }
 0x599   :  { %v4802_v1 = vrot.slane %v4801_v32, 4  ;;  %v5097_v23 = vadd.f32 %v5096_v12, %v5035_v41  ;;  %v4822_v48 = vadd.f32 %v4821_v49, %v10724_v62  ;;  %v5036_v55 = vmul.f32 %v10724_v62, %v10724_v62 }
 0x59a   :  { %v4761_v18 = vadd.f32 %v4760_v13, %v4759_v50  ;;  %v5056_v61 = vrot.slane %v5055_v30, 4  ;;  %v4781_v60 = vrot.slane %v4780_v39, 4  ;;  %v5076_v10 = vadd.f32 %v5075_v35, %v5034_v6 }
 0x59b   :  { %v4803_v27 = vadd.f32 %v4802_v1, %v4801_v32  ;;  %v5098_v37 = vrot.slane %v5097_v23, 4  ;;  %v4823_v14 = vrot.slane %v4822_v48, 4  ;;  %v5118_v25 = vadd.f32 %v5117_v26, %v5036_v55 }
 0x59c   :  { %v4762_v43 = vrot.slane %v4761_v18, 2  ;;  %v5057_v52 = vadd.f32 %v5056_v61, %v5055_v30  ;;  %v4782_v21 = vadd.f32 %v4781_v60, %v4780_v39  ;;  %v5077_v34 = vrot.slane %v5076_v10, 4 }
 0x59d   :  { %v4804_v20 = vrot.slane %v4803_v27, 2  ;;  %v5099_v56 = vadd.f32 %v5098_v37, %v5097_v23  ;;  %v4824_v41 = vadd.f32 %v4823_v14, %v4822_v48  ;;  %v5119_v12 = vrot.slane %v5118_v25, 4 }
 0x59e   :  { %v4763_v49 = vadd.f32 %v4762_v43, %v4761_v18  ;;  %v5058_v0 = vrot.slane %v5057_v52, 2  ;;  %v4783_v5 = vrot.slane %v4782_v21, 2  ;;  %v5078_v62 = vadd.f32 %v5077_v34, %v5076_v10 }
 0x59f   :  { %v4805_v13 = vadd.f32 %v4804_v20, %v4803_v27  ;;  %v5100_v50 = vrot.slane %v5099_v56, 2  ;;  %v4825_v22 = vrot.slane %v4824_v41, 2  ;;  %v5120_v35 = vadd.f32 %v5119_v12, %v5118_v25 }
 0x5a0   :  { %v4764_v32 = vrot.slane %v4763_v49, 1  ;;  %v5059_v6 = vadd.f32 %v5058_v0, %v5057_v52  ;;  %v4784_v1 = vadd.f32 %v4783_v5, %v4782_v21  ;;  %v5079_v26 = vrot.slane %v5078_v62, 2 }
 0x5a1   :  { %v4806_v55 = vrot.slane %v4805_v13, 1  ;;  %v5101_v30 = vadd.f32 %v5100_v50, %v5099_v56  ;;  %v4826_v39 = vadd.f32 %v4825_v22, %v4824_v41  ;;  %v5121_v61 = vrot.slane %v5120_v35, 2 }
 0x5a2   :  { %v4765_v60 = vadd.f32 %v4764_v32, %v4763_v49  ;;  %v5060_v37 = vrot.slane %v5059_v6, 1  ;;  %v4785_v14 = vrot.slane %v4784_v1, 1  ;;  %v5080_v23 = vadd.f32 %v5079_v26, %v5078_v62 }
 0x5a3   :  { %v4807_v48 = vadd.f32 %v4806_v55, %v4805_v13  ;;  %v5102_v18 = vrot.slane %v5101_v30, 1  ;;  %v4827_v43 = vrot.slane %v4826_v39, 1  ;;  %v5122_v34 = vadd.f32 %v5121_v61, %v5120_v35 }
 0x5a4   :  { %v5061_v27 = vadd.f32 %v5060_v37, %v5059_v6  ;;  %v10735_v20 = vmul.f32 0.0078125, %v4765_v60  ;;  %v4786_v10 = vadd.f32 %v4785_v14, %v4784_v1  ;;  %v5081_v25 = vrot.slane %v5080_v23, 1 }
 0x5a5   :  { %v5103_v0 = vadd.f32 %v5102_v18, %v5101_v30  ;;  %v10737_v21 = vmul.f32 0.0078125, %v4807_v48  ;;  %v4828_v5 = vadd.f32 %v4827_v43, %v4826_v39  ;;  %v5123_v56 = vrot.slane %v5122_v34, 1 }
 0x5a6   :  { %v5217_v22 = vmul.f32 0.0078125, %v5061_v27  ;;  %v5225_v52 = vmul.f32 %v10735_v20, %v10735_v20  ;;  %v5082_v41 = vadd.f32 %v5081_v25, %v5080_v23  ;;  %v10741_v62 = vmul.f32 0.0078125, %v4786_v10  ;;  %v12380_v10 = vld [vmem:[#allocation24_spill] sm:$0xff] }
 0x5a7   :  { %v5219_v12 = vmul.f32 0.0078125, %v5103_v0  ;;  %v5227_v49 = vmul.f32 %v10737_v21, %v10737_v21  ;;  %v5124_v13 = vadd.f32 %v5123_v56, %v5122_v34  ;;  %v10745_v50 = vmul.f32 0.0078125, %v4828_v5  ;;  %v8120_v56 = vld [vmem:[#allocation14 + $0x40] sm:$0xff]  }
 0x5a8   :  { %v5233_v35 = vsub.f32 %v5217_v22, %v5225_v52  ;;  %v5218_v32 = vmul.f32 0.0078125, %v5082_v41  ;;  %v5226_v6 = vmul.f32 %v10741_v62, %v10741_v62  ;;  %v8121_v22 = vld [vmem:[#allocation14] sm:$0xff]   ;;  %7557 = vmatprep.subr.bf16.mxu0 %v8120_v56  ;;  %v8130_v56 = vld [vmem:[#allocation14 + $0xd0] sm:$0xff]  }
 0x5a9   :  { %v5235_v1 = vsub.f32 %v5219_v12, %v5227_v49  ;;  %v5220_v26 = vmul.f32 0.0078125, %v5124_v13  ;;  %v5228_v55 = vmul.f32 %v10745_v50, %v10745_v50  ;;  %v8122_v52 = vld [vmem:[#allocation14 + $0xc0] sm:$0xff]   ;;  %v8124_v13 = vld [vmem:[#allocation14 + $0x48] sm:$0xff]   ;;  %7558 = vmatpush3.bf16.msra.mxu0 %v8121_v22 }
 0x5aa   :  { %v5242_v30 = vadd.f32 0.8, %v5233_v35  ;;  %v5234_v39 = vsub.f32 %v5218_v32, %v5226_v6  ;;  %v8123_v49 = vld [vmem:[#allocation14 + $0x80] sm:$0xff]   ;;  %7621 = vmatprep.subr.bf16.mxu1 %v8122_v52  ;;  %7559 = vmatprep.subr.bf16.mxu0 %v8124_v13  ;;  %v8129_v13 = vld [vmem:[#allocation14 + $0x10] sm:$0xff]  }
 0x5ab   :  { %v5244_v61 = vadd.f32 0.8, %v5235_v1  ;;  %v5236_v60 = vsub.f32 %v5220_v26, %v5228_v55  ;;  %v8126_v1 = vld [vmem:[#allocation14 + $0xc8] sm:$0xff]   ;;  %7622 = vmatpush3.bf16.msra.mxu1 %v8123_v49 }
 0x5ac   :  { %8196 = vrsqrt.f32 %v5242_v30  ;;  %v5243_v37 = vadd.f32 0.8, %v5234_v39  ;;  %7623 = vmatprep.subr.bf16.mxu1 %v8126_v1 }
 0x5ad   :  { %8198 = vrsqrt.f32 %v5244_v61  ;;  %v5245_v14 = vadd.f32 0.8, %v5236_v60  ;;  %v8125_v60 = vld [vmem:[#allocation14 + $0x8] sm:$0xff]  }
 0x5ae   :  { %8200 = vrsqrt.f32 %v5243_v37  ;;  %v8127_v37 = vld [vmem:[#allocation14 + $0x88] sm:$0xff]   ;;  %7560 = vmatpush3.bf16.msra.mxu0 %v8125_v60 }
 0x5af   :  { %8202 = vrsqrt.f32 %v5245_v14  ;;  %7624 = vmatpush3.bf16.msra.mxu1 %v8127_v37 }
 0x5b0   :  { %7625 = vmatprep.subr.bf16.mxu1 %v8130_v56 }
 0x5b6   :  { %v8197_v23 = vpop.eup %8196 }
 0x5b7   :  { %v8199_v48 = vpop.eup %8198 }
 0x5b8   :  { %v8201_v18 = vpop.eup %8200 }
 0x5b9   :  { %v8203_v43 = vpop.eup %8202  ;;  %v5266_v34 = vcombine.low %v8197_v23, %v8201_v18 }
 0x5ba   :  { %v5267_v27 = vcombine.low %v8199_v48, %v8203_v43 }
 0x5bb   :  { %v10752_v25 = vrot.slane %v5266_v34, %v12380_v10 }
 0x5bc   :  { %v10755_v0 = vrot.slane %v5267_v27, %v12380_v10  ;;  %v8128_v27 = vld [vmem:[#allocation14 + $0x50] sm:$0xff]  }
 0x5bd   :  { %7561 = vmatprep.subr.bf16.mxu0 %v8128_v27  ;;  %v8133_v27 = vld [vmem:[#allocation14 + $0x18] sm:$0xff]  }
 0x5be   :  { %7562 = vmatpush3.bf16.msra.mxu0 %v8129_v13 }
 0x5bf   :  { %7563 = vmatprep.subr.bf16.mxu0 %v8132_v45  ;;  %v8139_v45 = vld [vmem:[#allocation14 + $0xa0] sm:$0xff]  }
 0x5c2   :  { %7564 = vmatpush3.bf16.msra.mxu0 %v8133_v27 }
 0x5db   :  { %v10759_v41 = vpop.f32.mrb[80].mxu0  ;;  %v10761_v12 = vpop.f32.mrb[96].mxu1 }
 0x5dc   :  { %12381 = vst [vmem:[#allocation94_spill] sm:$0xff] %v10759_v41  ;;  %12382 = vst [vmem:[#allocation95_spill] sm:$0xff] %v10761_v12  ;;  %v4917_v35 = vmul.f32 %v10759_v41, %v10759_v41  ;;  %v10765_v32 = vpop.f32.mrb[81].mxu0  ;;  %v10767_v6 = vpop.f32.mrb[97].mxu1  ;;  %v4919_v26 = vmul.f32 %v10761_v12, %v10761_v12 }
 0x5dd   :  { %12383 = vst [vmem:[#allocation96_spill] sm:$0xff] %v10765_v32  ;;  %12384 = vst [vmem:[#allocation97_spill] sm:$0xff] %v10767_v6  ;;  %v4918_v55 = vmul.f32 %v10765_v32, %v10765_v32  ;;  %v4920_v30 = vmul.f32 %v10767_v6, %v10767_v6  ;;  %v10775_v39 = vpop.f32.mrb[82].mxu0  ;;  %v10777_v61 = vpop.f32.mrb[98].mxu1 }
 0x5de   :  { %12385 = vst [vmem:[#allocation98_spill] sm:$0xff] %v10775_v39  ;;  %12386 = vst [vmem:[#allocation99_spill] sm:$0xff] %v10777_v61  ;;  %v4829_v14 = vadd.f32 %v10775_v39, %v10759_v41  ;;  %v4925_v23 = vmul.f32 %v10775_v39, %v10775_v39  ;;  %v4871_v48 = vadd.f32 %v10777_v61, %v10761_v12  ;;  %v10787_v43 = vpop.f32.mrb[83].mxu0  ;;  %v10789_v34 = vpop.f32.mrb[99].mxu1 }
 0x5df   :  { %v4927_v18 = vmul.f32 %v10777_v61, %v10777_v61  ;;  %12387 = vst [vmem:[#allocation100_spill] sm:$0xff] %v10787_v43  ;;  %12388 = vst [vmem:[#allocation101_spill] sm:$0xff] %v10789_v34  ;;  %v4850_v22 = vadd.f32 %v10787_v43, %v10765_v32  ;;  %v4926_v52 = vmul.f32 %v10787_v43, %v10787_v43  ;;  %v8131_v32 = vld [vmem:[#allocation14 + $0x90] sm:$0xff]  }
 0x5e0   :  { %v4892_v49 = vadd.f32 %v10789_v34, %v10767_v6  ;;  %v4928_v5 = vmul.f32 %v10789_v34, %v10789_v34  ;;  %v5125_v61 = vadd.f32 %v4925_v23, %v4917_v35  ;;  %7626 = vmatpush3.bf16.msra.mxu1 %v8131_v32 }
 0x5e1   :  { %v5167_v12 = vadd.f32 %v4927_v18, %v4919_v26  ;;  %v5146_v39 = vadd.f32 %v4926_v52, %v4918_v55 }
 0x5e2   :  { %v5188_v41 = vadd.f32 %v4928_v5, %v4920_v30  ;;  %v8134_v30 = vld [vmem:[#allocation14 + $0xd8] sm:$0xff]  }
 0x5e3   :  { %v10799_v54 = vpop.f32.mrb[84].mxu0  ;;  %v10801_v43 = vpop.f32.mrb[100].mxu1  ;;  %7627 = vmatprep.subr.bf16.mxu1 %v8134_v30 }
 0x5e4   :  { %12389 = vst [vmem:[#allocation102_spill] sm:$0xff] %v10799_v54  ;;  %12390 = vst [vmem:[#allocation40_spill] sm:$0xff] %v10801_v43  ;;  %v4830_v6 = vadd.f32 %v4829_v14, %v10799_v54  ;;  %v4933_v1 = vmul.f32 %v10799_v54, %v10799_v54  ;;  %v4872_v35 = vadd.f32 %v4871_v48, %v10801_v43  ;;  %v10809_v26 = vpop.f32.mrb[85].mxu0  ;;  %v10811_v55 = vpop.f32.mrb[101].mxu1 }
 0x5e5   :  { %v4935_v5 = vmul.f32 %v10801_v43, %v10801_v43  ;;  %12391 = vst [vmem:[#allocation103_spill] sm:$0xff] %v10809_v26  ;;  %12392 = vst [vmem:[#allocation104_spill] sm:$0xff] %v10811_v55  ;;  %v4851_v60 = vadd.f32 %v4850_v22, %v10809_v26  ;;  %v4934_v37 = vmul.f32 %v10809_v26, %v10809_v26  ;;  %v10819_v18 = vpop.f32.mrb[86].mxu0  ;;  %v10821_v48 = vpop.f32.mrb[102].mxu1 }
 0x5e6   :  { %v4893_v14 = vadd.f32 %v4892_v49, %v10811_v55  ;;  %v4936_v23 = vmul.f32 %v10811_v55, %v10811_v55  ;;  %12393 = vst [vmem:[#allocation105_spill] sm:$0xff] %v10819_v18  ;;  %12394 = vst [vmem:[#allocation42_spill] sm:$0xff] %v10821_v48  ;;  %v5126_v56 = vadd.f32 %v5125_v61, %v4933_v1  ;;  %v10826_v54 = vpop.f32.mrb[87].mxu0  ;;  %v10828_v26 = vpop.f32.mrb[103].mxu1  ;;  %v8135_v49 = vld [vmem:[#allocation14 + $0x98] sm:$0xff]   ;;  %v8136_v55 = vld [vmem:[#allocation14 + $0x60] sm:$0xff]  }
 0x5e7   :  { %v5168_v52 = vadd.f32 %v5167_v12, %v4935_v5  ;;  %v4831_v43 = vadd.f32 %v4830_v6, %v10819_v18  ;;  %v4941_v22 = vmul.f32 %v10819_v18, %v10819_v18  ;;  %12395 = vst [vmem:[#allocation39_spill] sm:$0xff] %v10826_v54  ;;  %12396 = vst [vmem:[#allocation130_spill] sm:$0xff] %v10828_v26  ;;  %v8138_v12 = vld [vmem:[#allocation14 + $0xe0] sm:$0xff]   ;;  %7628 = vmatpush3.bf16.msra.mxu1 %v8135_v49 }
 0x5e8   :  { %v5147_v34 = vadd.f32 %v5146_v39, %v4934_v37  ;;  %v5189_v42 = vadd.f32 %v5188_v41, %v4936_v23  ;;  %v4873_v19 = vadd.f32 %v4872_v35, %v10821_v48  ;;  %v4943_v61 = vmul.f32 %v10821_v48, %v10821_v48  ;;  %v8137_v39 = vld [vmem:[#allocation14 + $0x20] sm:$0xff]   ;;  %7565 = vmatprep.subr.bf16.mxu0 %v8136_v55 }
 0x5e9   :  { %v5127_v6 = vadd.f32 %v5126_v56, %v4941_v22  ;;  %v4852_v13 = vadd.f32 %v4851_v60, %v10826_v54  ;;  %v4942_v1 = vmul.f32 %v10826_v54, %v10826_v54  ;;  %v4894_v5 = vadd.f32 %v4893_v14, %v10828_v26  ;;  %7629 = vmatprep.subr.bf16.mxu1 %v8138_v12  ;;  %v8140_v56 = vld [vmem:[#allocation14 + $0x68] sm:$0xff]  }
 0x5ea   :  { %v5169_v32 = vadd.f32 %v5168_v52, %v4943_v61  ;;  %v4944_v41 = vmul.f32 %v10828_v26, %v10828_v26  ;;  %7566 = vmatpush3.bf16.msra.mxu0 %v8137_v39 }
 0x5eb   :  { %v5148_v35 = vadd.f32 %v5147_v34, %v4942_v1  ;;  %v10839_v23 = vpop.f32.mrb[88].mxu0  ;;  %v10841_v60 = vpop.f32.mrb[104].mxu1  ;;  %v8141_v1 = vld [vmem:[#allocation14 + $0x28] sm:$0xff]   ;;  %7630 = vmatpush3.bf16.msra.mxu1 %v8139_v45  ;;  %7567 = vmatprep.subr.bf16.mxu0 %v8140_v56  ;;  %v8147_v56 = vld [vmem:[#allocation14 + $0xb0] sm:$0xff]  }
 0x5ec   :  { %v5190_v37 = vadd.f32 %v5189_v42, %v4944_v41  ;;  %12397 = vst [vmem:[#allocation41_spill] sm:$0xff] %v10839_v23  ;;  %12398 = vst [vmem:[#allocation44_spill] sm:$0xff] %v10841_v60  ;;  %v4832_v14 = vadd.f32 %v4831_v43, %v10839_v23  ;;  %v4949_v30 = vmul.f32 %v10839_v23, %v10839_v23  ;;  %v10849_v27 = vpop.f32.mrb[89].mxu0  ;;  %v10851_v55 = vpop.f32.mrb[105].mxu1  ;;  %v8142_v42 = vld [vmem:[#allocation14 + $0xe8] sm:$0xff]  }
 0x5ed   :  { %v4874_v52 = vadd.f32 %v4873_v19, %v10841_v60  ;;  %v4951_v34 = vmul.f32 %v10841_v60, %v10841_v60  ;;  %12399 = vst [vmem:[#allocation46_spill] sm:$0xff] %v10849_v27  ;;  %12400 = vst [vmem:[#allocation106_spill] sm:$0xff] %v10851_v55  ;;  %v4853_v22 = vadd.f32 %v4852_v13, %v10849_v27  ;;  %v10859_v12 = vpop.f32.mrb[90].mxu0  ;;  %v10861_v19 = vpop.f32.mrb[106].mxu1  ;;  %7631 = vmatprep.subr.bf16.mxu1 %v8142_v42 }
 0x5ee   :  { %v4950_v49 = vmul.f32 %v10849_v27, %v10849_v27  ;;  %v4895_v43 = vadd.f32 %v4894_v5, %v10851_v55  ;;  %v4952_v61 = vmul.f32 %v10851_v55, %v10851_v55  ;;  %12401 = vst [vmem:[#allocation107_spill] sm:$0xff] %v10859_v12  ;;  %12402 = vst [vmem:[#allocation108_spill] sm:$0xff] %v10861_v19  ;;  %v10866_v48 = vpop.f32.mrb[91].mxu0  ;;  %v10868_v27 = vpop.f32.mrb[107].mxu1  ;;  %v8143_v5 = vld [vmem:[#allocation14 + $0xa8] sm:$0xff]   ;;  %v8144_v55 = vld [vmem:[#allocation14 + $0x70] sm:$0xff]   ;;  %7568 = vmatpush3.bf16.msra.mxu0 %v8141_v1 }
 0x5ef   :  { %v5128_v41 = vadd.f32 %v5127_v6, %v4949_v30  ;;  %v5170_v60 = vadd.f32 %v5169_v32, %v4951_v34  ;;  %v4833_v23 = vadd.f32 %v4832_v14, %v10859_v12  ;;  %v4957_v13 = vmul.f32 %v10859_v12, %v10859_v12  ;;  %12403 = vst [vmem:[#allocation109_spill] sm:$0xff] %v10866_v48  ;;  %v8146_v32 = vld [vmem:[#allocation14 + $0xf0] sm:$0xff]  }
 0x5f0   :  { %12404 = vst [vmem:[#allocation110_spill] sm:$0xff] %v10868_v27  ;;  %v5149_v18 = vadd.f32 %v5148_v35, %v4950_v49  ;;  %v5191_v26 = vadd.f32 %v5190_v37, %v4952_v61  ;;  %v4875_v54 = vadd.f32 %v4874_v52, %v10861_v19  ;;  %v4959_v6 = vmul.f32 %v10861_v19, %v10861_v19  ;;  %v8145_v37 = vld [vmem:[#allocation14 + $0x30] sm:$0xff]  }
 0x5f1   :  { %v5129_v39 = vadd.f32 %v5128_v41, %v4957_v13  ;;  %v4854_v14 = vadd.f32 %v4853_v22, %v10866_v48  ;;  %v4958_v30 = vmul.f32 %v10866_v48, %v10866_v48  ;;  %v4896_v34 = vadd.f32 %v4895_v43, %v10868_v27  ;;  %7632 = vmatpush3.bf16.msra.mxu1 %v8143_v5  ;;  %v8148_v41 = vld [vmem:[#allocation14 + $0x78] sm:$0xff]  }
 0x5f2   :  { %v5171_v45 = vadd.f32 %v5170_v60, %v4959_v6  ;;  %v4960_v35 = vmul.f32 %v10868_v27, %v10868_v27  ;;  %7569 = vmatprep.subr.bf16.mxu0 %v8144_v55  ;;  %7633 = vmatprep.subr.bf16.mxu1 %v8146_v32 }
 0x5f3   :  { %v5150_v52 = vadd.f32 %v5149_v18, %v4958_v30  ;;  %v10879_v61 = vpop.f32.mrb[92].mxu0  ;;  %v10881_v22 = vpop.f32.mrb[108].mxu1  ;;  %7570 = vmatpush3.bf16.msra.mxu0 %v8145_v37  ;;  %v8149_v30 = vld [vmem:[#allocation14 + $0x38] sm:$0xff]  }
 0x5f4   :  { %v5192_v49 = vadd.f32 %v5191_v26, %v4960_v35  ;;  %12405 = vst [vmem:[#allocation111_spill] sm:$0xff] %v10879_v61  ;;  %12406 = vst [vmem:[#allocation112_spill] sm:$0xff] %v10881_v22  ;;  %v4834_v43 = vadd.f32 %v4833_v23, %v10879_v61  ;;  %v4965_v60 = vmul.f32 %v10879_v61, %v10879_v61  ;;  %v10889_v1 = vpop.f32.mrb[93].mxu0  ;;  %v10891_v55 = vpop.f32.mrb[109].mxu1  ;;  %v8150_v26 = vld [vmem:[#allocation14 + $0xf8] sm:$0xff]   ;;  %7571 = vmatprep.subr.bf16.mxu0 %v8148_v41 }
 0x5f5   :  { %v4876_v42 = vadd.f32 %v4875_v54, %v10881_v22  ;;  %v4967_v18 = vmul.f32 %v10881_v22, %v10881_v22  ;;  %12407 = vst [vmem:[#allocation113_spill] sm:$0xff] %v10889_v1  ;;  %12408 = vst [vmem:[#allocation43_spill] sm:$0xff] %v10891_v55  ;;  %v4855_v13 = vadd.f32 %v4854_v14, %v10889_v1  ;;  %v10899_v32 = vpop.f32.mrb[94].mxu0  ;;  %v10901_v54 = vpop.f32.mrb[110].mxu1  ;;  %7634 = vmatpush3.bf16.msra.mxu1 %v8147_v56 }
 0x5f6   :  { %v4966_v5 = vmul.f32 %v10889_v1, %v10889_v1  ;;  %v4897_v23 = vadd.f32 %v4896_v34, %v10891_v55  ;;  %v4968_v6 = vmul.f32 %v10891_v55, %v10891_v55  ;;  %12409 = vst [vmem:[#allocation45_spill] sm:$0xff] %v10899_v32  ;;  %12410 = vst [vmem:[#allocation48_spill] sm:$0xff] %v10901_v54  ;;  %v10906_v19 = vpop.f32.mrb[95].mxu0  ;;  %v10908_v1 = vpop.f32.mrb[111].mxu1  ;;  %v8151_v34 = vld [vmem:[#allocation14 + $0xb8] sm:$0xff]   ;;  %v8152_v55 = vld [vmem:[#allocation14 + $0x140] sm:$0xff]   ;;  %7635 = vmatprep.subr.bf16.mxu1 %v8150_v26 }
 0x5f7   :  { %v5130_v35 = vadd.f32 %v5129_v39, %v4965_v60  ;;  %v5172_v22 = vadd.f32 %v5171_v45, %v4967_v18  ;;  %v4835_v61 = vadd.f32 %v4834_v43, %v10899_v32  ;;  %v4973_v14 = vmul.f32 %v10899_v32, %v10899_v32  ;;  %12411 = vst [vmem:[#allocation50_spill] sm:$0xff] %v10906_v19  ;;  %v8154_v45 = vld [vmem:[#allocation14 + $0x1c0] sm:$0xff]  }
 0x5f8   :  { %12412 = vst [vmem:[#allocation47_spill] sm:$0xff] %v10908_v1  ;;  %v5151_v12 = vadd.f32 %v5150_v52, %v4966_v5  ;;  %v5193_v27 = vadd.f32 %v5192_v49, %v4968_v6  ;;  %v4877_v48 = vadd.f32 %v4876_v42, %v10901_v54  ;;  %v4975_v39 = vmul.f32 %v10901_v54, %v10901_v54 }
 0x5f9   :  { %v5131_v37 = vadd.f32 %v5130_v35, %v4973_v14  ;;  %v4856_v43 = vadd.f32 %v4855_v13, %v10906_v19  ;;  %v4974_v60 = vmul.f32 %v10906_v19, %v10906_v19  ;;  %v4898_v18 = vadd.f32 %v4897_v23, %v10908_v1  ;;  %7572 = vmatpush3.bf16.msra.mxu0 %v8149_v30 }
 0x5fa   :  { %v5173_v56 = vadd.f32 %v5172_v22, %v4975_v39  ;;  %v4976_v52 = vmul.f32 %v10908_v1, %v10908_v1  ;;  %7636 = vmatpush3.bf16.msra.mxu1 %v8151_v34  ;;  %7685 = vmatprep.subr.bf16.mxu0 %v8152_v55 }
 0x5fb   :  { %v5152_v49 = vadd.f32 %v5151_v12, %v4974_v60  ;;  %v10919_v41 = vpop.f32.mrb[96].mxu0  ;;  %v10921_v5 = vpop.f32.mrb[112].mxu1  ;;  %7749 = vmatprep.subr.bf16.mxu1 %v8154_v45 }
 0x5fc   :  { %v5194_v42 = vadd.f32 %v5193_v27, %v4976_v52  ;;  %12413 = vst [vmem:[#allocation114_spill] sm:$0xff] %v10919_v41  ;;  %12414 = vst [vmem:[#allocation115_spill] sm:$0xff] %v10921_v5  ;;  %v4836_v13 = vadd.f32 %v4835_v61, %v10919_v41  ;;  %v4981_v23 = vmul.f32 %v10919_v41, %v10919_v41  ;;  %v10929_v6 = vpop.f32.mrb[97].mxu0  ;;  %v10931_v12 = vpop.f32.mrb[113].mxu1 }
 0x5fd   :  { %v4878_v22 = vadd.f32 %v4877_v48, %v10921_v5  ;;  %v4983_v26 = vmul.f32 %v10921_v5, %v10921_v5  ;;  %12415 = vst [vmem:[#allocation116_spill] sm:$0xff] %v10929_v6  ;;  %12416 = vst [vmem:[#allocation117_spill] sm:$0xff] %v10931_v12  ;;  %v4857_v27 = vadd.f32 %v4856_v43, %v10929_v6  ;;  %v10939_v35 = vpop.f32.mrb[98].mxu0  ;;  %v10941_v48 = vpop.f32.mrb[114].mxu1 }
 0x5fe   :  { %v4982_v55 = vmul.f32 %v10929_v6, %v10929_v6  ;;  %v4899_v30 = vadd.f32 %v4898_v18, %v10931_v12  ;;  %v4984_v61 = vmul.f32 %v10931_v12, %v10931_v12  ;;  %12417 = vst [vmem:[#allocation49_spill] sm:$0xff] %v10939_v35  ;;  %12418 = vst [vmem:[#allocation118_spill] sm:$0xff] %v10941_v48  ;;  %v10946_v43 = vpop.f32.mrb[99].mxu0  ;;  %v10948_v60 = vpop.f32.mrb[115].mxu1 }
 0x5ff   :  { %v5132_v14 = vadd.f32 %v5131_v37, %v4981_v23  ;;  %v5174_v34 = vadd.f32 %v5173_v56, %v4983_v26  ;;  %v4837_v39 = vadd.f32 %v4836_v13, %v10939_v35  ;;  %v4989_v45 = vmul.f32 %v10939_v35, %v10939_v35  ;;  %12419 = vst [vmem:[#allocation119_spill] sm:$0xff] %v10946_v43 }
 0x600   :  { %12420 = vst [vmem:[#allocation120_spill] sm:$0xff] %v10948_v60  ;;  %v5153_v52 = vadd.f32 %v5152_v49, %v4982_v55  ;;  %v5195_v18 = vadd.f32 %v5194_v42, %v4984_v61  ;;  %v4879_v5 = vadd.f32 %v4878_v22, %v10941_v48  ;;  %v4991_v41 = vmul.f32 %v10941_v48, %v10941_v48 }
 0x601   :  { %v5133_v12 = vadd.f32 %v5132_v14, %v4989_v45  ;;  %v4858_v37 = vadd.f32 %v4857_v27, %v10946_v43  ;;  %v4990_v56 = vmul.f32 %v10946_v43, %v10946_v43  ;;  %v4900_v13 = vadd.f32 %v4899_v30, %v10948_v60 }
 0x602   :  { %v5175_v23 = vadd.f32 %v5174_v34, %v4991_v41  ;;  %v4992_v26 = vmul.f32 %v10948_v60, %v10948_v60 }
 0x603   :  { %v5154_v35 = vadd.f32 %v5153_v52, %v4990_v56  ;;  %v10959_v42 = vpop.f32.mrb[100].mxu0  ;;  %v10961_v22 = vpop.f32.mrb[116].mxu1 }
 0x604   :  { %v5196_v49 = vadd.f32 %v5195_v18, %v4992_v26  ;;  %12421 = vst [vmem:[#allocation121_spill] sm:$0xff] %v10959_v42  ;;  %12422 = vst [vmem:[#allocation52_spill] sm:$0xff] %v10961_v22  ;;  %v4838_v55 = vadd.f32 %v4837_v39, %v10959_v42  ;;  %v4997_v27 = vmul.f32 %v10959_v42, %v10959_v42  ;;  %v10969_v41 = vpop.f32.mrb[101].mxu0  ;;  %v10971_v14 = vpop.f32.mrb[117].mxu1 }
 0x605   :  { %v4880_v61 = vadd.f32 %v4879_v5, %v10961_v22  ;;  %v4999_v30 = vmul.f32 %v10961_v22, %v10961_v22  ;;  %12423 = vst [vmem:[#allocation54_spill] sm:$0xff] %v10969_v41  ;;  %12424 = vst [vmem:[#allocation51_spill] sm:$0xff] %v10971_v14  ;;  %v4859_v34 = vadd.f32 %v4858_v37, %v10969_v41  ;;  %v10979_v18 = vpop.f32.mrb[102].mxu0  ;;  %v10981_v5 = vpop.f32.mrb[118].mxu1 }
 0x606   :  { %v4998_v45 = vmul.f32 %v10969_v41, %v10969_v41  ;;  %v4901_v52 = vadd.f32 %v4900_v13, %v10971_v14  ;;  %v5000_v39 = vmul.f32 %v10971_v14, %v10971_v14  ;;  %12425 = vst [vmem:[#allocation53_spill] sm:$0xff] %v10979_v18  ;;  %12426 = vst [vmem:[#allocation122_spill] sm:$0xff] %v10981_v5  ;;  %v10986_v37 = vpop.f32.mrb[103].mxu0  ;;  %v10988_v48 = vpop.f32.mrb[119].mxu1 }
 0x607   :  { %v5134_v56 = vadd.f32 %v5133_v12, %v4997_v27  ;;  %v5176_v26 = vadd.f32 %v5175_v23, %v4999_v30  ;;  %v4839_v22 = vadd.f32 %v4838_v55, %v10979_v18  ;;  %v5005_v42 = vmul.f32 %v10979_v18, %v10979_v18  ;;  %12427 = vst [vmem:[#allocation123_spill] sm:$0xff] %v10986_v37 }
 0x608   :  { %12428 = vst [vmem:[#allocation124_spill] sm:$0xff] %v10988_v48  ;;  %v5155_v41 = vadd.f32 %v5154_v35, %v4998_v45  ;;  %v5197_v13 = vadd.f32 %v5196_v49, %v5000_v39  ;;  %v4881_v60 = vadd.f32 %v4880_v61, %v10981_v5  ;;  %v5007_v14 = vmul.f32 %v10981_v5, %v10981_v5 }
 0x609   :  { %v5135_v43 = vadd.f32 %v5134_v56, %v5005_v42  ;;  %v4860_v12 = vadd.f32 %v4859_v34, %v10986_v37  ;;  %v5006_v23 = vmul.f32 %v10986_v37, %v10986_v37  ;;  %v4902_v55 = vadd.f32 %v4901_v52, %v10988_v48 }
 0x60a   :  { %v5177_v27 = vadd.f32 %v5176_v26, %v5007_v14  ;;  %v5008_v30 = vmul.f32 %v10988_v48, %v10988_v48 }
 0x60b   :  { %v5156_v18 = vadd.f32 %v5155_v41, %v5006_v23  ;;  %v10999_v49 = vpop.f32.mrb[104].mxu0  ;;  %v11001_v61 = vpop.f32.mrb[120].mxu1 }
 0x60c   :  { %v5198_v35 = vadd.f32 %v5197_v13, %v5008_v30  ;;  %12429 = vst [vmem:[#allocation125_spill] sm:$0xff] %v10999_v49  ;;  %12430 = vst [vmem:[#allocation56_spill] sm:$0xff] %v11001_v61  ;;  %v4840_v45 = vadd.f32 %v4839_v22, %v10999_v49  ;;  %v5013_v42 = vmul.f32 %v10999_v49, %v10999_v49  ;;  %v11009_v14 = vpop.f32.mrb[105].mxu0  ;;  %v11011_v39 = vpop.f32.mrb[121].mxu1 }
 0x60d   :  { %v4882_v34 = vadd.f32 %v4881_v60, %v11001_v61  ;;  %v5015_v52 = vmul.f32 %v11001_v61, %v11001_v61  ;;  %12431 = vst [vmem:[#allocation126_spill] sm:$0xff] %v11009_v14  ;;  %12432 = vst [vmem:[#allocation127_spill] sm:$0xff] %v11011_v39  ;;  %v4861_v41 = vadd.f32 %v4860_v12, %v11009_v14  ;;  %v11019_v13 = vpop.f32.mrb[106].mxu0  ;;  %v11021_v60 = vpop.f32.mrb[122].mxu1 }
 0x60e   :  { %v5014_v56 = vmul.f32 %v11009_v14, %v11009_v14  ;;  %v4903_v26 = vadd.f32 %v4902_v55, %v11011_v39  ;;  %v5016_v22 = vmul.f32 %v11011_v39, %v11011_v39  ;;  %12433 = vst [vmem:[#allocation128_spill] sm:$0xff] %v11019_v13  ;;  %12434 = vst [vmem:[#allocation129_spill] sm:$0xff] %v11021_v60  ;;  %v11026_v12 = vpop.f32.mrb[107].mxu0  ;;  %v11028_v5 = vpop.f32.mrb[123].mxu1 }
 0x60f   :  { %v5136_v23 = vadd.f32 %v5135_v43, %v5013_v42  ;;  %v5178_v30 = vadd.f32 %v5177_v27, %v5015_v52  ;;  %v4841_v61 = vadd.f32 %v4840_v45, %v11019_v13  ;;  %v5021_v49 = vmul.f32 %v11019_v13, %v11019_v13  ;;  %12435 = vst [vmem:[#allocation59_spill] sm:$0xff] %v11026_v12 }
 0x610   :  { %12436 = vst [vmem:[#allocation132_spill] sm:$0xff] %v11028_v5  ;;  %v5157_v14 = vadd.f32 %v5156_v18, %v5014_v56  ;;  %v5199_v55 = vadd.f32 %v5198_v35, %v5016_v22  ;;  %v4883_v48 = vadd.f32 %v4882_v34, %v11021_v60  ;;  %v5023_v39 = vmul.f32 %v11021_v60, %v11021_v60 }
 0x611   :  { %v5137_v37 = vadd.f32 %v5136_v23, %v5021_v49  ;;  %v4862_v43 = vadd.f32 %v4861_v41, %v11026_v12  ;;  %v5022_v27 = vmul.f32 %v11026_v12, %v11026_v12  ;;  %v4904_v45 = vadd.f32 %v4903_v26, %v11028_v5 }
 0x612   :  { %v5179_v42 = vadd.f32 %v5178_v30, %v5023_v39  ;;  %v5024_v52 = vmul.f32 %v11028_v5, %v11028_v5 }
 0x613   :  { %v5158_v13 = vadd.f32 %v5157_v14, %v5022_v27  ;;  %v11039_v35 = vpop.f32.mrb[108].mxu0  ;;  %v11041_v34 = vpop.f32.mrb[124].mxu1 }
 0x614   :  { %v5200_v18 = vadd.f32 %v5199_v55, %v5024_v52  ;;  %12437 = vst [vmem:[#allocation131_spill] sm:$0xff] %v11039_v35  ;;  %12438 = vst [vmem:[#allocation55_spill] sm:$0xff] %v11041_v34  ;;  %v4842_v56 = vadd.f32 %v4841_v61, %v11039_v35  ;;  %v5029_v49 = vmul.f32 %v11039_v35, %v11039_v35  ;;  %v11049_v39 = vpop.f32.mrb[109].mxu0  ;;  %v11051_v22 = vpop.f32.mrb[125].mxu1 }
 0x615   :  { %v4884_v41 = vadd.f32 %v4883_v48, %v11041_v34  ;;  %v5031_v26 = vmul.f32 %v11041_v34, %v11041_v34  ;;  %12439 = vst [vmem:[#allocation58_spill] sm:$0xff] %v11049_v39  ;;  %12440 = vst [vmem:[#allocation63_spill] sm:$0xff] %v11051_v22  ;;  %v4863_v14 = vadd.f32 %v4862_v43, %v11049_v39  ;;  %v11059_v55 = vpop.f32.mrb[110].mxu0  ;;  %v11061_v48 = vpop.f32.mrb[126].mxu1 }
 0x616   :  { %v5030_v23 = vmul.f32 %v11049_v39, %v11049_v39  ;;  %v4905_v30 = vadd.f32 %v4904_v45, %v11051_v22  ;;  %v5032_v61 = vmul.f32 %v11051_v22, %v11051_v22  ;;  %12441 = vst [vmem:[#allocation57_spill] sm:$0xff] %v11059_v55  ;;  %12442 = vst [vmem:[#allocation61_spill] sm:$0xff] %v11061_v48  ;;  %v11066_v43 = vpop.f32.mrb[111].mxu0  ;;  %v11068_v60 = vpop.f32.mrb[127].mxu1 }
 0x617   :  { %v5138_v27 = vadd.f32 %v5137_v37, %v5029_v49  ;;  %v5180_v52 = vadd.f32 %v5179_v42, %v5031_v26  ;;  %v4843_v34 = vadd.f32 %v4842_v56, %v11059_v55  ;;  %v5037_v35 = vmul.f32 %v11059_v55, %v11059_v55  ;;  %12443 = vst [vmem:[#allocation65_spill] sm:$0xff] %v11066_v43 }
 0x618   :  { %v5159_v39 = vadd.f32 %v5158_v13, %v5030_v23  ;;  %v5201_v45 = vadd.f32 %v5200_v18, %v5032_v61  ;;  %v4885_v5 = vadd.f32 %v4884_v41, %v11061_v48  ;;  %v5039_v22 = vmul.f32 %v11061_v48, %v11061_v48 }
 0x619   :  { %v4844_v12 = vrot.slane %v4843_v34, 4  ;;  %v5139_v6 = vadd.f32 %v5138_v27, %v5037_v35  ;;  %v4864_v37 = vadd.f32 %v4863_v14, %v11066_v43  ;;  %v5038_v42 = vmul.f32 %v11066_v43, %v11066_v43 }
 0x61a   :  { %v4886_v56 = vrot.slane %v4885_v5, 4  ;;  %v5181_v49 = vadd.f32 %v5180_v52, %v5039_v22  ;;  %v4906_v26 = vadd.f32 %v4905_v30, %v11068_v60  ;;  %v5040_v13 = vmul.f32 %v11068_v60, %v11068_v60 }
 0x61b   :  { %v4845_v18 = vadd.f32 %v4844_v12, %v4843_v34  ;;  %v5140_v23 = vrot.slane %v5139_v6, 4  ;;  %v4865_v41 = vrot.slane %v4864_v37, 4  ;;  %v5160_v61 = vadd.f32 %v5159_v39, %v5038_v42 }
 0x61c   :  { %v4887_v55 = vadd.f32 %v4886_v56, %v4885_v5  ;;  %v5182_v48 = vrot.slane %v5181_v49, 4  ;;  %v4907_v54 = vrot.slane %v4906_v26, 4  ;;  %v5202_v35 = vadd.f32 %v5201_v45, %v5040_v13 }
 0x61d   :  { %v4846_v27 = vrot.slane %v4845_v18, 2  ;;  %v5141_v14 = vadd.f32 %v5140_v23, %v5139_v6  ;;  %v4866_v32 = vadd.f32 %v4865_v41, %v4864_v37  ;;  %v5161_v1 = vrot.slane %v5160_v61, 4 }
 0x61e   :  { %v4888_v43 = vrot.slane %v4887_v55, 2  ;;  %v5183_v19 = vadd.f32 %v5182_v48, %v5181_v49  ;;  %v4908_v22 = vadd.f32 %v4907_v54, %v4906_v26  ;;  %v5203_v52 = vrot.slane %v5202_v35, 4 }
 0x61f   :  { %v4847_v30 = vadd.f32 %v4846_v27, %v4845_v18  ;;  %v5142_v16 = vrot.slane %v5141_v14, 2  ;;  %v4867_v17 = vrot.slane %v4866_v32, 2  ;;  %v5162_v47 = vadd.f32 %v5161_v1, %v5160_v61 }
 0x620   :  { %v4889_v12 = vadd.f32 %v4888_v43, %v4887_v55  ;;  %v5184_v34 = vrot.slane %v5183_v19, 2  ;;  %v4909_v29 = vrot.slane %v4908_v22, 2  ;;  %v5204_v39 = vadd.f32 %v5203_v52, %v5202_v35 }
 0x621   :  { %v4848_v5 = vrot.slane %v4847_v30, 1  ;;  %v5143_v42 = vadd.f32 %v5142_v16, %v5141_v14  ;;  %v4868_v56 = vadd.f32 %v4867_v17, %v4866_v32  ;;  %v5163_v45 = vrot.slane %v5162_v47, 2 }
 0x622   :  { %v4890_v13 = vrot.slane %v4889_v12, 1  ;;  %v5185_v6 = vadd.f32 %v5184_v34, %v5183_v19  ;;  %v4910_v37 = vadd.f32 %v4909_v29, %v4908_v22  ;;  %v5205_v23 = vrot.slane %v5204_v39, 2 }
 0x623   :  { %v4849_v41 = vadd.f32 %v4848_v5, %v4847_v30  ;;  %v5144_v48 = vrot.slane %v5143_v42, 1  ;;  %v4869_v54 = vrot.slane %v4868_v56, 1  ;;  %v5164_v49 = vadd.f32 %v5163_v45, %v5162_v47 }
 0x624   :  { %v4891_v26 = vadd.f32 %v4890_v13, %v4889_v12  ;;  %v5186_v18 = vrot.slane %v5185_v6, 1  ;;  %v4911_v27 = vrot.slane %v4910_v37, 1  ;;  %v5206_v1 = vadd.f32 %v5205_v23, %v5204_v39 }
 0x625   :  { %v5145_v55 = vadd.f32 %v5144_v48, %v5143_v42  ;;  %v5213_v43 = vmul.f32 0.0078125, %v4849_v41  ;;  %v4870_v61 = vadd.f32 %v4869_v54, %v4868_v56  ;;  %v5165_v35 = vrot.slane %v5164_v49, 1 }
 0x626   :  { %v5187_v52 = vadd.f32 %v5186_v18, %v5185_v6  ;;  %v5215_v16 = vmul.f32 0.0078125, %v4891_v26  ;;  %v4912_v17 = vadd.f32 %v4911_v27, %v4910_v37  ;;  %v5207_v32 = vrot.slane %v5206_v1, 1 }
 0x627   :  { %v5221_v14 = vmul.f32 0.0078125, %v5145_v55  ;;  %v5229_v19 = vmul.f32 %v5213_v43, %v5213_v43  ;;  %v5166_v29 = vadd.f32 %v5165_v35, %v5164_v49  ;;  %v5214_v22 = vmul.f32 0.0078125, %v4870_v61 }
 0x628   :  { %v5223_v30 = vmul.f32 0.0078125, %v5187_v52  ;;  %v5231_v34 = vmul.f32 %v5215_v16, %v5215_v16  ;;  %v5208_v5 = vadd.f32 %v5207_v32, %v5206_v1  ;;  %v5216_v47 = vmul.f32 0.0078125, %v4912_v17 }
 0x629   :  { %v5237_v12 = vsub.f32 %v5221_v14, %v5229_v19  ;;  %v5222_v45 = vmul.f32 0.0078125, %v5166_v29  ;;  %v5230_v13 = vmul.f32 %v5214_v22, %v5214_v22  ;;  %v12444_v17 = vcombine.low %v10752_v25, %v10755_v0  ;;  %v5241_v19 = vld [vmem:[%s11752_s10] sm:$0xff] }
 0x62a   :  { %v5239_v39 = vsub.f32 %v5223_v30, %v5231_v34  ;;  %v5224_v42 = vmul.f32 0.0078125, %v5208_v5  ;;  %v5232_v23 = vmul.f32 %v5216_v47, %v5216_v47  ;;  %v12445_v30 = vld [vmem:[#allocation23_spill] sm:$0xff]  ;;  %v12447_v25 = vld [vmem:[#allocation26_spill] sm:$0xff] }
 0x62b   :  { %v5246_v56 = vadd.f32 0.8, %v5237_v12  ;;  %v5238_v41 = vsub.f32 %v5222_v45, %v5230_v13  ;;  %v5306_v32 = vrot.slane %v12444_v17, %v12380_v10  ;;  %v5337_v34 = vsub.s32 4, %v12445_v30 }
 0x62c   :  { %v5248_v6 = vadd.f32 0.8, %v5239_v39  ;;  %v5240_v48 = vsub.f32 %v5224_v42, %v5232_v23  ;;  %v5341_v5 = vsub.s32 5, %v12445_v30  ;;  %v5345_v12 = vsub.s32 6, %v12445_v30  ;;  %v12446_v39 = vld [vmem:[#allocation25_spill] sm:$0xff] }
 0x62d   :  { %8204 = vrsqrt.f32 %v5246_v56  ;;  %v5247_v37 = vadd.f32 0.8, %v5238_v41  ;;  %v5349_v45 = vsub.s32 7, %v12445_v30  ;;  %v12448_v23 = vld [vmem:[#allocation85_spill] sm:$0xff]  ;;  %v12449_v41 = vld [vmem:[#allocation86_spill] sm:$0xff] }
 0x62e   :  { %8206 = vrsqrt.f32 %v5248_v6  ;;  %v5249_v54 = vadd.f32 0.8, %v5240_v48 }
 0x62f   :  { %8208 = vrsqrt.f32 %v5247_v37 }
 0x630   :  { %8210 = vrsqrt.f32 %v5249_v54 }
 0x637   :  { %v8205_v49 = vpop.eup %8204 }
 0x638   :  { %v8207_v26 = vpop.eup %8206 }
 0x639   :  { %v8209_v18 = vpop.eup %8208 }
 0x63a   :  { %v8211_v27 = vpop.eup %8210  ;;  %v5268_v1 = vcombine.low %v8205_v49, %v8209_v18 }
 0x63b   :  { %v5269_v55 = vcombine.low %v8207_v26, %v8211_v27 }
 0x63c   :  { %v5290_v61 = vrot.slane %v5268_v1, %v12380_v10 }
 0x63d   :  { %v5297_v35 = vrot.slane %v5269_v55, %v12380_v10 }
 0x63f   :  { %v5299_v52 = vcombine.low %v5290_v61, %v5297_v35 }
 0x641   :  { %v5313_v14 = vrot.slane %v5299_v52, %v12380_v10 }
 0x643   :  { %v5314_v29 = vcombine.low %v5306_v32, %v5313_v14 }
 0x645   :  { %v5316_v13 = vmul.f32 %v5314_v29, %v5241_v19 }
 0x647   :  { %v11094_v42 = vrot.slane %v5316_v13, %v12446_v39  ;;  %v11097_v0 = vrot.slane %v5316_v13, %v12447_v25  ;;  %v11100_v56 = vrot.slane %v5316_v13, %v12448_v23  ;;  %v11103_v6 = vrot.slane %v5316_v13, %v12449_v41 }
 0x648   :  { %v11107_v48 = vrot.slane %v5316_v13, %v5337_v34  ;;  %v11111_v37 = vrot.slane %v5316_v13, %v5341_v5  ;;  %v11115_v54 = vrot.slane %v5316_v13, %v5345_v12  ;;  %v11119_v49 = vrot.slane %v5316_v13, %v5349_v45 }
 0x649   :  { %v5359_v26 = vmul.f32 %v11094_v42, %v10735_v20  ;;  %v5360_v18 = vmul.f32 %v11097_v0, %v10741_v62  ;;  %v5361_v27 = vmul.f32 %v11100_v56, %v10737_v21  ;;  %v5362_v1 = vmul.f32 %v11103_v6, %v10745_v50 }
 0x64a   :  { %12450 = vst [vmem:[#allocation24_spill] sm:$0xff] %v11107_v48  ;;  %12451 = vst [vmem:[#allocation23_spill] sm:$0xff] %v11115_v54  ;;  %v5363_v55 = vmul.f32 %v11107_v48, %v5213_v43  ;;  %v5364_v61 = vmul.f32 %v11111_v37, %v5214_v22  ;;  %v5365_v35 = vmul.f32 %v11115_v54, %v5215_v16 }
 0x64b   :  { %v5366_v52 = vmul.f32 %v11119_v49, %v5216_v47  ;;  %v5375_v17 = vcombine.low %v5359_v26, %v5360_v18  ;;  %v5376_v32 = vcombine.low %v5361_v27, %v5362_v1  ;;  %v11135_v20 = vmul.f32 %v11119_v49, %v11068_v60  ;;  %v12452_v1 = vld [vmem:[#allocation62_spill] sm:$0xff] }
 0x64c   :  { %v5427_v21 = vmul.f32 %v11097_v0, %v10419_v36  ;;  %v5377_v62 = vcombine.low %v5363_v55, %v5364_v61  ;;  %v5435_v50 = vmul.f32 %v11097_v0, %v10443_v9  ;;  %v5429_v43 = vmul.f32 %v11103_v6, %v10421_v51  ;;  %v12453_v61 = vld [vmem:[#allocation64_spill] sm:$0xff] }
 0x64d   :  { %v5378_v14 = vcombine.low %v5365_v35, %v5366_v52  ;;  %v5385_v16 = vrot.slane %v5375_v17, %v12380_v10  ;;  %v5392_v22 = vrot.slane %v5376_v32, %v12380_v10  ;;  %v5437_v47 = vmul.f32 %v11103_v6, %v10445_v15  ;;  %v12454_v35 = vld [vmem:[#allocation27_spill] sm:$0xff]  ;;  %v12456_v17 = vld [vmem:[#allocation29_spill] sm:$0xff]  ;;  %v12457_v32 = vld [vmem:[#allocation66_spill] sm:$0xff] }
 0x64e   :  { %v5426_v60 = vmul.f32 %v11094_v42, %v10415_v28  ;;  %v5399_v36 = vrot.slane %v5377_v62, %v12380_v10  ;;  %v5434_v9 = vmul.f32 %v11094_v42, %v10431_v8  ;;  %v5428_v51 = vmul.f32 %v11100_v56, %v10417_v38  ;;  %v12455_v52 = vld [vmem:[#allocation67_spill] sm:$0xff] }
 0x64f   :  { %v5406_v19 = vrot.slane %v5378_v14, %v12380_v10  ;;  %v5407_v29 = vcombine.low %v5385_v16, %v5392_v22  ;;  %v11157_v13 = vmul.f32 %v11100_v56, %v10433_v40  ;;  %v11161_v15 = vmul.f32 %v11097_v0, %v10465_v11  ;;  %v12458_v14 = vld [vmem:[#allocation28_spill] sm:$0xff] }
 0x650   :  { %v11165_v28 = vmul.f32 %v11097_v0, %v10482_v33  ;;  %v11169_v8 = vmul.f32 %v11103_v6, %v10467_v24  ;;  %v11173_v38 = vmul.f32 %v11103_v6, %v10484_v57  ;;  %v11177_v40 = vmul.f32 %v11094_v42, %v10455_v4 }
 0x651   :  { %v5408_v26 = vcombine.low %v5399_v36, %v5406_v19  ;;  %v5415_v11 = vrot.slane %v5407_v29, %v12380_v10  ;;  %v11182_v18 = vmul.f32 %v11094_v42, %v10475_v7  ;;  %v11186_v33 = vmul.f32 %v11100_v56, %v10457_v63  ;;  %v5317_v63 = vld [vmem:[%s11753_s11] sm:$0xff]  ;;  %v12459_v36 = vld [vmem:[#allocation60_spill] sm:$0xff] }
 0x652   :  { %v11190_v24 = vmul.f32 %v11100_v56, %v10477_v2  ;;  %v11195_v4 = vmul.f32 %v11097_v0, %v10505_v44  ;;  %v11199_v27 = vmul.f32 %v11097_v0, %v10522_v58  ;;  %v11203_v7 = vmul.f32 %v11103_v6, %v10507_v31  ;;  %v12460_v29 = vld [vmem:[#allocation30_spill] sm:$0xff] }
 0x653   :  { %v5422_v57 = vrot.slane %v5408_v26, %v12380_v10  ;;  %v11210_v2 = vmul.f32 %v11103_v6, %v10524_v59  ;;  %v11214_v44 = vmul.f32 %v11094_v42, %v10495_v53  ;;  %v11218_v58 = vmul.f32 %v11094_v42, %v10515_v3 }
 0x654   :  { %v11222_v31 = vmul.f32 %v11100_v56, %v10497_v46  ;;  %v11226_v55 = vmul.f32 %v11100_v56, %v12452_v1  ;;  %v11230_v59 = vmul.f32 %v11097_v0, %v12453_v61  ;;  %v11234_v53 = vmul.f32 %v11097_v0, %v12454_v35  ;;  %v12462_v1 = vld [vmem:[#allocation37_spill] sm:$0xff] }
 0x655   :  { %v5423_v10 = vcombine.low %v5415_v11, %v5422_v57  ;;  %v11238_v3 = vmul.f32 %v11103_v6, %v12455_v52  ;;  %v11242_v46 = vmul.f32 %v11103_v6, %v12456_v17  ;;  %v11246_v62 = vmul.f32 %v11094_v42, %v12457_v32  ;;  %v12461_v11 = vld [vmem:[#allocation31_spill] sm:$0xff]  ;;  %v12463_v35 = vld [vmem:[#allocation33_spill] sm:$0xff]  ;;  %v12465_v17 = vld [vmem:[#allocation32_spill] sm:$0xff] }
 0x656   :  { %v11250_v16 = vmul.f32 %v11094_v42, %v12458_v14  ;;  %v11254_v19 = vmul.f32 %v11100_v56, %v12459_v36  ;;  %v11258_v26 = vmul.f32 %v11100_v56, %v12460_v29  ;;  %v11262_v57 = vmul.f32 %v11097_v0, %v12461_v11 }
 0x657   :  { %v5425_v22 = vsub.f32 %v5317_v63, %v5423_v10  ;;  %v11266_v61 = vmul.f32 %v11097_v0, %v12462_v1  ;;  %v11270_v52 = vmul.f32 %v11103_v6, %v12463_v35  ;;  %v12464_v63 = vld [vmem:[#allocation38_spill] sm:$0xff]  ;;  %v11278_v32 = vmul.f32 %v11094_v42, %v12465_v17 }
 0x658   :  { %v11274_v10 = vmul.f32 %v11103_v6, %v12464_v63 }
 0x659   :  { %v11281_v14 = vrot.slane %v5425_v22, %v12446_v39  ;;  %v11284_v36 = vrot.slane %v5425_v22, %v12447_v25  ;;  %v11287_v29 = vrot.slane %v5425_v22, %v12448_v23  ;;  %v11290_v11 = vrot.slane %v5425_v22, %v12449_v41 }
 0x65a   :  { %v11294_v1 = vrot.slane %v5425_v22, %v5337_v34  ;;  %v11298_v35 = vrot.slane %v5425_v22, %v5341_v5  ;;  %v11302_v39 = vrot.slane %v5425_v22, %v5345_v12  ;;  %v11306_v25 = vrot.slane %v5425_v22, %v5349_v45 }
 0x65b   :  { %v5596_v23 = vadd.f32 %v11284_v36, %v5427_v21  ;;  %v5604_v41 = vadd.f32 %v11284_v36, %v5435_v50  ;;  %v5598_v63 = vadd.f32 %v11290_v11, %v5429_v43  ;;  %v5606_v34 = vadd.f32 %v11290_v11, %v5437_v47 }
 0x65c   :  { %12466 = vst [vmem:[#allocation25_spill] sm:$0xff] %v11294_v1  ;;  %12467 = vst [vmem:[#allocation26_spill] sm:$0xff] %v11302_v39  ;;  %v11314_v5 = vadd.f32 %v11306_v25, %v11135_v20  ;;  %v5595_v17 = vadd.f32 %v11281_v14, %v5426_v60  ;;  %v5603_v12 = vadd.f32 %v11281_v14, %v5434_v9 }
 0x65d   :  { %12468 = vst [vmem:[#allocation85_spill] sm:$0xff] %v11306_v25  ;;  %v5597_v30 = vadd.f32 %v11287_v29, %v5428_v51  ;;  %vm5724_vm0 = vcmp.gt.f32.partialorder %v5596_v23, 0.0  ;;  %vm5732_vm1 = vcmp.gt.f32.partialorder %v5604_v41, 0.0  ;;  %v5852_v45 = vmul.f32 0.2, %v5596_v23 }
 0x65e   :  { %12469 = vst [vmem:[#allocation86_spill] sm:$0xff] %v11314_v5  ;;  %v5860_v21 = vmul.f32 0.2, %v5604_v41  ;;  %vm5726_vm2 = vcmp.gt.f32.partialorder %v5598_v63, 0.0  ;;  %vm5734_vm3 = vcmp.gt.f32.partialorder %v5606_v34, 0.0  ;;  %vm5723_vm4 = vcmp.gt.f32.partialorder %v5595_v17, 0.0 }
 0x65f   :  { %v5854_v50 = vmul.f32 0.2, %v5598_v63  ;;  %v5862_v43 = vmul.f32 0.2, %v5606_v34  ;;  %v5980_v22 = vsel %vm5724_vm0, %v5596_v23, %v5852_v45  ;;  %vm5731_vm5 = vcmp.gt.f32.partialorder %v5603_v12, 0.0 }
 0x660   :  { %v5988_v47 = vsel %vm5732_vm1, %v5604_v41, %v5860_v21  ;;  %v5851_v60 = vmul.f32 0.2, %v5595_v17  ;;  %v5859_v9 = vmul.f32 0.2, %v5603_v12  ;;  %v5605_v51 = vadd.f32 %v11287_v29, %v11157_v13 }
 0x661   :  { %v6108_v20 = vpack.c.bf16 %v5988_v47, %v5980_v22  ;;  %v5982_v5 = vsel %vm5726_vm2, %v5598_v63, %v5854_v50  ;;  %v5990_v39 = vsel %vm5734_vm3, %v5606_v34, %v5862_v43  ;;  %vm5725_vm6 = vcmp.gt.f32.partialorder %v5597_v30, 0.0  ;;  %v8153_v34 = vld [vmem:[#allocation14 + $0x100] sm:$0xff]   ;;  %v8157_v22 = vld [vmem:[#allocation14 + $0x108] sm:$0xff]  }
 0x662   :  { %v6110_v54 = vpack.c.bf16 %v5990_v39, %v5982_v5  ;;  %v5979_v1 = vsel %vm5723_vm4, %v5595_v17, %v5851_v60  ;;  %v5853_v25 = vmul.f32 0.2, %v5597_v30  ;;  %v5612_v48 = vadd.f32 %v11284_v36, %v11161_v15  ;;  %v8156_v17 = vld [vmem:[#allocation14 + $0x148] sm:$0xff]   ;;  %v8160_v60 = vld [vmem:[#allocation14 + $0x150] sm:$0xff]  }
 0x663   :  { %6722 = vmatprep.mubr.bf16.mxu0 %v6108_v20  ;;  %v5620_v23 = vadd.f32 %v11284_v36, %v11165_v28  ;;  %v5987_v41 = vsel %vm5731_vm5, %v5603_v12, %v5859_v9  ;;  %vm5733_vm7 = vcmp.gt.f32.partialorder %v5605_v51, 0.0  ;;  %v5861_v63 = vmul.f32 0.2, %v5605_v51  ;;  %v8155_v28 = vld [vmem:[#allocation14 + $0x180] sm:$0xff]  }
 0x664   :  { %6819 = vmatprep.mubr.bf16.mxu1 %v6110_v54  ;;  %v5614_v39 = vadd.f32 %v11290_v11, %v11169_v8  ;;  %v6107_v5 = vpack.c.bf16 %v5987_v41, %v5979_v1  ;;  %v5981_v13 = vsel %vm5725_vm6, %v5597_v30, %v5853_v25  ;;  %vm5740_vm8 = vcmp.gt.f32.partialorder %v5612_v48, 0.0  ;;  %v8158_v8 = vld [vmem:[#allocation14 + $0x1c8] sm:$0xff]  }
 0x665   :  { %vm5748_vm9 = vcmp.gt.f32.partialorder %v5620_v23, 0.0  ;;  %v5989_v45 = vsel %vm5733_vm7, %v5605_v51, %v5861_v63  ;;  %v5868_v21 = vmul.f32 0.2, %v5612_v48  ;;  %v5876_v50 = vmul.f32 0.2, %v5620_v23 }
 0x666   :  { %v5622_v15 = vadd.f32 %v11290_v11, %v11173_v38  ;;  %6723 = vmatmul.mubr.bf16.vlgmr.msra.gmra.mrb[112].mxu0 %v6107_v5  ;;  %v6109_v54 = vpack.c.bf16 %v5989_v45, %v5981_v13  ;;  %vm5742_vm10 = vcmp.gt.f32.partialorder %v5614_v39, 0.0  ;;  %v5870_v12 = vmul.f32 0.2, %v5614_v39 }
 0x667   :  { %v5611_v43 = vadd.f32 %v11281_v14, %v11177_v40  ;;  %7686 = vmatpush3.bf16.msra.mxu0 %v8153_v34  ;;  %v5996_v1 = vsel %vm5740_vm8, %v5612_v48, %v5868_v21  ;;  %v6004_v25 = vsel %vm5748_vm9, %v5620_v23, %v5876_v50  ;;  %v5619_v38 = vadd.f32 %v11281_v14, %v11182_v18  ;;  %v8159_v23 = vld [vmem:[#allocation14 + $0x188] sm:$0xff]   ;;  %v8162_v18 = vld [vmem:[#allocation14 + $0x1d0] sm:$0xff]  }
 0x668   :  { %vm5750_vm11 = vcmp.gt.f32.partialorder %v5622_v15, 0.0  ;;  %v5878_v30 = vmul.f32 0.2, %v5622_v15  ;;  %6820 = vmatmul.mubr.bf16.vlgmr.msra.gmra.mrb[128].mxu1 %v6109_v54  ;;  %v6116_v47 = vpack.c.bf16 %v6004_v25, %v5996_v1  ;;  %v5998_v20 = vsel %vm5742_vm10, %v5614_v39, %v5870_v12  ;;  %7687 = vmatprep.subr.bf16.mxu0 %v8156_v17  ;;  %v8161_v17 = vld [vmem:[#allocation14 + $0x110] sm:$0xff]   ;;  %v8166_v25 = vld [vmem:[#allocation14 + $0x1d8] sm:$0xff]  }
 0x669   :  { %vm5739_vm12 = vcmp.gt.f32.partialorder %v5611_v43, 0.0  ;;  %7750 = vmatpush3.bf16.msra.mxu1 %v8155_v28  ;;  %v5867_v51 = vmul.f32 0.2, %v5611_v43  ;;  %v5613_v40 = vadd.f32 %v11287_v29, %v11186_v33  ;;  %v5621_v48 = vadd.f32 %v11287_v29, %v11190_v24  ;;  %v8163_v12 = vld [vmem:[#allocation14 + $0x190] sm:$0xff]  }
 0x66a   :  { %v6006_v9 = vsel %vm5750_vm11, %v5622_v15, %v5878_v30  ;;  %6730 = vmatprep.mubr.bf16.mxu0 %v6116_v47  ;;  %vm5747_vm13 = vcmp.gt.f32.partialorder %v5619_v38, 0.0  ;;  %v5875_v63 = vmul.f32 0.2, %v5619_v38  ;;  %v5628_v34 = vadd.f32 %v11284_v36, %v11195_v4  ;;  %7751 = vmatprep.subr.bf16.mxu1 %v8158_v8  ;;  %v8165_v47 = vld [vmem:[#allocation14 + $0x118] sm:$0xff]  }
 0x66b   :  { %v6118_v41 = vpack.c.bf16 %v6006_v9, %v5998_v20  ;;  %v5995_v39 = vsel %vm5739_vm12, %v5611_v43, %v5867_v51  ;;  %vm5741_vm14 = vcmp.gt.f32.partialorder %v5613_v40, 0.0  ;;  %vm5749_vm15 = vcmp.gt.f32.partialorder %v5621_v48, 0.0  ;;  %7688 = vmatpush3.bf16.msra.mxu0 %v8157_v22  ;;  %v8164_v43 = vld [vmem:[#allocation14 + $0x158] sm:$0xff]  }
 0x66c   :  { %v5869_v5 = vmul.f32 0.2, %v5613_v40  ;;  %v6003_v33 = vsel %vm5747_vm13, %v5619_v38, %v5875_v63  ;;  %v5877_v13 = vmul.f32 0.2, %v5621_v48  ;;  %v5636_v24 = vadd.f32 %v11284_v36, %v11199_v27  ;;  %7689 = vmatprep.subr.bf16.mxu0 %v8160_v60 }
 0x66d   :  { %6827 = vmatprep.mubr.bf16.mxu1 %v6118_v41  ;;  %vm5756_vm0 = vcmp.gt.f32.partialorder %v5628_v34, 0.0  ;;  %v6115_v45 = vpack.c.bf16 %v6003_v33, %v5995_v39  ;;  %v5884_v50 = vmul.f32 0.2, %v5628_v34  ;;  %v5630_v4 = vadd.f32 %v11290_v11, %v11203_v7  ;;  %7752 = vmatpush3.bf16.msra.mxu1 %v8159_v23  ;;  %v8168_v41 = vld [vmem:[#allocation14 + $0x160] sm:$0xff]  }
 0x66e   :  { %v5997_v21 = vsel %vm5741_vm14, %v5613_v40, %v5869_v5  ;;  %v6005_v15 = vsel %vm5749_vm15, %v5621_v48, %v5877_v13  ;;  %vm5764_vm1 = vcmp.gt.f32.partialorder %v5636_v24, 0.0  ;;  %v5892_v28 = vmul.f32 0.2, %v5636_v24  ;;  %7753 = vmatprep.subr.bf16.mxu1 %v8162_v18  ;;  %v8169_v33 = vld [vmem:[#allocation14 + $0x120] sm:$0xff]  }
 0x66f   :  { %v5638_v54 = vadd.f32 %v11290_v11, %v11210_v2  ;;  %6731 = vmatmul.mubr.bf16.gmra.mrb[116].mxu0 %v6115_v45  ;;  %v6117_v27 = vpack.c.bf16 %v6005_v15, %v5997_v21  ;;  %v6012_v8 = vsel %vm5756_vm0, %v5628_v34, %v5884_v50  ;;  %vm5758_vm2 = vcmp.gt.f32.partialorder %v5630_v4, 0.0  ;;  %v8171_v21 = vld [vmem:[#allocation14 + $0x1a0] sm:$0xff]  }
 0x670   :  { %v5886_v1 = vmul.f32 0.2, %v5630_v4  ;;  %v6020_v30 = vsel %vm5764_vm1, %v5636_v24, %v5892_v28  ;;  %v5627_v22 = vadd.f32 %v11281_v14, %v11214_v44  ;;  %7690 = vmatpush3.bf16.msra.mxu0 %v8161_v17  ;;  %v5635_v38 = vadd.f32 %v11281_v14, %v11218_v58  ;;  %v8167_v44 = vld [vmem:[#allocation14 + $0x198] sm:$0xff]   ;;  %v8170_v58 = vld [vmem:[#allocation14 + $0x1e0] sm:$0xff]  }
 0x671   :  { %vm5766_vm3 = vcmp.gt.f32.partialorder %v5638_v54, 0.0  ;;  %v5894_v7 = vmul.f32 0.2, %v5638_v54  ;;  %6828 = vmatmul.mubr.bf16.gmra.mrb[132].mxu1 %v6117_v27  ;;  %v6124_v2 = vpack.c.bf16 %v6020_v30, %v6012_v8  ;;  %v5629_v60 = vadd.f32 %v11287_v29, %v11222_v31  ;;  %7691 = vmatprep.subr.bf16.mxu0 %v8164_v43  ;;  %v8173_v43 = vld [vmem:[#allocation14 + $0x128] sm:$0xff]  }
 0x672   :  { %v6014_v20 = vsel %vm5758_vm2, %v5630_v4, %v5886_v1  ;;  %vm5755_vm4 = vcmp.gt.f32.partialorder %v5627_v22, 0.0  ;;  %v5883_v51 = vmul.f32 0.2, %v5627_v22  ;;  %v5637_v40 = vadd.f32 %v11287_v29, %v11226_v55  ;;  %7754 = vmatpush3.bf16.msra.mxu1 %v8163_v12  ;;  %v8174_v4 = vld [vmem:[#allocation14 + $0x1e8] sm:$0xff]  }
 0x673   :  { %v6022_v9 = vsel %vm5766_vm3, %v5638_v54, %v5894_v7  ;;  %6738 = vmatprep.mubr.bf16.mxu0 %v6124_v2  ;;  %vm5763_vm5 = vcmp.gt.f32.partialorder %v5635_v38, 0.0  ;;  %v5891_v23 = vmul.f32 0.2, %v5635_v38  ;;  %vm5757_vm6 = vcmp.gt.f32.partialorder %v5629_v60, 0.0  ;;  %7755 = vmatprep.subr.bf16.mxu1 %v8166_v25 }
 0x674   :  { %v6126_v48 = vpack.c.bf16 %v6022_v9, %v6014_v20  ;;  %v6011_v63 = vsel %vm5755_vm4, %v5627_v22, %v5883_v51  ;;  %vm5765_vm7 = vcmp.gt.f32.partialorder %v5637_v40, 0.0  ;;  %v5885_v31 = vmul.f32 0.2, %v5629_v60  ;;  %7692 = vmatpush3.bf16.msra.mxu0 %v8165_v47  ;;  %v8178_v20 = vld [vmem:[#allocation14 + $0x1f0] sm:$0xff]  }
 0x675   :  { %v5893_v34 = vmul.f32 0.2, %v5637_v40  ;;  %v6019_v18 = vsel %vm5763_vm5, %v5635_v38, %v5891_v23  ;;  %v5644_v55 = vadd.f32 %v11284_v36, %v11230_v59  ;;  %v5652_v39 = vadd.f32 %v11284_v36, %v11234_v53  ;;  %7693 = vmatprep.subr.bf16.mxu0 %v8168_v41  ;;  %v8172_v53 = vld [vmem:[#allocation14 + $0x168] sm:$0xff]   ;;  %v8177_v41 = vld [vmem:[#allocation14 + $0x130] sm:$0xff]  }
 0x676   :  { %6835 = vmatprep.mubr.bf16.mxu1 %v6126_v48  ;;  %v5646_v5 = vadd.f32 %v11290_v11, %v11238_v3  ;;  %v6123_v13 = vpack.c.bf16 %v6019_v18, %v6011_v63  ;;  %v6013_v24 = vsel %vm5757_vm6, %v5629_v60, %v5885_v31  ;;  %v5654_v45 = vadd.f32 %v11290_v11, %v11242_v46  ;;  %v8182_v18 = vld [vmem:[#allocation14 + $0x1f8] sm:$0xff]  }
 0x677   :  { %v6021_v17 = vsel %vm5765_vm7, %v5637_v40, %v5893_v34  ;;  %7756 = vmatpush3.bf16.msra.mxu1 %v8167_v44  ;;  %vm5772_vm8 = vcmp.gt.f32.partialorder %v5644_v55, 0.0  ;;  %vm5780_vm9 = vcmp.gt.f32.partialorder %v5652_v39, 0.0  ;;  %v5900_v59 = vmul.f32 0.2, %v5644_v55 }
 0x678   :  { %v6125_v50 = vpack.c.bf16 %v6021_v17, %v6013_v24  ;;  %7757 = vmatprep.subr.bf16.mxu1 %v8170_v58  ;;  %6739 = vmatmul.mubr.bf16.gmra.mrb[120].mxu0 %v6123_v13  ;;  %v5908_v3 = vmul.f32 0.2, %v5652_v39  ;;  %vm5774_vm10 = vcmp.gt.f32.partialorder %v5646_v5, 0.0  ;;  %vm5782_vm11 = vcmp.gt.f32.partialorder %v5654_v45, 0.0  ;;  %v8180_v58 = vld [vmem:[#allocation14 + $0x178] sm:$0xff]  }
 0x679   :  { %v5902_v15 = vmul.f32 0.2, %v5646_v5  ;;  %v6028_v28 = vsel %vm5772_vm8, %v5644_v55, %v5900_v59  ;;  %v5910_v54 = vmul.f32 0.2, %v5654_v45  ;;  %v5643_v46 = vadd.f32 %v11281_v14, %v11246_v62  ;;  %7694 = vmatpush3.bf16.msra.mxu0 %v8169_v33  ;;  %v8175_v62 = vld [vmem:[#allocation14 + $0x1a8] sm:$0xff]   ;;  %v12470_v55 = vld [vmem:[#allocation35_spill] sm:$0xff] }
 0x67a   :  { %6836 = vmatmul.mubr.bf16.gmra.mrb[136].mxu1 %v6125_v50  ;;  %v5651_v12 = vadd.f32 %v11281_v14, %v11250_v16  ;;  %v6036_v27 = vsel %vm5780_vm9, %v5652_v39, %v5908_v3  ;;  %v5645_v1 = vadd.f32 %v11287_v29, %v11254_v19  ;;  %v5653_v25 = vadd.f32 %v11287_v29, %v11258_v26  ;;  %v8176_v16 = vld [vmem:[#allocation14 + $0x170] sm:$0xff]   ;;  %v12471_v24 = vld [vmem:[#allocation34_spill] sm:$0xff]  ;;  %v12472_v3 = vld [vmem:[#allocation36_spill] sm:$0xff] }
 0x67b   :  { %v6030_v8 = vsel %vm5774_vm10, %v5646_v5, %v5902_v15  ;;  %7758 = vmatpush3.bf16.msra.mxu1 %v8171_v21  ;;  %v6132_v30 = vpack.c.bf16 %v6036_v27, %v6028_v28  ;;  %v6038_v7 = vsel %vm5782_vm11, %v5654_v45, %v5910_v54  ;;  %vm5771_vm12 = vcmp.gt.f32.partialorder %v5643_v46, 0.0  ;;  %7695 = vmatprep.subr.bf16.mxu0 %v8172_v53  ;;  %v8183_v59 = vld [vmem:[#allocation14 + $0x1b8] sm:$0xff]  }
 0x67c   :  { %vm5779_vm13 = vcmp.gt.f32.partialorder %v5651_v12, 0.0  ;;  %7759 = vmatprep.subr.bf16.mxu1 %v8174_v4  ;;  %v6134_v22 = vpack.c.bf16 %v6038_v7, %v6030_v8  ;;  %v5899_v47 = vmul.f32 0.2, %v5643_v46  ;;  %v5907_v2 = vmul.f32 0.2, %v5651_v12  ;;  %v12473_v54 = vld [vmem:[#allocation70_spill] sm:$0xff] }
 0x67d   :  { %vm5773_vm14 = vcmp.gt.f32.partialorder %v5645_v1, 0.0  ;;  %6746 = vmatprep.mubr.bf16.mxu0 %v6132_v30  ;;  %vm5781_vm15 = vcmp.gt.f32.partialorder %v5653_v25, 0.0  ;;  %v5901_v19 = vmul.f32 0.2, %v5645_v1  ;;  %v5909_v38 = vmul.f32 0.2, %v5653_v25  ;;  %7696 = vmatpush3.bf16.msra.mxu0 %v8173_v43 }
 0x67e   :  { %v5660_v26 = vadd.f32 %v11284_v36, %v11262_v57  ;;  %6843 = vmatprep.mubr.bf16.mxu1 %v6134_v22  ;;  %v6027_v60 = vsel %vm5771_vm12, %v5643_v46, %v5899_v47  ;;  %v6035_v9 = vsel %vm5779_vm13, %v5651_v12, %v5907_v2  ;;  %v5668_v51 = vadd.f32 %v11284_v36, %v11266_v61  ;;  %v8179_v57 = vld [vmem:[#allocation14 + $0x1b0] sm:$0xff]   ;;  %v12474_v12 = vld [vmem:[#allocation74_spill] sm:$0xff]  ;;  %v12475_v22 = vld [vmem:[#allocation71_spill] sm:$0xff] }
 0x67f   :  { %v5662_v40 = vadd.f32 %v11290_v11, %v11270_v52  ;;  %v6131_v44 = vpack.c.bf16 %v6035_v9, %v6027_v60  ;;  %v6029_v48 = vsel %vm5773_vm14, %v5645_v1, %v5901_v19  ;;  %v6037_v23 = vsel %vm5781_vm15, %v5653_v25, %v5909_v38  ;;  %7760 = vmatpush3.bf16.msra.mxu1 %v8175_v62  ;;  %v12476_v2 = vld [vmem:[#allocation75_spill] sm:$0xff] }
 0x680   :  { %vm5788_vm0 = vcmp.gt.f32.partialorder %v5660_v26, 0.0  ;;  %7697 = vmatprep.subr.bf16.mxu0 %v8176_v16  ;;  %v6133_v63 = vpack.c.bf16 %v6037_v23, %v6029_v48  ;;  %vm5796_vm1 = vcmp.gt.f32.partialorder %v5668_v51, 0.0  ;;  %v5916_v31 = vmul.f32 0.2, %v5660_v26  ;;  %7761 = vmatprep.subr.bf16.mxu1 %v8178_v20  ;;  %v12477_v48 = vld [vmem:[#allocation68_spill] sm:$0xff] }
 0x681   :  { %v5924_v34 = vmul.f32 0.2, %v5668_v51  ;;  %6747 = vmatmul.mubr.bf16.gmra.mrb[124].mxu0 %v6131_v44  ;;  %v5670_v61 = vadd.f32 %v11290_v11, %v11274_v10  ;;  %vm5790_vm2 = vcmp.gt.f32.partialorder %v5662_v40, 0.0  ;;  %v5918_v52 = vmul.f32 0.2, %v5662_v40  ;;  %v8181_v10 = vld [vmem:[#allocation14 + $0x138] sm:$0xff]  }
 0x682   :  { %v5498_v39 = vmul.f32 %v11094_v42, %v12470_v55  ;;  %6844 = vmatmul.mubr.bf16.gmra.mrb[140].mxu1 %v6133_v63  ;;  %v6044_v5 = vsel %vm5788_vm0, %v5660_v26, %v5916_v31  ;;  %v5659_v13 = vadd.f32 %v11281_v14, %v11278_v32  ;;  %v5492_v17 = vmul.f32 %v11100_v56, %v12471_v24  ;;  %v12478_v63 = vld [vmem:[#allocation72_spill] sm:$0xff] }
 0x683   :  { %v6052_v33 = vsel %vm5796_vm1, %v5668_v51, %v5924_v34  ;;  %vm5798_vm3 = vcmp.gt.f32.partialorder %v5670_v61, 0.0  ;;  %v5926_v21 = vmul.f32 0.2, %v5670_v61  ;;  %v6046_v50 = vsel %vm5790_vm2, %v5662_v40, %v5918_v52  ;;  %7698 = vmatpush3.bf16.msra.mxu0 %v8177_v41  ;;  %7762 = vmatpush3.bf16.msra.mxu1 %v8179_v57 }
 0x684   :  { %v6140_v45 = vpack.c.bf16 %v6052_v33, %v6044_v5  ;;  %v5667_v53 = vadd.f32 %v11281_v14, %v5498_v39  ;;  %vm5787_vm4 = vcmp.gt.f32.partialorder %v5659_v13, 0.0  ;;  %v5915_v4 = vmul.f32 0.2, %v5659_v13  ;;  %7699 = vmatprep.subr.bf16.mxu0 %v8180_v58  ;;  %7763 = vmatprep.subr.bf16.mxu1 %v8182_v18  ;;  %v12479_v39 = vld [vmem:[#allocation69_spill] sm:$0xff] }
 0x685   :  { %v5500_v15 = vmul.f32 %v11100_v56, %v12472_v3  ;;  %v6054_v32 = vsel %vm5798_vm3, %v5670_v61, %v5926_v21  ;;  %v5661_v28 = vadd.f32 %v11287_v29, %v5492_v17  ;;  %v5507_v46 = vmul.f32 %v11097_v0, %v12473_v54  ;;  %v12481_v17 = vld [vmem:[#allocation78_spill] sm:$0xff] }
 0x686   :  { %6754 = vmatprep.mubr.bf16.mxu0 %v6140_v45  ;;  %v5515_v43 = vmul.f32 %v11097_v0, %v12474_v12  ;;  %v6142_v27 = vpack.c.bf16 %v6054_v32, %v6046_v50  ;;  %vm5795_vm5 = vcmp.gt.f32.partialorder %v5667_v53, 0.0  ;;  %v5923_v8 = vmul.f32 0.2, %v5667_v53  ;;  %v12482_v21 = vld [vmem:[#allocation82_spill] sm:$0xff] }
 0x687   :  { %v6043_v1 = vsel %vm5787_vm4, %v5659_v13, %v5915_v4  ;;  %v5669_v25 = vadd.f32 %v11287_v29, %v5500_v15  ;;  %vm5789_vm6 = vcmp.gt.f32.partialorder %v5661_v28, 0.0  ;;  %v5917_v30 = vmul.f32 0.2, %v5661_v28  ;;  %7700 = vmatpush3.bf16.msra.mxu0 %v8181_v10  ;;  %7764 = vmatpush3.bf16.msra.mxu1 %v8183_v59  ;;  %v12480_v13 = vld [vmem:[#allocation73_spill] sm:$0xff] }
 0x688   :  { %v5676_v7 = vadd.f32 %v11284_v36, %v5507_v46  ;;  %6851 = vmatprep.mubr.bf16.mxu1 %v6142_v27  ;;  %v6051_v62 = vsel %vm5795_vm5, %v5667_v53, %v5923_v8  ;;  %v5684_v16 = vadd.f32 %v11284_v36, %v5515_v43  ;;  %v5509_v47 = vmul.f32 %v11103_v6, %v12475_v22  ;;  %v12483_v46 = vld [vmem:[#allocation79_spill] sm:$0xff] }
 0x689   :  { %v5517_v20 = vmul.f32 %v11103_v6, %v12476_v2  ;;  %v6139_v19 = vpack.c.bf16 %v6051_v62, %v6043_v1  ;;  %vm5797_vm7 = vcmp.gt.f32.partialorder %v5669_v25, 0.0  ;;  %v5925_v38 = vmul.f32 0.2, %v5669_v25  ;;  %v12484_v62 = vld [vmem:[#allocation83_spill] sm:$0xff]  ;;  %v12485_v2 = vld [vmem:[#allocation76_spill] sm:$0xff] }
 0x68a   :  { %v6045_v26 = vsel %vm5789_vm6, %v5661_v28, %v5917_v30  ;;  %vm5804_vm8 = vcmp.gt.f32.partialorder %v5676_v7, 0.0  ;;  %vm5812_vm9 = vcmp.gt.f32.partialorder %v5684_v16, 0.0  ;;  %v5932_v60 = vmul.f32 0.2, %v5676_v7 }
 0x68b   :  { %v5940_v9 = vmul.f32 0.2, %v5684_v16  ;;  %6755 = vmatmul.mubr.bf16.gmra.mrb[128].mxu0 %v6139_v19  ;;  %v6053_v51 = vsel %vm5797_vm7, %v5669_v25, %v5925_v38  ;;  %v5678_v40 = vadd.f32 %v11290_v11, %v5509_v47  ;;  %v5686_v44 = vadd.f32 %v11290_v11, %v5517_v20  ;;  %v12486_v19 = vld [vmem:[#allocation80_spill] sm:$0xff] }
 0x68c   :  { %v5506_v23 = vmul.f32 %v11094_v42, %v12477_v48  ;;  %v6141_v41 = vpack.c.bf16 %v6053_v51, %v6045_v26  ;;  %v6060_v57 = vsel %vm5804_vm8, %v5676_v7, %v5932_v60  ;;  %v5514_v31 = vmul.f32 %v11094_v42, %v12478_v63 }
 0x68d   :  { %v6068_v58 = vsel %vm5812_vm9, %v5684_v16, %v5940_v9  ;;  %vm5806_vm10 = vcmp.gt.f32.partialorder %v5678_v40, 0.0  ;;  %vm5814_vm11 = vcmp.gt.f32.partialorder %v5686_v44, 0.0  ;;  %v5934_v18 = vmul.f32 0.2, %v5678_v40 }
 0x68e   :  { %v6148_v34 = vpack.c.bf16 %v6068_v58, %v6060_v57  ;;  %6852 = vmatmul.mubr.bf16.gmra.mrb[144].mxu1 %v6141_v41  ;;  %v5942_v61 = vmul.f32 0.2, %v5686_v44  ;;  %v5675_v52 = vadd.f32 %v11281_v14, %v5506_v23  ;;  %v5683_v55 = vadd.f32 %v11281_v14, %v5514_v31  ;;  %v12487_v57 = vld [vmem:[#allocation77_spill] sm:$0xff] }
 0x68f   :  { %v5508_v5 = vmul.f32 %v11100_v56, %v12479_v39  ;;  %v6062_v33 = vsel %vm5806_vm10, %v5678_v40, %v5934_v18  ;;  %v5516_v24 = vmul.f32 %v11100_v56, %v12480_v13  ;;  %v5523_v45 = vmul.f32 %v11097_v0, %v12481_v17  ;;  %v12489_v13 = vld [vmem:[#allocation88_spill] sm:$0xff] }
 0x690   :  { %6762 = vmatprep.mubr.bf16.mxu0 %v6148_v34  ;;  %v5531_v50 = vmul.f32 %v11097_v0, %v12482_v21  ;;  %v6070_v10 = vsel %vm5814_vm11, %v5686_v44, %v5942_v61  ;;  %vm5803_vm12 = vcmp.gt.f32.partialorder %v5675_v52, 0.0  ;;  %vm5811_vm13 = vcmp.gt.f32.partialorder %v5683_v55, 0.0  ;;  %v12488_v34 = vld [vmem:[#allocation81_spill] sm:$0xff]  ;;  %v12490_v21 = vld [vmem:[#allocation92_spill] sm:$0xff] }
 0x691   :  { %v5931_v59 = vmul.f32 0.2, %v5675_v52  ;;  %v6150_v53 = vpack.c.bf16 %v6070_v10, %v6062_v33  ;;  %v5939_v4 = vmul.f32 0.2, %v5683_v55  ;;  %v5677_v3 = vadd.f32 %v11287_v29, %v5508_v5 }
 0x692   :  { %v5685_v15 = vadd.f32 %v11287_v29, %v5516_v24  ;;  %v5692_v28 = vadd.f32 %v11284_v36, %v5523_v45  ;;  %v5700_v54 = vadd.f32 %v11284_v36, %v5531_v50  ;;  %v5525_v12 = vmul.f32 %v11103_v6, %v12483_v46 }
 0x693   :  { %v6059_v32 = vsel %vm5803_vm12, %v5675_v52, %v5931_v59  ;;  %6859 = vmatprep.mubr.bf16.mxu1 %v6150_v53  ;;  %v6067_v43 = vsel %vm5811_vm13, %v5683_v55, %v5939_v4  ;;  %vm5805_vm14 = vcmp.gt.f32.partialorder %v5677_v3, 0.0  ;;  %v5933_v27 = vmul.f32 0.2, %v5677_v3 }
 0x694   :  { %vm5813_vm15 = vcmp.gt.f32.partialorder %v5685_v15, 0.0  ;;  %v6147_v8 = vpack.c.bf16 %v6067_v43, %v6059_v32  ;;  %v5941_v1 = vmul.f32 0.2, %v5685_v15  ;;  %vm5820_vm0 = vcmp.gt.f32.partialorder %v5692_v28, 0.0 }
 0x695   :  { %vm5828_vm1 = vcmp.gt.f32.partialorder %v5700_v54, 0.0  ;;  %v6061_v25 = vsel %vm5805_vm14, %v5677_v3, %v5933_v27  ;;  %v5948_v30 = vmul.f32 0.2, %v5692_v28  ;;  %v5956_v7 = vmul.f32 0.2, %v5700_v54 }
 0x696   :  { %v5533_v16 = vmul.f32 %v11103_v6, %v12484_v62  ;;  %6763 = vmatmul.mubr.bf16.gmra.mrb[132].mxu0 %v6147_v8  ;;  %v6069_v22 = vsel %vm5813_vm15, %v5685_v15, %v5941_v1  ;;  %v5694_v47 = vadd.f32 %v11290_v11, %v5525_v12  ;;  %v5522_v20 = vmul.f32 %v11094_v42, %v12485_v2  ;;  %v12491_v15 = vld [vmem:[#allocation89_spill] sm:$0xff] }
 0x697   :  { %v5530_v38 = vmul.f32 %v11094_v42, %v12486_v19  ;;  %v6149_v26 = vpack.c.bf16 %v6069_v22, %v6061_v25  ;;  %v6076_v60 = vsel %vm5820_vm0, %v5692_v28, %v5948_v30  ;;  %v6084_v9 = vsel %vm5828_vm1, %v5700_v54, %v5956_v7  ;;  %v12492_v28 = vld [vmem:[#allocation93_spill] sm:$0xff]  ;;  %v12494_v30 = vld [vmem:[#allocation90_spill] sm:$0xff]  ;;  %v12495_v22 = vld [vmem:[#allocation87_spill] sm:$0xff] }
 0x698   :  { %v5702_v51 = vadd.f32 %v11290_v11, %v5533_v16  ;;  %v6156_v40 = vpack.c.bf16 %v6084_v9, %v6076_v60  ;;  %vm5822_vm2 = vcmp.gt.f32.partialorder %v5694_v47, 0.0  ;;  %v5950_v44 = vmul.f32 0.2, %v5694_v47 }
 0x699   :  { %v5691_v48 = vadd.f32 %v11281_v14, %v5522_v20  ;;  %6860 = vmatmul.mubr.bf16.gmra.mrb[148].mxu1 %v6149_v26  ;;  %v5699_v41 = vadd.f32 %v11281_v14, %v5530_v38  ;;  %v5524_v58 = vmul.f32 %v11100_v56, %v12487_v57  ;;  %v5532_v18 = vmul.f32 %v11100_v56, %v12488_v34  ;;  %v12496_v26 = vld [vmem:[#allocation91_spill] sm:$0xff] }
 0x69a   :  { %vm5830_vm3 = vcmp.gt.f32.partialorder %v5702_v51, 0.0  ;;  %v5958_v23 = vmul.f32 0.2, %v5702_v51  ;;  %6770 = vmatprep.mubr.bf16.mxu0 %v6156_v40  ;;  %v6078_v63 = vsel %vm5822_vm2, %v5694_v47, %v5950_v44  ;;  %v5539_v24 = vmul.f32 %v11097_v0, %v12489_v13  ;;  %v12501_v13 = vld [vmem:[#allocation94_spill] sm:$0xff] }
 0x69b   :  { %vm5819_vm4 = vcmp.gt.f32.partialorder %v5691_v48, 0.0  ;;  %v5947_v31 = vmul.f32 0.2, %v5691_v48  ;;  %vm5827_vm5 = vcmp.gt.f32.partialorder %v5699_v41, 0.0  ;;  %v5955_v52 = vmul.f32 0.2, %v5699_v41 }
 0x69c   :  { %v6086_v61 = vsel %vm5830_vm3, %v5702_v51, %v5958_v23  ;;  %v5693_v55 = vadd.f32 %v11287_v29, %v5524_v58  ;;  %v5701_v33 = vadd.f32 %v11287_v29, %v5532_v18  ;;  %v5547_v50 = vmul.f32 %v11097_v0, %v12490_v21  ;;  %v12493_v0 = vld [vmem:[#allocation84_spill] sm:$0xff] }
 0x69d   :  { %v6158_v39 = vpack.c.bf16 %v6086_v61, %v6078_v63  ;;  %v6075_v5 = vsel %vm5819_vm4, %v5691_v48, %v5947_v31  ;;  %v6083_v17 = vsel %vm5827_vm5, %v5699_v41, %v5955_v52  ;;  %v5708_v53 = vadd.f32 %v11284_v36, %v5539_v24  ;;  %v12497_v23 = vld [vmem:[#allocation96_spill] sm:$0xff]  ;;  %v12499_v52 = vld [vmem:[#allocation97_spill] sm:$0xff] }
 0x69e   :  { %vm5821_vm6 = vcmp.gt.f32.partialorder %v5693_v55, 0.0  ;;  %v5949_v45 = vmul.f32 0.2, %v5693_v55  ;;  %v6155_v10 = vpack.c.bf16 %v6083_v17, %v6075_v5  ;;  %vm5829_vm7 = vcmp.gt.f32.partialorder %v5701_v33, 0.0  ;;  %v12498_v58 = vld [vmem:[#allocation100_spill] sm:$0xff] }
 0x69f   :  { %6867 = vmatprep.mubr.bf16.mxu1 %v6158_v39  ;;  %v5957_v59 = vmul.f32 0.2, %v5701_v33  ;;  %v5716_v3 = vadd.f32 %v11284_v36, %v5547_v50  ;;  %v5541_v32 = vmul.f32 %v11103_v6, %v12491_v15  ;;  %v5549_v54 = vmul.f32 %v11103_v6, %v12492_v28  ;;  %v12502_v24 = vld [vmem:[#allocation24_spill] sm:$0xff]  ;;  %v12503_v50 = vld [vmem:[#allocation85_spill] sm:$0xff] }
 0x6a0   :  { %v6077_v4 = vsel %vm5821_vm6, %v5693_v55, %v5949_v45  ;;  %6771 = vmatmul.mubr.bf16.gmra.mrb[136].mxu0 %v6155_v10  ;;  %vm5836_vm8 = vcmp.gt.f32.partialorder %v5708_v53, 0.0  ;;  %v5964_v12 = vmul.f32 0.2, %v5708_v53  ;;  %v5538_v43 = vmul.f32 %v11094_v42, %v12493_v0  ;;  %v12500_v55 = vld [vmem:[#allocation101_spill] sm:$0xff] }
 0x6a1   :  { %v6085_v46 = vsel %vm5829_vm7, %v5701_v33, %v5957_v59  ;;  %vm5844_vm9 = vcmp.gt.f32.partialorder %v5716_v3, 0.0  ;;  %v5972_v8 = vmul.f32 0.2, %v5716_v3  ;;  %v5710_v1 = vadd.f32 %v11290_v11, %v5541_v32  ;;  %v12505_v15 = vld [vmem:[#allocation25_spill] sm:$0xff] }
 0x6a2   :  { %v6157_v27 = vpack.c.bf16 %v6085_v46, %v6077_v4  ;;  %v6092_v25 = vsel %vm5836_vm8, %v5708_v53, %v5964_v12  ;;  %v5718_v36 = vadd.f32 %v11290_v11, %v5549_v54  ;;  %v5546_v7 = vmul.f32 %v11094_v42, %v12494_v30  ;;  %v12504_v4 = vld [vmem:[#allocation98_spill] sm:$0xff]  ;;  %v12506_v46 = vld [vmem:[#allocation95_spill] sm:$0xff] }
 0x6a3   :  { %v5707_v6 = vadd.f32 %v11281_v14, %v5538_v43  ;;  %v6100_v62 = vsel %vm5844_vm9, %v5716_v3, %v5972_v8  ;;  %vm5838_vm10 = vcmp.gt.f32.partialorder %v5710_v1, 0.0  ;;  %v5966_v16 = vmul.f32 0.2, %v5710_v1  ;;  %v12507_v12 = vld [vmem:[#allocation23_spill] sm:$0xff] }
 0x6a4   :  { %6868 = vmatmul.mubr.bf16.gmra.mrb[152].mxu1 %v6157_v27  ;;  %v5540_v47 = vmul.f32 %v11100_v56, %v12495_v22  ;;  %v6164_v2 = vpack.c.bf16 %v6100_v62, %v6092_v25  ;;  %vm5846_vm11 = vcmp.gt.f32.partialorder %v5718_v36, 0.0  ;;  %v5974_v20 = vmul.f32 0.2, %v5718_v36  ;;  %v12509_v62 = vld [vmem:[#allocation26_spill] sm:$0xff] }
 0x6a5   :  { %v5715_v19 = vadd.f32 %v11281_v14, %v5546_v7  ;;  %v6094_v38 = vsel %vm5838_vm10, %v5710_v1, %v5966_v16  ;;  %vm5835_vm12 = vcmp.gt.f32.partialorder %v5707_v6, 0.0  ;;  %v5963_v11 = vmul.f32 0.2, %v5707_v6 }
 0x6a6   :  { %v5548_v42 = vmul.f32 %v11100_v56, %v12496_v26  ;;  %6778 = vmatprep.mubr.bf16.mxu0 %v6164_v2  ;;  %v6102_v60 = vsel %vm5846_vm11, %v5718_v36, %v5974_v20  ;;  %v5709_v51 = vadd.f32 %v11287_v29, %v5540_v47  ;;  %v5431_v41 = vmul.f32 %v11111_v37, %v12497_v23  ;;  %v12508_v36 = vld [vmem:[#allocation99_spill] sm:$0xff] }
 0x6a7   :  { %vm5843_vm13 = vcmp.gt.f32.partialorder %v5715_v19, 0.0  ;;  %v5971_v9 = vmul.f32 0.2, %v5715_v19  ;;  %v6166_v40 = vpack.c.bf16 %v6102_v60, %v6094_v38  ;;  %v6091_v44 = vsel %vm5835_vm12, %v5707_v6, %v5963_v11  ;;  %v12510_v20 = vld [vmem:[#allocation103_spill] sm:$0xff] }
 0x6a8   :  { %v5717_v48 = vadd.f32 %v11287_v29, %v5548_v42  ;;  %vm5837_vm14 = vcmp.gt.f32.partialorder %v5709_v51, 0.0  ;;  %v5965_v57 = vmul.f32 0.2, %v5709_v51  ;;  %v5439_v63 = vmul.f32 %v11111_v37, %v12498_v58  ;;  %v12511_v26 = vld [vmem:[#allocation39_spill] sm:$0xff] }
 0x6a9   :  { %v6099_v14 = vsel %vm5843_vm13, %v5715_v19, %v5971_v9  ;;  %6875 = vmatprep.mubr.bf16.mxu1 %v6166_v40  ;;  %v5600_v34 = vadd.f32 %v11298_v35, %v5431_v41  ;;  %v5433_v29 = vmul.f32 %v11119_v49, %v12499_v52  ;;  %v5441_v39 = vmul.f32 %v11119_v49, %v12500_v55  ;;  %v12513_v41 = vld [vmem:[#allocation130_spill] sm:$0xff] }
 0x6aa   :  { %v6163_v56 = vpack.c.bf16 %v6099_v14, %v6091_v44  ;;  %vm5845_vm15 = vcmp.gt.f32.partialorder %v5717_v48, 0.0  ;;  %v5973_v31 = vmul.f32 0.2, %v5717_v48  ;;  %v6093_v18 = vsel %vm5837_vm14, %v5709_v51, %v5965_v57 }
 0x6ab   :  { %v5608_v61 = vadd.f32 %v11298_v35, %v5439_v63  ;;  %vm5728_vm0 = vcmp.gt.f32.partialorder %v5600_v34, 0.0  ;;  %v5856_v33 = vmul.f32 0.2, %v5600_v34  ;;  %v5430_v17 = vmul.f32 %v12502_v24, %v12501_v13  ;;  %v12514_v63 = vld [vmem:[#allocation102_spill] sm:$0xff]  ;;  %v12516_v13 = vld [vmem:[#allocation40_spill] sm:$0xff] }
 0x6ac   :  { %6779 = vmatmul.mubr.bf16.gmra.mrb[140].mxu0 %v6163_v56  ;;  %v6101_v5 = vsel %vm5845_vm15, %v5717_v48, %v5973_v31  ;;  %v5602_v10 = vadd.f32 %v12503_v50, %v5433_v29  ;;  %v5610_v53 = vadd.f32 %v12503_v50, %v5441_v39  ;;  %v5438_v3 = vmul.f32 %v12502_v24, %v12504_v4  ;;  %v12512_v48 = vld [vmem:[#allocation104_spill] sm:$0xff]  ;;  %v12515_v29 = vld [vmem:[#allocation105_spill] sm:$0xff]  ;;  %v12517_v4 = vld [vmem:[#allocation42_spill] sm:$0xff] }
 0x6ad   :  { %v6165_v45 = vpack.c.bf16 %v6101_v5, %v6093_v18  ;;  %vm5736_vm1 = vcmp.gt.f32.partialorder %v5608_v61, 0.0  ;;  %v5864_v21 = vmul.f32 0.2, %v5608_v61  ;;  %v5984_v59 = vsel %vm5728_vm0, %v5600_v34, %v5856_v33 }
 0x6ae   :  { %v5599_v32 = vadd.f32 %v12505_v15, %v5430_v17  ;;  %vm5730_vm2 = vcmp.gt.f32.partialorder %v5602_v10, 0.0  ;;  %v5858_v54 = vmul.f32 0.2, %v5602_v10  ;;  %v5432_v0 = vmul.f32 %v12507_v12, %v12506_v46 }
 0x6af   :  { %6876 = vmatmul.mubr.bf16.gmra.mrb[156].mxu1 %v6165_v45  ;;  %v5992_v28 = vsel %vm5736_vm1, %v5608_v61, %v5864_v21  ;;  %vm5738_vm3 = vcmp.gt.f32.partialorder %v5610_v53, 0.0  ;;  %v5866_v27 = vmul.f32 0.2, %v5610_v53  ;;  %v5607_v8 = vadd.f32 %v12505_v15, %v5438_v3 }
 0x6b0   :  { %v6112_v43 = vpack.c.bf16 %v5992_v28, %v5984_v59  ;;  %v5986_v1 = vsel %vm5730_vm2, %v5602_v10, %v5858_v54  ;;  %vm5727_vm4 = vcmp.gt.f32.partialorder %v5599_v32, 0.0  ;;  %v5855_v25 = vmul.f32 0.2, %v5599_v32 }
 0x6b1   :  { %v5440_v30 = vmul.f32 %v12507_v12, %v12508_v36  ;;  %v5994_v7 = vsel %vm5738_vm3, %v5610_v53, %v5866_v27  ;;  %vm5735_vm5 = vcmp.gt.f32.partialorder %v5607_v8, 0.0  ;;  %v5863_v6 = vmul.f32 0.2, %v5607_v8  ;;  %v12518_v27 = vld [vmem:[#allocation46_spill] sm:$0xff]  ;;  %v12519_v36 = vld [vmem:[#allocation109_spill] sm:$0xff] }
 0x6b2   :  { %6916 = vmatprep.mubr.bf16.mxu0 %v6112_v43  ;;  %v5601_v16 = vadd.f32 %v12509_v62, %v5432_v0  ;;  %v6114_v22 = vpack.c.bf16 %v5994_v7, %v5986_v1  ;;  %v5983_v47 = vsel %vm5727_vm4, %v5599_v32, %v5855_v25  ;;  %v5447_v19 = vmul.f32 %v11111_v37, %v12510_v20 }
 0x6b3   :  { %v5609_v2 = vadd.f32 %v12509_v62, %v5440_v30  ;;  %v5991_v38 = vsel %vm5735_vm5, %v5607_v8, %v5863_v6  ;;  %v5455_v42 = vmul.f32 %v11111_v37, %v12511_v26  ;;  %v5449_v23 = vmul.f32 %v11119_v49, %v12512_v48 }
 0x6b4   :  { %vm5729_vm6 = vcmp.gt.f32.partialorder %v5601_v16, 0.0  ;;  %v5857_v11 = vmul.f32 0.2, %v5601_v16  ;;  %7013 = vmatprep.mubr.bf16.mxu1 %v6114_v22  ;;  %v6111_v60 = vpack.c.bf16 %v5991_v38, %v5983_v47  ;;  %v5616_v51 = vadd.f32 %v11298_v35, %v5447_v19  ;;  %v12521_v19 = vld [vmem:[#allocation110_spill] sm:$0xff] }
 0x6b5   :  { %vm5737_vm7 = vcmp.gt.f32.partialorder %v5609_v2, 0.0  ;;  %v5865_v9 = vmul.f32 0.2, %v5609_v2  ;;  %v5624_v44 = vadd.f32 %v11298_v35, %v5455_v42  ;;  %v5457_v14 = vmul.f32 %v11119_v49, %v12513_v41  ;;  %v12522_v42 = vld [vmem:[#allocation41_spill] sm:$0xff] }
 0x6b6   :  { %v5985_v40 = vsel %vm5729_vm6, %v5601_v16, %v5857_v11  ;;  %6917 = vmatmul.mubr.bf16.vlgmr.msra.gmra.mrb[144].mxu0 %v6111_v60  ;;  %vm5744_vm8 = vcmp.gt.f32.partialorder %v5616_v51, 0.0  ;;  %v5872_v58 = vmul.f32 0.2, %v5616_v51  ;;  %v5446_v56 = vmul.f32 %v12502_v24, %v12514_v63  ;;  %v12524_v63 = vld [vmem:[#allocation44_spill] sm:$0xff] }
 0x6b7   :  { %v5993_v57 = vsel %vm5737_vm7, %v5609_v2, %v5865_v9  ;;  %vm5752_vm9 = vcmp.gt.f32.partialorder %v5624_v44, 0.0  ;;  %v5880_v34 = vmul.f32 0.2, %v5624_v44  ;;  %v5618_v18 = vadd.f32 %v12503_v50, %v5449_v23  ;;  %v12520_v2 = vld [vmem:[#allocation106_spill] sm:$0xff]  ;;  %v12523_v23 = vld [vmem:[#allocation107_spill] sm:$0xff] }
 0x6b8   :  { %v6113_v31 = vpack.c.bf16 %v5993_v57, %v5985_v40  ;;  %v6000_v61 = vsel %vm5744_vm8, %v5616_v51, %v5872_v58  ;;  %v5626_v52 = vadd.f32 %v12503_v50, %v5457_v14  ;;  %v5454_v55 = vmul.f32 %v12502_v24, %v12515_v29  ;;  %v12525_v29 = vld [vmem:[#allocation108_spill] sm:$0xff] }
 0x6b9   :  { %v5615_v39 = vadd.f32 %v12505_v15, %v5446_v56  ;;  %v6008_v5 = vsel %vm5752_vm9, %v5624_v44, %v5880_v34  ;;  %vm5746_vm10 = vcmp.gt.f32.partialorder %v5618_v18, 0.0  ;;  %v5874_v33 = vmul.f32 0.2, %v5618_v18 }
 0x6ba   :  { %7014 = vmatmul.mubr.bf16.vlgmr.msra.gmra.mrb[160].mxu1 %v6113_v31  ;;  %v5448_v17 = vmul.f32 %v12507_v12, %v12516_v13  ;;  %v6120_v45 = vpack.c.bf16 %v6008_v5, %v6000_v61  ;;  %vm5754_vm11 = vcmp.gt.f32.partialorder %v5626_v52, 0.0  ;;  %v5882_v21 = vmul.f32 0.2, %v5626_v52 }
 0x6bb   :  { %v5623_v10 = vadd.f32 %v12505_v15, %v5454_v55  ;;  %v6002_v59 = vsel %vm5746_vm10, %v5618_v18, %v5874_v33  ;;  %vm5743_vm12 = vcmp.gt.f32.partialorder %v5615_v39, 0.0  ;;  %v5871_v53 = vmul.f32 0.2, %v5615_v39 }
 0x6bc   :  { %v5456_v3 = vmul.f32 %v12507_v12, %v12517_v4  ;;  %6924 = vmatprep.mubr.bf16.mxu0 %v6120_v45  ;;  %v6010_v32 = vsel %vm5754_vm11, %v5626_v52, %v5882_v21  ;;  %v5617_v54 = vadd.f32 %v12509_v62, %v5448_v17  ;;  %v5463_v8 = vmul.f32 %v11111_v37, %v12518_v27  ;;  %v12526_v21 = vld [vmem:[#allocation113_spill] sm:$0xff]  ;;  %v12527_v4 = vld [vmem:[#allocation50_spill] sm:$0xff] }
 0x6bd   :  { %vm5751_vm13 = vcmp.gt.f32.partialorder %v5623_v10, 0.0  ;;  %v5879_v28 = vmul.f32 0.2, %v5623_v10  ;;  %v6122_v46 = vpack.c.bf16 %v6010_v32, %v6002_v59  ;;  %v5999_v0 = vsel %vm5743_vm12, %v5615_v39, %v5871_v53 }
 0x6be   :  { %v5625_v43 = vadd.f32 %v12509_v62, %v5456_v3  ;;  %vm5745_vm14 = vcmp.gt.f32.partialorder %v5617_v54, 0.0  ;;  %v5873_v25 = vmul.f32 0.2, %v5617_v54  ;;  %v5471_v30 = vmul.f32 %v11111_v37, %v12519_v36 }
 0x6bf   :  { %v6007_v1 = vsel %vm5751_vm13, %v5623_v10, %v5879_v28  ;;  %7021 = vmatprep.mubr.bf16.mxu1 %v6122_v46  ;;  %v5632_v16 = vadd.f32 %v11298_v35, %v5463_v8  ;;  %v5465_v20 = vmul.f32 %v11119_v49, %v12520_v2  ;;  %v5473_v38 = vmul.f32 %v11119_v49, %v12521_v19  ;;  %v12529_v8 = vld [vmem:[#allocation47_spill] sm:$0xff] }
 0x6c0   :  { %v6119_v7 = vpack.c.bf16 %v6007_v1, %v5999_v0  ;;  %vm5753_vm15 = vcmp.gt.f32.partialorder %v5625_v43, 0.0  ;;  %v5881_v6 = vmul.f32 0.2, %v5625_v43  ;;  %v6001_v22 = vsel %vm5745_vm14, %v5617_v54, %v5873_v25 }
 0x6c1   :  { %v5640_v47 = vadd.f32 %v11298_v35, %v5471_v30  ;;  %vm5760_vm0 = vcmp.gt.f32.partialorder %v5632_v16, 0.0  ;;  %v5888_v26 = vmul.f32 0.2, %v5632_v16  ;;  %v5462_v60 = vmul.f32 %v12502_v24, %v12522_v42  ;;  %v12530_v30 = vld [vmem:[#allocation111_spill] sm:$0xff]  ;;  %v12532_v42 = vld [vmem:[#allocation112_spill] sm:$0xff] }
 0x6c2   :  { %6925 = vmatmul.mubr.bf16.gmra.mrb[148].mxu0 %v6119_v7  ;;  %v6009_v11 = vsel %vm5753_vm15, %v5625_v43, %v5881_v6  ;;  %v5634_v40 = vadd.f32 %v12503_v50, %v5465_v20  ;;  %v5642_v48 = vadd.f32 %v12503_v50, %v5473_v38  ;;  %v5470_v41 = vmul.f32 %v12502_v24, %v12523_v23  ;;  %v12528_v43 = vld [vmem:[#allocation43_spill] sm:$0xff]  ;;  %v12531_v20 = vld [vmem:[#allocation45_spill] sm:$0xff]  ;;  %v12533_v23 = vld [vmem:[#allocation48_spill] sm:$0xff] }
 0x6c3   :  { %v6121_v9 = vpack.c.bf16 %v6009_v11, %v6001_v22  ;;  %vm5768_vm1 = vcmp.gt.f32.partialorder %v5640_v47, 0.0  ;;  %v5896_v51 = vmul.f32 0.2, %v5640_v47  ;;  %v6016_v44 = vsel %vm5760_vm0, %v5632_v16, %v5888_v26 }
 0x6c4   :  { %v5631_v14 = vadd.f32 %v12505_v15, %v5462_v60  ;;  %vm5762_vm2 = vcmp.gt.f32.partialorder %v5634_v40, 0.0  ;;  %v5890_v58 = vmul.f32 0.2, %v5634_v40  ;;  %v5464_v56 = vmul.f32 %v12507_v12, %v12524_v63 }
 0x6c5   :  { %7022 = vmatmul.mubr.bf16.gmra.mrb[164].mxu1 %v6121_v9  ;;  %v6024_v57 = vsel %vm5768_vm1, %v5640_v47, %v5896_v51  ;;  %vm5770_vm3 = vcmp.gt.f32.partialorder %v5642_v48, 0.0  ;;  %v5898_v34 = vmul.f32 0.2, %v5642_v48  ;;  %v5639_v18 = vadd.f32 %v12505_v15, %v5470_v41 }
 0x6c6   :  { %v6128_v31 = vpack.c.bf16 %v6024_v57, %v6016_v44  ;;  %v6018_v61 = vsel %vm5762_vm2, %v5634_v40, %v5890_v58  ;;  %vm5759_vm4 = vcmp.gt.f32.partialorder %v5631_v14, 0.0  ;;  %v5887_v52 = vmul.f32 0.2, %v5631_v14 }
 0x6c7   :  { %v5472_v55 = vmul.f32 %v12507_v12, %v12525_v29  ;;  %v6026_v39 = vsel %vm5770_vm3, %v5642_v48, %v5898_v34  ;;  %vm5767_vm5 = vcmp.gt.f32.partialorder %v5639_v18, 0.0  ;;  %v5895_v5 = vmul.f32 0.2, %v5639_v18  ;;  %v12534_v34 = vld [vmem:[#allocation116_spill] sm:$0xff]  ;;  %v12535_v29 = vld [vmem:[#allocation119_spill] sm:$0xff] }
 0x6c8   :  { %6932 = vmatprep.mubr.bf16.mxu0 %v6128_v31  ;;  %v5633_v33 = vadd.f32 %v12509_v62, %v5464_v56  ;;  %v6130_v13 = vpack.c.bf16 %v6026_v39, %v6018_v61  ;;  %v6015_v17 = vsel %vm5759_vm4, %v5631_v14, %v5887_v52  ;;  %v5479_v10 = vmul.f32 %v11111_v37, %v12526_v21 }
 0x6c9   :  { %v5641_v45 = vadd.f32 %v12509_v62, %v5472_v55  ;;  %v6023_v59 = vsel %vm5767_vm5, %v5639_v18, %v5895_v5  ;;  %v5487_v3 = vmul.f32 %v11111_v37, %v12527_v4  ;;  %v5481_v27 = vmul.f32 %v11119_v49, %v12528_v43 }
 0x6ca   :  { %vm5761_vm6 = vcmp.gt.f32.partialorder %v5633_v33, 0.0  ;;  %v5889_v53 = vmul.f32 0.2, %v5633_v33  ;;  %7029 = vmatprep.mubr.bf16.mxu1 %v6130_v13  ;;  %v6127_v32 = vpack.c.bf16 %v6023_v59, %v6015_v17  ;;  %v5648_v54 = vadd.f32 %v11298_v35, %v5479_v10  ;;  %v12537_v10 = vld [vmem:[#allocation120_spill] sm:$0xff] }
 0x6cb   :  { %vm5769_vm7 = vcmp.gt.f32.partialorder %v5641_v45, 0.0  ;;  %v5897_v28 = vmul.f32 0.2, %v5641_v45  ;;  %v5656_v0 = vadd.f32 %v11298_v35, %v5487_v3  ;;  %v5489_v1 = vmul.f32 %v11119_v49, %v12529_v8  ;;  %v12538_v3 = vld [vmem:[#allocation114_spill] sm:$0xff] }
 0x6cc   :  { %v6017_v46 = vsel %vm5761_vm6, %v5633_v33, %v5889_v53  ;;  %6933 = vmatmul.mubr.bf16.gmra.mrb[152].mxu0 %v6127_v32  ;;  %vm5776_vm8 = vcmp.gt.f32.partialorder %v5648_v54, 0.0  ;;  %v5904_v36 = vmul.f32 0.2, %v5648_v54  ;;  %v5478_v7 = vmul.f32 %v12502_v24, %v12530_v30  ;;  %v12540_v30 = vld [vmem:[#allocation115_spill] sm:$0xff] }
 0x6cd   :  { %v6025_v25 = vsel %vm5769_vm7, %v5641_v45, %v5897_v28  ;;  %vm5784_vm9 = vcmp.gt.f32.partialorder %v5656_v0, 0.0  ;;  %v5912_v16 = vmul.f32 0.2, %v5656_v0  ;;  %v5650_v22 = vadd.f32 %v12503_v50, %v5481_v27  ;;  %v12536_v45 = vld [vmem:[#allocation117_spill] sm:$0xff] }
 0x6ce   :  { %v6129_v6 = vpack.c.bf16 %v6025_v25, %v6017_v46  ;;  %v6032_v47 = vsel %vm5776_vm8, %v5648_v54, %v5904_v36  ;;  %v5658_v2 = vadd.f32 %v12503_v50, %v5489_v1  ;;  %v5486_v19 = vmul.f32 %v12502_v24, %v12531_v20  ;;  %v12539_v27 = vld [vmem:[#allocation49_spill] sm:$0xff]  ;;  %v12541_v20 = vld [vmem:[#allocation118_spill] sm:$0xff] }
 0x6cf   :  { %v5647_v38 = vadd.f32 %v12505_v15, %v5478_v7  ;;  %v6040_v11 = vsel %vm5784_vm9, %v5656_v0, %v5912_v16  ;;  %vm5778_vm10 = vcmp.gt.f32.partialorder %v5650_v22, 0.0  ;;  %v5906_v26 = vmul.f32 0.2, %v5650_v22 }
 0x6d0   :  { %7030 = vmatmul.mubr.bf16.gmra.mrb[168].mxu1 %v6129_v6  ;;  %v5480_v60 = vmul.f32 %v12507_v12, %v12532_v42  ;;  %v6136_v9 = vpack.c.bf16 %v6040_v11, %v6032_v47  ;;  %vm5786_vm11 = vcmp.gt.f32.partialorder %v5658_v2, 0.0  ;;  %v5914_v51 = vmul.f32 0.2, %v5658_v2 }
 0x6d1   :  { %v5655_v40 = vadd.f32 %v12505_v15, %v5486_v19  ;;  %v6034_v44 = vsel %vm5778_vm10, %v5650_v22, %v5906_v26  ;;  %vm5775_vm12 = vcmp.gt.f32.partialorder %v5647_v38, 0.0  ;;  %v5903_v48 = vmul.f32 0.2, %v5647_v38 }
 0x6d2   :  { %v5488_v41 = vmul.f32 %v12507_v12, %v12533_v23  ;;  %6940 = vmatprep.mubr.bf16.mxu0 %v6136_v9  ;;  %v6042_v14 = vsel %vm5786_vm11, %v5658_v2, %v5914_v51  ;;  %v5649_v58 = vadd.f32 %v12509_v62, %v5480_v60  ;;  %v5495_v18 = vmul.f32 %v11111_v37, %v12534_v34  ;;  %v12542_v51 = vld [vmem:[#allocation54_spill] sm:$0xff]  ;;  %v12543_v23 = vld [vmem:[#allocation123_spill] sm:$0xff] }
 0x6d3   :  { %vm5783_vm13 = vcmp.gt.f32.partialorder %v5655_v40, 0.0  ;;  %v5911_v57 = vmul.f32 0.2, %v5655_v40  ;;  %v6138_v63 = vpack.c.bf16 %v6042_v14, %v6034_v44  ;;  %v6031_v56 = vsel %vm5775_vm12, %v5647_v38, %v5903_v48 }
 0x6d4   :  { %v5657_v31 = vadd.f32 %v12509_v62, %v5488_v41  ;;  %vm5777_vm14 = vcmp.gt.f32.partialorder %v5649_v58, 0.0  ;;  %v5905_v52 = vmul.f32 0.2, %v5649_v58  ;;  %v5503_v55 = vmul.f32 %v11111_v37, %v12535_v29 }
 0x6d5   :  { %v6039_v61 = vsel %vm5783_vm13, %v5655_v40, %v5911_v57  ;;  %7037 = vmatprep.mubr.bf16.mxu1 %v6138_v63  ;;  %v5664_v33 = vadd.f32 %v11298_v35, %v5495_v18  ;;  %v5497_v21 = vmul.f32 %v11119_v49, %v12536_v45  ;;  %v5505_v59 = vmul.f32 %v11119_v49, %v12537_v10  ;;  %v12545_v18 = vld [vmem:[#allocation124_spill] sm:$0xff] }
 0x6d6   :  { %v6135_v39 = vpack.c.bf16 %v6039_v61, %v6031_v56  ;;  %vm5785_vm15 = vcmp.gt.f32.partialorder %v5657_v31, 0.0  ;;  %v5913_v5 = vmul.f32 0.2, %v5657_v31  ;;  %v6033_v13 = vsel %vm5777_vm14, %v5649_v58, %v5905_v52 }
 0x6d7   :  { %v5672_v17 = vadd.f32 %v11298_v35, %v5503_v55  ;;  %vm5792_vm0 = vcmp.gt.f32.partialorder %v5664_v33, 0.0  ;;  %v5920_v4 = vmul.f32 0.2, %v5664_v33  ;;  %v5494_v32 = vmul.f32 %v12502_v24, %v12538_v3  ;;  %v12546_v55 = vld [vmem:[#allocation121_spill] sm:$0xff]  ;;  %v12548_v3 = vld [vmem:[#allocation52_spill] sm:$0xff] }
 0x6d8   :  { %6941 = vmatmul.mubr.bf16.gmra.mrb[156].mxu0 %v6135_v39  ;;  %v6041_v53 = vsel %vm5785_vm15, %v5657_v31, %v5913_v5  ;;  %v5666_v46 = vadd.f32 %v12503_v50, %v5497_v21  ;;  %v5674_v43 = vadd.f32 %v12503_v50, %v5505_v59  ;;  %v5502_v8 = vmul.f32 %v12502_v24, %v12539_v27  ;;  %v12544_v31 = vld [vmem:[#allocation51_spill] sm:$0xff]  ;;  %v12547_v21 = vld [vmem:[#allocation53_spill] sm:$0xff]  ;;  %v12549_v27 = vld [vmem:[#allocation122_spill] sm:$0xff] }
 0x6d9   :  { %v6137_v28 = vpack.c.bf16 %v6041_v53, %v6033_v13  ;;  %vm5800_vm1 = vcmp.gt.f32.partialorder %v5672_v17, 0.0  ;;  %v5928_v54 = vmul.f32 0.2, %v5672_v17  ;;  %v6048_v0 = vsel %vm5792_vm0, %v5664_v33, %v5920_v4 }
 0x6da   :  { %v5663_v1 = vadd.f32 %v12505_v15, %v5494_v32  ;;  %vm5794_vm2 = vcmp.gt.f32.partialorder %v5666_v46, 0.0  ;;  %v5922_v36 = vmul.f32 0.2, %v5666_v46  ;;  %v5496_v7 = vmul.f32 %v12507_v12, %v12540_v30 }
 0x6db   :  { %7038 = vmatmul.mubr.bf16.gmra.mrb[172].mxu1 %v6137_v28  ;;  %v6056_v25 = vsel %vm5800_vm1, %v5672_v17, %v5928_v54  ;;  %vm5802_vm3 = vcmp.gt.f32.partialorder %v5674_v43, 0.0  ;;  %v5930_v16 = vmul.f32 0.2, %v5674_v43  ;;  %v5671_v22 = vadd.f32 %v12505_v15, %v5502_v8 }
 0x6dc   :  { %v6144_v6 = vpack.c.bf16 %v6056_v25, %v6048_v0  ;;  %v6050_v47 = vsel %vm5794_vm2, %v5666_v46, %v5922_v36  ;;  %vm5791_vm4 = vcmp.gt.f32.partialorder %v5663_v1, 0.0  ;;  %v5919_v2 = vmul.f32 0.2, %v5663_v1 }
 0x6dd   :  { %v5504_v19 = vmul.f32 %v12507_v12, %v12541_v20  ;;  %v6058_v38 = vsel %vm5802_vm3, %v5674_v43, %v5930_v16  ;;  %vm5799_vm5 = vcmp.gt.f32.partialorder %v5671_v22, 0.0  ;;  %v5927_v11 = vmul.f32 0.2, %v5671_v22  ;;  %v12550_v16 = vld [vmem:[#allocation126_spill] sm:$0xff]  ;;  %v12551_v20 = vld [vmem:[#allocation59_spill] sm:$0xff] }
 0x6de   :  { %6948 = vmatprep.mubr.bf16.mxu0 %v6144_v6  ;;  %v5665_v26 = vadd.f32 %v12509_v62, %v5496_v7  ;;  %v6146_v42 = vpack.c.bf16 %v6058_v38, %v6050_v47  ;;  %v6047_v60 = vsel %vm5791_vm4, %v5663_v1, %v5919_v2  ;;  %v5511_v40 = vmul.f32 %v11111_v37, %v12542_v51 }
 0x6df   :  { %v5673_v9 = vadd.f32 %v12509_v62, %v5504_v19  ;;  %v6055_v44 = vsel %vm5799_vm5, %v5671_v22, %v5927_v11  ;;  %v5519_v41 = vmul.f32 %v11111_v37, %v12543_v23  ;;  %v5513_v34 = vmul.f32 %v11119_v49, %v12544_v31 }
 0x6e0   :  { %vm5793_vm6 = vcmp.gt.f32.partialorder %v5665_v26, 0.0  ;;  %v5921_v48 = vmul.f32 0.2, %v5665_v26  ;;  %7045 = vmatprep.mubr.bf16.mxu1 %v6146_v42  ;;  %v6143_v14 = vpack.c.bf16 %v6055_v44, %v6047_v60  ;;  %v5680_v58 = vadd.f32 %v11298_v35, %v5511_v40  ;;  %v12553_v40 = vld [vmem:[#allocation132_spill] sm:$0xff] }
 0x6e1   :  { %vm5801_vm7 = vcmp.gt.f32.partialorder %v5673_v9, 0.0  ;;  %v5929_v57 = vmul.f32 0.2, %v5673_v9  ;;  %v5688_v56 = vadd.f32 %v11298_v35, %v5519_v41  ;;  %v5521_v61 = vmul.f32 %v11119_v49, %v12545_v18  ;;  %v12554_v41 = vld [vmem:[#allocation125_spill] sm:$0xff] }
 0x6e2   :  { %v6049_v63 = vsel %vm5793_vm6, %v5665_v26, %v5921_v48  ;;  %6949 = vmatmul.mubr.bf16.gmra.mrb[160].mxu0 %v6143_v14  ;;  %vm5808_vm8 = vcmp.gt.f32.partialorder %v5680_v58, 0.0  ;;  %v5936_v29 = vmul.f32 0.2, %v5680_v58  ;;  %v5510_v39 = vmul.f32 %v12502_v24, %v12546_v55  ;;  %v12556_v55 = vld [vmem:[#allocation56_spill] sm:$0xff] }
 0x6e3   :  { %v6057_v52 = vsel %vm5801_vm7, %v5673_v9, %v5929_v57  ;;  %vm5816_vm9 = vcmp.gt.f32.partialorder %v5688_v56, 0.0  ;;  %v5944_v33 = vmul.f32 0.2, %v5688_v56  ;;  %v5682_v13 = vadd.f32 %v12503_v50, %v5513_v34  ;;  %v12552_v9 = vld [vmem:[#allocation127_spill] sm:$0xff]  ;;  %v12555_v34 = vld [vmem:[#allocation128_spill] sm:$0xff] }
 0x6e4   :  { %v6145_v5 = vpack.c.bf16 %v6057_v52, %v6049_v63  ;;  %v6064_v17 = vsel %vm5808_vm8, %v5680_v58, %v5936_v29  ;;  %v5690_v45 = vadd.f32 %v12503_v50, %v5521_v61  ;;  %v5518_v10 = vmul.f32 %v12502_v24, %v12547_v21  ;;  %v12557_v21 = vld [vmem:[#allocation129_spill] sm:$0xff] }
 0x6e5   :  { %v5679_v59 = vadd.f32 %v12505_v15, %v5510_v39  ;;  %v6072_v53 = vsel %vm5816_vm9, %v5688_v56, %v5944_v33  ;;  %vm5810_vm10 = vcmp.gt.f32.partialorder %v5682_v13, 0.0  ;;  %v5938_v4 = vmul.f32 0.2, %v5682_v13 }
 0x6e6   :  { %7046 = vmatmul.mubr.bf16.gmra.mrb[176].mxu1 %v6145_v5  ;;  %v5512_v32 = vmul.f32 %v12507_v12, %v12548_v3  ;;  %v6152_v28 = vpack.c.bf16 %v6072_v53, %v6064_v17  ;;  %vm5818_vm11 = vcmp.gt.f32.partialorder %v5690_v45, 0.0  ;;  %v5946_v54 = vmul.f32 0.2, %v5690_v45 }
 0x6e7   :  { %v5687_v46 = vadd.f32 %v12505_v15, %v5518_v10  ;;  %v6066_v0 = vsel %vm5810_vm10, %v5682_v13, %v5938_v4  ;;  %vm5807_vm12 = vcmp.gt.f32.partialorder %v5679_v59, 0.0  ;;  %v5935_v43 = vmul.f32 0.2, %v5679_v59 }
 0x6e8   :  { %v5520_v8 = vmul.f32 %v12507_v12, %v12549_v27  ;;  %6956 = vmatprep.mubr.bf16.mxu0 %v6152_v28  ;;  %v6074_v1 = vsel %vm5818_vm11, %v5690_v45, %v5946_v54  ;;  %v5681_v36 = vadd.f32 %v12509_v62, %v5512_v32  ;;  %v5527_v22 = vmul.f32 %v11111_v37, %v12550_v16  ;;  %v12558_v54 = vld [vmem:[#allocation58_spill] sm:$0xff]  ;;  %v12559_v27 = vld [vmem:[#allocation65_spill] sm:$0xff] }
 0x6e9   :  { %vm5815_vm13 = vcmp.gt.f32.partialorder %v5687_v46, 0.0  ;;  %v5943_v25 = vmul.f32 0.2, %v5687_v46  ;;  %v6154_v30 = vpack.c.bf16 %v6074_v1, %v6066_v0  ;;  %v6063_v7 = vsel %vm5807_vm12, %v5679_v59, %v5935_v43 }
 0x6ea   :  { %v5689_v6 = vadd.f32 %v12509_v62, %v5520_v8  ;;  %vm5809_vm14 = vcmp.gt.f32.partialorder %v5681_v36, 0.0  ;;  %v5937_v2 = vmul.f32 0.2, %v5681_v36  ;;  %v5535_v19 = vmul.f32 %v11111_v37, %v12551_v20 }
 0x6eb   :  { %v6071_v47 = vsel %vm5815_vm13, %v5687_v46, %v5943_v25  ;;  %7053 = vmatprep.mubr.bf16.mxu1 %v6154_v30  ;;  %v5696_v26 = vadd.f32 %v11298_v35, %v5527_v22  ;;  %v5529_v51 = vmul.f32 %v11119_v49, %v12552_v9  ;;  %v5537_v44 = vmul.f32 %v11119_v49, %v12553_v40  ;;  %v12561_v22 = vld [vmem:[#allocation86_spill] sm:$0xff]  ;;  %v12564_v40 = vld [vmem:[#allocation55_spill] sm:$0xff] }
 0x6ec   :  { %v6151_v38 = vpack.c.bf16 %v6071_v47, %v6063_v7  ;;  %vm5817_vm15 = vcmp.gt.f32.partialorder %v5689_v6, 0.0  ;;  %v5945_v11 = vmul.f32 0.2, %v5689_v6  ;;  %v6065_v42 = vsel %vm5809_vm14, %v5681_v36, %v5937_v2 }
 0x6ed   :  { %v5704_v60 = vadd.f32 %v11298_v35, %v5535_v19  ;;  %vm5824_vm0 = vcmp.gt.f32.partialorder %v5696_v26, 0.0  ;;  %v5952_v23 = vmul.f32 0.2, %v5696_v26  ;;  %v5526_v14 = vmul.f32 %v12502_v24, %v12554_v41 }
 0x6ee   :  { %6957 = vmatmul.mubr.bf16.gmra.mrb[164].mxu0 %v6151_v38  ;;  %v6073_v48 = vsel %vm5817_vm15, %v5689_v6, %v5945_v11  ;;  %v5698_v63 = vadd.f32 %v12503_v50, %v5529_v51  ;;  %v5706_v31 = vadd.f32 %v12503_v50, %v5537_v44  ;;  %v5534_v18 = vmul.f32 %v12502_v24, %v12555_v34  ;;  %v12560_v6 = vld [vmem:[#allocation63_spill] sm:$0xff] }
 0x6ef   :  { %v6153_v57 = vpack.c.bf16 %v6073_v48, %v6065_v42  ;;  %vm5832_vm1 = vcmp.gt.f32.partialorder %v5704_v60, 0.0  ;;  %v5960_v58 = vmul.f32 0.2, %v5704_v60  ;;  %v6080_v56 = vsel %vm5824_vm0, %v5696_v26, %v5952_v23 }
 0x6f0   :  { %v5695_v61 = vadd.f32 %v12505_v15, %v5526_v14  ;;  %vm5826_vm2 = vcmp.gt.f32.partialorder %v5698_v63, 0.0  ;;  %v5954_v29 = vmul.f32 0.2, %v5698_v63  ;;  %v5528_v39 = vmul.f32 %v12507_v12, %v12556_v55  ;;  %v12565_v14 = vld [vmem:[#allocation61_spill] sm:$0xff] }
 0x6f1   :  { %7054 = vmatmul.mubr.bf16.gmra.mrb[180].mxu1 %v6153_v57  ;;  %v6088_v52 = vsel %vm5832_vm1, %v5704_v60, %v5960_v58  ;;  %vm5834_vm3 = vcmp.gt.f32.partialorder %v5706_v31, 0.0  ;;  %v5962_v33 = vmul.f32 0.2, %v5706_v31  ;;  %v5703_v13 = vadd.f32 %v12505_v15, %v5534_v18 }
 0x6f2   :  { %v6160_v5 = vpack.c.bf16 %v6088_v52, %v6080_v56  ;;  %v6082_v17 = vsel %vm5826_vm2, %v5698_v63, %v5954_v29  ;;  %vm5823_vm4 = vcmp.gt.f32.partialorder %v5695_v61, 0.0  ;;  %v5951_v45 = vmul.f32 0.2, %v5695_v61 }
 0x6f3   :  { %v5536_v10 = vmul.f32 %v12507_v12, %v12557_v21  ;;  %v6090_v59 = vsel %vm5834_vm3, %v5706_v31, %v5962_v33  ;;  %vm5831_vm5 = vcmp.gt.f32.partialorder %v5703_v13, 0.0  ;;  %v5959_v53 = vmul.f32 0.2, %v5703_v13 }
 0x6f4   :  { %6964 = vmatprep.mubr.bf16.mxu0 %v6160_v5  ;;  %v5697_v4 = vadd.f32 %v12509_v62, %v5528_v39  ;;  %v6162_v3 = vpack.c.bf16 %v6090_v59, %v6082_v17  ;;  %v6079_v32 = vsel %vm5823_vm4, %v5695_v61, %v5951_v45  ;;  %v5543_v46 = vmul.f32 %v11111_v37, %v12558_v54  ;;  %v11661_v5 = vld [vmem:[%s11755_s13] ss:$0 sm:$0xff]  ;;  %s8472_s13 = smov [#allocation16]  }
 0x6f5   :  { %v5705_v28 = vadd.f32 %v12509_v62, %v5536_v10  ;;  %v6087_v0 = vsel %vm5831_vm5, %v5703_v13, %v5959_v53  ;;  %v5551_v8 = vmul.f32 %v11111_v37, %v12559_v27  ;;  %v5545_v16 = vmul.f32 %v11119_v49, %v12560_v6  ;;  %v12563_v49 = vld [vmem:[#allocation57_spill] sm:$0xff]  ;;  %s7115_s28 = sshll.u32 %s8472_s13, 4  ;;  %s7116_s28 = int_to_ptr.vmem [resolvable:$true] %s7115_s28 }
 0x6f6   :  { %vm5825_vm6 = vcmp.gt.f32.partialorder %v5697_v4, 0.0  ;;  %v5953_v43 = vmul.f32 0.2, %v5697_v4  ;;  %7061 = vmatprep.mubr.bf16.mxu1 %v6162_v3  ;;  %v6159_v1 = vpack.c.bf16 %v6087_v0, %v6079_v32  ;;  %v5712_v36 = vadd.f32 %v11298_v35, %v5543_v46  ;;  %s8420_s23 = scalar_lea.vmem %s7116_s28, 2048  ;;  %p8425_p9 = scmp.lt.s32.totalorder %s7116_s28, %s7116_s28 }
 0x6f7   :  { %vm5833_vm7 = vcmp.gt.f32.partialorder %v5705_v28, 0.0  ;;  %v5961_v25 = vmul.f32 0.2, %v5705_v28  ;;  %v5720_v7 = vadd.f32 %v11298_v35, %v5551_v8  ;;  %vm5850_vm8 = vcmp.gt.f32.partialorder %v12561_v22, 0.0  ;;  %v12562_v35 = vld [vmem:[#allocation131_spill] sm:$0xff]  ;;  %p8421_p8 = scmp.ne.s32.totalorder %s7116_s28, %s8420_s23  ;;  %p8426_p10 = scmp.lt.s32.totalorder %s8420_s23, %s8420_s23 }
 0x6f8   :  { %v6081_v30 = vsel %vm5825_vm6, %v5697_v4, %v5953_v43  ;;  %6965 = vmatmul.mubr.bf16.gmra.mrb[168].mxu0 %v6159_v1  ;;  %vm5840_vm9 = vcmp.gt.f32.partialorder %v5712_v36, 0.0  ;;  %v5968_v2 = vmul.f32 0.2, %v5712_v36  ;;  %v5978_v37 = vmul.f32 0.2, %v12561_v22 }
 0x6f9   :  { %v6089_v47 = vsel %vm5833_vm7, %v5705_v28, %v5961_v25  ;;  %vm5848_vm10 = vcmp.gt.f32.partialorder %v5720_v7, 0.0  ;;  %v5976_v19 = vmul.f32 0.2, %v5720_v7  ;;  %v5714_v38 = vadd.f32 %v12503_v50, %v5545_v16  ;;  %p8427_p11 = por %p8426_p10, %p8425_p9 }
 0x6fa   :  { %v6161_v20 = vpack.c.bf16 %v6089_v47, %v6081_v30  ;;  %v6096_v11 = vsel %vm5840_vm9, %v5712_v36, %v5968_v2  ;;  %v6106_v26 = vsel %vm5850_vm8, %v12561_v22, %v5978_v37  ;;  %v5542_v42 = vmul.f32 %v12502_v24, %v12562_v35 }
 0x6fb   :  { %v5550_v60 = vmul.f32 %v12502_v24, %v12563_v49  ;;  %v6104_v9 = vsel %vm5848_vm10, %v5720_v7, %v5976_v19  ;;  %vm5842_vm11 = vcmp.gt.f32.partialorder %v5714_v38, 0.0  ;;  %v5970_v51 = vmul.f32 0.2, %v5714_v38  ;;  %p8428_p12 = pnand %p8427_p11, %p8421_p8 }
 0x6fc   :  { %7062 = vmatmul.mubr.bf16.gmra.mrb[184].mxu1 %v6161_v20  ;;  %v5544_v44 = vmul.f32 %v12507_v12, %v12564_v40  ;;  %v6168_v48 = vpack.c.bf16 %v6104_v9, %v6096_v11  ;;  %v5711_v23 = vadd.f32 %v12505_v15, %v5542_v42  ;;  %v5552_v57 = vmul.f32 %v12507_v12, %v12565_v14 }
 0x6fd   :  { %v5719_v50 = vadd.f32 %v12505_v15, %v5550_v60  ;;  %v6098_v41 = vsel %vm5842_vm11, %v5714_v38, %v5970_v51 }
 0x6fe   :  { %v5713_v58 = vadd.f32 %v12509_v62, %v5544_v44  ;;  %6972 = vmatprep.mubr.bf16.mxu0 %v6168_v48  ;;  %v6170_v24 = vpack.c.bf16 %v6106_v26, %v6098_v41  ;;  %vm5839_vm12 = vcmp.gt.f32.partialorder %v5711_v23, 0.0  ;;  %v5967_v63 = vmul.f32 0.2, %v5711_v23 }
 0x6ff   :  { %vm5847_vm13 = vcmp.gt.f32.partialorder %v5719_v50, 0.0  ;;  %v5975_v56 = vmul.f32 0.2, %v5719_v50  ;;  %v5721_v31 = vadd.f32 %v12509_v62, %v5552_v57 }
 0x700   :  { %vm5841_vm14 = vcmp.gt.f32.partialorder %v5713_v58, 0.0  ;;  %v5969_v34 = vmul.f32 0.2, %v5713_v58  ;;  %7069 = vmatprep.mubr.bf16.mxu1 %v6170_v24  ;;  %v6095_v18 = vsel %vm5839_vm12, %v5711_v23, %v5967_v63 }
 0x701   :  { %v6103_v61 = vsel %vm5847_vm13, %v5719_v50, %v5975_v56  ;;  %vm5849_vm15 = vcmp.gt.f32.partialorder %v5721_v31, 0.0  ;;  %v5977_v15 = vmul.f32 0.2, %v5721_v31 }
 0x702   :  { %v6097_v52 = vsel %vm5841_vm14, %v5713_v58, %v5969_v34  ;;  %v6167_v29 = vpack.c.bf16 %v6103_v61, %v6095_v18 }
 0x703   :  { %v6105_v12 = vsel %vm5849_vm15, %v5721_v31, %v5977_v15 }
 0x704   :  { %6973 = vmatmul.mubr.bf16.gmra.mrb[172].mxu0 %v6167_v29  ;;  %v6169_v55 = vpack.c.bf16 %v6105_v12, %v6097_v52 }
 0x706   :  { %7070 = vmatmul.mubr.bf16.gmra.mrb[188].mxu1 %v6169_v55 }
 0x739   :  { %v7573_v39 = vpop.f32.mrb[112].mxu0 }
 0x73a   :  { %v7574_v62 = vpop.f32.mrb[113].mxu0 }
 0x73b   :  { %v7637_v33 = vpop.f32.mrb[128].mxu1  ;;  %v7575_v13 = vadd.f32 %v7574_v62, %v7573_v39  ;;  %v7576_v17 = vpop.f32.mrb[114].mxu0 }
 0x73c   :  { %v7638_v45 = vpop.f32.mrb[129].mxu1  ;;  %v7577_v21 = vpop.f32.mrb[115].mxu0 }
 0x73d   :  { %v6725_v10 = vadd.f32 %v7575_v13, %v11661_v5  ;;  %v7639_v59 = vadd.f32 %v7638_v45, %v7637_v33  ;;  %v7640_v53 = vpop.f32.mrb[130].mxu1  ;;  %v7578_v4 = vadd.f32 %v7577_v21, %v7576_v17 }
 0x73e   :  { %v7641_v3 = vpop.f32.mrb[131].mxu1 }
 0x73f   :  { %v11664_v32 = vadd.f32 %v7639_v59, %v6725_v10  ;;  %v6728_v28 = vadd.f32 %v7578_v4, %v11661_v5  ;;  %v7642_v54 = vadd.f32 %v7641_v3, %v7640_v53 }
 0x741   :  { %v11667_v46 = vadd.f32 %v7642_v54, %v6728_v28 }
 0x742   :  { %v7579_v0 = vpop.f32.mrb[116].mxu0 }
 0x743   :  { %v7580_v43 = vpop.f32.mrb[117].mxu0 }
 0x744   :  { %v7643_v27 = vpop.f32.mrb[132].mxu1  ;;  %v7581_v8 = vadd.f32 %v7580_v43, %v7579_v0  ;;  %v7582_v1 = vpop.f32.mrb[118].mxu0 }
 0x745   :  { %v7644_v25 = vpop.f32.mrb[133].mxu1  ;;  %v7583_v36 = vpop.f32.mrb[119].mxu0 }
 0x746   :  { %v6733_v30 = vadd.f32 %v7581_v8, %v11661_v5  ;;  %v7645_v7 = vadd.f32 %v7644_v25, %v7643_v27  ;;  %v7646_v6 = vpop.f32.mrb[134].mxu1  ;;  %v7584_v16 = vadd.f32 %v7583_v36, %v7582_v1 }
 0x747   :  { %v7647_v22 = vpop.f32.mrb[135].mxu1 }
 0x748   :  { %v11670_v47 = vadd.f32 %v7645_v7, %v6733_v30  ;;  %v6736_v2 = vadd.f32 %v7584_v16, %v11661_v5  ;;  %v7648_v37 = vadd.f32 %v7647_v22, %v7646_v6 }
 0x74a   :  { %v11673_v20 = vadd.f32 %v7648_v37, %v6736_v2 }
 0x74b   :  { %v7585_v19 = vpop.f32.mrb[120].mxu0 }
 0x74c   :  { %v7586_v11 = vpop.f32.mrb[121].mxu0 }
 0x74d   :  { %v7649_v38 = vpop.f32.mrb[136].mxu1  ;;  %v7587_v26 = vadd.f32 %v7586_v11, %v7585_v19  ;;  %v7588_v42 = vpop.f32.mrb[122].mxu0 }
 0x74e   :  { %v7650_v35 = vpop.f32.mrb[137].mxu1  ;;  %v7589_v9 = vpop.f32.mrb[123].mxu0 }
 0x74f   :  { %v7651_v49 = vadd.f32 %v7650_v35, %v7649_v38  ;;  %v7652_v60 = vpop.f32.mrb[138].mxu1  ;;  %v6741_v51 = vadd.f32 %v7587_v26, %v11661_v5  ;;  %v7590_v40 = vadd.f32 %v7589_v9, %v7588_v42 }
 0x750   :  { %v7653_v44 = vpop.f32.mrb[139].mxu1 }
 0x751   :  { %v7654_v48 = vadd.f32 %v7653_v44, %v7652_v60  ;;  %v11676_v23 = vadd.f32 %v7651_v49, %v6741_v51  ;;  %v6744_v50 = vadd.f32 %v7590_v40, %v11661_v5 }
 0x753   :  { %v11679_v41 = vadd.f32 %v7654_v48, %v6744_v50 }
 0x754   :  { %v7591_v14 = vpop.f32.mrb[124].mxu0 }
 0x755   :  { %v7655_v57 = vpop.f32.mrb[140].mxu1  ;;  %v7592_v58 = vpop.f32.mrb[125].mxu0 }
 0x756   :  { %v7593_v24 = vadd.f32 %v7592_v58, %v7591_v14  ;;  %v7656_v63 = vpop.f32.mrb[141].mxu1  ;;  %v7594_v56 = vpop.f32.mrb[126].mxu0 }
 0x757   :  { %v7657_v31 = vadd.f32 %v7656_v63, %v7655_v57  ;;  %v7658_v34 = vpop.f32.mrb[142].mxu1  ;;  %v7595_v18 = vpop.f32.mrb[127].mxu0 }
 0x758   :  { %v6749_v61 = vadd.f32 %v7593_v24, %v11661_v5  ;;  %v7596_v15 = vadd.f32 %v7595_v18, %v7594_v56  ;;  %v7659_v52 = vpop.f32.mrb[143].mxu1 }
 0x759   :  { %v7660_v29 = vadd.f32 %v7659_v52, %v7658_v34 }
 0x75a   :  { %v11682_v12 = vadd.f32 %v7657_v31, %v6749_v61  ;;  %v6752_v55 = vadd.f32 %v7596_v15, %v11661_v5 }
 0x75c   :  { %v11685_v39 = vadd.f32 %v7660_v29, %v6752_v55 }
 0x75e   :  { %v7597_v62 = vpop.f32.mrb[128].mxu0 }
 0x75f   :  { %v7598_v33 = vpop.f32.mrb[129].mxu0 }
 0x760   :  { %v7599_v13 = vadd.f32 %v7598_v33, %v7597_v62  ;;  %v7600_v17 = vpop.f32.mrb[130].mxu0 }
 0x761   :  { %v7661_v45 = vpop.f32.mrb[144].mxu1  ;;  %v7601_v21 = vpop.f32.mrb[131].mxu0 }
 0x762   :  { %v6757_v10 = vadd.f32 %v7599_v13, %v11661_v5  ;;  %v7662_v59 = vpop.f32.mrb[145].mxu1  ;;  %v7602_v53 = vadd.f32 %v7601_v21, %v7600_v17 }
 0x763   :  { %v7663_v4 = vadd.f32 %v7662_v59, %v7661_v45  ;;  %v7664_v3 = vpop.f32.mrb[146].mxu1 }
 0x764   :  { %v6760_v28 = vadd.f32 %v7602_v53, %v11661_v5  ;;  %v7665_v54 = vpop.f32.mrb[147].mxu1 }
 0x765   :  { %v11689_v0 = vadd.f32 %v7663_v4, %v6757_v10  ;;  %v7666_v43 = vadd.f32 %v7665_v54, %v7664_v3 }
 0x767   :  { %v11691_v27 = vadd.f32 %v7666_v43, %v6760_v28 }
 0x769   :  { %v7603_v8 = vpop.f32.mrb[132].mxu0 }
 0x76a   :  { %v7604_v1 = vpop.f32.mrb[133].mxu0 }
 0x76b   :  { %v7605_v25 = vadd.f32 %v7604_v1, %v7603_v8  ;;  %v7606_v36 = vpop.f32.mrb[134].mxu0 }
 0x76c   :  { %v7667_v30 = vpop.f32.mrb[148].mxu1  ;;  %v7607_v7 = vpop.f32.mrb[135].mxu0 }
 0x76d   :  { %v6765_v6 = vadd.f32 %v7605_v25, %v11661_v5  ;;  %v7668_v16 = vpop.f32.mrb[149].mxu1  ;;  %v7608_v22 = vadd.f32 %v7607_v7, %v7606_v36 }
 0x76e   :  { %v7669_v2 = vadd.f32 %v7668_v16, %v7667_v30  ;;  %v7670_v37 = vpop.f32.mrb[150].mxu1 }
 0x76f   :  { %v6768_v19 = vadd.f32 %v7608_v22, %v11661_v5  ;;  %v7671_v38 = vpop.f32.mrb[151].mxu1 }
 0x770   :  { %v11695_v11 = vadd.f32 %v7669_v2, %v6765_v6  ;;  %v7672_v26 = vadd.f32 %v7671_v38, %v7670_v37 }
 0x772   :  { %v11697_v35 = vadd.f32 %v7672_v26, %v6768_v19 }
 0x773   :  { %v7609_v42 = vpop.f32.mrb[136].mxu0 }
 0x774   :  { %v7610_v49 = vpop.f32.mrb[137].mxu0 }
 0x775   :  { %v7611_v60 = vadd.f32 %v7610_v49, %v7609_v42  ;;  %v7612_v9 = vpop.f32.mrb[138].mxu0 }
 0x776   :  { %v7613_v40 = vpop.f32.mrb[139].mxu0 }
 0x777   :  { %v7673_v51 = vpop.f32.mrb[152].mxu1  ;;  %v6773_v44 = vadd.f32 %v7611_v60, %v11661_v5  ;;  %v7614_v50 = vadd.f32 %v7613_v40, %v7612_v9 }
 0x778   :  { %v7674_v48 = vpop.f32.mrb[153].mxu1 }
 0x779   :  { %v7675_v14 = vadd.f32 %v7674_v48, %v7673_v51  ;;  %v7676_v57 = vpop.f32.mrb[154].mxu1  ;;  %v6776_v58 = vadd.f32 %v7614_v50, %v11661_v5 }
 0x77a   :  { %v7677_v24 = vpop.f32.mrb[155].mxu1 }
 0x77b   :  { %v11701_v63 = vadd.f32 %v7675_v14, %v6773_v44  ;;  %v7678_v56 = vadd.f32 %v7677_v24, %v7676_v57 }
 0x77d   :  { %v11703_v31 = vadd.f32 %v7678_v56, %v6776_v58 }
 0x77f   :  { %v7615_v34 = vpop.f32.mrb[140].mxu0 }
 0x780   :  { %v7616_v18 = vpop.f32.mrb[141].mxu0 }
 0x781   :  { %v7617_v61 = vadd.f32 %v7616_v18, %v7615_v34  ;;  %v7618_v15 = vpop.f32.mrb[142].mxu0 }
 0x782   :  { %v7679_v52 = vpop.f32.mrb[156].mxu1  ;;  %v7619_v29 = vpop.f32.mrb[143].mxu0 }
 0x783   :  { %v6781_v55 = vadd.f32 %v7617_v61, %v11661_v5  ;;  %v7680_v62 = vpop.f32.mrb[157].mxu1  ;;  %v7620_v33 = vadd.f32 %v7619_v29, %v7618_v15 }
 0x784   :  { %v7681_v13 = vadd.f32 %v7680_v62, %v7679_v52  ;;  %v7682_v17 = vpop.f32.mrb[158].mxu1 }
 0x785   :  { %v6784_v45 = vadd.f32 %v7620_v33, %v11661_v5  ;;  %v7683_v21 = vpop.f32.mrb[159].mxu1 }
 0x786   :  { %v11707_v10 = vadd.f32 %v7681_v13, %v6781_v55  ;;  %v7684_v59 = vadd.f32 %v7683_v21, %v7682_v17 }
 0x788   :  { %v11709_v53 = vadd.f32 %v7684_v59, %v6784_v45 }
 0x789   :  { %v7701_v4 = vpop.f32.mrb[144].mxu0 }
 0x78a   :  { %v7702_v3 = vpop.f32.mrb[145].mxu0 }
 0x78b   :  { %v7703_v28 = vadd.f32 %v7702_v3, %v7701_v4  ;;  %v7704_v54 = vpop.f32.mrb[146].mxu0 }
 0x78c   :  { %v7705_v8 = vpop.f32.mrb[147].mxu0 }
 0x78d   :  { %v7765_v43 = vpop.f32.mrb[160].mxu1  ;;  %v6919_v1 = vadd.f32 %v7703_v28, %v11664_v32  ;;  %v7706_v36 = vadd.f32 %v7705_v8, %v7704_v54 }
 0x78e   :  { %v7766_v25 = vpop.f32.mrb[161].mxu1 }
 0x78f   :  { %v7767_v30 = vadd.f32 %v7766_v25, %v7765_v43  ;;  %v7768_v7 = vpop.f32.mrb[162].mxu1  ;;  %v6922_v5 = vadd.f32 %v7706_v36, %v11667_v46 }
 0x790   :  { %v7769_v6 = vpop.f32.mrb[163].mxu1 }
 0x791   :  { %v7016_v16 = vadd.f32 %v7767_v30, %v6919_v1  ;;  %v7770_v22 = vadd.f32 %v7769_v6, %v7768_v7 }
 0x793   :  { %8212 = vtanh.f32 %v7016_v16  ;;  %v7019_v2 = vadd.f32 %v7770_v22, %v6922_v5 }
 0x795   :  { %8214 = vtanh.f32 %v7019_v2  ;;  %v7707_v37 = vpop.f32.mrb[148].mxu0 }
 0x796   :  { %v7708_v19 = vpop.f32.mrb[149].mxu0 }
 0x797   :  { %v7709_v38 = vadd.f32 %v7708_v19, %v7707_v37  ;;  %v7710_v26 = vpop.f32.mrb[150].mxu0 }
 0x798   :  { %v7771_v42 = vpop.f32.mrb[164].mxu1  ;;  %v7711_v49 = vpop.f32.mrb[151].mxu0 }
 0x799   :  { %v6927_v32 = vadd.f32 %v7709_v38, %v11670_v47  ;;  %v7772_v60 = vpop.f32.mrb[165].mxu1  ;;  %v7712_v9 = vadd.f32 %v7711_v49, %v7710_v26 }
 0x79a   :  { %v7773_v51 = vadd.f32 %v7772_v60, %v7771_v42  ;;  %v7774_v40 = vpop.f32.mrb[166].mxu1 }
 0x79b   :  { %v6930_v46 = vadd.f32 %v7712_v9, %v11673_v20  ;;  %v7775_v44 = vpop.f32.mrb[167].mxu1 }
 0x79c   :  { %v7024_v48 = vadd.f32 %v7773_v51, %v6927_v32  ;;  %v7776_v50 = vadd.f32 %v7775_v44, %v7774_v40 }
 0x79d   :  { %v8213_v14 = vpop.eup %8212 }
 0x79e   :  { %7094 = vst [vmem:[#allocation16] sm:$0xff] %v8213_v14  ;;  %8216 = vtanh.f32 %v7024_v48  ;;  %v7027_v57 = vadd.f32 %v7776_v50, %v6930_v46 }
 0x79f   :  { %v8215_v58 = vpop.eup %8214  ;;  %v7713_v24 = vpop.f32.mrb[152].mxu0 }
 0x7a0   :  { %7095 = vst [vmem:[#allocation16 + $0x8] sm:$0xff] %v8215_v58  ;;  %8218 = vtanh.f32 %v7027_v57  ;;  %v7714_v56 = vpop.f32.mrb[153].mxu0 }
 0x7a1   :  { %v7715_v34 = vadd.f32 %v7714_v56, %v7713_v24  ;;  %v7716_v47 = vpop.f32.mrb[154].mxu0 }
 0x7a2   :  { %v7717_v61 = vpop.f32.mrb[155].mxu0 }
 0x7a3   :  { %v7777_v18 = vpop.f32.mrb[168].mxu1  ;;  %v6935_v15 = vadd.f32 %v7715_v34, %v11676_v23  ;;  %v7718_v20 = vadd.f32 %v7717_v61, %v7716_v47 }
 0x7a4   :  { %v7778_v52 = vpop.f32.mrb[169].mxu1 }
 0x7a5   :  { %v7779_v29 = vadd.f32 %v7778_v52, %v7777_v18  ;;  %v7780_v55 = vpop.f32.mrb[170].mxu1  ;;  %v6938_v62 = vadd.f32 %v7718_v20, %v11679_v41 }
 0x7a6   :  { %v7781_v33 = vpop.f32.mrb[171].mxu1 }
 0x7a7   :  { %v7032_v13 = vadd.f32 %v7779_v29, %v6935_v15  ;;  %v7782_v17 = vadd.f32 %v7781_v33, %v7780_v55 }
 0x7a8   :  { %v8217_v45 = vpop.eup %8216 }
 0x7a9   :  { %7096 = vst [vmem:[#allocation16 + $0x10] sm:$0xff] %v8217_v45  ;;  %8220 = vtanh.f32 %v7032_v13  ;;  %v7035_v21 = vadd.f32 %v7782_v17, %v6938_v62 }
 0x7aa   :  { %v8219_v59 = vpop.eup %8218 }
 0x7ab   :  { %7097 = vst [vmem:[#allocation16 + $0x18] sm:$0xff] %v8219_v59  ;;  %8222 = vtanh.f32 %v7035_v21  ;;  %v7719_v4 = vpop.f32.mrb[156].mxu0 }
 0x7ac   :  { %v7720_v3 = vpop.f32.mrb[157].mxu0 }
 0x7ad   :  { %v7721_v28 = vadd.f32 %v7720_v3, %v7719_v4  ;;  %v7722_v23 = vpop.f32.mrb[158].mxu0 }
 0x7ae   :  { %v7783_v54 = vpop.f32.mrb[172].mxu1  ;;  %v7723_v43 = vpop.f32.mrb[159].mxu0 }
 0x7af   :  { %v6943_v8 = vadd.f32 %v7721_v28, %v11682_v12  ;;  %v7784_v1 = vpop.f32.mrb[173].mxu1  ;;  %v7724_v41 = vadd.f32 %v7723_v43, %v7722_v23 }
 0x7b0   :  { %v7785_v25 = vadd.f32 %v7784_v1, %v7783_v54  ;;  %v7786_v36 = vpop.f32.mrb[174].mxu1 }
 0x7b1   :  { %v6946_v30 = vadd.f32 %v7724_v41, %v11685_v39  ;;  %v7787_v7 = vpop.f32.mrb[175].mxu1 }
 0x7b2   :  { %v7040_v5 = vadd.f32 %v7785_v25, %v6943_v8  ;;  %v7788_v6 = vadd.f32 %v7787_v7, %v7786_v36 }
 0x7b3   :  { %v8221_v16 = vpop.eup %8220 }
 0x7b4   :  { %7098 = vst [vmem:[#allocation16 + $0x20] sm:$0xff] %v8221_v16  ;;  %8224 = vtanh.f32 %v7040_v5  ;;  %v7043_v22 = vadd.f32 %v7788_v6, %v6946_v30 }
 0x7b5   :  { %v8223_v2 = vpop.eup %8222  ;;  %v7725_v37 = vpop.f32.mrb[160].mxu0 }
 0x7b6   :  { %7099 = vst [vmem:[#allocation16 + $0x28] sm:$0xff] %v8223_v2  ;;  %8226 = vtanh.f32 %v7043_v22  ;;  %v7726_v19 = vpop.f32.mrb[161].mxu0 }
 0x7b7   :  { %v7727_v38 = vadd.f32 %v7726_v19, %v7725_v37  ;;  %v7728_v12 = vpop.f32.mrb[162].mxu0 }
 0x7b8   :  { %v7729_v42 = vpop.f32.mrb[163].mxu0 }
 0x7b9   :  { %v7789_v26 = vpop.f32.mrb[176].mxu1  ;;  %v6951_v49 = vadd.f32 %v7727_v38, %v11689_v0  ;;  %v7730_v39 = vadd.f32 %v7729_v42, %v7728_v12 }
 0x7ba   :  { %v7790_v32 = vpop.f32.mrb[177].mxu1 }
 0x7bb   :  { %v7791_v60 = vadd.f32 %v7790_v32, %v7789_v26  ;;  %v7792_v9 = vpop.f32.mrb[178].mxu1  ;;  %v6954_v51 = vadd.f32 %v7730_v39, %v11691_v27 }
 0x7bc   :  { %v7793_v40 = vpop.f32.mrb[179].mxu1 }
 0x7bd   :  { %v7048_v46 = vadd.f32 %v7791_v60, %v6951_v49  ;;  %v7794_v44 = vadd.f32 %v7793_v40, %v7792_v9 }
 0x7be   :  { %v8225_v48 = vpop.eup %8224 }
 0x7bf   :  { %7100 = vst [vmem:[#allocation16 + $0x30] sm:$0xff] %v8225_v48  ;;  %8228 = vtanh.f32 %v7048_v46  ;;  %v7051_v50 = vadd.f32 %v7794_v44, %v6954_v51 }
 0x7c0   :  { %v8227_v14 = vpop.eup %8226 }
 0x7c1   :  { %7101 = vst [vmem:[#allocation16 + $0x38] sm:$0xff] %v8227_v14  ;;  %8230 = vtanh.f32 %v7051_v50  ;;  %v7731_v57 = vpop.f32.mrb[164].mxu0 }
 0x7c2   :  { %v7732_v58 = vpop.f32.mrb[165].mxu0 }
 0x7c3   :  { %v7733_v24 = vadd.f32 %v7732_v58, %v7731_v57  ;;  %v7734_v0 = vpop.f32.mrb[166].mxu0 }
 0x7c4   :  { %v7795_v56 = vpop.f32.mrb[180].mxu1  ;;  %v7735_v34 = vpop.f32.mrb[167].mxu0 }
 0x7c5   :  { %v6959_v47 = vadd.f32 %v7733_v24, %v11695_v11  ;;  %v7796_v18 = vpop.f32.mrb[181].mxu1  ;;  %v7736_v27 = vadd.f32 %v7735_v34, %v7734_v0 }
 0x7c6   :  { %v7797_v61 = vadd.f32 %v7796_v18, %v7795_v56  ;;  %v7798_v15 = vpop.f32.mrb[182].mxu1 }
 0x7c7   :  { %v6962_v52 = vadd.f32 %v7736_v27, %v11697_v35  ;;  %v7799_v20 = vpop.f32.mrb[183].mxu1 }
 0x7c8   :  { %v7056_v29 = vadd.f32 %v7797_v61, %v6959_v47  ;;  %v7800_v55 = vadd.f32 %v7799_v20, %v7798_v15 }
 0x7c9   :  { %v8229_v62 = vpop.eup %8228 }
 0x7ca   :  { %7102 = vst [vmem:[#allocation16 + $0x40] sm:$0xff] %v8229_v62  ;;  %8232 = vtanh.f32 %v7056_v29  ;;  %v7059_v33 = vadd.f32 %v7800_v55, %v6962_v52 }
 0x7cb   :  { %v8231_v13 = vpop.eup %8230  ;;  %v7737_v17 = vpop.f32.mrb[168].mxu0 }
 0x7cc   :  { %7103 = vst [vmem:[#allocation16 + $0x48] sm:$0xff] %v8231_v13  ;;  %8234 = vtanh.f32 %v7059_v33  ;;  %v7738_v45 = vpop.f32.mrb[169].mxu0 }
 0x7cd   :  { %v7739_v21 = vadd.f32 %v7738_v45, %v7737_v17  ;;  %v7740_v11 = vpop.f32.mrb[170].mxu0 }
 0x7ce   :  { %v7741_v4 = vpop.f32.mrb[171].mxu0 }
 0x7cf   :  { %v7801_v59 = vpop.f32.mrb[184].mxu1  ;;  %v6967_v3 = vadd.f32 %v7739_v21, %v11701_v63  ;;  %v7742_v35 = vadd.f32 %v7741_v4, %v7740_v11 }
 0x7d0   :  { %v7802_v28 = vpop.f32.mrb[185].mxu1 }
 0x7d1   :  { %v7803_v23 = vadd.f32 %v7802_v28, %v7801_v59  ;;  %v7804_v54 = vpop.f32.mrb[186].mxu1  ;;  %v6970_v43 = vadd.f32 %v7742_v35, %v11703_v31 }
 0x7d2   :  { %v7805_v8 = vpop.f32.mrb[187].mxu1 }
 0x7d3   :  { %v7064_v1 = vadd.f32 %v7803_v23, %v6967_v3  ;;  %v7806_v41 = vadd.f32 %v7805_v8, %v7804_v54 }
 0x7d4   :  { %v8233_v25 = vpop.eup %8232 }
 0x7d5   :  { %7104 = vst [vmem:[#allocation16 + $0x50] sm:$0xff] %v8233_v25  ;;  %8236 = vtanh.f32 %v7064_v1  ;;  %v7067_v36 = vadd.f32 %v7806_v41, %v6970_v43 }
 0x7d6   :  { %v8235_v30 = vpop.eup %8234 }
 0x7d7   :  { %7105 = vst [vmem:[#allocation16 + $0x58] sm:$0xff] %v8235_v30  ;;  %8238 = vtanh.f32 %v7067_v36  ;;  %v7743_v7 = vpop.f32.mrb[172].mxu0 }
 0x7d8   :  { %v7744_v5 = vpop.f32.mrb[173].mxu0 }
 0x7d9   :  { %v7807_v6 = vpop.f32.mrb[188].mxu1  ;;  %v7745_v63 = vadd.f32 %v7744_v5, %v7743_v7  ;;  %v7746_v16 = vpop.f32.mrb[174].mxu0 }
 0x7da   :  { %v7808_v22 = vpop.f32.mrb[189].mxu1  ;;  %v7747_v2 = vpop.f32.mrb[175].mxu0 }
 0x7db   :  { %v6975_v37 = vadd.f32 %v7745_v63, %v11707_v10  ;;  %v7809_v31 = vadd.f32 %v7808_v22, %v7807_v6  ;;  %v7810_v19 = vpop.f32.mrb[190].mxu1  ;;  %v7748_v38 = vadd.f32 %v7747_v2, %v7746_v16 }
 0x7dc   :  { %v7811_v12 = vpop.f32.mrb[191].mxu1 }
 0x7dd   :  { %v7072_v26 = vadd.f32 %v7809_v31, %v6975_v37  ;;  %v6978_v42 = vadd.f32 %v7748_v38, %v11709_v53  ;;  %v7812_v49 = vadd.f32 %v7811_v12, %v7810_v19 }
 0x7df   :  { %v8237_v32 = vpop.eup %8236  ;;  %8240 = vtanh.f32 %v7072_v26  ;;  %v7075_v39 = vadd.f32 %v7812_v49, %v6978_v42 }
 0x7e0   :  { %7106 = vst [vmem:[#allocation16 + $0x60] sm:$0xff] %v8237_v32 }
 0x7e1   :  { %v8239_v60 = vpop.eup %8238  ;;  %8242 = vtanh.f32 %v7075_v39 }
 0x7e2   :  { %7107 = vst [vmem:[#allocation16 + $0x68] sm:$0xff] %v8239_v60 }
 0x7e9   :  { %v8241_v9 = vpop.eup %8240 }
 0x7ea   :  { %7108 = vst [vmem:[#allocation16 + $0x70] sm:$0xff] %v8241_v9 }
 0x7eb   :  { %v8243_v10 = vpop.eup %8242 }
 0x7ec   :  { %7109 = vst [vmem:[#allocation16 + $0x78] sm:$0xff] %v8243_v10 }
 0x7ed   :  { %8431 = shalt.err (!%p8428_p12)
}
 0x7ee   :  { %s8432_s26 = scalar_lea.hbm %s11756_s14, 2048 }
 0x7ef   :  { %p8433_p13 = scmp.ne.s32.totalorder %s11756_s14, %s8432_s26  ;;  %p8436_p0 = scmp.lt.u32.totalorder %s8432_s26, %s11756_s14 }
 0x7f1   :  { %p8438_p1 = pnand %p8436_p0, %p8433_p13 }
 0x7f3   :  { %8441 = shalt.err (!%p8438_p1)
}
 0x7f4   :  { %7121 = dma.vmem_to_hbm [thread:$0]  %s7116_s28, 2048, %s11756_s14, [#allocation4], %s8459_s30, %s8459_s30, %s8460_s25  }
 0x7f5   :  { %8452 = dma.done.wait [#allocation4], 2048  }
 0x7f6   :  { %8453 = vsyncadd [#allocation4], 4294965248 }
 0x7f7   :  { %7125 = vsyncpa [#allocation3], 1 }
 0x7f8   :  { %7126 = vsyncpa [#allocation6], 1 }
 0x7f9   :  { %7127 = vsyncpa [#allocation9], 1 }
 0x7fa   :  { %7128 = vsyncpa [#allocation12], 1 }
 0x7fb   :  { %7129 = vsyncpa [#allocation15], 1 }
 0x7fc   :  { %7130 = vsyncpa [#allocation4], 1 }

</bundles_post_ra>
